<compile_context>
chip_gen: v5e
topology: v5e:2x2
jax: 0.10.0
libtpu: 0.0.40
codegen_flags: <defaults>
</compile_context>

<pallas_src>
import functools

import jax
import jax.numpy as jnp
from jax.experimental import pallas as pl
from jax.experimental.pallas import tpu as pltpu


# --------------------------------------------------------------------------
# Fused kernel: one image per grid step.
# --------------------------------------------------------------------------
def _fused_block_kernel(x_ref, w1_ref, s1_ref, b1_ref, w2_ref, s2_ref, b2_ref,
                        wu_ref, bu_ref, o_ref,
                        xp1, imc1, xp2, imc2, *, H, W, Cin, C):
    f32 = jnp.float32
    bf16 = jnp.bfloat16

    def conv3x3_bn_relu(xpad_ref, imc_ref, w_ref, s_ref, b_ref, cin):
        # Build the im2col operand once (K = 9*cin, bf16) -> single MXU matmul,
        # instead of 9 tiny matmuls + a VPU accumulation chain.
        xpad = xpad_ref[...]                                   # (H+2, W+2, cin) f32
        t = 0
        for ky in range(3):
            for kx in range(3):
                imc_ref[:, :, t * cin:(t + 1) * cin] = (
                    xpad[ky:ky + H, kx:kx + W, :].astype(bf16))
                t += 1
        patch = imc_ref[...].reshape(H * W, 9 * cin)           # bf16, free reshape
        y = jnp.dot(patch, w_ref[...], preferred_element_type=f32)   # (H*W, C) f32
        # folded BatchNorm (eval mode) + ReLU in f32
        return jnp.maximum(y * s_ref[...] + b_ref[...], 0.0)

    # ---- conv1 + BN1 + ReLU (padding handled in VMEM, no HBM jnp.pad) ----
    xp1[...] = jnp.zeros((H + 2, W + 2, Cin), f32)
    xp1[pl.ds(1, H), pl.ds(1, W), :] = x_ref[0].astype(f32)
    a1 = conv3x3_bn_relu(xp1, imc1, w1_ref, s1_ref, b1_ref, Cin)     # (H*W, C) f32

    # ---- conv2 + BN2 + ReLU (intermediate stays in VMEM) ----
    xp2[...] = jnp.zeros((H + 2, W + 2, C), f32)
    xp2[pl.ds(1, H), pl.ds(1, W), :] = a1.reshape(H, W, C)
    a2 = conv3x3_bn_relu(xp2, imc2, w2_ref, s2_ref, b2_ref, C)       # (H*W, C) f32

    # ---- ConvTranspose2d(k=2, s=2) + bias + ReLU: 4 taps fused in one matmul ----
    # wu_ref columns are ordered (ky, kx, c); since stride == kernel, tap (ky,kx)
    # writes output pixel (2i+ky, 2j+kx) exclusively.
    y = jnp.dot(a2.astype(bf16), wu_ref[...], preferred_element_type=f32)  # (H*W, 4C)
    y = jnp.maximum(y + bu_ref[...], 0.0)
    # single dense store of the whole block; (H*W, 4C) -> (H, W, 4C) is a free reshape
    o_ref[0, :, :, :] = y.reshape(H, W, 4 * C)


def _fused_forward(x_nhwc, w1, s1, b1, w2, s2, b2, wu4, bu4):
    N, H, W, Cin = x_nhwc.shape
    C = w1.shape[-1]
    kernel = functools.partial(_fused_block_kernel, H=H, W=W, Cin=Cin, C=C)

    flops = 2 * N * H * W * (9 * Cin * C + 9 * C * C + C * 4 * C)
    bytes_accessed = (N * H * W * Cin * 2                      # bf16 input
                      + (9 * Cin * C + 9 * C * C + C * 4 * C) * 2   # bf16 weights
                      + (2 * C + 2 * C + 4 * C) * 4            # scale/shift/bias f32
                      + N * H * W * 4 * C * 4)                 # f32 output

    return pl.pallas_call(
        kernel,
        out_shape=jax.ShapeDtypeStruct((N, H, W, 4 * C), jnp.float32),
        grid=(N,),
        in_specs=[
            pl.BlockSpec((1, H, W, Cin), lambda n: (n, 0, 0, 0)),
            pl.BlockSpec((9 * Cin, C), lambda n: (0, 0)),
            pl.BlockSpec((1, C), lambda n: (0, 0)),
            pl.BlockSpec((1, C), lambda n: (0, 0)),
            pl.BlockSpec((9 * C, C), lambda n: (0, 0)),
            pl.BlockSpec((1, C), lambda n: (0, 0)),
            pl.BlockSpec((1, C), lambda n: (0, 0)),
            pl.BlockSpec((C, 4 * C), lambda n: (0, 0)),
            pl.BlockSpec((1, 4 * C), lambda n: (0, 0)),
        ],
        out_specs=pl.BlockSpec((1, H, W, 4 * C), lambda n: (n, 0, 0, 0)),
        scratch_shapes=[
            pltpu.VMEM((H + 2, W + 2, Cin), jnp.float32),   # padded input for conv1
            pltpu.VMEM((H, W, 9 * Cin), jnp.bfloat16),      # im2col operand for conv1 (bf16)
            pltpu.VMEM((H + 2, W + 2, C), jnp.float32),     # padded activation for conv2
            pltpu.VMEM((H, W, 9 * C), jnp.bfloat16),        # im2col operand for conv2 (bf16)
        ],
        compiler_params=pltpu.CompilerParams(
            dimension_semantics=("parallel",),              # independent images -> megacore / 2 TCs
            vmem_limit_bytes=48 * 1024 * 1024,              # safe on v5e/v6e (128 MiB) and v7x (64 MiB)
        ),
        cost_estimate=pl.CostEstimate(flops=int(flops), transcendentals=0,
                                      bytes_accessed=int(bytes_accessed)),
    )(x_nhwc, w1, s1, b1, w2, s2, b2, wu4, bu4)


# --------------------------------------------------------------------------
# Module wrapper: NCHW in / NCHW out (PyTorch semantics). jit fuses all
# layout glue (transposes/reshapes/casts) into single copies.
# --------------------------------------------------------------------------
@jax.jit
def unet_expansion_block(x_up, x_down, params):
    x = jnp.concatenate([x_up, x_down], axis=1)                  # (N, Cin, H, W)
    x = jnp.transpose(x, (0, 2, 3, 1)).astype(jnp.bfloat16)      # NHWC, bf16 for HBM/MXU
    N, H, W, Cin = x.shape
    C = params["w1"].shape[-1]
    # conv weights: (3,3,Cin,C) -> (9*Cin, C), row order (ky, kx, cin) == im2col column order
    w1 = params["w1"].reshape(9 * Cin, C).astype(jnp.bfloat16)
    w2 = params["w2"].reshape(9 * C, C).astype(jnp.bfloat16)
    # upconv weights: (ky,kx,ci,co) -> (ci, 4*C) with column order (ky, kx, co)
    wu4 = jnp.transpose(params["wu"], (2, 0, 1, 3)).reshape(C, 4 * C).astype(jnp.bfloat16)
    bu4 = jnp.tile(params["bu"], (1, 4))                         # (1, 4C), same bias per tap
    out = _fused_forward(x, w1, params["scale1"], params["shift1"],
                         w2, params["scale2"], params["shift2"], wu4, bu4)
    # (N, H, W, 4C) -> (N, H, W, ky, kx, C) -> (N, C, H, ky, W, kx) -> NCHW 2x upsampled
    out = out.reshape(N, H, W, 2, 2, C)
    out = jnp.transpose(out, (0, 5, 1, 3, 2, 4))                 # single fused copy under jit
    return out.reshape(N, C, 2 * H, 2 * W)


# --------------------------------------------------------------------------
# Pure-JAX reference (mirrors the bf16 matmul inputs / f32 accumulation)
# --------------------------------------------------------------------------
def ref_forward(x_up, x_down, params):
    bf = lambda a: a.astype(jnp.bfloat16).astype(jnp.float32)    # emulate bf16 MXU operands
    x = jnp.concatenate([x_up, x_down], axis=1)
    x = jnp.transpose(x, (0, 2, 3, 1))
    for w, s, b in [(params["w1"], params["scale1"], params["shift1"]),
                    (params["w2"], params["scale2"], params["shift2"])]:
        y = jax.lax.conv_general_dilated(
            bf(x), bf(w), (1, 1), ((1, 1), (1, 1)),
            dimension_numbers=("NHWC", "HWIO", "NHWC"))
        x = jnp.maximum(y * s + b, 0.0)
    N, H, W, C = x.shape
    out = jnp.zeros((N, 2 * H, 2 * W, C), jnp.float32)
    for ky in range(2):
        for kx in range(2):
            t = jnp.einsum("nhwc,cd->nhwd", bf(x), bf(params["wu"][ky, kx])) + params["bu"][0]
            out = out.at[:, ky::2, kx::2, :].set(jnp.maximum(t, 0.0))
    return jnp.transpose(out, (0, 3, 1, 2))


def make_params(key, in_size, out_size):
    ks = jax.random.split(key, 12)
    eps = 1e-5

    def bn_fold(kg, kb, km, kv, c):
        gamma = jax.random.uniform(kg, (c,), minval=0.5, maxval=1.5)
        beta = jax.random.normal(kb, (c,)) * 0.1
        mean = jax.random.normal(km, (c,)) * 0.1
        var = jax.random.uniform(kv, (c,), minval=0.5, maxval=1.5)
        scale = gamma / jnp.sqrt(var + eps)
        shift = beta - mean * scale
        return scale.reshape(1, c).astype(jnp.float32), shift.reshape(1, c).astype(jnp.float32)

    w1 = (jax.random.normal(ks[0], (3, 3, in_size, out_size)) * 0.1).astype(jnp.float32)
    scale1, shift1 = bn_fold(ks[1], ks[2], ks[3], ks[4], out_size)
    w2 = (jax.random.normal(ks[5], (3, 3, out_size, out_size)) * 0.1).astype(jnp.float32)
    scale2, shift2 = bn_fold(ks[6], ks[7], ks[8], ks[9], out_size)
    wu = (jax.random.normal(ks[10], (2, 2, out_size, out_size)) * 0.1).astype(jnp.float32)
    bu = (jax.random.normal(ks[11], (1, out_size)) * 0.1).astype(jnp.float32)
    return dict(w1=w1, scale1=scale1, shift1=shift1,
                w2=w2, scale2=scale2, shift2=shift2,
                wu=wu, bu=bu)


if __name__ == "__main__":
    key = jax.random.PRNGKey(0)
    k_up, k_down, k_params = jax.random.split(key, 3)

    N, C_up, C_down, H, W = 2, 4, 4, 16, 16
    in_size, out_size = C_up + C_down, 8

    x_up = jax.random.normal(k_up, (N, C_up, H, W), jnp.float32)
    x_down = jax.random.normal(k_down, (N, C_down, H, W), jnp.float32)
    params = make_params(k_params, in_size, out_size)

    out = jax.block_until_ready(unet_expansion_block(x_up, x_down, params))
    assert out.shape == (N, out_size, 2 * H, 2 * W), out.shape

    ref = jax.block_until_ready(ref_forward(x_up, x_down, params))
    max_err = float(jnp.max(jnp.abs(out - ref)))
    assert jnp.allclose(out, ref, atol=5e-2, rtol=5e-2), max_err

    print("KERNEL_OK")
</pallas_src>

<mosaic_0001>
module attributes {stable_mosaic.version = 11 : i64} {
  func.func @_fused_block_kernel(%arg0: i32, %arg1: memref<1x16x16x8xbf16, #tpu.memory_space<vmem>>, %arg2: memref<72x8xbf16, #tpu.memory_space<vmem>>, %arg3: memref<1x8xf32, #tpu.memory_space<vmem>>, %arg4: memref<1x8xf32, #tpu.memory_space<vmem>>, %arg5: memref<72x8xbf16, #tpu.memory_space<vmem>>, %arg6: memref<1x8xf32, #tpu.memory_space<vmem>>, %arg7: memref<1x8xf32, #tpu.memory_space<vmem>>, %arg8: memref<8x32xbf16, #tpu.memory_space<vmem>>, %arg9: memref<1x32xf32, #tpu.memory_space<vmem>>, %arg10: memref<1x16x16x32xf32, #tpu.memory_space<vmem>>, %arg11: memref<18x18x8xf32, #tpu.memory_space<vmem>>, %arg12: memref<16x16x72xbf16, #tpu.memory_space<vmem>>, %arg13: memref<18x18x8xf32, #tpu.memory_space<vmem>>, %arg14: memref<16x16x72xbf16, #tpu.memory_space<vmem>>) attributes {dimension_semantics = [#tpu.dimension_semantics<parallel>], iteration_bounds = array<i64: 2>, scalar_prefetch = 0 : i64, scratch_operands = 4 : i64, tpu.core_type = #tpu.core_type<tc>, window_params = [{transform_indices = @transform_0, window_bounds = array<i64: 1, 16, 16, 8>}, {pipeline_mode = #tpu.pipeline_mode<synchronous>, transform_indices = @transform_1, window_bounds = array<i64: 72, 8>}, {pipeline_mode = #tpu.pipeline_mode<synchronous>, transform_indices = @transform_2, window_bounds = array<i64: 1, 8>}, {pipeline_mode = #tpu.pipeline_mode<synchronous>, transform_indices = @transform_3, window_bounds = array<i64: 1, 8>}, {pipeline_mode = #tpu.pipeline_mode<synchronous>, transform_indices = @transform_4, window_bounds = array<i64: 72, 8>}, {pipeline_mode = #tpu.pipeline_mode<synchronous>, transform_indices = @transform_5, window_bounds = array<i64: 1, 8>}, {pipeline_mode = #tpu.pipeline_mode<synchronous>, transform_indices = @transform_6, window_bounds = array<i64: 1, 8>}, {pipeline_mode = #tpu.pipeline_mode<synchronous>, transform_indices = @transform_7, window_bounds = array<i64: 8, 32>}, {pipeline_mode = #tpu.pipeline_mode<synchronous>, transform_indices = @transform_8, window_bounds = array<i64: 1, 32>}, {transform_indices = @transform_9, window_bounds = array<i64: 1, 16, 16, 32>}]} {
    %cst = arith.constant 0.000000e+00 : f32
    %0 = vector.broadcast %cst : f32 to vector<18x18x8xf32>
    %c0 = arith.constant 0 : index
    %c0_0 = arith.constant 0 : index
    %c0_1 = arith.constant 0 : index
    %1 = vector.load %arg11[%c0, %c0_0, %c0_1] : memref<18x18x8xf32, #tpu.memory_space<vmem>>, vector<18x18x8xf32>
    tpu.vector_store %arg11[%c0, %c0_0, %c0_1], %0 {strides = array<i32>} : memref<18x18x8xf32, #tpu.memory_space<vmem>>, vector<18x18x8xf32>,
    %c0_2 = arith.constant 0 : index
    %c0_3 = arith.constant 0 : index
    %c0_4 = arith.constant 0 : index
    %c0_5 = arith.constant 0 : index
    %2 = vector.load %arg1[%c0_2, %c0_3, %c0_4, %c0_5] : memref<1x16x16x8xbf16, #tpu.memory_space<vmem>>, vector<1x16x16x8xbf16>
    %3 = vector.shape_cast %2 : vector<1x16x16x8xbf16> to vector<16x16x8xbf16>
    %4 = arith.extf %3 : vector<16x16x8xbf16> to vector<16x16x8xf32>
    %c1 = arith.constant 1 : index
    %c1_6 = arith.constant 1 : index
    %c0_7 = arith.constant 0 : index
    %5 = vector.load %arg11[%c1, %c1_6, %c0_7] : memref<18x18x8xf32, #tpu.memory_space<vmem>>, vector<16x16x8xf32>
    tpu.vector_store %arg11[%c1, %c1_6, %c0_7], %4 {strides = array<i32>} : memref<18x18x8xf32, #tpu.memory_space<vmem>>, vector<16x16x8xf32>,
    %c0_8 = arith.constant 0 : index
    %c0_9 = arith.constant 0 : index
    %c0_10 = arith.constant 0 : index
    %6 = vector.load %arg11[%c0_8, %c0_9, %c0_10] : memref<18x18x8xf32, #tpu.memory_space<vmem>>, vector<18x18x8xf32>
    %7 = vector.extract_strided_slice %6 {offsets = [0, 0, 0], sizes = [16, 16, 8], strides = [1, 1, 1]} : vector<18x18x8xf32> to vector<16x16x8xf32>
    %8 = arith.truncf %7 : vector<16x16x8xf32> to vector<16x16x8xbf16>
    %c0_11 = arith.constant 0 : index
    %c0_12 = arith.constant 0 : index
    %c0_13 = arith.constant 0 : index
    %9 = vector.load %arg12[%c0_11, %c0_12, %c0_13] : memref<16x16x72xbf16, #tpu.memory_space<vmem>>, vector<16x16x8xbf16>
    tpu.vector_store %arg12[%c0_11, %c0_12, %c0_13], %8 {strides = array<i32>} : memref<16x16x72xbf16, #tpu.memory_space<vmem>>, vector<16x16x8xbf16>,
    %10 = vector.extract_strided_slice %6 {offsets = [0, 1, 0], sizes = [16, 16, 8], strides = [1, 1, 1]} : vector<18x18x8xf32> to vector<16x16x8xf32>
    %11 = arith.truncf %10 : vector<16x16x8xf32> to vector<16x16x8xbf16>
    %c0_14 = arith.constant 0 : index
    %c0_15 = arith.constant 0 : index
    %c8 = arith.constant 8 : index
    %12 = vector.load %arg12[%c0_14, %c0_15, %c8] : memref<16x16x72xbf16, #tpu.memory_space<vmem>>, vector<16x16x8xbf16>
    tpu.vector_store %arg12[%c0_14, %c0_15, %c8], %11 {strides = array<i32>} : memref<16x16x72xbf16, #tpu.memory_space<vmem>>, vector<16x16x8xbf16>,
    %13 = vector.extract_strided_slice %6 {offsets = [0, 2, 0], sizes = [16, 16, 8], strides = [1, 1, 1]} : vector<18x18x8xf32> to vector<16x16x8xf32>
    %14 = arith.truncf %13 : vector<16x16x8xf32> to vector<16x16x8xbf16>
    %c0_16 = arith.constant 0 : index
    %c0_17 = arith.constant 0 : index
    %c16 = arith.constant 16 : index
    %15 = vector.load %arg12[%c0_16, %c0_17, %c16] : memref<16x16x72xbf16, #tpu.memory_space<vmem>>, vector<16x16x8xbf16>
    tpu.vector_store %arg12[%c0_16, %c0_17, %c16], %14 {strides = array<i32>} : memref<16x16x72xbf16, #tpu.memory_space<vmem>>, vector<16x16x8xbf16>,
    %16 = vector.extract_strided_slice %6 {offsets = [1, 0, 0], sizes = [16, 16, 8], strides = [1, 1, 1]} : vector<18x18x8xf32> to vector<16x16x8xf32>
    %17 = arith.truncf %16 : vector<16x16x8xf32> to vector<16x16x8xbf16>
    %c0_18 = arith.constant 0 : index
    %c0_19 = arith.constant 0 : index
    %c24 = arith.constant 24 : index
    %18 = vector.load %arg12[%c0_18, %c0_19, %c24] : memref<16x16x72xbf16, #tpu.memory_space<vmem>>, vector<16x16x8xbf16>
    tpu.vector_store %arg12[%c0_18, %c0_19, %c24], %17 {strides = array<i32>} : memref<16x16x72xbf16, #tpu.memory_space<vmem>>, vector<16x16x8xbf16>,
    %19 = vector.extract_strided_slice %6 {offsets = [1, 1, 0], sizes = [16, 16, 8], strides = [1, 1, 1]} : vector<18x18x8xf32> to vector<16x16x8xf32>
    %20 = arith.truncf %19 : vector<16x16x8xf32> to vector<16x16x8xbf16>
    %c0_20 = arith.constant 0 : index
    %c0_21 = arith.constant 0 : index
    %c32 = arith.constant 32 : index
    %21 = vector.load %arg12[%c0_20, %c0_21, %c32] : memref<16x16x72xbf16, #tpu.memory_space<vmem>>, vector<16x16x8xbf16>
    tpu.vector_store %arg12[%c0_20, %c0_21, %c32], %20 {strides = array<i32>} : memref<16x16x72xbf16, #tpu.memory_space<vmem>>, vector<16x16x8xbf16>,
    %22 = vector.extract_strided_slice %6 {offsets = [1, 2, 0], sizes = [16, 16, 8], strides = [1, 1, 1]} : vector<18x18x8xf32> to vector<16x16x8xf32>
    %23 = arith.truncf %22 : vector<16x16x8xf32> to vector<16x16x8xbf16>
    %c0_22 = arith.constant 0 : index
    %c0_23 = arith.constant 0 : index
    %c40 = arith.constant 40 : index
    %24 = vector.load %arg12[%c0_22, %c0_23, %c40] : memref<16x16x72xbf16, #tpu.memory_space<vmem>>, vector<16x16x8xbf16>
    tpu.vector_store %arg12[%c0_22, %c0_23, %c40], %23 {strides = array<i32>} : memref<16x16x72xbf16, #tpu.memory_space<vmem>>, vector<16x16x8xbf16>,
    %25 = vector.extract_strided_slice %6 {offsets = [2, 0, 0], sizes = [16, 16, 8], strides = [1, 1, 1]} : vector<18x18x8xf32> to vector<16x16x8xf32>
    %26 = arith.truncf %25 : vector<16x16x8xf32> to vector<16x16x8xbf16>
    %c0_24 = arith.constant 0 : index
    %c0_25 = arith.constant 0 : index
    %c48 = arith.constant 48 : index
    %27 = vector.load %arg12[%c0_24, %c0_25, %c48] : memref<16x16x72xbf16, #tpu.memory_space<vmem>>, vector<16x16x8xbf16>
    tpu.vector_store %arg12[%c0_24, %c0_25, %c48], %26 {strides = array<i32>} : memref<16x16x72xbf16, #tpu.memory_space<vmem>>, vector<16x16x8xbf16>,
    %28 = vector.extract_strided_slice %6 {offsets = [2, 1, 0], sizes = [16, 16, 8], strides = [1, 1, 1]} : vector<18x18x8xf32> to vector<16x16x8xf32>
    %29 = arith.truncf %28 : vector<16x16x8xf32> to vector<16x16x8xbf16>
    %c0_26 = arith.constant 0 : index
    %c0_27 = arith.constant 0 : index
    %c56 = arith.constant 56 : index
    %30 = vector.load %arg12[%c0_26, %c0_27, %c56] : memref<16x16x72xbf16, #tpu.memory_space<vmem>>, vector<16x16x8xbf16>
    tpu.vector_store %arg12[%c0_26, %c0_27, %c56], %29 {strides = array<i32>} : memref<16x16x72xbf16, #tpu.memory_space<vmem>>, vector<16x16x8xbf16>,
    %31 = vector.extract_strided_slice %6 {offsets = [2, 2, 0], sizes = [16, 16, 8], strides = [1, 1, 1]} : vector<18x18x8xf32> to vector<16x16x8xf32>
    %32 = arith.truncf %31 : vector<16x16x8xf32> to vector<16x16x8xbf16>
    %c0_28 = arith.constant 0 : index
    %c0_29 = arith.constant 0 : index
    %c64 = arith.constant 64 : index
    %33 = vector.load %arg12[%c0_28, %c0_29, %c64] : memref<16x16x72xbf16, #tpu.memory_space<vmem>>, vector<16x16x8xbf16>
    tpu.vector_store %arg12[%c0_28, %c0_29, %c64], %32 {strides = array<i32>} : memref<16x16x72xbf16, #tpu.memory_space<vmem>>, vector<16x16x8xbf16>,
    %c0_30 = arith.constant 0 : index
    %c0_31 = arith.constant 0 : index
    %c0_32 = arith.constant 0 : index
    %34 = vector.load %arg12[%c0_30, %c0_31, %c0_32] : memref<16x16x72xbf16, #tpu.memory_space<vmem>>, vector<16x16x72xbf16>
    %35 = vector.shape_cast %34 : vector<16x16x72xbf16> to vector<256x72xbf16>
    %c0_33 = arith.constant 0 : index
    %c0_34 = arith.constant 0 : index
    %36 = vector.load %arg2[%c0_33, %c0_34] : memref<72x8xbf16, #tpu.memory_space<vmem>>, vector<72x8xbf16>
    %cst_35 = arith.constant dense<0.000000e+00> : vector<256x8xf32>
    %37 = tpu.matmul %35, %36, %cst_35 {dimension_numbers = #tpu.dot_dimension_numbers<[1], [0], [0], [1], [0, 0, 1, 1], [], []>} : vector<256x72xbf16>, vector<72x8xbf16>, vector<256x8xf32> -> vector<256x8xf32>
    %c0_36 = arith.constant 0 : index
    %c0_37 = arith.constant 0 : index
    %38 = vector.load %arg3[%c0_36, %c0_37] : memref<1x8xf32, #tpu.memory_space<vmem>>, vector<1x8xf32>
    %39 = vector.broadcast %38 : vector<1x8xf32> to vector<256x8xf32>
    %40 = arith.mulf %37, %39 : vector<256x8xf32>
    %c0_38 = arith.constant 0 : index
    %c0_39 = arith.constant 0 : index
    %41 = vector.load %arg4[%c0_38, %c0_39] : memref<1x8xf32, #tpu.memory_space<vmem>>, vector<1x8xf32>
    %42 = vector.broadcast %41 : vector<1x8xf32> to vector<256x8xf32>
    %43 = arith.addf %40, %42 : vector<256x8xf32>
    %cst_40 = arith.constant 0.000000e+00 : f32
    %44 = vector.broadcast %cst_40 : f32 to vector<256x8xf32>
    %45 = arith.maximumf %43, %44 : vector<256x8xf32>
    %cst_41 = arith.constant 0.000000e+00 : f32
    %46 = vector.broadcast %cst_41 : f32 to vector<18x18x8xf32>
    %c0_42 = arith.constant 0 : index
    %c0_43 = arith.constant 0 : index
    %c0_44 = arith.constant 0 : index
    %47 = vector.load %arg13[%c0_42, %c0_43, %c0_44] : memref<18x18x8xf32, #tpu.memory_space<vmem>>, vector<18x18x8xf32>
    tpu.vector_store %arg13[%c0_42, %c0_43, %c0_44], %46 {strides = array<i32>} : memref<18x18x8xf32, #tpu.memory_space<vmem>>, vector<18x18x8xf32>,
    %48 = vector.shape_cast %45 : vector<256x8xf32> to vector<16x16x8xf32>
    %c1_45 = arith.constant 1 : index
    %c1_46 = arith.constant 1 : index
    %c0_47 = arith.constant 0 : index
    %49 = vector.load %arg13[%c1_45, %c1_46, %c0_47] : memref<18x18x8xf32, #tpu.memory_space<vmem>>, vector<16x16x8xf32>
    tpu.vector_store %arg13[%c1_45, %c1_46, %c0_47], %48 {strides = array<i32>} : memref<18x18x8xf32, #tpu.memory_space<vmem>>, vector<16x16x8xf32>,
    %c0_48 = arith.constant 0 : index
    %c0_49 = arith.constant 0 : index
    %c0_50 = arith.constant 0 : index
    %50 = vector.load %arg13[%c0_48, %c0_49, %c0_50] : memref<18x18x8xf32, #tpu.memory_space<vmem>>, vector<18x18x8xf32>
    %51 = vector.extract_strided_slice %50 {offsets = [0, 0, 0], sizes = [16, 16, 8], strides = [1, 1, 1]} : vector<18x18x8xf32> to vector<16x16x8xf32>
    %52 = arith.truncf %51 : vector<16x16x8xf32> to vector<16x16x8xbf16>
    %c0_51 = arith.constant 0 : index
    %c0_52 = arith.constant 0 : index
    %c0_53 = arith.constant 0 : index
    %53 = vector.load %arg14[%c0_51, %c0_52, %c0_53] : memref<16x16x72xbf16, #tpu.memory_space<vmem>>, vector<16x16x8xbf16>
    tpu.vector_store %arg14[%c0_51, %c0_52, %c0_53], %52 {strides = array<i32>} : memref<16x16x72xbf16, #tpu.memory_space<vmem>>, vector<16x16x8xbf16>,
    %54 = vector.extract_strided_slice %50 {offsets = [0, 1, 0], sizes = [16, 16, 8], strides = [1, 1, 1]} : vector<18x18x8xf32> to vector<16x16x8xf32>
    %55 = arith.truncf %54 : vector<16x16x8xf32> to vector<16x16x8xbf16>
    %c0_54 = arith.constant 0 : index
    %c0_55 = arith.constant 0 : index
    %c8_56 = arith.constant 8 : index
    %56 = vector.load %arg14[%c0_54, %c0_55, %c8_56] : memref<16x16x72xbf16, #tpu.memory_space<vmem>>, vector<16x16x8xbf16>
    tpu.vector_store %arg14[%c0_54, %c0_55, %c8_56], %55 {strides = array<i32>} : memref<16x16x72xbf16, #tpu.memory_space<vmem>>, vector<16x16x8xbf16>,
    %57 = vector.extract_strided_slice %50 {offsets = [0, 2, 0], sizes = [16, 16, 8], strides = [1, 1, 1]} : vector<18x18x8xf32> to vector<16x16x8xf32>
    %58 = arith.truncf %57 : vector<16x16x8xf32> to vector<16x16x8xbf16>
    %c0_57 = arith.constant 0 : index
    %c0_58 = arith.constant 0 : index
    %c16_59 = arith.constant 16 : index
    %59 = vector.load %arg14[%c0_57, %c0_58, %c16_59] : memref<16x16x72xbf16, #tpu.memory_space<vmem>>, vector<16x16x8xbf16>
    tpu.vector_store %arg14[%c0_57, %c0_58, %c16_59], %58 {strides = array<i32>} : memref<16x16x72xbf16, #tpu.memory_space<vmem>>, vector<16x16x8xbf16>,
    %60 = vector.extract_strided_slice %50 {offsets = [1, 0, 0], sizes = [16, 16, 8], strides = [1, 1, 1]} : vector<18x18x8xf32> to vector<16x16x8xf32>
    %61 = arith.truncf %60 : vector<16x16x8xf32> to vector<16x16x8xbf16>
    %c0_60 = arith.constant 0 : index
    %c0_61 = arith.constant 0 : index
    %c24_62 = arith.constant 24 : index
    %62 = vector.load %arg14[%c0_60, %c0_61, %c24_62] : memref<16x16x72xbf16, #tpu.memory_space<vmem>>, vector<16x16x8xbf16>
    tpu.vector_store %arg14[%c0_60, %c0_61, %c24_62], %61 {strides = array<i32>} : memref<16x16x72xbf16, #tpu.memory_space<vmem>>, vector<16x16x8xbf16>,
    %63 = vector.extract_strided_slice %50 {offsets = [1, 1, 0], sizes = [16, 16, 8], strides = [1, 1, 1]} : vector<18x18x8xf32> to vector<16x16x8xf32>
    %64 = arith.truncf %63 : vector<16x16x8xf32> to vector<16x16x8xbf16>
    %c0_63 = arith.constant 0 : index
    %c0_64 = arith.constant 0 : index
    %c32_65 = arith.constant 32 : index
    %65 = vector.load %arg14[%c0_63, %c0_64, %c32_65] : memref<16x16x72xbf16, #tpu.memory_space<vmem>>, vector<16x16x8xbf16>
    tpu.vector_store %arg14[%c0_63, %c0_64, %c32_65], %64 {strides = array<i32>} : memref<16x16x72xbf16, #tpu.memory_space<vmem>>, vector<16x16x8xbf16>,
    %66 = vector.extract_strided_slice %50 {offsets = [1, 2, 0], sizes = [16, 16, 8], strides = [1, 1, 1]} : vector<18x18x8xf32> to vector<16x16x8xf32>
    %67 = arith.truncf %66 : vector<16x16x8xf32> to vector<16x16x8xbf16>
    %c0_66 = arith.constant 0 : index
    %c0_67 = arith.constant 0 : index
    %c40_68 = arith.constant 40 : index
    %68 = vector.load %arg14[%c0_66, %c0_67, %c40_68] : memref<16x16x72xbf16, #tpu.memory_space<vmem>>, vector<16x16x8xbf16>
    tpu.vector_store %arg14[%c0_66, %c0_67, %c40_68], %67 {strides = array<i32>} : memref<16x16x72xbf16, #tpu.memory_space<vmem>>, vector<16x16x8xbf16>,
    %69 = vector.extract_strided_slice %50 {offsets = [2, 0, 0], sizes = [16, 16, 8], strides = [1, 1, 1]} : vector<18x18x8xf32> to vector<16x16x8xf32>
    %70 = arith.truncf %69 : vector<16x16x8xf32> to vector<16x16x8xbf16>
    %c0_69 = arith.constant 0 : index
    %c0_70 = arith.constant 0 : index
    %c48_71 = arith.constant 48 : index
    %71 = vector.load %arg14[%c0_69, %c0_70, %c48_71] : memref<16x16x72xbf16, #tpu.memory_space<vmem>>, vector<16x16x8xbf16>
    tpu.vector_store %arg14[%c0_69, %c0_70, %c48_71], %70 {strides = array<i32>} : memref<16x16x72xbf16, #tpu.memory_space<vmem>>, vector<16x16x8xbf16>,
    %72 = vector.extract_strided_slice %50 {offsets = [2, 1, 0], sizes = [16, 16, 8], strides = [1, 1, 1]} : vector<18x18x8xf32> to vector<16x16x8xf32>
    %73 = arith.truncf %72 : vector<16x16x8xf32> to vector<16x16x8xbf16>
    %c0_72 = arith.constant 0 : index
    %c0_73 = arith.constant 0 : index
    %c56_74 = arith.constant 56 : index
    %74 = vector.load %arg14[%c0_72, %c0_73, %c56_74] : memref<16x16x72xbf16, #tpu.memory_space<vmem>>, vector<16x16x8xbf16>
    tpu.vector_store %arg14[%c0_72, %c0_73, %c56_74], %73 {strides = array<i32>} : memref<16x16x72xbf16, #tpu.memory_space<vmem>>, vector<16x16x8xbf16>,
    %75 = vector.extract_strided_slice %50 {offsets = [2, 2, 0], sizes = [16, 16, 8], strides = [1, 1, 1]} : vector<18x18x8xf32> to vector<16x16x8xf32>
    %76 = arith.truncf %75 : vector<16x16x8xf32> to vector<16x16x8xbf16>
    %c0_75 = arith.constant 0 : index
    %c0_76 = arith.constant 0 : index
    %c64_77 = arith.constant 64 : index
    %77 = vector.load %arg14[%c0_75, %c0_76, %c64_77] : memref<16x16x72xbf16, #tpu.memory_space<vmem>>, vector<16x16x8xbf16>
    tpu.vector_store %arg14[%c0_75, %c0_76, %c64_77], %76 {strides = array<i32>} : memref<16x16x72xbf16, #tpu.memory_space<vmem>>, vector<16x16x8xbf16>,
    %c0_78 = arith.constant 0 : index
    %c0_79 = arith.constant 0 : index
    %c0_80 = arith.constant 0 : index
    %78 = vector.load %arg14[%c0_78, %c0_79, %c0_80] : memref<16x16x72xbf16, #tpu.memory_space<vmem>>, vector<16x16x72xbf16>
    %79 = vector.shape_cast %78 : vector<16x16x72xbf16> to vector<256x72xbf16>
    %c0_81 = arith.constant 0 : index
    %c0_82 = arith.constant 0 : index
    %80 = vector.load %arg5[%c0_81, %c0_82] : memref<72x8xbf16, #tpu.memory_space<vmem>>, vector<72x8xbf16>
    %cst_83 = arith.constant dense<0.000000e+00> : vector<256x8xf32>
    %81 = tpu.matmul %79, %80, %cst_83 {dimension_numbers = #tpu.dot_dimension_numbers<[1], [0], [0], [1], [0, 0, 1, 1], [], []>} : vector<256x72xbf16>, vector<72x8xbf16>, vector<256x8xf32> -> vector<256x8xf32>
    %c0_84 = arith.constant 0 : index
    %c0_85 = arith.constant 0 : index
    %82 = vector.load %arg6[%c0_84, %c0_85] : memref<1x8xf32, #tpu.memory_space<vmem>>, vector<1x8xf32>
    %83 = vector.broadcast %82 : vector<1x8xf32> to vector<256x8xf32>
    %84 = arith.mulf %81, %83 : vector<256x8xf32>
    %c0_86 = arith.constant 0 : index
    %c0_87 = arith.constant 0 : index
    %85 = vector.load %arg7[%c0_86, %c0_87] : memref<1x8xf32, #tpu.memory_space<vmem>>, vector<1x8xf32>
    %86 = vector.broadcast %85 : vector<1x8xf32> to vector<256x8xf32>
    %87 = arith.addf %84, %86 : vector<256x8xf32>
    %cst_88 = arith.constant 0.000000e+00 : f32
    %88 = vector.broadcast %cst_88 : f32 to vector<256x8xf32>
    %89 = arith.maximumf %87, %88 : vector<256x8xf32>
    %90 = arith.truncf %89 : vector<256x8xf32> to vector<256x8xbf16>
    %c0_89 = arith.constant 0 : index
    %c0_90 = arith.constant 0 : index
    %91 = vector.load %arg8[%c0_89, %c0_90] : memref<8x32xbf16, #tpu.memory_space<vmem>>, vector<8x32xbf16>
    %cst_91 = arith.constant dense<0.000000e+00> : vector<256x32xf32>
    %92 = tpu.matmul %90, %91, %cst_91 {dimension_numbers = #tpu.dot_dimension_numbers<[1], [0], [0], [1], [0, 0, 1, 1], [], []>} : vector<256x8xbf16>, vector<8x32xbf16>, vector<256x32xf32> -> vector<256x32xf32>
    %c0_92 = arith.constant 0 : index
    %c0_93 = arith.constant 0 : index
    %93 = vector.load %arg9[%c0_92, %c0_93] : memref<1x32xf32, #tpu.memory_space<vmem>>, vector<1x32xf32>
    %94 = vector.broadcast %93 : vector<1x32xf32> to vector<256x32xf32>
    %95 = arith.addf %92, %94 : vector<256x32xf32>
    %cst_94 = arith.constant 0.000000e+00 : f32
    %96 = vector.broadcast %cst_94 : f32 to vector<256x32xf32>
    %97 = arith.maximumf %95, %96 : vector<256x32xf32>
    %98 = vector.shape_cast %97 : vector<256x32xf32> to vector<16x16x32xf32>
    %c0_95 = arith.constant 0 : index
    %c0_96 = arith.constant 0 : index
    %c0_97 = arith.constant 0 : index
    %c0_98 = arith.constant 0 : index
    %99 = vector.load %arg10[%c0_95, %c0_96, %c0_97, %c0_98] : memref<1x16x16x32xf32, #tpu.memory_space<vmem>>, vector<1x16x16x32xf32>
    %100 = vector.shape_cast %99 : vector<1x16x16x32xf32> to vector<16x16x32xf32>
    %101 = vector.shape_cast %98 : vector<16x16x32xf32> to vector<1x16x16x32xf32>
    tpu.vector_store %arg10[%c0_95, %c0_96, %c0_97, %c0_98], %101 {strides = array<i32>} : memref<1x16x16x32xf32, #tpu.memory_space<vmem>>, vector<1x16x16x32xf32>,
    return
  }
  func.func @transform_0(%arg0: i32) -> (i32, i32, i32, i32) {
    %c0_i32 = arith.constant 0 : i32
    %c0_i32_0 = arith.constant 0 : i32
    %c0_i32_1 = arith.constant 0 : i32
    %c0_i32_2 = arith.constant 0 : i32
    return %arg0, %c0_i32, %c0_i32_0, %c0_i32_1 : i32, i32, i32, i32
  }
  func.func @transform_1(%arg0: i32) -> (i32, i32) {
    %c0_i32 = arith.constant 0 : i32
    %c0_i32_0 = arith.constant 0 : i32
    %c0_i32_1 = arith.constant 0 : i32
    return %c0_i32, %c0_i32_0 : i32, i32
  }
  func.func @transform_2(%arg0: i32) -> (i32, i32) {
    %c0_i32 = arith.constant 0 : i32
    %c0_i32_0 = arith.constant 0 : i32
    %c0_i32_1 = arith.constant 0 : i32
    return %c0_i32, %c0_i32_0 : i32, i32
  }
  func.func @transform_3(%arg0: i32) -> (i32, i32) {
    %c0_i32 = arith.constant 0 : i32
    %c0_i32_0 = arith.constant 0 : i32
    %c0_i32_1 = arith.constant 0 : i32
    return %c0_i32, %c0_i32_0 : i32, i32
  }
  func.func @transform_4(%arg0: i32) -> (i32, i32) {
    %c0_i32 = arith.constant 0 : i32
    %c0_i32_0 = arith.constant 0 : i32
    %c0_i32_1 = arith.constant 0 : i32
    return %c0_i32, %c0_i32_0 : i32, i32
  }
  func.func @transform_5(%arg0: i32) -> (i32, i32) {
    %c0_i32 = arith.constant 0 : i32
    %c0_i32_0 = arith.constant 0 : i32
    %c0_i32_1 = arith.constant 0 : i32
    return %c0_i32, %c0_i32_0 : i32, i32
  }
  func.func @transform_6(%arg0: i32) -> (i32, i32) {
    %c0_i32 = arith.constant 0 : i32
    %c0_i32_0 = arith.constant 0 : i32
    %c0_i32_1 = arith.constant 0 : i32
    return %c0_i32, %c0_i32_0 : i32, i32
  }
  func.func @transform_7(%arg0: i32) -> (i32, i32) {
    %c0_i32 = arith.constant 0 : i32
    %c0_i32_0 = arith.constant 0 : i32
    %c0_i32_1 = arith.constant 0 : i32
    return %c0_i32, %c0_i32_0 : i32, i32
  }
  func.func @transform_8(%arg0: i32) -> (i32, i32) {
    %c0_i32 = arith.constant 0 : i32
    %c0_i32_0 = arith.constant 0 : i32
    %c0_i32_1 = arith.constant 0 : i32
    return %c0_i32, %c0_i32_0 : i32, i32
  }
  func.func @transform_9(%arg0: i32) -> (i32, i32, i32, i32) {
    %c0_i32 = arith.constant 0 : i32
    %c0_i32_0 = arith.constant 0 : i32
    %c0_i32_1 = arith.constant 0 : i32
    %c0_i32_2 = arith.constant 0 : i32
    return %arg0, %c0_i32, %c0_i32_0, %c0_i32_1 : i32, i32, i32, i32
  }
}

</mosaic_0001>

<bundles_post_ra>
// kernel: unet_expansion_block.1
= control target key start
LH: loop header
LB: loop body
LE: loop exit
PB: predicated region body
PF: predicated region fallthrough
CT: control target
= control target key end

     0   :  { %s5688_s30 = smov 0   ;;  %s9125_s0 = inlined_call_operand.vmem [shape: bf16[2,16,16,8], index: 0, kind: input, shape index: {}]   ;;  %s9126_s1 = inlined_call_operand.vmem [shape: bf16[72,8], index: 1, kind: input, shape index: {}]   ;;  %s9127_s2 = inlined_call_operand.vmem [shape: f32[1,8], index: 2, kind: input, shape index: {}]   ;;  %s9128_s3 = inlined_call_operand.vmem [shape: f32[1,8], index: 3, kind: input, shape index: {}]   ;;  %s9129_s4 = inlined_call_operand.vmem [shape: bf16[72,8], index: 4, kind: input, shape index: {}]   ;;  %s9130_s5 = inlined_call_operand.vmem [shape: f32[1,8], index: 5, kind: input, shape index: {}]   ;;  %s9131_s6 = inlined_call_operand.vmem [shape: f32[1,8], index: 6, kind: input, shape index: {}]   ;;  %s9132_s7 = inlined_call_operand.vmem [shape: bf16[8,32], index: 7, kind: input, shape index: {}]   ;;  %s9133_s8 = inlined_call_operand.vmem [shape: f32[1,32], index: 8, kind: input, shape index: {}]   ;;  %s9134_s9 = inlined_call_operand.vmem [shape: f32[2,16,16,32], index: 9, kind: output, shape index: {}]  }
   0x1 LB: > { %s5208_s10 = sadd.s32 4294967295, %s5627_s30   ;;  %p5212_p0 = scmp.ge.s32.totalorder %s5627_s30, 1  ;;  %s5627_s30 = sphi %s5688_s30, %s19_s30  }
   0x2   : > { %p287_p1 = scmp.lt.s32.totalorder %s5627_s30, 3 }
   0x4   : > { %p288_p2 = pnand %p5212_p0, %p287_p1 }
   0x6   : > { %291 = sbr.rel (%p288_p2) target bundleno = 2214 (0x8a6), region = 56 }
   0xb   : > { %vm334_vm0 = vcmask 64512   ;;  %v5629_v0 = vmov 0.0   ;;  %vm622_vm1 = vsmask.f32 3328  ;;  %vm623_vm2 = vsmask.f32 7440 }
   0xc   : > { %335 = vst.msk [vmem:[#allocation2] sm:$0xff] %vm334_vm0, %v5629_v0  ;;  %vm5735_vm3 = vmor %vm622_vm1, %vm623_vm2  ;;  %v9311_v12 = vmov 0  ;;  %s5630_s11 = smov 8   ;;  %vm337_vm4 = vcmask 58368   ;;  %p323_p3 = scmp.lt.s32.totalorder %s5208_s10, 1  ;;  %vm1186_vm5 = vcmask 1042432  }
   0xd   : > { %336 = vst.msk [vmem:[#allocation2 + $0x8] sm:$0xff] %vm334_vm0, %v5629_v0  ;;  %v9312_v12 = vsel %vm5735_vm3, 4294967295, %v9311_v12  ;;  %vm1187_vm6 = vcmask 1046532   ;;  %vm573_vm8 = vcmask 60416   ;;  %vm1105_vm9 = vcmask 126016   ;;  %s5631_s16 = smov 16  }
   0xe   : > { %339 = vst.msk [vmem:[#allocation2 + $0x18] sm:$0xff] %vm334_vm0, %v5629_v0  ;;  %s9538_s10 = smov (!%p323_p3, %s5208_s10), 1  ;;  %vm6361_vm7 = vmor %vm1186_vm5, %vm1187_vm6  ;;  %s5632_s17 = smov 24   ;;  %vm1397_vm10 = vcmask 191616   ;;  %vm1530_vm11 = vcmask 257216   ;;  %vm1684_vm12 = vcmask 322816  }
   0xf   : > { %340 = vst.msk [vmem:[#allocation2 + $0x20] sm:$0xff] %vm334_vm0, %v5629_v0  ;;  %s5463_s12 = sshll.u32 %s9538_s10, 7  ;;  %s5633_s18 = smov 32   ;;  %vm1821_vm13 = vcmask 388416   ;;  %vm1954_vm14 = vcmask 454016   ;;  %vm2108_vm15 = vcmask 519616  }
  0x10   : > { %342 = vst.msk [vmem:[#allocation2 + $0x30] sm:$0xff] %vm334_vm0, %v5629_v0  ;;  %s5929_s15 = scalar_lea.vmem %s9125_s0, %s5463_s12  ;;  %s5634_s19 = smov 40   ;;  %vm2475_vm1 = vcmask 1043456   ;;  %vm2245_vm2 = vcmask 585216   ;;  %vm5120_vm5 = vcmask 261120  }
  0x11   : > { %343 = vst.msk [vmem:[#allocation2 + $0x38] sm:$0xff] %vm334_vm0, %v5629_v0  ;;  %v5570_v24 = vld [vmem:[%s5929_s15 + $0x10] sm:$0xff]   ;;  %v5506_v25 = vld [vmem:[%s5929_s15] sm:$0xff]   ;;  %v5571_v28 = vld [vmem:[%s5929_s15 + $0x18] sm:$0xff]   ;;  %s5635_s20 = smov 48   ;;  %s5636_s21 = smov 56  }
  0x12   : > { %345 = vst.msk [vmem:[#allocation2 + $0x48] sm:$0xff] %vm334_vm0, %v5629_v0  ;;  %v5515_v26 = vunpack.c.l.bf16 %v5570_v24  ;;  %v5516_v27 = vunpack.c.h.bf16 %v5570_v24  ;;  %v5507_v29 = vunpack.c.l.bf16 %v5506_v25  ;;  %v5508_v30 = vunpack.c.h.bf16 %v5506_v25  ;;  %v5573_v31 = vld [vmem:[%s5929_s15 + $0x28] sm:$0xff]   ;;  %v5574_v37 = vld [vmem:[%s5929_s15 + $0x30] sm:$0xff]   ;;  %v5572_v39 = vld [vmem:[%s5929_s15 + $0x20] sm:$0xff]   ;;  %s5637_s22 = smov 64  }
  0x13   : > { %v487_v1 = vld [vmem:[#allocation2] sm:$0xff]  ;;  %346 = vst.msk [vmem:[#allocation2 + $0x50] sm:$0xff] %vm334_vm0, %v5629_v0  ;;  %v5519_v32 = vunpack.c.l.bf16 %v5571_v28  ;;  %v5520_v33 = vunpack.c.h.bf16 %v5571_v28  ;;  %v5569_v34 = vld [vmem:[%s5929_s15 + $0x8] sm:$0xff]   ;;  %v5527_v35 = vunpack.c.l.bf16 %v5573_v31  ;;  %v5528_v36 = vunpack.c.h.bf16 %v5573_v31  ;;  %v5971_v47 = vld [vmem:[%s5929_s15 + $0x38] sm:$0xff]  }
  0x14   : > { %v488_v2 = vld [vmem:[#allocation2 + $0x8] sm:$0xff]  ;;  %v5712_v3 = vpack.c.bf16 %v487_v1, %v487_v1  ;;  %348 = vst.msk [vmem:[#allocation2 + $0x60] sm:$0xff] %vm334_vm0, %v5629_v0  ;;  %v5511_v38 = vunpack.c.l.bf16 %v5569_v34  ;;  %v5512_v40 = vunpack.c.h.bf16 %v5569_v34  ;;  %v5963_v41 = vld [vmem:[%s5929_s15 + $0x40] sm:$0xff]   ;;  %v5531_v42 = vunpack.c.l.bf16 %v5574_v37 }
  0x15   : > { %v5716_v4 = vpack.c.bf16 %v488_v2, %v488_v2  ;;  %349 = vst.msk [vmem:[#allocation2 + $0x68] sm:$0xff] %vm334_vm0, %v5629_v0  ;;  %v5532_v44 = vunpack.c.h.bf16 %v5574_v37  ;;  %v5523_v45 = vunpack.c.l.bf16 %v5572_v39  ;;  %v5968_v46 = vld [vmem:[%s5929_s15 + $0x48] sm:$0xff]   ;;  %v5524_v51 = vunpack.c.h.bf16 %v5572_v39 }
  0x16   : > { %v626_v5 = vshrl.u32 %v5712_v3, 16  ;;  %v629_v6 = vshll.u32 %v5712_v3, 16  ;;  %351 = vst.msk [vmem:[#allocation2 + $0x78] sm:$0xff] %vm334_vm0, %v5629_v0  ;;  %v5539_v52 = vunpack.c.l.bf16 %v5963_v41  ;;  %v5540_v53 = vunpack.c.h.bf16 %v5963_v41 }
  0x17   : > { %v635_v7 = vshll.u32 %v5716_v4, 16  ;;  %352 = vst.msk [vmem:[#allocation2 + $0x80] sm:$0xff] %vm334_vm0, %v5629_v0  ;;  %v639_v15 = vshrl.u32 %v5716_v4, 16  ;;  %v5543_v56 = vunpack.c.l.bf16 %v5968_v46  ;;  %v5544_v57 = vunpack.c.h.bf16 %v5968_v46 }
  0x18   : > { %v628_v8 = vrot.slane %v626_v5, 4  ;;  %v631_v9 = vrot.slane %v629_v6, 5  ;;  %354 = vst.msk [vmem:[#allocation2 + $0x90] sm:$0xff] %vm334_vm0, %v5629_v0  ;;  %v5535_v58 = vunpack.c.l.bf16 %v5971_v47 }
  0x19   : > { %355 = vst.msk [vmem:[#allocation2 + $0x98] sm:$0xff] %vm334_vm0, %v5629_v0  ;;  %v5731_v11 = vrot.slane %v635_v7, 5  ;;  %v641_v16 = vrot.slane %v639_v15, 4 }
  0x1a   : > { %v632_v10 = vor.u32 %v631_v9, %v628_v8  ;;  %357 = vst.msk [vmem:[#allocation2 + $0xa8] sm:$0xff] %vm334_vm0, %v5629_v0 }
  0x1b   : > { %9313 = vst [vmem:[#allocation6_spill] sm:$0xff] %v9312_v12  ;;  %v642_v17 = vor.u32 %v641_v16, %v5731_v11 }
  0x1c   : > { %358 = vst.msk [vmem:[#allocation2 + $0xb0] sm:$0xff] %vm334_vm0, %v5629_v0  ;;  %v633_v13 = vrot.slane %v632_v10, 4 }
  0x1d   : > { %360 = vst.msk [vmem:[#allocation2 + $0xc0] sm:$0xff] %vm334_vm0, %v5629_v0  ;;  %v643_v20 = vrot.slane %v642_v17, 4 }
  0x1e   : > { %361 = vst.msk [vmem:[#allocation2 + $0xc8] sm:$0xff] %vm334_vm0, %v5629_v0  ;;  %v638_v14 = vsel %vm5735_vm3, %v633_v13, %v5731_v11 }
  0x1f   : > { %363 = vst.msk [vmem:[#allocation2 + $0xd8] sm:$0xff] %vm334_vm0, %v5629_v0  ;;  %1009 = vrot.lane.b32.xlu0 %v638_v14, %s5630_s11 }
  0x20   : > { %364 = vst.msk [vmem:[#allocation2 + $0xe0] sm:$0xff] %vm334_vm0, %v5629_v0 }
  0x21   : > { %366 = vst.msk [vmem:[#allocation2 + $0xf0] sm:$0xff] %vm334_vm0, %v5629_v0 }
  0x22   : > { %367 = vst.msk [vmem:[#allocation2 + $0xf8] sm:$0xff] %vm334_vm0, %v5629_v0 }
  0x23   : > { %369 = vst.msk [vmem:[#allocation2 + $0x108] sm:$0xff] %vm334_vm0, %v5629_v0 }
  0x24   : > { %370 = vst.msk [vmem:[#allocation2 + $0x110] sm:$0xff] %vm334_vm0, %v5629_v0 }
  0x25   : > { %372 = vst.msk [vmem:[#allocation2 + $0x120] sm:$0xff] %vm334_vm0, %v5629_v0 }
  0x26   : > { %373 = vst.msk [vmem:[#allocation2 + $0x128] sm:$0xff] %vm334_vm0, %v5629_v0 }
  0x27   : > { %375 = vst.msk [vmem:[#allocation2 + $0x138] sm:$0xff] %vm334_vm0, %v5629_v0 }
  0x28   : > { %376 = vst.msk [vmem:[#allocation2 + $0x140] sm:$0xff] %vm334_vm0, %v5629_v0 }
  0x29   : > { %378 = vst.msk [vmem:[#allocation2 + $0x150] sm:$0xff] %vm334_vm0, %v5629_v0 }
  0x2a   : > { %379 = vst.msk [vmem:[#allocation2 + $0x158] sm:$0xff] %vm334_vm0, %v5629_v0 }
  0x2b   : > { %381 = vst.msk [vmem:[#allocation2 + $0x168] sm:$0xff] %vm334_vm0, %v5629_v0 }
  0x2c   : > { %382 = vst.msk [vmem:[#allocation2 + $0x170] sm:$0xff] %vm334_vm0, %v5629_v0 }
  0x2d   : > { %384 = vst.msk [vmem:[#allocation2 + $0x180] sm:$0xff] %vm334_vm0, %v5629_v0 }
  0x2e   : > { %385 = vst.msk [vmem:[#allocation2 + $0x188] sm:$0xff] %vm334_vm0, %v5629_v0 }
  0x2f   : > { %387 = vst.msk [vmem:[#allocation2 + $0x198] sm:$0xff] %vm334_vm0, %v5629_v0 }
  0x30   : > { %388 = vst.msk [vmem:[#allocation2 + $0x1a0] sm:$0xff] %vm334_vm0, %v5629_v0 }
  0x31   : > { %2672 = vst.msk [vmem:[#allocation4] sm:$0xff] %vm334_vm0, %v5629_v0 }
  0x32   : > { %2673 = vst.msk [vmem:[#allocation4 + $0x8] sm:$0xff] %vm334_vm0, %v5629_v0 }
  0x33   : > { %2675 = vst.msk [vmem:[#allocation4 + $0x18] sm:$0xff] %vm334_vm0, %v5629_v0 }
  0x34   : > { %2676 = vst.msk [vmem:[#allocation4 + $0x20] sm:$0xff] %vm334_vm0, %v5629_v0 }
  0x35   : > { %2678 = vst.msk [vmem:[#allocation4 + $0x30] sm:$0xff] %vm334_vm0, %v5629_v0 }
  0x36   : > { %2679 = vst.msk [vmem:[#allocation4 + $0x38] sm:$0xff] %vm334_vm0, %v5629_v0 }
  0x37   : > { %2681 = vst.msk [vmem:[#allocation4 + $0x48] sm:$0xff] %vm334_vm0, %v5629_v0 }
  0x38   : > { %2682 = vst.msk [vmem:[#allocation4 + $0x50] sm:$0xff] %vm334_vm0, %v5629_v0 }
  0x39   : > { %2684 = vst.msk [vmem:[#allocation4 + $0x60] sm:$0xff] %vm334_vm0, %v5629_v0 }
  0x3a   : > { %2685 = vst.msk [vmem:[#allocation4 + $0x68] sm:$0xff] %vm334_vm0, %v5629_v0 }
  0x3b   : > { %2687 = vst.msk [vmem:[#allocation4 + $0x78] sm:$0xff] %vm334_vm0, %v5629_v0 }
  0x3c   : > { %2688 = vst.msk [vmem:[#allocation4 + $0x80] sm:$0xff] %vm334_vm0, %v5629_v0 }
  0x3d   : > { %2690 = vst.msk [vmem:[#allocation4 + $0x90] sm:$0xff] %vm334_vm0, %v5629_v0 }
  0x3e   : > { %2691 = vst.msk [vmem:[#allocation4 + $0x98] sm:$0xff] %vm334_vm0, %v5629_v0 }
  0x3f   : > { %2693 = vst.msk [vmem:[#allocation4 + $0xa8] sm:$0xff] %vm334_vm0, %v5629_v0 }
  0x40   : > { %2694 = vst.msk [vmem:[#allocation4 + $0xb0] sm:$0xff] %vm334_vm0, %v5629_v0 }
  0x41   : > { %2696 = vst.msk [vmem:[#allocation4 + $0xc0] sm:$0xff] %vm334_vm0, %v5629_v0 }
  0x42   : > { %2697 = vst.msk [vmem:[#allocation4 + $0xc8] sm:$0xff] %vm334_vm0, %v5629_v0 }
  0x43   : > { %2699 = vst.msk [vmem:[#allocation4 + $0xd8] sm:$0xff] %vm334_vm0, %v5629_v0 }
  0x44   : > { %2700 = vst.msk [vmem:[#allocation4 + $0xe0] sm:$0xff] %vm334_vm0, %v5629_v0 }
  0x45   : > { %2702 = vst.msk [vmem:[#allocation4 + $0xf0] sm:$0xff] %vm334_vm0, %v5629_v0 }
  0x46   : > { %2703 = vst.msk [vmem:[#allocation4 + $0xf8] sm:$0xff] %vm334_vm0, %v5629_v0 }
  0x47   : > { %2705 = vst.msk [vmem:[#allocation4 + $0x108] sm:$0xff] %vm334_vm0, %v5629_v0 }
  0x48   : > { %2706 = vst.msk [vmem:[#allocation4 + $0x110] sm:$0xff] %vm334_vm0, %v5629_v0 }
  0x49   : > { %2708 = vst.msk [vmem:[#allocation4 + $0x120] sm:$0xff] %vm334_vm0, %v5629_v0 }
  0x4a   : > { %2709 = vst.msk [vmem:[#allocation4 + $0x128] sm:$0xff] %vm334_vm0, %v5629_v0 }
  0x4b   : > { %2711 = vst.msk [vmem:[#allocation4 + $0x138] sm:$0xff] %vm334_vm0, %v5629_v0 }
  0x4c   : > { %2712 = vst.msk [vmem:[#allocation4 + $0x140] sm:$0xff] %vm334_vm0, %v5629_v0 }
  0x4d   : > { %2714 = vst.msk [vmem:[#allocation4 + $0x150] sm:$0xff] %vm334_vm0, %v5629_v0 }
  0x4e   : > { %2715 = vst.msk [vmem:[#allocation4 + $0x158] sm:$0xff] %vm334_vm0, %v5629_v0 }
  0x4f   : > { %2717 = vst.msk [vmem:[#allocation4 + $0x168] sm:$0xff] %vm334_vm0, %v5629_v0 }
  0x50   : > { %2718 = vst.msk [vmem:[#allocation4 + $0x170] sm:$0xff] %vm334_vm0, %v5629_v0 }
  0x51   : > { %2720 = vst.msk [vmem:[#allocation4 + $0x180] sm:$0xff] %vm334_vm0, %v5629_v0 }
  0x52   : > { %2721 = vst.msk [vmem:[#allocation4 + $0x188] sm:$0xff] %vm334_vm0, %v5629_v0 }
  0x53   : > { %2723 = vst.msk [vmem:[#allocation4 + $0x198] sm:$0xff] %vm334_vm0, %v5629_v0 }
  0x54   : > { %2724 = vst.msk [vmem:[#allocation4 + $0x1a0] sm:$0xff] %vm334_vm0, %v5629_v0 }
  0x55   : > { %338 = vst.msk [vmem:[#allocation2 + $0x10] sm:$0x3] %vm337_vm4, %v5629_v0 }
  0x56   : > { %341 = vst.msk [vmem:[#allocation2 + $0x28] sm:$0x3] %vm337_vm4, %v5629_v0 }
  0x57   : > { %344 = vst.msk [vmem:[#allocation2 + $0x40] sm:$0x3] %vm337_vm4, %v5629_v0 }
  0x58   : > { %347 = vst.msk [vmem:[#allocation2 + $0x58] sm:$0x3] %vm337_vm4, %v5629_v0 }
  0x59   : > { %350 = vst.msk [vmem:[#allocation2 + $0x70] sm:$0x3] %vm337_vm4, %v5629_v0 }
  0x5a   : > { %353 = vst.msk [vmem:[#allocation2 + $0x88] sm:$0x3] %vm337_vm4, %v5629_v0 }
  0x5b   : > { %356 = vst.msk [vmem:[#allocation2 + $0xa0] sm:$0x3] %vm337_vm4, %v5629_v0 }
  0x5c   : > { %v489_v18 = vld [vmem:[#allocation2 + $0x10] sm:$0x3]  ;;  %359 = vst.msk [vmem:[#allocation2 + $0xb8] sm:$0x3] %vm337_vm4, %v5629_v0 }
  0x5d   : > { %v5875_v19 = vpack.c.bf16 %v489_v18, %v489_v18  ;;  %362 = vst.msk [vmem:[#allocation2 + $0xd0] sm:$0x3] %vm337_vm4, %v5629_v0 }
  0x5e   : > { %365 = vst.msk [vmem:[#allocation2 + $0xe8] sm:$0x3] %vm337_vm4, %v5629_v0 }
  0x5f   : > { %v645_v21 = vshll.u32 %v5875_v19, 16  ;;  %368 = vst.msk [vmem:[#allocation2 + $0x100] sm:$0x3] %vm337_vm4, %v5629_v0 }
  0x60   : > { %371 = vst.msk [vmem:[#allocation2 + $0x118] sm:$0x3] %vm337_vm4, %v5629_v0 }
  0x61   : > { %v647_v22 = vrot.slane %v645_v21, 5  ;;  %374 = vst.msk [vmem:[#allocation2 + $0x130] sm:$0x3] %vm337_vm4, %v5629_v0 }
  0x62   : > { %377 = vst.msk [vmem:[#allocation2 + $0x148] sm:$0x3] %vm337_vm4, %v5629_v0 }
  0x63   : > { %v648_v23 = vsel %vm5735_vm3, %v643_v20, %v647_v22  ;;  %380 = vst.msk [vmem:[#allocation2 + $0x160] sm:$0x3] %vm337_vm4, %v5629_v0 }
  0x64   : > { %1011 = vrot.lane.b32.xlu0 %v648_v23, %s5630_s11  ;;  %383 = vst.msk [vmem:[#allocation2 + $0x178] sm:$0x3] %vm337_vm4, %v5629_v0 }
  0x65   : > { %386 = vst.msk [vmem:[#allocation2 + $0x190] sm:$0x3] %vm337_vm4, %v5629_v0 }
  0x66   : > { %389 = vst.msk [vmem:[#allocation2 + $0x1a8] sm:$0x3] %vm337_vm4, %v5629_v0 }
  0x67   : > { %2674 = vst.msk [vmem:[#allocation4 + $0x10] sm:$0x3] %vm337_vm4, %v5629_v0 }
  0x68   : > { %2677 = vst.msk [vmem:[#allocation4 + $0x28] sm:$0x3] %vm337_vm4, %v5629_v0 }
  0x69   : > { %2680 = vst.msk [vmem:[#allocation4 + $0x40] sm:$0x3] %vm337_vm4, %v5629_v0 }
  0x6a   : > { %2683 = vst.msk [vmem:[#allocation4 + $0x58] sm:$0x3] %vm337_vm4, %v5629_v0 }
  0x6b   : > { %2686 = vst.msk [vmem:[#allocation4 + $0x70] sm:$0x3] %vm337_vm4, %v5629_v0 }
  0x6c   : > { %2689 = vst.msk [vmem:[#allocation4 + $0x88] sm:$0x3] %vm337_vm4, %v5629_v0 }
  0x6d   : > { %2692 = vst.msk [vmem:[#allocation4 + $0xa0] sm:$0x3] %vm337_vm4, %v5629_v0 }
  0x6e   : > { %2695 = vst.msk [vmem:[#allocation4 + $0xb8] sm:$0x3] %vm337_vm4, %v5629_v0 }
  0x6f   : > { %2698 = vst.msk [vmem:[#allocation4 + $0xd0] sm:$0x3] %vm337_vm4, %v5629_v0 }
  0x70   : > { %2701 = vst.msk [vmem:[#allocation4 + $0xe8] sm:$0x3] %vm337_vm4, %v5629_v0 }
  0x71   : > { %2704 = vst.msk [vmem:[#allocation4 + $0x100] sm:$0x3] %vm337_vm4, %v5629_v0 }
  0x72   : > { %2707 = vst.msk [vmem:[#allocation4 + $0x118] sm:$0x3] %vm337_vm4, %v5629_v0 }
  0x73   : > { %2710 = vst.msk [vmem:[#allocation4 + $0x130] sm:$0x3] %vm337_vm4, %v5629_v0 }
  0x74   : > { %2713 = vst.msk [vmem:[#allocation4 + $0x148] sm:$0x3] %vm337_vm4, %v5629_v0 }
  0x75   : > { %2716 = vst.msk [vmem:[#allocation4 + $0x160] sm:$0x3] %vm337_vm4, %v5629_v0 }
  0x76   : > { %2719 = vst.msk [vmem:[#allocation4 + $0x178] sm:$0x3] %vm337_vm4, %v5629_v0 }
  0x77   : > { %2722 = vst.msk [vmem:[#allocation4 + $0x190] sm:$0x3] %vm337_vm4, %v5629_v0 }
  0x78   : > { %2725 = vst.msk [vmem:[#allocation4 + $0x1a8] sm:$0x3] %vm337_vm4, %v5629_v0  ;;  %vm2426_vm4 = vcmask 588800  }
  0x79   : > { %459 = vst.msk [vmem:[#allocation2 + $0x49] sm:$0xff] %vm334_vm0, %v5515_v26 }
  0x7a   : > { %460 = vst.msk [vmem:[#allocation2 + $0x51] sm:$0xff] %vm334_vm0, %v5516_v27 }
  0x7b   : > { %455 = vst.msk [vmem:[#allocation2 + $0x19] sm:$0xff] %vm334_vm0, %v5507_v29 }
  0x7c   : > { %456 = vst.msk [vmem:[#allocation2 + $0x21] sm:$0xff] %vm334_vm0, %v5508_v30 }
  0x7d   : > { %461 = vst.msk [vmem:[#allocation2 + $0x61] sm:$0xff] %vm334_vm0, %v5519_v32 }
  0x7e   : > { %462 = vst.msk [vmem:[#allocation2 + $0x69] sm:$0xff] %vm334_vm0, %v5520_v33 }
  0x7f   : > { %465 = vst.msk [vmem:[#allocation2 + $0x91] sm:$0xff] %vm334_vm0, %v5527_v35 }
  0x80   : > { %v496_v43 = vld [vmem:[#allocation2 + $0x48] sm:$0xff]  ;;  %466 = vst.msk [vmem:[#allocation2 + $0x99] sm:$0xff] %vm334_vm0, %v5528_v36 }
  0x81   : > { %v497_v48 = vld [vmem:[#allocation2 + $0x50] sm:$0xff]  ;;  %v5973_v49 = vpack.c.bf16 %v496_v43, %v496_v43  ;;  %457 = vst.msk [vmem:[#allocation2 + $0x31] sm:$0xff] %vm334_vm0, %v5511_v38  ;;  %v498_v50 = vld [vmem:[#allocation2 + $0x58] sm:$0x3] }
  0x82   : > { %v5978_v54 = vpack.c.bf16 %v497_v48, %v497_v48  ;;  %v490_v55 = vld [vmem:[#allocation2 + $0x18] sm:$0xff]  ;;  %458 = vst.msk [vmem:[#allocation2 + $0x39] sm:$0xff] %vm334_vm0, %v5512_v40  ;;  %v5988_v0 = vpack.c.bf16 %v498_v50, %v498_v50 }
  0x83   : > { %v698_v59 = vshrl.u32 %v5973_v49, 16  ;;  %v701_v60 = vshll.u32 %v5973_v49, 16  ;;  %v491_v61 = vld [vmem:[#allocation2 + $0x20] sm:$0xff]  ;;  %v5986_v62 = vpack.c.bf16 %v490_v55, %v490_v55  ;;  %v492_v63 = vld [vmem:[#allocation2 + $0x28] sm:$0x3]  ;;  %467 = vst.msk [vmem:[#allocation2 + $0xa9] sm:$0xff] %vm334_vm0, %v5531_v42 }
  0x84   : > { %v707_v1 = vshll.u32 %v5978_v54, 16  ;;  %v5992_v2 = vpack.c.bf16 %v491_v61, %v491_v61  ;;  %v5994_v5 = vpack.c.bf16 %v492_v63, %v492_v63  ;;  %v711_v6 = vshrl.u32 %v5978_v54, 16  ;;  %468 = vst.msk [vmem:[#allocation2 + $0xb1] sm:$0xff] %vm334_vm0, %v5532_v44 }
  0x85   : > { %v700_v7 = vrot.slane %v698_v59, 4  ;;  %v703_v8 = vrot.slane %v701_v60, 5  ;;  %v650_v9 = vshrl.u32 %v5986_v62, 16  ;;  %v653_v10 = vshll.u32 %v5986_v62, 16  ;;  %v500_v11 = vld [vmem:[#allocation2 + $0x68] sm:$0xff]  ;;  %463 = vst.msk [vmem:[#allocation2 + $0x79] sm:$0xff] %vm334_vm0, %v5523_v45 }
  0x86   : > { %v6001_v13 = vrot.slane %v707_v1, 5  ;;  %v659_v14 = vshll.u32 %v5992_v2, 16  ;;  %v501_v15 = vld [vmem:[#allocation2 + $0x70] sm:$0x3]  ;;  %v6004_v16 = vpack.c.bf16 %v500_v11, %v500_v11  ;;  %v663_v17 = vshrl.u32 %v5992_v2, 16  ;;  %464 = vst.msk [vmem:[#allocation2 + $0x81] sm:$0xff] %vm334_vm0, %v5524_v51 }
  0x87   : > { %v704_v18 = vor.u32 %v703_v8, %v700_v7  ;;  %v652_v20 = vrot.slane %v650_v9, 4  ;;  %v655_v21 = vrot.slane %v653_v10, 5  ;;  %v6007_v22 = vpack.c.bf16 %v501_v15, %v501_v15  ;;  %v505_v23 = vld [vmem:[#allocation2 + $0x90] sm:$0xff]  ;;  %471 = vst.msk [vmem:[#allocation2 + $0xd9] sm:$0xff] %vm334_vm0, %v5539_v52  ;;  %v506_v32 = vld [vmem:[#allocation2 + $0x98] sm:$0xff] }
  0x88   : > { %v661_v24 = vrot.slane %v659_v14, 5  ;;  %v731_v25 = vshll.u32 %v6004_v16, 16  ;;  %v735_v26 = vshrl.u32 %v6004_v16, 16  ;;  %v665_v27 = vrot.slane %v663_v17, 4  ;;  %v493_v37 = vld [vmem:[#allocation2 + $0x30] sm:$0xff]  ;;  %472 = vst.msk [vmem:[#allocation2 + $0xe1] sm:$0xff] %vm334_vm0, %v5540_v53 }
  0x89   : > { %9314 = vst [vmem:[#allocation7_spill] sm:$0xff] %v6007_v22  ;;  %v705_v28 = vrot.slane %v704_v18, 4  ;;  %v656_v29 = vor.u32 %v655_v21, %v652_v20  ;;  %v741_v30 = vshll.u32 %v6007_v22, 16  ;;  %v669_v31 = vshll.u32 %v5994_v5, 16  ;;  %v494_v38 = vld [vmem:[#allocation2 + $0x38] sm:$0xff]  ;;  %v5581_v22 = vld [vmem:[%s5929_s15 + $0x68] sm:$0xff]  }
  0x8a   : > { %v6015_v33 = vrot.slane %v731_v25, 5  ;;  %v737_v34 = vrot.slane %v735_v26, 4  ;;  %v666_v35 = vor.u32 %v665_v27, %v661_v24  ;;  %v6017_v36 = vpack.c.bf16 %v505_v23, %v505_v23  ;;  %473 = vst.msk [vmem:[#allocation2 + $0xf1] sm:$0xff] %vm334_vm0, %v5543_v56  ;;  %v495_v11 = vld [vmem:[#allocation2 + $0x40] sm:$0x3] }
  0x8b   : > { %v6023_v39 = vsel %vm5735_vm3, %v705_v28, %v6001_v13  ;;  %v657_v40 = vrot.slane %v656_v29, 4  ;;  %v743_v41 = vrot.slane %v741_v30, 5  ;;  %v671_v42 = vrot.slane %v669_v31, 5  ;;  %474 = vst.msk [vmem:[#allocation2 + $0xf9] sm:$0xff] %vm334_vm0, %v5544_v57  ;;  %v510_v56 = vld [vmem:[#allocation2 + $0xb8] sm:$0x3] }
  0x8c   : > { %9315 = vst [vmem:[#allocation8_spill] sm:$0xff] %v6023_v39  ;;  %1021 = vrot.lane.b32.xlu0 %v6023_v39, %s5630_s11  ;;  %v738_v43 = vor.u32 %v737_v34, %v6015_v33  ;;  %v667_v44 = vrot.slane %v666_v35, 4  ;;  %v6028_v45 = vpack.c.bf16 %v506_v32, %v506_v32  ;;  %v770_v46 = vshrl.u32 %v6017_v36, 16  ;;  %v509_v7 = vld [vmem:[#allocation2 + $0xb0] sm:$0xff]  ;;  %v502_v30 = vld [vmem:[#allocation2 + $0x78] sm:$0xff] }
  0x8d   : > { %v6034_v48 = vsel %vm5735_vm3, %v657_v40, %v661_v24  ;;  %v773_v50 = vshll.u32 %v6017_v36, 16  ;;  %v6037_v51 = vpack.c.bf16 %v493_v37, %v493_v37  ;;  %v6039_v52 = vpack.c.bf16 %v494_v38, %v494_v38  ;;  %469 = vst.msk [vmem:[#allocation2 + $0xc1] sm:$0xff] %vm334_vm0, %v5535_v58 }
  0x8e   : > { %9316 = vst [vmem:[#allocation9_spill] sm:$0xff] %v6034_v48  ;;  %1013 = vrot.lane.b32.xlu1 %v6034_v48, %s5630_s11  ;;  %v739_v53 = vrot.slane %v738_v43, 4  ;;  %v772_v55 = vrot.slane %v770_v46, 4  ;;  %v779_v59 = vshll.u32 %v6028_v45, 16  ;;  %v6057_v8 = vsel %vm5735_vm3, %v667_v44, %v671_v42  ;;  %v514_v37 = vld [vmem:[#allocation2 + $0xd8] sm:$0xff]  ;;  %v499_v44 = vld [vmem:[#allocation2 + $0x60] sm:$0xff] }
  0x8f   : > { %v775_v60 = vrot.slane %v773_v50, 5  ;;  %v674_v61 = vshrl.u32 %v6037_v51, 16  ;;  %v677_v63 = vshll.u32 %v6037_v51, 16  ;;  %v683_v1 = vshll.u32 %v6039_v52, 16  ;;  %9318 = vst [vmem:[#allocation11_spill] sm:$0xff] %v6057_v8  ;;  %v515_v38 = vld [vmem:[#allocation2 + $0xe0] sm:$0xff] }
  0x90   : > { %v6053_v57 = vsel %vm5735_vm3, %v739_v53, %v743_v41  ;;  %v713_v9 = vrot.slane %v711_v6, 4  ;;  %v717_v10 = vshll.u32 %v5988_v0, 16  ;;  %v6062_v15 = vrot.slane %v779_v59, 5  ;;  %574 = vst.msk [vmem:[#allocation3] sm:$0xf] %vm573_vm8, %v5712_v3 }
  0x91   : > { %9317 = vst [vmem:[#allocation10_spill] sm:$0xff] %v6053_v57  ;;  %v776_v14 = vor.u32 %v775_v60, %v772_v55  ;;  %v676_v17 = vrot.slane %v674_v61, 4  ;;  %v679_v18 = vrot.slane %v677_v63, 5  ;;  %v685_v58 = vrot.slane %v683_v1, 5 }
  0x92   : > { %v714_v20 = vor.u32 %v713_v9, %v6001_v13  ;;  %v6065_v21 = vpack.c.bf16 %v509_v7, %v509_v7  ;;  %v6067_v23 = vpack.c.bf16 %v510_v56, %v510_v56  ;;  %v6069_v26 = vpack.c.bf16 %v495_v11, %v495_v11  ;;  %v503_v13 = vld [vmem:[#allocation2 + $0x80] sm:$0xff]  ;;  %575 = vst.msk [vmem:[#allocation3 + $0x4] sm:$0xf] %vm573_vm8, %v5716_v4 }
  0x93   : > { %v777_v24 = vrot.slane %v776_v14, 4  ;;  %v680_v25 = vor.u32 %v679_v18, %v676_v17  ;;  %v687_v6 = vshrl.u32 %v6039_v52, 16  ;;  %v719_v27 = vrot.slane %v717_v10, 5  ;;  %v507_v18 = vld [vmem:[#allocation2 + $0xa0] sm:$0x3] }
  0x94   : > { %9319 = vst [vmem:[#allocation12_spill] sm:$0xff] %v6067_v23  ;;  %1027 = vrot.lane.b32.xlu0 %v6053_v57, %s5630_s11  ;;  %v803_v28 = vshll.u32 %v6065_v21, 16  ;;  %v807_v29 = vshrl.u32 %v6065_v21, 16  ;;  %v715_v32 = vrot.slane %v714_v20, 4  ;;  %v693_v35 = vshll.u32 %v6069_v26, 16  ;;  %v517_v57 = vld [vmem:[#allocation2 + $0xf0] sm:$0xff] }
  0x95   : > { %v681_v31 = vrot.slane %v680_v25, 4  ;;  %v689_v34 = vrot.slane %v687_v6, 4  ;;  %v6082_v40 = vsel %vm5735_vm3, %v777_v24, %v6062_v15  ;;  %v813_v43 = vshll.u32 %v6067_v23, 16  ;;  %v518_v6 = vld [vmem:[#allocation2 + $0xf8] sm:$0xff]  ;;  %576 = vst.msk [vmem:[#allocation3 + $0x8] sm:$0xf] %vm573_vm8, %v5986_v62 }
  0x96   : > { %1015 = vrot.lane.b32.xlu1 %v6057_v8, %s5630_s11  ;;  %9320 = vst [vmem:[#allocation13_spill] sm:$0xff] %v6082_v40  ;;  %v6084_v41 = vrot.slane %v803_v28, 5  ;;  %v809_v42 = vrot.slane %v807_v29, 4  ;;  %v695_v53 = vrot.slane %v693_v35, 5  ;;  %v6091_v55 = vpack.c.bf16 %v502_v30, %v502_v30 }
  0x97   : > { %v6089_v46 = vsel %vm5735_vm3, %v681_v31, %v685_v58  ;;  %v690_v50 = vor.u32 %v689_v34, %v685_v58  ;;  %v6096_v56 = vpack.c.bf16 %v503_v13, %v503_v13  ;;  %v6098_v60 = vpack.c.bf16 %v514_v37, %v514_v37  ;;  %v519_v13 = vld [vmem:[#allocation2 + $0x100] sm:$0x3]  ;;  %577 = vst.msk [vmem:[#allocation3 + $0xc] sm:$0xf] %vm573_vm8, %v5992_v2 }
  0x98   : > { %9321 = vst [vmem:[#allocation14_spill] sm:$0xff] %v6089_v46  ;;  %1017 = vrot.lane.b32.xlu2 %v6089_v46, %s5630_s11  ;;  %v810_v59 = vor.u32 %v809_v42, %v6084_v41  ;;  %v6100_v61 = vpack.c.bf16 %v515_v38, %v515_v38  ;;  %v746_v1 = vshrl.u32 %v6091_v55, 16  ;;  %v749_v7 = vshll.u32 %v6091_v55, 16 }
  0x99   : > { %v691_v63 = vrot.slane %v690_v50, 4  ;;  %v6104_v9 = vpack.c.bf16 %v499_v44, %v499_v44  ;;  %v6108_v10 = vsel %vm5735_vm3, %v715_v32, %v719_v27  ;;  %v755_v11 = vshll.u32 %v6096_v56, 16  ;;  %578 = vst.msk [vmem:[#allocation3 + $0x10] sm:$0xf] %vm573_vm8, %v6037_v51 }
  0x9a   : > { %9322 = vst [vmem:[#allocation15_spill] sm:$0xff] %v6108_v10  ;;  %v842_v14 = vshrl.u32 %v6098_v60, 16  ;;  %v845_v17 = vshll.u32 %v6098_v60, 16  ;;  %v811_v58 = vrot.slane %v810_v59, 4  ;;  %v815_v20 = vrot.slane %v813_v43, 5 }
  0x9b   : > { %v748_v24 = vrot.slane %v746_v1, 4  ;;  %v751_v25 = vrot.slane %v749_v7, 5  ;;  %v6117_v28 = vsel %vm5735_vm3, %v691_v63, %v695_v53  ;;  %v851_v30 = vshll.u32 %v6100_v61, 16  ;;  %579 = vst.msk [vmem:[#allocation3 + $0x14] sm:$0xf] %vm573_vm8, %v6039_v52 }
  0x9c   : > { %1033 = vrot.lane.b32.xlu0 %v6082_v40, %s5630_s11  ;;  %9323 = vst [vmem:[#allocation16_spill] sm:$0xff] %v6117_v28  ;;  %v844_v27 = vrot.slane %v842_v14, 4  ;;  %v847_v29 = vrot.slane %v845_v17, 5  ;;  %v6120_v32 = vrot.slane %v755_v11, 5  ;;  %v722_v34 = vshrl.u32 %v6104_v9, 16 }
  0x9d   : > { %v752_v31 = vor.u32 %v751_v25, %v748_v24  ;;  %v725_v35 = vshll.u32 %v6104_v9, 16  ;;  %v6126_v38 = vpack.c.bf16 %v507_v18, %v507_v18  ;;  %v783_v42 = vshrl.u32 %v6028_v45, 16  ;;  %v504_v11 = vld [vmem:[#allocation2 + $0x88] sm:$0x3]  ;;  %v511_v25 = vld [vmem:[#allocation2 + $0xc0] sm:$0xff] }
  0x9e   : > { %1023 = vrot.lane.b32.xlu1 %v6108_v10, %s5630_s11  ;;  %v848_v37 = vor.u32 %v847_v29, %v844_v27  ;;  %v6129_v43 = vpack.c.bf16 %v518_v6, %v518_v6  ;;  %v724_v50 = vrot.slane %v722_v34, 4  ;;  %v6131_v59 = vpack.c.bf16 %v519_v13, %v519_v13  ;;  %580 = vst.msk [vmem:[#allocation3 + $0x18] sm:$0xf] %vm573_vm8, %v5973_v49 }
  0x9f   : > { %v753_v44 = vrot.slane %v752_v31, 4  ;;  %v727_v53 = vrot.slane %v725_v35, 5  ;;  %v785_v63 = vrot.slane %v783_v42, 4  ;;  %v789_v1 = vshll.u32 %v6126_v38, 16  ;;  %v5579_v31 = vld [vmem:[%s5929_s15 + $0x58] sm:$0xff]  }
  0xa0   : > { %9324 = vst [vmem:[#allocation17_spill] sm:$0xff] %v6131_v59  ;;  %1019 = vrot.lane.b32.xlu2 %v6117_v28, %s5630_s11  ;;  %v875_v7 = vshll.u32 %v6129_v43, 16  ;;  %v6139_v14 = vsel %vm5735_vm3, %v811_v58, %v815_v20  ;;  %v6141_v17 = vrot.slane %v851_v30, 5  ;;  %v879_v24 = vshrl.u32 %v6129_v43, 16 }
  0xa1   : > { %9325 = vst [vmem:[#allocation18_spill] sm:$0xff] %v6139_v14  ;;  %v728_v18 = vor.u32 %v727_v53, %v724_v50  ;;  %v6147_v6 = vsel %vm5735_vm3, %v753_v44, %v6120_v32  ;;  %v849_v27 = vrot.slane %v848_v37, 4  ;;  %v786_v29 = vor.u32 %v785_v63, %v6062_v15  ;;  %v508_v15 = vld [vmem:[#allocation2 + $0xa8] sm:$0xff] }
  0xa2   : > { %9326 = vst [vmem:[#allocation19_spill] sm:$0xff] %v6147_v6  ;;  %v6150_v13 = vrot.slane %v875_v7, 5  ;;  %v881_v58 = vrot.slane %v879_v24, 4  ;;  %v885_v20 = vshll.u32 %v6131_v59, 16  ;;  %v6154_v30 = vpack.c.bf16 %v504_v11, %v504_v11 }
  0xa3   : > { %v729_v34 = vrot.slane %v728_v18, 4  ;;  %v791_v35 = vrot.slane %v789_v1, 5  ;;  %v759_v42 = vshrl.u32 %v6096_v56, 16  ;;  %v5536_v44 = vunpack.c.h.bf16 %v5971_v47  ;;  %581 = vst.msk [vmem:[#allocation3 + $0x1c] sm:$0xf] %vm573_vm8, %v5978_v54 }
  0xa4   : > { %1039 = vrot.lane.b32.xlu0 %v6139_v14, %s5630_s11  ;;  %v6160_v37 = vpack.c.bf16 %v511_v25, %v511_v25  ;;  %v787_v53 = vrot.slane %v786_v29, 4  ;;  %v765_v63 = vshll.u32 %v6154_v30, 16  ;;  %v5551_v7 = vunpack.c.l.bf16 %v5579_v31  ;;  %v5580_v29 = vld [vmem:[%s5929_s15 + $0x60] sm:$0xff]   ;;  %v516_v14 = vld [vmem:[#allocation2 + $0xe8] sm:$0x3] }
  0xa5   : > { %v6165_v50 = vsel %vm5735_vm3, %v729_v34, %v6015_v33  ;;  %v882_v1 = vor.u32 %v881_v58, %v6150_v13  ;;  %v761_v11 = vrot.slane %v759_v42, 4  ;;  %470 = vst.msk [vmem:[#allocation2 + $0xc9] sm:$0xff] %vm334_vm0, %v5536_v44  ;;  %v6177_v33 = vsel %vm5735_vm3, %v849_v27, %v6141_v17 }
  0xa6   : > { %9327 = vst [vmem:[#allocation20_spill] sm:$0xff] %v6165_v50  ;;  %1029 = vrot.lane.b32.xlu1 %v6147_v6, %s5630_s11  ;;  %v818_v47 = vshrl.u32 %v6160_v37, 16  ;;  %v821_v18 = vshll.u32 %v6160_v37, 16  ;;  %v5552_v24 = vunpack.c.h.bf16 %v5579_v31  ;;  %v6180_v25 = vpack.c.bf16 %v508_v15, %v508_v15 }
  0xa7   : > { %9328 = vst [vmem:[#allocation21_spill] sm:$0xff] %v6177_v33  ;;  %v887_v34 = vrot.slane %v885_v20, 5  ;;  %v762_v58 = vor.u32 %v761_v11, %v6120_v32  ;;  %v767_v6 = vrot.slane %v765_v63, 5  ;;  %v855_v15 = vshrl.u32 %v6100_v61, 16  ;;  %v5582_v11 = vld [vmem:[%s5929_s15 + $0x70] sm:$0xff]  }
  0xa8   : > { %477 = vst.msk [vmem:[#allocation2 + $0x121] sm:$0xff] %vm334_vm0, %v5551_v7  ;;  %1025 = vrot.lane.b32.xlu2 %v6165_v50, %s5630_s11  ;;  %v820_v42 = vrot.slane %v818_v47, 4  ;;  %v823_v44 = vrot.slane %v821_v18, 5  ;;  %v794_v27 = vshrl.u32 %v6180_v25, 16  ;;  %v797_v31 = vshll.u32 %v6180_v25, 16  ;;  %v5578_v7 = vld [vmem:[%s5929_s15 + $0x50] sm:$0xff]  }
  0xa9   : > { %478 = vst.msk [vmem:[#allocation2 + $0x129] sm:$0xff] %vm334_vm0, %v5552_v24  ;;  %v6193_v40 = vsel %vm5735_vm3, %v787_v53, %v791_v35  ;;  %v883_v20 = vrot.slane %v882_v1, 4  ;;  %v763_v10 = vrot.slane %v762_v58, 4  ;;  %v5555_v32 = vunpack.c.l.bf16 %v5580_v29 }
  0xaa   : > { %9329 = vst [vmem:[#allocation22_spill] sm:$0xff] %v6193_v40  ;;  %v796_v47 = vrot.slane %v794_v27, 4  ;;  %v799_v18 = vrot.slane %v797_v31, 5  ;;  %v6196_v63 = vpack.c.bf16 %v516_v14, %v516_v14  ;;  %v5556_v24 = vunpack.c.h.bf16 %v5580_v29 }
  0xab   : > { %v824_v46 = vor.u32 %v823_v44, %v820_v42  ;;  %v857_v39 = vrot.slane %v855_v15, 4  ;;  %479 = vst.msk [vmem:[#allocation2 + $0x139] sm:$0xff] %vm334_vm0, %v5555_v32  ;;  %v5547_v8 = vunpack.c.l.bf16 %v5578_v7  ;;  %v6203_v35 = vsel %vm5735_vm3, %v763_v10, %v767_v6 }
  0xac   : > { %9330 = vst [vmem:[#allocation23_spill] sm:$0xff] %v6196_v63  ;;  %1045 = vrot.lane.b32.xlu0 %v6177_v33, %s5630_s11  ;;  %v512_v53 = vld [vmem:[#allocation2 + $0xc8] sm:$0xff]  ;;  %v800_v1 = vor.u32 %v799_v18, %v796_v47  ;;  %v513_v14 = vld [vmem:[#allocation2 + $0xd0] sm:$0x3]  ;;  %v5548_v58 = vunpack.c.h.bf16 %v5578_v7  ;;  %v5563_v29 = vunpack.c.l.bf16 %v5582_v11  ;;  %v5564_v31 = vunpack.c.h.bf16 %v5582_v11 }
  0xad   : > { %9331 = vst [vmem:[#allocation24_spill] sm:$0xff] %v6203_v35  ;;  %v6208_v27 = vpack.c.bf16 %v512_v53, %v512_v53  ;;  %v6210_v44 = vpack.c.bf16 %v513_v14, %v513_v14  ;;  %v6213_v10 = vpack.c.bf16 %v517_v57, %v517_v57  ;;  %v6217_v6 = vsel %vm5735_vm3, %v883_v20, %v887_v34 }
  0xae   : > { %480 = vst.msk [vmem:[#allocation2 + $0x141] sm:$0xff] %vm334_vm0, %v5556_v24  ;;  %1035 = vrot.lane.b32.xlu1 %v6193_v40, %s5630_s11  ;;  %v861_v7 = vshll.u32 %v6196_v63, 16  ;;  %v825_v32 = vrot.slane %v824_v46, 4  ;;  %v801_v11 = vrot.slane %v800_v1, 4  ;;  %v858_v24 = vor.u32 %v857_v39, %v6141_v17 }
  0xaf   : > { %v523_v42 = vld [vmem:[#allocation2 + $0x120] sm:$0xff]  ;;  %9332 = vst [vmem:[#allocation25_spill] sm:$0xff] %v6210_v44  ;;  %v827_v47 = vshll.u32 %v6208_v27, 16  ;;  %v831_v57 = vshrl.u32 %v6208_v27, 16  ;;  %v837_v14 = vshll.u32 %v6210_v44, 16  ;;  %v866_v1 = vshrl.u32 %v6213_v10, 16 }
  0xb0   : > { %475 = vst.msk [vmem:[#allocation2 + $0x109] sm:$0xff] %vm334_vm0, %v5547_v8  ;;  %v6219_v15 = vpack.c.bf16 %v523_v42, %v523_v42  ;;  %1031 = vrot.lane.b32.xlu2 %v6203_v35, %s5630_s11  ;;  %v524_v8 = vld [vmem:[#allocation2 + $0x128] sm:$0xff]  ;;  %v6246_v39 = vsel %vm5735_vm3, %v801_v11, %v6084_v41 }
  0xb1   : > { %9333 = vst [vmem:[#allocation26_spill] sm:$0xff] %v6217_v6  ;;  %v6228_v34 = vpack.c.bf16 %v524_v8, %v524_v8  ;;  %v829_v53 = vrot.slane %v827_v47, 5  ;;  %v833_v46 = vrot.slane %v831_v57, 4  ;;  %v863_v8 = vrot.slane %v861_v7, 5 }
  0xb2   : > { %476 = vst.msk [vmem:[#allocation2 + $0x111] sm:$0xff] %vm334_vm0, %v5548_v58  ;;  %v914_v20 = vshrl.u32 %v6219_v15, 16  ;;  %v917_v18 = vshll.u32 %v6219_v15, 16  ;;  %v869_v57 = vshll.u32 %v6213_v10, 16  ;;  %v839_v35 = vrot.slane %v837_v14, 5 }
  0xb3   : > { %483 = vst.msk [vmem:[#allocation2 + $0x169] sm:$0xff] %vm334_vm0, %v5563_v29  ;;  %v923_v29 = vshll.u32 %v6228_v34, 16  ;;  %v6241_v33 = vsel %vm5735_vm3, %v825_v32, %v829_v53  ;;  %v834_v47 = vor.u32 %v833_v46, %v829_v53  ;;  %v859_v32 = vrot.slane %v858_v24, 4 }
  0xb4   : > { %484 = vst.msk [vmem:[#allocation2 + $0x171] sm:$0xff] %vm334_vm0, %v5564_v31  ;;  %v916_v58 = vrot.slane %v914_v20, 4  ;;  %v919_v42 = vrot.slane %v917_v18, 5  ;;  %1051 = vrot.lane.b32.xlu0 %v6217_v6, %s5630_s11  ;;  %v868_v50 = vrot.slane %v866_v1, 4  ;;  %v871_v14 = vrot.slane %v869_v57, 5 }
  0xb5   : > { %9334 = vst [vmem:[#allocation27_spill] sm:$0xff] %v6241_v33  ;;  %v527_v17 = vld [vmem:[#allocation2 + $0x140] sm:$0xff]  ;;  %v528_v31 = vld [vmem:[#allocation2 + $0x148] sm:$0x3]  ;;  %v6249_v18 = vrot.slane %v923_v29, 5  ;;  %v6279_v48 = vsel %vm5735_vm3, %v859_v32, %v863_v8 }
  0xb6   : > { %9335 = vst [vmem:[#allocation28_spill] sm:$0xff] %v6246_v39  ;;  %v920_v20 = vor.u32 %v919_v42, %v916_v58  ;;  %v6251_v7 = vpack.c.bf16 %v527_v17, %v527_v17  ;;  %v6253_v6 = vpack.c.bf16 %v528_v31, %v528_v31  ;;  %1041 = vrot.lane.b32.xlu1 %v6241_v33, %s5630_s11  ;;  %v835_v42 = vrot.slane %v834_v47, 4 }
  0xb7   : > { %v520_v40 = vld [vmem:[#allocation2 + $0x108] sm:$0xff]  ;;  %9338 = vst [vmem:[#allocation31_spill] sm:$0xff] %v6279_v48 }
  0xb8   : > { %9336 = vst [vmem:[#allocation29_spill] sm:$0xff] %v6253_v6  ;;  %v6257_v11 = vpack.c.bf16 %v520_v40, %v520_v40  ;;  %v921_v53 = vrot.slane %v920_v20, 4  ;;  %v947_v46 = vshll.u32 %v6251_v7, 16  ;;  %v951_v58 = vshrl.u32 %v6251_v7, 16  ;;  %1037 = vrot.lane.b32.xlu2 %v6246_v39, %s5630_s11 }
  0xb9   : > { %v521_v41 = vld [vmem:[#allocation2 + $0x110] sm:$0xff]  ;;  %v957_v47 = vshll.u32 %v6253_v6, 16  ;;  %v872_v6 = vor.u32 %v871_v14, %v868_v50  ;;  %582 = vst.msk [vmem:[#allocation3 + $0x20] sm:$0xf] %vm573_vm8, %v6104_v9 }
  0xba   : > { %v532_v29 = vld [vmem:[#allocation2 + $0x168] sm:$0xff]  ;;  %v6263_v17 = vpack.c.bf16 %v521_v41, %v521_v41  ;;  %v890_v31 = vshrl.u32 %v6257_v11, 16  ;;  %v893_v24 = vshll.u32 %v6257_v11, 16  ;;  %v6270_v40 = vsel %vm5735_vm3, %v921_v53, %v6249_v18  ;;  %583 = vst.msk [vmem:[#allocation3 + $0x24] sm:$0xf] %vm573_vm8, %v6004_v16 }
  0xbb   : > { %9337 = vst [vmem:[#allocation30_spill] sm:$0xff] %v6270_v40  ;;  %v6272_v1 = vrot.slane %v947_v46, 5  ;;  %v953_v20 = vrot.slane %v951_v58, 4  ;;  %v533_v33 = vld [vmem:[#allocation2 + $0x170] sm:$0xff]  ;;  %v6275_v41 = vpack.c.bf16 %v532_v29, %v532_v29  ;;  %v927_v53 = vshrl.u32 %v6228_v34, 16 }
  0xbc   : > { %v892_v28 = vrot.slane %v890_v31, 4  ;;  %v895_v39 = vrot.slane %v893_v24, 5  ;;  %v899_v59 = vshll.u32 %v6263_v17, 16  ;;  %1057 = vrot.lane.b32.xlu0 %v6270_v40, %s5630_s11  ;;  %v6286_v58 = vpack.c.bf16 %v533_v33, %v533_v33  ;;  %v525_v24 = vld [vmem:[#allocation2 + $0x130] sm:$0x3] }
  0xbd   : > { %v954_v57 = vor.u32 %v953_v20, %v6272_v1  ;;  %v986_v29 = vshrl.u32 %v6275_v41, 16  ;;  %v989_v31 = vshll.u32 %v6275_v41, 16  ;;  %v959_v32 = vrot.slane %v957_v47, 5  ;;  %v522_v33 = vld [vmem:[#allocation2 + $0x118] sm:$0x3] }
  0xbe   : > { %v896_v46 = vor.u32 %v895_v39, %v892_v28  ;;  %v6292_v20 = vsel %vm5735_vm3, %v835_v42, %v839_v35  ;;  %1047 = vrot.lane.b32.xlu1 %v6279_v48, %s5630_s11  ;;  %v901_v23 = vrot.slane %v899_v59, 5  ;;  %v6296_v44 = vpack.c.bf16 %v525_v24, %v525_v24  ;;  %v526_v59 = vld [vmem:[#allocation2 + $0x138] sm:$0xff]  ;;  %584 = vst.msk [vmem:[#allocation3 + $0x28] sm:$0xf] %vm573_vm8, %v6091_v55 }
  0xbf   : > { %v955_v8 = vrot.slane %v954_v57, 4  ;;  %9339 = vst [vmem:[#allocation32_spill] sm:$0xff] %v6292_v20  ;;  %v988_v40 = vrot.slane %v986_v29, 4  ;;  %v991_v28 = vrot.slane %v989_v31, 5  ;;  %v929_v63 = vrot.slane %v927_v53, 4 }
  0xc0   : > { %v897_v39 = vrot.slane %v896_v46, 4  ;;  %1043 = vrot.lane.b32.xlu2 %v6292_v20, %s5630_s11  ;;  %v995_v35 = vshll.u32 %v6286_v58, 16  ;;  %v873_v42 = vrot.slane %v872_v6, 4  ;;  %v6306_v14 = vpack.c.bf16 %v522_v33, %v522_v33  ;;  %585 = vst.msk [vmem:[#allocation3 + $0x2c] sm:$0xf] %vm573_vm8, %v6096_v56 }
  0xc1   : > { %v992_v47 = vor.u32 %v991_v28, %v988_v40  ;;  %v6304_v50 = vsel %vm5735_vm3, %v955_v8, %v959_v32  ;;  %v903_v57 = vshrl.u32 %v6263_v17, 16  ;;  %v5559_v46 = vunpack.c.l.bf16 %v5581_v22  ;;  %586 = vst.msk [vmem:[#allocation3 + $0x30] sm:$0xf] %vm573_vm8, %v6017_v36 }
  0xc2   : > { %9340 = vst [vmem:[#allocation33_spill] sm:$0xff] %v6304_v50  ;;  %v5560_v29 = vunpack.c.h.bf16 %v5581_v22  ;;  %v6311_v53 = vsel %vm5735_vm3, %v897_v39, %v901_v23  ;;  %v930_v40 = vor.u32 %v929_v63, %v6249_v18  ;;  %v933_v31 = vshll.u32 %v6296_v44, 16 }
  0xc3   : > { %9341 = vst [vmem:[#allocation34_spill] sm:$0xff] %v6311_v53  ;;  %v905_v24 = vrot.slane %v903_v57, 4  ;;  %v993_v6 = vrot.slane %v992_v47, 4  ;;  %v6317_v8 = vrot.slane %v995_v35, 5  ;;  %v6320_v32 = vpack.c.bf16 %v526_v59, %v526_v59 }
  0xc4   : > { %1063 = vrot.lane.b32.xlu0 %v6304_v50, %s5630_s11  ;;  %481 = vst.msk [vmem:[#allocation2 + $0x151] sm:$0xff] %vm334_vm0, %v5559_v46  ;;  %v6325_v22 = vsel %vm5735_vm3, %v873_v42, %v6150_v13  ;;  %v909_v63 = vshll.u32 %v6306_v14, 16  ;;  %v931_v39 = vrot.slane %v930_v40, 4  ;;  %v935_v47 = vrot.slane %v933_v31, 5 }
  0xc5   : > { %9342 = vst [vmem:[#allocation35_spill] sm:$0xff] %v6325_v22  ;;  %v906_v28 = vor.u32 %v905_v24, %v901_v23  ;;  %v938_v18 = vshrl.u32 %v6320_v32, 16  ;;  %v941_v33 = vshll.u32 %v6320_v32, 16  ;;  %v6336_v35 = vsel %vm5735_vm3, %v993_v6, %v6317_v8 }
  0xc6   : > { %482 = vst.msk [vmem:[#allocation2 + $0x159] sm:$0xff] %vm334_vm0, %v5560_v29  ;;  %1053 = vrot.lane.b32.xlu1 %v6311_v53, %s5630_s11  ;;  %v9177_v23 = vrot.slane %v5716_v4, 5  ;;  %v911_v42 = vrot.slane %v909_v63, 5  ;;  %v6343_v46 = vsel %vm5735_vm3, %v931_v39, %v935_v47  ;;  %v999_v40 = vshrl.u32 %v6286_v58, 16 }
  0xc7   : > { %9343 = vst [vmem:[#allocation36_spill] sm:$0xff] %v6336_v35  ;;  %v907_v13 = vrot.slane %v906_v28, 4  ;;  %v940_v57 = vrot.slane %v938_v18, 4  ;;  %v943_v59 = vrot.slane %v941_v33, 5  ;;  %v1194_v31 = vrot.slane %v5875_v19, 5 }
  0xc8   : > { %1049 = vrot.lane.b32.xlu2 %v6325_v22, %s5630_s11  ;;  %9344 = vst [vmem:[#allocation37_spill] sm:$0xff] %v6343_v46  ;;  %v534_v28 = vld [vmem:[#allocation2 + $0x178] sm:$0x3]  ;;  %v1193_v63 = vrot.slane %v9177_v23, 4 }
  0xc9   : > { %v6355_v18 = vsel %vm5735_vm3, %v907_v13, %v911_v42  ;;  %v944_v39 = vor.u32 %v943_v59, %v940_v57  ;;  %v6368_v50 = vpack.c.bf16 %v534_v28, %v534_v28  ;;  %v1001_v13 = vrot.slane %v999_v40, 4  ;;  %v1010_v57 = vpop.permute.xlu0 %1009  ;;  %587 = vst.msk [vmem:[#allocation3 + $0x34] sm:$0xf] %vm573_vm8, %v6028_v45 }
  0xca   : > { %9345 = vst [vmem:[#allocation38_spill] sm:$0xff] %v6355_v18 }
  0xcb   : > { %v529_v29 = vld [vmem:[#allocation2 + $0x150] sm:$0xff]  ;;  %v945_v53 = vrot.slane %v944_v39, 4  ;;  %1106 = vst.msk [vmem:[#allocation3] sm:$0xf] %vm1105_vm9, %v1010_v57 }
  0xcc   : > { %1069 = vrot.lane.b32.xlu0 %v6336_v35, %s5630_s11  ;;  %v6349_v6 = vpack.c.bf16 %v529_v29, %v529_v29  ;;  %588 = vst.msk [vmem:[#allocation3 + $0x38] sm:$0xf] %vm573_vm8, %v6180_v25 }
  0xcd   : > { %v530_v24 = vld [vmem:[#allocation2 + $0x158] sm:$0xff]  ;;  %v531_v35 = vld [vmem:[#allocation2 + $0x160] sm:$0x3]  ;;  %v6392_v39 = vsel %vm5735_vm3, %v945_v53, %v6272_v1  ;;  %589 = vst.msk [vmem:[#allocation3 + $0x3c] sm:$0xf] %vm573_vm8, %v6065_v21 }
  0xce   : > { %v6357_v33 = vpack.c.bf16 %v530_v24, %v530_v24  ;;  %1059 = vrot.lane.b32.xlu1 %v6343_v46, %s5630_s11  ;;  %v962_v19 = vshrl.u32 %v6349_v6, 16  ;;  %v965_v29 = vshll.u32 %v6349_v6, 16  ;;  %v1195_v46 = vsel %vm6361_vm7, %v1193_v63, %v1194_v31  ;;  %9348 = vst [vmem:[#allocation39_spill] sm:$0xff] %v6392_v39 }
  0xcf   : > { %v6375_v48 = vpack.c.bf16 %v531_v35, %v531_v35  ;;  %v5219_v31 = vrot.slane %v6037_v51, 9  ;;  %v1002_v35 = vor.u32 %v1001_v13, %v6317_v8  ;;  %v1005_v63 = vshll.u32 %v6368_v50, 16  ;;  %590 = vst.msk [vmem:[#allocation3 + $0x40] sm:$0xf] %vm573_vm8, %v6160_v37 }
  0xd0   : > { %v971_v23 = vshll.u32 %v6357_v33, 16  ;;  %v975_v42 = vshrl.u32 %v6357_v33, 16  ;;  %1055 = vrot.lane.b32.xlu2 %v6355_v18, %s5630_s11  ;;  %v964_v59 = vrot.slane %v962_v19, 4  ;;  %v967_v24 = vrot.slane %v965_v29, 5  ;;  %591 = vst.msk [vmem:[#allocation3 + $0x44] sm:$0xf] %vm573_vm8, %v6208_v27 }
  0xd1   : > { %v1003_v1 = vrot.slane %v1002_v35, 4  ;;  %v1007_v53 = vrot.slane %v1005_v63, 5  ;;  %v1212_v13 = vrot.slane %v5978_v54, 5  ;;  %v5217_v35 = vrot.slane %v5712_v3, 9  ;;  %592 = vst.msk [vmem:[#allocation3 + $0x48] sm:$0xf] %vm573_vm8, %v6098_v60 }
  0xd2   : > { %v977_v22 = vrot.slane %v975_v42, 4  ;;  %v968_v40 = vor.u32 %v967_v24, %v964_v59  ;;  %v973_v28 = vrot.slane %v971_v23, 5  ;;  %v1205_v23 = vrot.slane %v6039_v52, 5  ;;  %593 = vst.msk [vmem:[#allocation3 + $0x4c] sm:$0xf] %vm573_vm8, %v6100_v61 }
  0xd3   : > { %v6426_v59 = vsel %vm5735_vm3, %v1003_v1, %v1007_v53  ;;  %v1214_v24 = vrot.slane %v1212_v13, 4  ;;  %v5222_v3 = vrot.slane %v6091_v55, 9  ;;  %594 = vst.msk [vmem:[#allocation3 + $0x50] sm:$0xf] %vm573_vm8, %v6213_v10 }
  0xd4   : > { %1303 = vrot.lane.b32.xlu0 %v1195_v46, %s5631_s16  ;;  %v969_v19 = vrot.slane %v968_v40, 4  ;;  %v978_v29 = vor.u32 %v977_v22, %v973_v28  ;;  %v981_v46 = vshll.u32 %v6375_v48, 16  ;;  %v6413_v22 = vsel %vm6361_vm7, %v5219_v31, %v1205_v23  ;;  %595 = vst.msk [vmem:[#allocation3 + $0x54] sm:$0xf] %vm573_vm8, %v6129_v43 }
  0xd5   : > { %v1215_v40 = vrot.slane %v5988_v0, 5  ;;  %v5218_v0 = vrot.slane %v5986_v62, 9  ;;  %v1207_v53 = vrot.slane %v1205_v23, 4  ;;  %596 = vst.msk [vmem:[#allocation3 + $0x58] sm:$0xf] %vm573_vm8, %v6257_v11  ;;  %v1236_v23 = vrot.slane %v6126_v38, 5 }
  0xd6   : > { %v6399_v8 = vsel %vm5735_vm3, %v969_v19, %v973_v28  ;;  %v979_v42 = vrot.slane %v978_v29, 4  ;;  %v983_v57 = vrot.slane %v981_v46, 5  ;;  %v1198_v19 = vrot.slane %v5992_v2, 5  ;;  %597 = vst.msk [vmem:[#allocation3 + $0x5c] sm:$0xf] %vm573_vm8, %v6263_v17 }
  0xd7   : > { %1065 = vrot.lane.b32.xlu1 %v6399_v8, %s5630_s11  ;;  %v6453_v31 = vsel %vm6361_vm7, %v1214_v24, %v1215_v40  ;;  %v1226_v29 = vrot.slane %v6096_v56, 5  ;;  %v9350_v46 = vrot.slane %v5716_v4, 5  ;;  %v1208_v4 = vrot.slane %v6069_v26, 5  ;;  %598 = vst.msk [vmem:[#allocation3 + $0x60] sm:$0xf] %vm573_vm8, %v6219_v15 }
  0xd8   : > { %1061 = vrot.lane.b32.xlu2 %v6392_v39, %s5630_s11  ;;  %v6435_v28 = vsel %vm5735_vm3, %v979_v42, %v983_v57  ;;  %v6466_v63 = vsel %vm6361_vm7, %v5218_v0, %v1198_v19  ;;  %v9188_v57 = vrot.slane %v6028_v45, 5  ;;  %v1200_v24 = vrot.slane %v1198_v19, 4  ;;  %599 = vst.msk [vmem:[#allocation3 + $0x64] sm:$0xf] %vm573_vm8, %v6228_v34  ;;  %v1012_v19 = vpop.permute.xlu0 %1011 }
  0xd9   : > { %9349 = vst [vmem:[#allocation40_spill] sm:$0xff] %v6435_v28  ;;  %v1192_v1 = vsel %vm6361_vm7, %v5217_v35, %v9350_v46  ;;  %v6490_v42 = vsel %vm6361_vm7, %v5222_v3, %v1226_v29  ;;  %v1201_v40 = vrot.slane %v5994_v5, 5  ;;  %v6504_v26 = vsel %vm6361_vm7, %v1207_v53, %v1208_v4 }
  0xda   : > { %9351 = vst [vmem:[#allocation41_spill] sm:$0xff] %v6490_v42  ;;  %v1235_v5 = vrot.slane %v9188_v57, 4  ;;  %v5221_v38 = vrot.slane %v6104_v9, 9  ;;  %v1219_v35 = vrot.slane %v6004_v16, 5  ;;  %v5220_v46 = vrot.slane %v5973_v49, 9  ;;  %v9356_v57 = vld [vmem:[#allocation7_spill] sm:$0xff] }
  0xdb   : > { %9352 = vst [vmem:[#allocation42_spill] sm:$0xff] %v6504_v26  ;;  %v6515_v0 = vsel %vm6361_vm7, %v1200_v24, %v1201_v40  ;;  %v5225_v4 = vrot.slane %v6160_v37, 9  ;;  %v1247_v24 = vrot.slane %v6208_v27, 5 }
  0xdc   : > { %1309 = vrot.lane.b32.xlu0 %v6413_v22, %s5631_s16  ;;  %600 = vst.msk [vmem:[#allocation3 + $0x68] sm:$0xf] %vm573_vm8, %v6320_v32  ;;  %v6533_v3 = vsel %vm6361_vm7, %v1235_v5, %v1236_v23  ;;  %v6542_v53 = vsel %vm6361_vm7, %v5221_v38, %v1219_v35  ;;  %v6550_v40 = vsel %vm6361_vm7, %v5220_v46, %v1212_v13  ;;  %v1228_v5 = vrot.slane %v1226_v29, 4  ;;  %v9358_v46 = vld [vmem:[#allocation23_spill] sm:$0xff] }
  0xdd   : > { %601 = vst.msk [vmem:[#allocation3 + $0x6c] sm:$0xf] %vm573_vm8, %v6251_v7  ;;  %v1229_v23 = vrot.slane %v6154_v30, 5  ;;  %v9191_v38 = vrot.slane %v6100_v61, 5 }
  0xde   : > { %602 = vst.msk [vmem:[#allocation3 + $0x70] sm:$0xf] %vm573_vm8, %v6349_v6 }
  0xdf   : > { %1071 = vrot.lane.b32.xlu1 %v6426_v59, %s5630_s11  ;;  %603 = vst.msk [vmem:[#allocation3 + $0x74] sm:$0xf] %vm573_vm8, %v6357_v33  ;;  %v6568_v29 = vsel %vm6361_vm7, %v1228_v5, %v1229_v23  ;;  %v1256_v30 = vrot.slane %v9191_v38, 4  ;;  %v5224_v5 = vrot.slane %v6180_v25, 9  ;;  %v1240_v23 = vrot.slane %v6065_v21, 5 }
  0xe0   : > { %1067 = vrot.lane.b32.xlu2 %v6435_v28, %s5630_s11  ;;  %604 = vst.msk [vmem:[#allocation3 + $0x78] sm:$0xf] %vm573_vm8, %v6275_v41  ;;  %v5228_v38 = vrot.slane %v6257_v11, 9 }
  0xe1   : > { %605 = vst.msk [vmem:[#allocation3 + $0x7c] sm:$0xf] %vm573_vm8, %v6286_v58 }
  0xe2   : > { %9353 = vst [vmem:[#allocation43_spill] sm:$0xff] %v6533_v3 }
  0xe3   : > { %1107 = vst.msk [vmem:[#allocation3 + $0x4] sm:$0xf] %vm1105_vm9, %v1012_v19  ;;  %v6559_v19 = vsel %vm6361_vm7, %v5225_v4, %v1247_v24  ;;  %v1257_v4 = vrot.slane %v9358_v46, 5 }
  0xe4   : > { %1315 = vrot.lane.b32.xlu0 %v6453_v31, %s5631_s16  ;;  %9354 = vst [vmem:[#allocation44_spill] sm:$0xff] %v6542_v53 }
  0xe5   : > { %9355 = vst [vmem:[#allocation45_spill] sm:$0xff] %v6559_v19 }
  0xe6   : > { %9357 = vst [vmem:[#allocation7_spill] sm:$0xff] %v6568_v29 }
  0xe7   : > { %1305 = vrot.lane.b32.xlu1 %v6466_v63, %s5631_s16 }
  0xe8   : > { %1301 = vrot.lane.b32.xlu2 %v1192_v1, %s5631_s16 }
  0xec   : > { %1321 = vrot.lane.b32.xlu0 %v6490_v42, %s5631_s16  ;;  %v9364_v42 = vld [vmem:[#allocation12_spill] sm:$0xff] }
  0xef   : > { %1311 = vrot.lane.b32.xlu1 %v6504_v26, %s5631_s16 }
  0xf0   : > { %1307 = vrot.lane.b32.xlu2 %v6515_v0, %s5631_s16 }
  0xf2   : > { %v1018_v1 = vpop.permute.xlu2 %1017 }
  0xf3   : > { %1110 = vst.msk [vmem:[#allocation3 + $0x10] sm:$0xf] %vm1105_vm9, %v1018_v1  ;;  %v1221_v1 = vrot.slane %v1219_v35, 4 }
  0xf4   : > { %1327 = vrot.lane.b32.xlu0 %v6533_v3, %s5631_s16  ;;  %v1222_v3 = vrot.slane %v9356_v57, 5 }
  0xf6   : > { %v6575_v35 = vsel %vm6361_vm7, %v1221_v1, %v1222_v3  ;;  %v6587_v3 = vsel %vm6361_vm7, %v1256_v30, %v1257_v4  ;;  %v5223_v1 = vrot.slane %v6017_v36, 9 }
  0xf7   : > { %1317 = vrot.lane.b32.xlu1 %v6542_v53, %s5631_s16  ;;  %9359 = vst [vmem:[#allocation23_spill] sm:$0xff] %v6587_v3 }
  0xf8   : > { %1313 = vrot.lane.b32.xlu2 %v6550_v40, %s5631_s16 }
  0xfa   : > { %v1020_v13 = vpop.permute.xlu2 %1019 }
  0xfb   : > { %1111 = vst.msk [vmem:[#allocation3 + $0x14] sm:$0xf] %vm1105_vm9, %v1020_v13 }
  0xfc   : > { %1333 = vrot.lane.b32.xlu0 %v6559_v19, %s5631_s16  ;;  %v9361_v19 = vrot.slane %v6028_v45, 5 }
  0xfe   : > { %v1022_v57 = vpop.permute.xlu0 %1021  ;;  %v6603_v30 = vsel %vm6361_vm7, %v5223_v1, %v9361_v19  ;;  %v1275_v19 = vrot.slane %v6228_v34, 5  ;;  %v1242_v1 = vrot.slane %v1240_v23, 4 }
  0xff   : > { %1323 = vrot.lane.b32.xlu1 %v6568_v29, %s5631_s16  ;;  %1112 = vst.msk [vmem:[#allocation3 + $0x18] sm:$0xf] %vm1105_vm9, %v1022_v57  ;;  %v6595_v57 = vsel %vm6361_vm7, %v5224_v5, %v1240_v23  ;;  %v1249_v5 = vrot.slane %v1247_v24, 4 }
 0x100   : > { %v1014_v13 = vpop.permute.xlu1 %1013  ;;  %1319 = vrot.lane.b32.xlu2 %v6575_v35, %s5631_s16  ;;  %9360 = vst [vmem:[#allocation46_spill] sm:$0xff] %v6595_v57 }
 0x101   : > { %1108 = vst.msk [vmem:[#allocation3 + $0x8] sm:$0xf] %vm1105_vm9, %v1014_v13  ;;  %v1268_v13 = vrot.slane %v6263_v17, 5 }
 0x102   : > { %v1026_v46 = vpop.permute.xlu2 %1025 }
 0x103   : > { %1114 = vst.msk [vmem:[#allocation3 + $0x20] sm:$0xf] %vm1105_vm9, %v1026_v46  ;;  %v6614_v53 = vsel %vm6361_vm7, %v5228_v38, %v1268_v13 }
 0x104   : > { %1339 = vrot.lane.b32.xlu0 %v6587_v3, %s5631_s16  ;;  %v9362_v3 = vld [vmem:[#allocation25_spill] sm:$0xff] }
 0x105   : > { %v1250_v29 = vrot.slane %v9362_v3, 5  ;;  %9363 = vst [vmem:[#allocation25_spill] sm:$0xff] %v6614_v53  ;;  %v1277_v3 = vrot.slane %v1275_v19, 4 }
 0x106   : > { %v1028_v4 = vpop.permute.xlu0 %1027 }
 0x107   : > { %1329 = vrot.lane.b32.xlu1 %v6595_v57, %s5631_s16  ;;  %1115 = vst.msk [vmem:[#allocation3 + $0x24] sm:$0xf] %vm1105_vm9, %v1028_v4  ;;  %v1243_v57 = vrot.slane %v9364_v42, 5  ;;  %v6623_v24 = vsel %vm6361_vm7, %v1249_v5, %v1250_v29  ;;  %v1278_v4 = vrot.slane %v6296_v44, 5  ;;  %v1261_v29 = vrot.slane %v6129_v43, 5 }
 0x108   : > { %v1016_v46 = vpop.permute.xlu1 %1015  ;;  %1325 = vrot.lane.b32.xlu2 %v6603_v30, %s5631_s16  ;;  %9365 = vst [vmem:[#allocation12_spill] sm:$0xff] %v6623_v24 }
 0x109   : > { %1109 = vst.msk [vmem:[#allocation3 + $0xc] sm:$0xf] %vm1105_vm9, %v1016_v46  ;;  %v6628_v38 = vsel %vm6361_vm7, %v1242_v1, %v1243_v57  ;;  %v6640_v44 = vsel %vm6361_vm7, %v1277_v3, %v1278_v4  ;;  %v5226_v57 = vrot.slane %v6098_v60, 9  ;;  %v5231_v1 = vrot.slane %v6349_v6, 9 }
 0x10a   : > { %v1032_v26 = vpop.permute.xlu2 %1031  ;;  %9366 = vst [vmem:[#allocation47_spill] sm:$0xff] %v6628_v38 }
 0x10b   : > { %1117 = vst.msk [vmem:[#allocation3 + $0x2c] sm:$0xf] %vm1105_vm9, %v1032_v26  ;;  %v5227_v26 = vrot.slane %v6213_v10, 9 }
 0x10c   : > { %1345 = vrot.lane.b32.xlu0 %v6614_v53, %s5631_s16  ;;  %9367 = vst [vmem:[#allocation48_spill] sm:$0xff] %v6640_v44 }
 0x10d   : > { %v6648_v5 = vsel %vm6361_vm7, %v5227_v26, %v1261_v29  ;;  %v1270_v26 = vrot.slane %v1268_v13, 4 }
 0x10e   : > { %v1034_v23 = vpop.permute.xlu0 %1033  ;;  %9368 = vst [vmem:[#allocation49_spill] sm:$0xff] %v6648_v5 }
 0x10f   : > { %1335 = vrot.lane.b32.xlu1 %v6623_v24, %s5631_s16  ;;  %1118 = vst.msk [vmem:[#allocation3 + $0x30] sm:$0xf] %vm1105_vm9, %v1034_v23  ;;  %v1289_v23 = vrot.slane %v6357_v33, 5  ;;  %v9371_v24 = vld [vmem:[#allocation17_spill] sm:$0xff] }
 0x110   : > { %v1024_v42 = vpop.permute.xlu1 %1023  ;;  %1331 = vrot.lane.b32.xlu2 %v6628_v38, %s5631_s16 }
 0x111   : > { %1113 = vst.msk [vmem:[#allocation3 + $0x1c] sm:$0xf] %vm1105_vm9, %v1024_v42  ;;  %v9369_v42 = vrot.slane %v6100_v61, 5  ;;  %v6667_v53 = vsel %vm6361_vm7, %v5231_v1, %v1289_v23 }
 0x112   : > { %v1038_v46 = vpop.permute.xlu2 %1037 }
 0x113   : > { %1120 = vst.msk [vmem:[#allocation3 + $0x38] sm:$0xf] %vm1105_vm9, %v1038_v46  ;;  %v6656_v3 = vsel %vm6361_vm7, %v5226_v57, %v9369_v42  ;;  %v1296_v57 = vrot.slane %v6286_v58, 5  ;;  %v1263_v42 = vrot.slane %v1261_v29, 4 }
 0x114   : > { %1351 = vrot.lane.b32.xlu0 %v6640_v44, %s5631_s16  ;;  %9370 = vst [vmem:[#allocation50_spill] sm:$0xff] %v6656_v3  ;;  %v1271_v44 = vrot.slane %v6306_v14, 5 }
 0x115   : > { %v1298_v13 = vrot.slane %v1296_v57, 4 }
 0x116   : > { %v1040_v4 = vpop.permute.xlu0 %1039  ;;  %v6676_v14 = vsel %vm6361_vm7, %v1270_v26, %v1271_v44  ;;  %v1282_v44 = vrot.slane %v6251_v7, 5 }
 0x117   : > { %1341 = vrot.lane.b32.xlu1 %v6648_v5, %s5631_s16  ;;  %1121 = vst.msk [vmem:[#allocation3 + $0x3c] sm:$0xf] %vm1105_vm9, %v1040_v4  ;;  %v1264_v5 = vrot.slane %v9371_v24, 5  ;;  %v1299_v4 = vrot.slane %v6368_v50, 5 }
 0x118   : > { %v1030_v46 = vpop.permute.xlu1 %1029  ;;  %1337 = vrot.lane.b32.xlu2 %v6656_v3, %s5631_s16 }
 0x119   : > { %1116 = vst.msk [vmem:[#allocation3 + $0x28] sm:$0xf] %vm1105_vm9, %v1030_v46  ;;  %v6681_v1 = vsel %vm6361_vm7, %v1263_v42, %v1264_v5  ;;  %v6693_v50 = vsel %vm6361_vm7, %v1298_v13, %v1299_v4  ;;  %v5229_v5 = vrot.slane %v6219_v15, 9  ;;  %v1291_v4 = vrot.slane %v1289_v23, 4 }
 0x11a   : > { %v1044_v38 = vpop.permute.xlu2 %1043  ;;  %9372 = vst [vmem:[#allocation17_spill] sm:$0xff] %v6681_v1 }
 0x11b   : > { %1123 = vst.msk [vmem:[#allocation3 + $0x44] sm:$0xf] %vm1105_vm9, %v1044_v38  ;;  %v5230_v38 = vrot.slane %v6320_v32, 9  ;;  %v6705_v42 = vsel %vm6361_vm7, %v5229_v5, %v1275_v19 }
 0x11c   : > { %1357 = vrot.lane.b32.xlu0 %v6667_v53, %s5631_s16  ;;  %9373 = vst [vmem:[#allocation51_spill] sm:$0xff] %v6693_v50 }
 0x11d   : > { %v6701_v26 = vsel %vm6361_vm7, %v5230_v38, %v1282_v44  ;;  %9374 = vst [vmem:[#allocation52_spill] sm:$0xff] %v6705_v42  ;;  %v1284_v38 = vrot.slane %v1282_v44, 4 }
 0x11e   : > { %v1046_v29 = vpop.permute.xlu0 %1045 }
 0x11f   : > { %1347 = vrot.lane.b32.xlu1 %v6676_v14, %s5631_s16  ;;  %1124 = vst.msk [vmem:[#allocation3 + $0x48] sm:$0xf] %vm1105_vm9, %v1046_v29 }
 0x120   : > { %v1036_v24 = vpop.permute.xlu1 %1035  ;;  %1343 = vrot.lane.b32.xlu2 %v6681_v1, %s5631_s16 }
 0x121   : > { %1119 = vst.msk [vmem:[#allocation3 + $0x34] sm:$0xf] %vm1105_vm9, %v1036_v24  ;;  %v1292_v24 = vrot.slane %v6375_v48, 5 }
 0x122   : > { %v1050_v46 = vpop.permute.xlu2 %1049 }
 0x123   : > { %1126 = vst.msk [vmem:[#allocation3 + $0x50] sm:$0xf] %vm1105_vm9, %v1050_v46  ;;  %v9375_v46 = vld [vmem:[#allocation29_spill] sm:$0xff]  ;;  %v6720_v5 = vsel %vm6361_vm7, %v1291_v4, %v1292_v24 }
 0x124   : > { %1363 = vrot.lane.b32.xlu0 %v6693_v50, %s5631_s16  ;;  %v1285_v50 = vrot.slane %v9375_v46, 5 }
 0x126   : > { %v1052_v29 = vpop.permute.xlu0 %1051  ;;  %v6724_v23 = vsel %vm6361_vm7, %v1284_v38, %v1285_v50 }
 0x127   : > { %1353 = vrot.lane.b32.xlu1 %v6701_v26, %s5631_s16  ;;  %1127 = vst.msk [vmem:[#allocation3 + $0x54] sm:$0xf] %vm1105_vm9, %v1052_v29  ;;  %v5232_v29 = vrot.slane %v6275_v41, 9 }
 0x128   : > { %v1042_v13 = vpop.permute.xlu1 %1041  ;;  %1349 = vrot.lane.b32.xlu2 %v6705_v42, %s5631_s16  ;;  %9376 = vst [vmem:[#allocation29_spill] sm:$0xff] %v6724_v23 }
 0x129   : > { %1122 = vst.msk [vmem:[#allocation3 + $0x40] sm:$0xf] %vm1105_vm9, %v1042_v13  ;;  %v6738_v50 = vsel %vm6361_vm7, %v5232_v29, %v1296_v57 }
 0x12a   : > { %v1056_v19 = vpop.permute.xlu2 %1055 }
 0x12b   : > { %1129 = vst.msk [vmem:[#allocation3 + $0x5c] sm:$0xf] %vm1105_vm9, %v1056_v19 }
 0x12c   : > { %1438 = vrot.lane.b32.xlu0 %v6037_v51, %s5632_s17 }
 0x12e   : > { %v1058_v48 = vpop.permute.xlu0 %1057 }
 0x12f   : > { %1359 = vrot.lane.b32.xlu1 %v6720_v5, %s5631_s16  ;;  %1130 = vst.msk [vmem:[#allocation3 + $0x60] sm:$0xf] %vm1105_vm9, %v1058_v48 }
 0x130   : > { %v1048_v44 = vpop.permute.xlu1 %1047  ;;  %1355 = vrot.lane.b32.xlu2 %v6724_v23, %s5631_s16 }
 0x131   : > { %1125 = vst.msk [vmem:[#allocation3 + $0x4c] sm:$0xf] %vm1105_vm9, %v1048_v44 }
 0x132   : > { %v1062_v13 = vpop.permute.xlu2 %1061 }
 0x133   : > { %1132 = vst.msk [vmem:[#allocation3 + $0x68] sm:$0xf] %vm1105_vm9, %v1062_v13 }
 0x134   : > { %1444 = vrot.lane.b32.xlu0 %v5978_v54, %s5632_s17 }
 0x136   : > { %v1064_v4 = vpop.permute.xlu0 %1063 }
 0x137   : > { %1434 = vrot.lane.b32.xlu1 %v5986_v62, %s5632_s17  ;;  %1133 = vst.msk [vmem:[#allocation3 + $0x6c] sm:$0xf] %vm1105_vm9, %v1064_v4 }
 0x138   : > { %v1054_v24 = vpop.permute.xlu1 %1053  ;;  %1361 = vrot.lane.b32.xlu2 %v6738_v50, %s5631_s16 }
 0x139   : > { %1128 = vst.msk [vmem:[#allocation3 + $0x58] sm:$0xf] %vm1105_vm9, %v1054_v24 }
 0x13a   : > { %v1068_v38 = vpop.permute.xlu2 %1067 }
 0x13b   : > { %1135 = vst.msk [vmem:[#allocation3 + $0x74] sm:$0xf] %vm1105_vm9, %v1068_v38 }
 0x13c   : > { %1450 = vrot.lane.b32.xlu0 %v6091_v55, %s5632_s17 }
 0x13e   : > { %v1070_v57 = vpop.permute.xlu0 %1069 }
 0x13f   : > { %1440 = vrot.lane.b32.xlu1 %v6039_v52, %s5632_s17  ;;  %1136 = vst.msk [vmem:[#allocation3 + $0x78] sm:$0xf] %vm1105_vm9, %v1070_v57  ;;  %v5583_v57 = vld [vmem:[%s5929_s15 + $0x78] sm:$0xff]   ;;  %s5464_s15 = sshll.u32 %s9538_s10, 8 }
 0x140   : > { %v1060_v62 = vpop.permute.xlu1 %1059  ;;  %1436 = vrot.lane.b32.xlu2 %v5992_v2, %s5632_s17  ;;  %s8861_s25 = scalar_lea.vmem %s9134_s9, %s5464_s15 }
 0x141   : > { %1131 = vst.msk [vmem:[#allocation3 + $0x64] sm:$0xf] %vm1105_vm9, %v1060_v62  ;;  %v5567_v62 = vunpack.c.l.bf16 %v5583_v57 }
 0x142   : > { %v1302_v46 = vpop.permute.xlu2 %1301 }
 0x143   : > { %1398 = vst.msk [vmem:[#allocation3] sm:$0xf] %vm1397_vm10, %v1302_v46 }
 0x144   : > { %1456 = vrot.lane.b32.xlu0 %v6028_v45, %s5632_s17  ;;  %485 = vst.msk [vmem:[#allocation2 + $0x181] sm:$0xff] %vm334_vm0, %v5567_v62 }
 0x146   : > { %v1304_v19 = vpop.permute.xlu0 %1303 }
 0x147   : > { %1446 = vrot.lane.b32.xlu1 %v6104_v9, %s5632_s17  ;;  %1399 = vst.msk [vmem:[#allocation3 + $0x4] sm:$0xf] %vm1397_vm10, %v1304_v19 }
 0x148   : > { %1442 = vrot.lane.b32.xlu2 %v5973_v49, %s5632_s17 }
 0x149   : > { %v1066_v48 = vpop.permute.xlu1 %1065 }
 0x14a   : > { %1134 = vst.msk [vmem:[#allocation3 + $0x70] sm:$0xf] %vm1105_vm9, %v1066_v48  ;;  %v1308_v2 = vpop.permute.xlu2 %1307 }
 0x14b   : > { %1401 = vst.msk [vmem:[#allocation3 + $0xc] sm:$0xf] %vm1397_vm10, %v1308_v2 }
 0x14c   : > { %1462 = vrot.lane.b32.xlu0 %v6160_v37, %s5632_s17 }
 0x14e   : > { %v1310_v44 = vpop.permute.xlu0 %1309 }
 0x14f   : > { %1452 = vrot.lane.b32.xlu1 %v6096_v56, %s5632_s17  ;;  %1402 = vst.msk [vmem:[#allocation3 + $0x10] sm:$0xf] %vm1397_vm10, %v1310_v44 }
 0x150   : > { %1448 = vrot.lane.b32.xlu2 %v6004_v16, %s5632_s17 }
 0x151   : > { %v1072_v29 = vpop.permute.xlu1 %1071 }
 0x152   : > { %1137 = vst.msk [vmem:[#allocation3 + $0x7c] sm:$0xf] %vm1105_vm9, %v1072_v29  ;;  %v1314_v13 = vpop.permute.xlu2 %1313 }
 0x153   : > { %1404 = vst.msk [vmem:[#allocation3 + $0x18] sm:$0xf] %vm1397_vm10, %v1314_v13  ;;  %v5568_v13 = vunpack.c.h.bf16 %v5583_v57 }
 0x154   : > { %1468 = vrot.lane.b32.xlu0 %v6100_v61, %s5632_s17 }
 0x155   : > { %486 = vst.msk [vmem:[#allocation2 + $0x189] sm:$0xff] %vm334_vm0, %v5568_v13 }
 0x156   : > { %v1316_v4 = vpop.permute.xlu0 %1315 }
 0x157   : > { %1458 = vrot.lane.b32.xlu1 %v6180_v25, %s5632_s17  ;;  %1405 = vst.msk [vmem:[#allocation3 + $0x1c] sm:$0xf] %vm1397_vm10, %v1316_v4 }
 0x158   : > { %1454 = vrot.lane.b32.xlu2 %v6017_v36, %s5632_s17 }
 0x159   : > { %v1306_v24 = vpop.permute.xlu1 %1305 }
 0x15a   : > { %1400 = vst.msk [vmem:[#allocation3 + $0x8] sm:$0xf] %vm1397_vm10, %v1306_v24  ;;  %v1320_v38 = vpop.permute.xlu2 %1319 }
 0x15b   : > { %1407 = vst.msk [vmem:[#allocation3 + $0x24] sm:$0xf] %vm1397_vm10, %v1320_v38 }
 0x15c   : > { %1474 = vrot.lane.b32.xlu0 %v6257_v11, %s5632_s17 }
 0x15e   : > { %v1322_v46 = vpop.permute.xlu0 %1321 }
 0x15f   : > { %1464 = vrot.lane.b32.xlu1 %v6208_v27, %s5632_s17  ;;  %1408 = vst.msk [vmem:[#allocation3 + $0x28] sm:$0xf] %vm1397_vm10, %v1322_v46 }
 0x160   : > { %1460 = vrot.lane.b32.xlu2 %v6065_v21, %s5632_s17 }
 0x161   : > { %v1312_v19 = vpop.permute.xlu1 %1311 }
 0x162   : > { %1403 = vst.msk [vmem:[#allocation3 + $0x14] sm:$0xf] %vm1397_vm10, %v1312_v19  ;;  %v1326_v48 = vpop.permute.xlu2 %1325  ;;  %v9377_v19 = vld [vmem:[#allocation9_spill] sm:$0xff] }
 0x163   : > { %1410 = vst.msk [vmem:[#allocation3 + $0x30] sm:$0xf] %vm1397_vm10, %v1326_v48 }
 0x164   : > { %1480 = vrot.lane.b32.xlu0 %v6228_v34, %s5632_s17 }
 0x166   : > { %v1328_v2 = vpop.permute.xlu0 %1327 }
 0x167   : > { %1470 = vrot.lane.b32.xlu1 %v6213_v10, %s5632_s17  ;;  %1411 = vst.msk [vmem:[#allocation3 + $0x34] sm:$0xf] %vm1397_vm10, %v1328_v2  ;;  %v535_v2 = vld [vmem:[#allocation2 + $0x180] sm:$0xff] }
 0x168   : > { %1466 = vrot.lane.b32.xlu2 %v6098_v60, %s5632_s17  ;;  %v6830_v13 = vpack.c.bf16 %v535_v2, %v535_v2  ;;  %v9380_v2 = vld [vmem:[#allocation11_spill] sm:$0xff] }
 0x169   : > { %v1318_v44 = vpop.permute.xlu1 %1317 }
 0x16a   : > { %1406 = vst.msk [vmem:[#allocation3 + $0x20] sm:$0xf] %vm1397_vm10, %v1318_v44  ;;  %v1332_v29 = vpop.permute.xlu2 %1331 }
 0x16b   : > { %1413 = vst.msk [vmem:[#allocation3 + $0x3c] sm:$0xf] %vm1397_vm10, %v1332_v29 }
 0x16c   : > { %1486 = vrot.lane.b32.xlu0 %v6349_v6, %s5632_s17 }
 0x16e   : > { %v1334_v4 = vpop.permute.xlu0 %1333 }
 0x16f   : > { %1476 = vrot.lane.b32.xlu1 %v6263_v17, %s5632_s17  ;;  %1414 = vst.msk [vmem:[#allocation3 + $0x40] sm:$0xf] %vm1397_vm10, %v1334_v4  ;;  %v9378_v4 = vld [vmem:[#allocation16_spill] sm:$0xff] }
 0x170   : > { %1472 = vrot.lane.b32.xlu2 %v6129_v43, %s5632_s17 }
 0x171   : > { %v1324_v24 = vpop.permute.xlu1 %1323 }
 0x172   : > { %1409 = vst.msk [vmem:[#allocation3 + $0x2c] sm:$0xf] %vm1397_vm10, %v1324_v24  ;;  %v1338_v38 = vpop.permute.xlu2 %1337 }
 0x173   : > { %1416 = vst.msk [vmem:[#allocation3 + $0x48] sm:$0xf] %vm1397_vm10, %v1338_v38 }
 0x174   : > { %1492 = vrot.lane.b32.xlu0 %v6286_v58, %s5632_s17 }
 0x176   : > { %v1340_v57 = vpop.permute.xlu0 %1339 }
 0x177   : > { %1482 = vrot.lane.b32.xlu1 %v6320_v32, %s5632_s17  ;;  %1417 = vst.msk [vmem:[#allocation3 + $0x4c] sm:$0xf] %vm1397_vm10, %v1340_v57  ;;  %v536_v57 = vld [vmem:[#allocation2 + $0x188] sm:$0xff] }
 0x178   : > { %1478 = vrot.lane.b32.xlu2 %v6219_v15, %s5632_s17 }
 0x179   : > { %v1330_v62 = vpop.permute.xlu1 %1329 }
 0x17a   : > { %1412 = vst.msk [vmem:[#allocation3 + $0x38] sm:$0xf] %vm1397_vm10, %v1330_v62  ;;  %v1344_v46 = vpop.permute.xlu2 %1343 }
 0x17b   : > { %1419 = vst.msk [vmem:[#allocation3 + $0x54] sm:$0xf] %vm1397_vm10, %v1344_v46  ;;  %v9379_v46 = vld [vmem:[#allocation20_spill] sm:$0xff] }
 0x17c   : > { %1588 = vrot.lane.b32.xlu0 %v9377_v19, %s5633_s18  ;;  %v6844_v19 = vpack.c.bf16 %v536_v57, %v536_v57  ;;  %v9382_v57 = vld [vmem:[#allocation8_spill] sm:$0xff] }
 0x17e   : > { %v1346_v48 = vpop.permute.xlu0 %1345 }
 0x17f   : > { %1488 = vrot.lane.b32.xlu1 %v6357_v33, %s5632_s17  ;;  %1420 = vst.msk [vmem:[#allocation3 + $0x58] sm:$0xf] %vm1397_vm10, %v1346_v48 }
 0x180   : > { %1484 = vrot.lane.b32.xlu2 %v6251_v7, %s5632_s17 }
 0x181   : > { %v1336_v44 = vpop.permute.xlu1 %1335 }
 0x182   : > { %1415 = vst.msk [vmem:[#allocation3 + $0x44] sm:$0xf] %vm1397_vm10, %v1336_v44  ;;  %v1350_v29 = vpop.permute.xlu2 %1349 }
 0x183   : > { %1422 = vst.msk [vmem:[#allocation3 + $0x60] sm:$0xf] %vm1397_vm10, %v1350_v29 }
 0x184   : > { %1594 = vrot.lane.b32.xlu0 %v9378_v4, %s5633_s18 }
 0x186   : > { %v1352_v24 = vpop.permute.xlu0 %1351 }
 0x187   : > { %1494 = vrot.lane.b32.xlu1 %v6830_v13, %s5632_s17  ;;  %1423 = vst.msk [vmem:[#allocation3 + $0x64] sm:$0xf] %vm1397_vm10, %v1352_v24  ;;  %v9381_v24 = vld [vmem:[#allocation24_spill] sm:$0xff] }
 0x188   : > { %1490 = vrot.lane.b32.xlu2 %v6275_v41, %s5632_s17 }
 0x189   : > { %v1342_v38 = vpop.permute.xlu1 %1341 }
 0x18a   : > { %1418 = vst.msk [vmem:[#allocation3 + $0x50] sm:$0xf] %vm1397_vm10, %v1342_v38  ;;  %v1356_v62 = vpop.permute.xlu2 %1355 }
 0x18b   : > { %1425 = vst.msk [vmem:[#allocation3 + $0x6c] sm:$0xf] %vm1397_vm10, %v1356_v62  ;;  %v9383_v62 = vld [vmem:[#allocation14_spill] sm:$0xff] }
 0x18c   : > { %1600 = vrot.lane.b32.xlu0 %v9379_v46, %s5633_s18 }
 0x18e   : > { %v1358_v48 = vpop.permute.xlu0 %1357 }
 0x18f   : > { %1590 = vrot.lane.b32.xlu1 %v9380_v2, %s5633_s18  ;;  %1426 = vst.msk [vmem:[#allocation3 + $0x70] sm:$0xf] %vm1397_vm10, %v1358_v48 }
 0x190   : > { %1496 = vrot.lane.b32.xlu2 %v6844_v19, %s5632_s17 }
 0x191   : > { %v1348_v44 = vpop.permute.xlu1 %1347 }
 0x192   : > { %1421 = vst.msk [vmem:[#allocation3 + $0x5c] sm:$0xf] %vm1397_vm10, %v1348_v44  ;;  %v1362_v29 = vpop.permute.xlu2 %1361  ;;  %v9384_v44 = vld [vmem:[#allocation28_spill] sm:$0xff] }
 0x193   : > { %1428 = vst.msk [vmem:[#allocation3 + $0x78] sm:$0xf] %vm1397_vm10, %v1362_v29 }
 0x194   : > { %1606 = vrot.lane.b32.xlu0 %v9381_v24, %s5633_s18  ;;  %v9385_v24 = vld [vmem:[#allocation10_spill] sm:$0xff] }
 0x196   : > { %v1364_v38 = vpop.permute.xlu0 %1363 }
 0x197   : > { %1596 = vrot.lane.b32.xlu1 %v9382_v57, %s5633_s18  ;;  %1429 = vst.msk [vmem:[#allocation3 + $0x7c] sm:$0xf] %vm1397_vm10, %v1364_v38  ;;  %v9386_v38 = vld [vmem:[#allocation15_spill] sm:$0xff] }
 0x198   : > { %1592 = vrot.lane.b32.xlu2 %v9383_v62, %s5633_s18 }
 0x199   : > { %v1354_v48 = vpop.permute.xlu1 %1353 }
 0x19a   : > { %1424 = vst.msk [vmem:[#allocation3 + $0x68] sm:$0xf] %vm1397_vm10, %v1354_v48  ;;  %v1437_v2 = vpop.permute.xlu2 %1436 }
 0x19b   : > { %1532 = vst.msk [vmem:[#allocation3 + $0x4] sm:$0xf] %vm1530_vm11, %v1437_v2  ;;  %v9387_v2 = vld [vmem:[#allocation13_spill] sm:$0xff] }
 0x19c   : > { %1612 = vrot.lane.b32.xlu0 %v9384_v44, %s5633_s18 }
 0x19e   : > { %v1439_v29 = vpop.permute.xlu0 %1438 }
 0x19f   : > { %1602 = vrot.lane.b32.xlu1 %v9385_v24, %s5633_s18  ;;  %1533 = vst.msk [vmem:[#allocation3 + $0x8] sm:$0xf] %vm1530_vm11, %v1439_v29  ;;  %v9388_v29 = vld [vmem:[#allocation19_spill] sm:$0xff] }
 0x1a0   : > { %1598 = vrot.lane.b32.xlu2 %v9386_v38, %s5633_s18 }
 0x1a1   : > { %v1360_v57 = vpop.permute.xlu1 %1359 }
 0x1a2   : > { %1427 = vst.msk [vmem:[#allocation3 + $0x74] sm:$0xf] %vm1397_vm10, %v1360_v57  ;;  %v1443_v46 = vpop.permute.xlu2 %1442 }
 0x1a3   : > { %1535 = vst.msk [vmem:[#allocation3 + $0x10] sm:$0xf] %vm1530_vm11, %v1443_v46  ;;  %v9389_v46 = vld [vmem:[#allocation35_spill] sm:$0xff] }
 0x1a4   : > { %1618 = vrot.lane.b32.xlu0 %v6292_v20, %s5633_s18  ;;  %v9390_v20 = vld [vmem:[#allocation18_spill] sm:$0xff] }
 0x1a6   : > { %v1445_v48 = vpop.permute.xlu0 %1444 }
 0x1a7   : > { %1608 = vrot.lane.b32.xlu1 %v9387_v2, %s5633_s18  ;;  %1536 = vst.msk [vmem:[#allocation3 + $0x14] sm:$0xf] %vm1530_vm11, %v1445_v48  ;;  %v9391_v48 = vld [vmem:[#allocation22_spill] sm:$0xff] }
 0x1a8   : > { %1604 = vrot.lane.b32.xlu2 %v9388_v29, %s5633_s18 }
 0x1a9   : > { %v1435_v44 = vpop.permute.xlu1 %1434 }
 0x1aa   : > { %1531 = vst.msk [vmem:[#allocation3] sm:$0xf] %vm1530_vm11, %v1435_v44  ;;  %v1449_v24 = vpop.permute.xlu2 %1448  ;;  %v9392_v44 = vld [vmem:[#allocation21_spill] sm:$0xff] }
 0x1ab   : > { %1538 = vst.msk [vmem:[#allocation3 + $0x1c] sm:$0xf] %vm1530_vm11, %v1449_v24 }
 0x1ac   : > { %1624 = vrot.lane.b32.xlu0 %v9389_v46, %s5633_s18 }
 0x1ae   : > { %v1451_v57 = vpop.permute.xlu0 %1450 }
 0x1af   : > { %1614 = vrot.lane.b32.xlu1 %v9390_v20, %s5633_s18  ;;  %1539 = vst.msk [vmem:[#allocation3 + $0x20] sm:$0xf] %vm1530_vm11, %v1451_v57  ;;  %v9393_v57 = vld [vmem:[#allocation27_spill] sm:$0xff]  ;;  %v1565_v20 = vshrl.u32 %v6830_v13, 16 }
 0x1b0   : > { %1610 = vrot.lane.b32.xlu2 %v9391_v48, %s5633_s18 }
 0x1b1   : > { %v1441_v2 = vpop.permute.xlu1 %1440 }
 0x1b2   : > { %1534 = vst.msk [vmem:[#allocation3 + $0xc] sm:$0xf] %vm1530_vm11, %v1441_v2  ;;  %v1455_v4 = vpop.permute.xlu2 %1454  ;;  %v1568_v2 = vshll.u32 %v6830_v13, 16 }
 0x1b3   : > { %1541 = vst.msk [vmem:[#allocation3 + $0x28] sm:$0xf] %vm1530_vm11, %v1455_v4 }
 0x1b4   : > { %1630 = vrot.lane.b32.xlu0 %v6355_v18, %s5633_s18  ;;  %v1567_v18 = vrot.slane %v1565_v20, 4 }
 0x1b6   : > { %v1457_v24 = vpop.permute.xlu0 %1456 }
 0x1b7   : > { %1620 = vrot.lane.b32.xlu1 %v9392_v44, %s5633_s18  ;;  %1542 = vst.msk [vmem:[#allocation3 + $0x2c] sm:$0xf] %vm1530_vm11, %v1457_v24  ;;  %v1570_v44 = vrot.slane %v1568_v2, 5  ;;  %v9394_v24 = vld [vmem:[#allocation26_spill] sm:$0xff] }
 0x1b8   : > { %1616 = vrot.lane.b32.xlu2 %v9393_v57, %s5633_s18  ;;  %v9395_v57 = vld [vmem:[#allocation31_spill] sm:$0xff] }
 0x1b9   : > { %v1447_v46 = vpop.permute.xlu1 %1446  ;;  %v1571_v38 = vor.u32 %v1570_v44, %v1567_v18  ;;  %v9397_v18 = vld [vmem:[#allocation34_spill] sm:$0xff] }
 0x1ba   : > { %1537 = vst.msk [vmem:[#allocation3 + $0x18] sm:$0xf] %vm1530_vm11, %v1447_v46  ;;  %v1461_v4 = vpop.permute.xlu2 %1460  ;;  %v1574_v46 = vshll.u32 %v6844_v19, 16 }
 0x1bb   : > { %1544 = vst.msk [vmem:[#allocation3 + $0x34] sm:$0xf] %vm1530_vm11, %v1461_v4  ;;  %v1572_v20 = vrot.slane %v1571_v38, 4  ;;  %v1578_v38 = vshrl.u32 %v6844_v19, 16 }
 0x1bc   : > { %1636 = vrot.lane.b32.xlu0 %v6392_v39, %s5633_s18  ;;  %v1576_v2 = vrot.slane %v1574_v46, 5  ;;  %v537_v46 = vld [vmem:[#allocation2 + $0x190] sm:$0x3] }
 0x1be   : > { %v1463_v48 = vpop.permute.xlu0 %1462 }
 0x1bf   : > { %1626 = vrot.lane.b32.xlu1 %v9394_v24, %s5633_s18  ;;  %1545 = vst.msk [vmem:[#allocation3 + $0x38] sm:$0xf] %vm1530_vm11, %v1463_v48  ;;  %v9396_v48 = vld [vmem:[#allocation30_spill] sm:$0xff] }
 0x1c0   : > { %1622 = vrot.lane.b32.xlu2 %v9395_v57, %s5633_s18 }
 0x1c1   : > { %v1453_v29 = vpop.permute.xlu1 %1452 }
 0x1c2   : > { %1540 = vst.msk [vmem:[#allocation3 + $0x24] sm:$0xf] %vm1530_vm11, %v1453_v29  ;;  %v1467_v4 = vpop.permute.xlu2 %1466  ;;  %v6919_v29 = vsel %vm5735_vm3, %v1572_v20, %v1576_v2  ;;  %v9400_v20 = vld [vmem:[#allocation37_spill] sm:$0xff] }
 0x1c3   : > { %1547 = vst.msk [vmem:[#allocation3 + $0x40] sm:$0xf] %vm1530_vm11, %v1467_v4 }
 0x1c4   : > { %1642 = vrot.lane.b32.xlu0 %v6435_v28, %s5633_s18  ;;  %9398 = vst [vmem:[#allocation9_spill] sm:$0xff] %v6919_v29  ;;  %v9399_v28 = vld [vmem:[#allocation33_spill] sm:$0xff] }
 0x1c6   : > { %v1469_v39 = vpop.permute.xlu0 %1468 }
 0x1c7   : > { %1632 = vrot.lane.b32.xlu1 %v9396_v48, %s5633_s18  ;;  %1548 = vst.msk [vmem:[#allocation3 + $0x44] sm:$0xf] %vm1530_vm11, %v1469_v39  ;;  %v6931_v48 = vpack.c.bf16 %v537_v46, %v537_v46 }
 0x1c8   : > { %1628 = vrot.lane.b32.xlu2 %v9397_v18, %s5633_s18  ;;  %v9401_v18 = vld [vmem:[#allocation36_spill] sm:$0xff] }
 0x1c9   : > { %v1459_v44 = vpop.permute.xlu1 %1458 }
 0x1ca   : > { %1543 = vst.msk [vmem:[#allocation3 + $0x30] sm:$0xf] %vm1530_vm11, %v1459_v44  ;;  %v1473_v4 = vpop.permute.xlu2 %1472  ;;  %v1580_v44 = vrot.slane %v1578_v38, 4 }
 0x1cb   : > { %1550 = vst.msk [vmem:[#allocation3 + $0x4c] sm:$0xf] %vm1530_vm11, %v1473_v4 }
 0x1cc   : > { %1648 = vrot.lane.b32.xlu0 %v6919_v29, %s5633_s18  ;;  %v1581_v29 = vor.u32 %v1580_v44, %v1576_v2 }
 0x1ce   : > { %v1475_v39 = vpop.permute.xlu0 %1474 }
 0x1cf   : > { %1638 = vrot.lane.b32.xlu1 %v9399_v28, %s5633_s18  ;;  %1551 = vst.msk [vmem:[#allocation3 + $0x50] sm:$0xf] %vm1530_vm11, %v1475_v39  ;;  %v1584_v28 = vshll.u32 %v6931_v48, 16 }
 0x1d0   : > { %1634 = vrot.lane.b32.xlu2 %v9400_v20, %s5633_s18 }
 0x1d1   : > { %v1465_v24 = vpop.permute.xlu1 %1464  ;;  %v1586_v38 = vrot.slane %v1584_v28, 5 }
 0x1d2   : > { %1546 = vst.msk [vmem:[#allocation3 + $0x3c] sm:$0xf] %vm1530_vm11, %v1465_v24  ;;  %v1479_v4 = vpop.permute.xlu2 %1478  ;;  %v1582_v24 = vrot.slane %v1581_v29, 4 }
 0x1d3   : > { %1553 = vst.msk [vmem:[#allocation3 + $0x58] sm:$0xf] %vm1530_vm11, %v1479_v4 }
 0x1d4   : > { %1727 = vrot.lane.b32.xlu0 %v6515_v0, %s5634_s19  ;;  %v6949_v0 = vsel %vm5735_vm3, %v1582_v24, %v1586_v38 }
 0x1d6   : > { %v1481_v39 = vpop.permute.xlu0 %1480 }
 0x1d7   : > { %1644 = vrot.lane.b32.xlu1 %v9401_v18, %s5633_s18  ;;  %1554 = vst.msk [vmem:[#allocation3 + $0x5c] sm:$0xf] %vm1530_vm11, %v1481_v39 }
 0x1d8   : > { %1640 = vrot.lane.b32.xlu2 %v6399_v8, %s5633_s18 }
 0x1d9   : > { %v1471_v46 = vpop.permute.xlu1 %1470 }
 0x1da   : > { %1549 = vst.msk [vmem:[#allocation3 + $0x48] sm:$0xf] %vm1530_vm11, %v1471_v46  ;;  %v1485_v4 = vpop.permute.xlu2 %1484  ;;  %v9402_v46 = vld [vmem:[#allocation42_spill] sm:$0xff] }
 0x1db   : > { %1556 = vst.msk [vmem:[#allocation3 + $0x64] sm:$0xf] %vm1530_vm11, %v1485_v4 }
 0x1dc   : > { %1733 = vrot.lane.b32.xlu0 %v6550_v40, %s5634_s19 }
 0x1de   : > { %v1487_v2 = vpop.permute.xlu0 %1486 }
 0x1df   : > { %1650 = vrot.lane.b32.xlu1 %v6949_v0, %s5633_s18  ;;  %1557 = vst.msk [vmem:[#allocation3 + $0x68] sm:$0xf] %vm1530_vm11, %v1487_v2  ;;  %v9403_v2 = vld [vmem:[#allocation47_spill] sm:$0xff] }
 0x1e0   : > { %1646 = vrot.lane.b32.xlu2 %v6426_v59, %s5633_s18 }
 0x1e1   : > { %v1477_v28 = vpop.permute.xlu1 %1476 }
 0x1e2   : > { %1552 = vst.msk [vmem:[#allocation3 + $0x54] sm:$0xf] %vm1530_vm11, %v1477_v28  ;;  %v1491_v29 = vpop.permute.xlu2 %1490 }
 0x1e3   : > { %1559 = vst.msk [vmem:[#allocation3 + $0x70] sm:$0xf] %vm1530_vm11, %v1491_v29  ;;  %v9404_v29 = vld [vmem:[#allocation41_spill] sm:$0xff] }
 0x1e4   : > { %1739 = vrot.lane.b32.xlu0 %v6575_v35, %s5634_s19 }
 0x1e6   : > { %v1493_v44 = vpop.permute.xlu0 %1492 }
 0x1e7   : > { %1729 = vrot.lane.b32.xlu1 %v6413_v22, %s5634_s19  ;;  %1560 = vst.msk [vmem:[#allocation3 + $0x74] sm:$0xf] %vm1530_vm11, %v1493_v44  ;;  %v9405_v44 = vld [vmem:[#allocation44_spill] sm:$0xff] }
 0x1e8   : > { %1725 = vrot.lane.b32.xlu2 %v6466_v63, %s5634_s19 }
 0x1e9   : > { %v1483_v39 = vpop.permute.xlu1 %1482 }
 0x1ea   : > { %1555 = vst.msk [vmem:[#allocation3 + $0x60] sm:$0xf] %vm1530_vm11, %v1483_v39  ;;  %v1497_v24 = vpop.permute.xlu2 %1496 }
 0x1eb   : > { %1562 = vst.msk [vmem:[#allocation3 + $0x7c] sm:$0xf] %vm1530_vm11, %v1497_v24 }
 0x1ec   : > { %1745 = vrot.lane.b32.xlu0 %v6603_v30, %s5634_s19 }
 0x1ee   : > { %v1589_v38 = vpop.permute.xlu0 %1588 }
 0x1ef   : > { %1735 = vrot.lane.b32.xlu1 %v6453_v31, %s5634_s19  ;;  %1685 = vst.msk [vmem:[#allocation3] sm:$0xf] %vm1684_vm12, %v1589_v38 }
 0x1f0   : > { %1731 = vrot.lane.b32.xlu2 %v9402_v46, %s5634_s19 }
 0x1f1   : > { %v1489_v63 = vpop.permute.xlu1 %1488 }
 0x1f2   : > { %1558 = vst.msk [vmem:[#allocation3 + $0x6c] sm:$0xf] %vm1530_vm11, %v1489_v63  ;;  %v1593_v4 = vpop.permute.xlu2 %1592  ;;  %v9406_v63 = vld [vmem:[#allocation43_spill] sm:$0xff] }
 0x1f3   : > { %1687 = vst.msk [vmem:[#allocation3 + $0x8] sm:$0xf] %vm1684_vm12, %v1593_v4  ;;  %v9407_v4 = vld [vmem:[#allocation7_spill] sm:$0xff] }
 0x1f4   : > { %1751 = vrot.lane.b32.xlu0 %v9403_v2, %s5634_s19 }
 0x1f6   : > { %v1595_v28 = vpop.permute.xlu0 %1594 }
 0x1f7   : > { %1741 = vrot.lane.b32.xlu1 %v9404_v29, %s5634_s19  ;;  %1688 = vst.msk [vmem:[#allocation3 + $0xc] sm:$0xf] %vm1684_vm12, %v1595_v28 }
 0x1f8   : > { %1737 = vrot.lane.b32.xlu2 %v9405_v44, %s5634_s19 }
 0x1f9   : > { %v1495_v39 = vpop.permute.xlu1 %1494 }
 0x1fa   : > { %1561 = vst.msk [vmem:[#allocation3 + $0x78] sm:$0xf] %vm1530_vm11, %v1495_v39  ;;  %v1599_v24 = vpop.permute.xlu2 %1598 }
 0x1fb   : > { %1690 = vst.msk [vmem:[#allocation3 + $0x14] sm:$0xf] %vm1684_vm12, %v1599_v24  ;;  %v9408_v24 = vld [vmem:[#allocation45_spill] sm:$0xff] }
 0x1fc   : > { %1757 = vrot.lane.b32.xlu0 %v6656_v3, %s5634_s19 }
 0x1fe   : > { %v1601_v38 = vpop.permute.xlu0 %1600 }
 0x1ff   : > { %1747 = vrot.lane.b32.xlu1 %v9406_v63, %s5634_s19  ;;  %1691 = vst.msk [vmem:[#allocation3 + $0x18] sm:$0xf] %vm1684_vm12, %v1601_v38  ;;  %v9409_v38 = vld [vmem:[#allocation46_spill] sm:$0xff] }
 0x200   : > { %1743 = vrot.lane.b32.xlu2 %v9407_v4, %s5634_s19 }
 0x201   : > { %v1591_v28 = vpop.permute.xlu1 %1590 }
 0x202   : > { %1686 = vst.msk [vmem:[#allocation3 + $0x4] sm:$0xf] %vm1684_vm12, %v1591_v28  ;;  %v1605_v2 = vpop.permute.xlu2 %1604  ;;  %v9410_v28 = vld [vmem:[#allocation23_spill] sm:$0xff] }
 0x203   : > { %1693 = vst.msk [vmem:[#allocation3 + $0x20] sm:$0xf] %vm1684_vm12, %v1605_v2 }
 0x204   : > { %1763 = vrot.lane.b32.xlu0 %v6681_v1, %s5634_s19 }
 0x206   : > { %v1607_v39 = vpop.permute.xlu0 %1606 }
 0x207   : > { %1753 = vrot.lane.b32.xlu1 %v9408_v24, %s5634_s19  ;;  %1694 = vst.msk [vmem:[#allocation3 + $0x24] sm:$0xf] %vm1684_vm12, %v1607_v39  ;;  %v9411_v39 = vld [vmem:[#allocation12_spill] sm:$0xff] }
 0x208   : > { %1749 = vrot.lane.b32.xlu2 %v9409_v38, %s5634_s19 }
 0x209   : > { %v1597_v3 = vpop.permute.xlu1 %1596 }
 0x20a   : > { %1689 = vst.msk [vmem:[#allocation3 + $0x10] sm:$0xf] %vm1684_vm12, %v1597_v3  ;;  %v1611_v63 = vpop.permute.xlu2 %1610 }
 0x20b   : > { %1696 = vst.msk [vmem:[#allocation3 + $0x2c] sm:$0xf] %vm1684_vm12, %v1611_v63  ;;  %v9412_v63 = vld [vmem:[#allocation25_spill] sm:$0xff] }
 0x20c   : > { %1769 = vrot.lane.b32.xlu0 %v6705_v42, %s5634_s19 }
 0x20e   : > { %v1613_v2 = vpop.permute.xlu0 %1612 }
 0x20f   : > { %1759 = vrot.lane.b32.xlu1 %v9410_v28, %s5634_s19  ;;  %1697 = vst.msk [vmem:[#allocation3 + $0x30] sm:$0xf] %vm1684_vm12, %v1613_v2  ;;  %v9413_v2 = vld [vmem:[#allocation49_spill] sm:$0xff]  ;;  %v1720_v28 = vrot.slane %v6844_v19, 5 }
 0x210   : > { %1755 = vrot.lane.b32.xlu2 %v9411_v39, %s5634_s19 }
 0x211   : > { %v1603_v1 = vpop.permute.xlu1 %1602 }
 0x212   : > { %1692 = vst.msk [vmem:[#allocation3 + $0x1c] sm:$0xf] %vm1684_vm12, %v1603_v1  ;;  %v1617_v24 = vpop.permute.xlu2 %1616 }
 0x213   : > { %1699 = vst.msk [vmem:[#allocation3 + $0x38] sm:$0xf] %vm1684_vm12, %v1617_v24  ;;  %v1722_v24 = vrot.slane %v1720_v28, 4 }
 0x214   : > { %1775 = vrot.lane.b32.xlu0 %v6724_v23, %s5634_s19  ;;  %v1723_v23 = vrot.slane %v6931_v48, 5 }
 0x216   : > { %v1619_v3 = vpop.permute.xlu0 %1618 }
 0x217   : > { %1765 = vrot.lane.b32.xlu1 %v9412_v63, %s5634_s19  ;;  %1700 = vst.msk [vmem:[#allocation3 + $0x3c] sm:$0xf] %vm1684_vm12, %v1619_v3  ;;  %v9414_v3 = vld [vmem:[#allocation48_spill] sm:$0xff] }
 0x218   : > { %1761 = vrot.lane.b32.xlu2 %v9413_v2, %s5634_s19 }
 0x219   : > { %v1609_v42 = vpop.permute.xlu1 %1608 }
 0x21a   : > { %1695 = vst.msk [vmem:[#allocation3 + $0x28] sm:$0xf] %vm1684_vm12, %v1609_v42  ;;  %v1623_v1 = vpop.permute.xlu2 %1622  ;;  %v7032_v42 = vsel %vm6361_vm7, %v1722_v24, %v1723_v23  ;;  %v9415_v24 = vld [vmem:[#allocation51_spill] sm:$0xff] }
 0x21b   : > { %1702 = vst.msk [vmem:[#allocation3 + $0x44] sm:$0xf] %vm1684_vm12, %v1623_v1 }
 0x21c   : > { %1781 = vrot.lane.b32.xlu0 %v6738_v50, %s5634_s19 }
 0x21e   : > { %v1625_v63 = vpop.permute.xlu0 %1624 }
 0x21f   : > { %1771 = vrot.lane.b32.xlu1 %v9414_v3, %s5634_s19  ;;  %1703 = vst.msk [vmem:[#allocation3 + $0x48] sm:$0xf] %vm1684_vm12, %v1625_v63 }
 0x220   : > { %1767 = vrot.lane.b32.xlu2 %v6676_v14, %s5634_s19 }
 0x221   : > { %v1615_v2 = vpop.permute.xlu1 %1614 }
 0x222   : > { %1698 = vst.msk [vmem:[#allocation3 + $0x34] sm:$0xf] %vm1684_vm12, %v1615_v2  ;;  %v1629_v1 = vpop.permute.xlu2 %1628 }
 0x223   : > { %1705 = vst.msk [vmem:[#allocation3 + $0x50] sm:$0xf] %vm1684_vm12, %v1629_v1 }
 0x224   : > { %1787 = vrot.lane.b32.xlu0 %v7032_v42, %s5634_s19 }
 0x226   : > { %v1631_v48 = vpop.permute.xlu0 %1630 }
 0x227   : > { %1777 = vrot.lane.b32.xlu1 %v6667_v53, %s5634_s19  ;;  %1706 = vst.msk [vmem:[#allocation3 + $0x54] sm:$0xf] %vm1684_vm12, %v1631_v48  ;;  %v5233_v48 = vrot.slane %v6830_v13, 9 }
 0x228   : > { %1773 = vrot.lane.b32.xlu2 %v6701_v26, %s5634_s19 }
 0x229   : > { %v1621_v63 = vpop.permute.xlu1 %1620 }
 0x22a   : > { %1701 = vst.msk [vmem:[#allocation3 + $0x40] sm:$0xf] %vm1684_vm12, %v1621_v63  ;;  %v1635_v23 = vpop.permute.xlu2 %1634 }
 0x22b   : > { %1708 = vst.msk [vmem:[#allocation3 + $0x5c] sm:$0xf] %vm1684_vm12, %v1635_v23 }
 0x22c   : > { %1862 = vrot.lane.b32.xlu0 %v5973_v49, %s5635_s20  ;;  %v7059_v49 = vsel %vm6361_vm7, %v5233_v48, %v1720_v28 }
 0x22e   : > { %v1637_v2 = vpop.permute.xlu0 %1636 }
 0x22f   : > { %1783 = vrot.lane.b32.xlu1 %v9415_v24, %s5634_s19  ;;  %1709 = vst.msk [vmem:[#allocation3 + $0x60] sm:$0xf] %vm1684_vm12, %v1637_v2 }
 0x230   : > { %1779 = vrot.lane.b32.xlu2 %v6720_v5, %s5634_s19 }
 0x231   : > { %v1627_v1 = vpop.permute.xlu1 %1626 }
 0x232   : > { %1704 = vst.msk [vmem:[#allocation3 + $0x4c] sm:$0xf] %vm1684_vm12, %v1627_v1  ;;  %v1641_v63 = vpop.permute.xlu2 %1640 }
 0x233   : > { %1711 = vst.msk [vmem:[#allocation3 + $0x68] sm:$0xf] %vm1684_vm12, %v1641_v63 }
 0x234   : > { %1868 = vrot.lane.b32.xlu0 %v6004_v16, %s5635_s20 }
 0x236   : > { %v1643_v23 = vpop.permute.xlu0 %1642 }
 0x237   : > { %1858 = vrot.lane.b32.xlu1 %v6037_v51, %s5635_s20  ;;  %1712 = vst.msk [vmem:[#allocation3 + $0x6c] sm:$0xf] %vm1684_vm12, %v1643_v23 }
 0x238   : > { %1785 = vrot.lane.b32.xlu2 %v7059_v49, %s5634_s19 }
 0x239   : > { %v1633_v2 = vpop.permute.xlu1 %1632 }
 0x23a   : > { %1707 = vst.msk [vmem:[#allocation3 + $0x58] sm:$0xf] %vm1684_vm12, %v1633_v2  ;;  %v1647_v1 = vpop.permute.xlu2 %1646 }
 0x23b   : > { %1714 = vst.msk [vmem:[#allocation3 + $0x74] sm:$0xf] %vm1684_vm12, %v1647_v1  ;;  %v9417_v1 = vld [vmem:[#allocation19_spill] sm:$0xff] }
 0x23c   : > { %1874 = vrot.lane.b32.xlu0 %v6017_v36, %s5635_s20 }
 0x23e   : > { %v1649_v16 = vpop.permute.xlu0 %1648 }
 0x23f   : > { %1864 = vrot.lane.b32.xlu1 %v5978_v54, %s5635_s20  ;;  %1715 = vst.msk [vmem:[#allocation3 + $0x78] sm:$0xf] %vm1684_vm12, %v1649_v16 }
 0x240   : > { %1860 = vrot.lane.b32.xlu2 %v6039_v52, %s5635_s20 }
 0x241   : > { %v1639_v51 = vpop.permute.xlu1 %1638 }
 0x242   : > { %1710 = vst.msk [vmem:[#allocation3 + $0x64] sm:$0xf] %vm1684_vm12, %v1639_v51  ;;  %v1726_v28 = vpop.permute.xlu2 %1725 }
 0x243   : > { %1822 = vst.msk [vmem:[#allocation3] sm:$0xf] %vm1821_vm13, %v1726_v28  ;;  %v9418_v28 = vld [vmem:[#allocation16_spill] sm:$0xff] }
 0x244   : > { %1880 = vrot.lane.b32.xlu0 %v6065_v21, %s5635_s20 }
 0x246   : > { %v1728_v36 = vpop.permute.xlu0 %1727 }
 0x247   : > { %1870 = vrot.lane.b32.xlu1 %v6091_v55, %s5635_s20  ;;  %1823 = vst.msk [vmem:[#allocation3 + $0x4] sm:$0xf] %vm1821_vm13, %v1728_v36 }
 0x248   : > { %1866 = vrot.lane.b32.xlu2 %v6104_v9, %s5635_s20 }
 0x249   : > { %v1645_v54 = vpop.permute.xlu1 %1644 }
 0x24a   : > { %1713 = vst.msk [vmem:[#allocation3 + $0x70] sm:$0xf] %vm1684_vm12, %v1645_v54  ;;  %v1732_v52 = vpop.permute.xlu2 %1731  ;;  %v9419_v54 = vld [vmem:[#allocation22_spill] sm:$0xff] }
 0x24b   : > { %1825 = vst.msk [vmem:[#allocation3 + $0xc] sm:$0xf] %vm1821_vm13, %v1732_v52 }
 0x24c   : > { %1886 = vrot.lane.b32.xlu0 %v6098_v60, %s5635_s20 }
 0x24e   : > { %v1734_v48 = vpop.permute.xlu0 %1733 }
 0x24f   : > { %1876 = vrot.lane.b32.xlu1 %v6028_v45, %s5635_s20  ;;  %1826 = vst.msk [vmem:[#allocation3 + $0x10] sm:$0xf] %vm1821_vm13, %v1734_v48  ;;  %v9420_v48 = vld [vmem:[#allocation20_spill] sm:$0xff] }
 0x250   : > { %1872 = vrot.lane.b32.xlu2 %v6096_v56, %s5635_s20 }
 0x251   : > { %v1651_v21 = vpop.permute.xlu1 %1650 }
 0x252   : > { %1716 = vst.msk [vmem:[#allocation3 + $0x7c] sm:$0xf] %vm1684_vm12, %v1651_v21  ;;  %v1738_v55 = vpop.permute.xlu2 %1737  ;;  %v9421_v21 = vld [vmem:[#allocation8_spill] sm:$0xff] }
 0x253   : > { %1828 = vst.msk [vmem:[#allocation3 + $0x18] sm:$0xf] %vm1821_vm13, %v1738_v55 }
 0x254   : > { %1892 = vrot.lane.b32.xlu0 %v6129_v43, %s5635_s20 }
 0x256   : > { %v1740_v9 = vpop.permute.xlu0 %1739 }
 0x257   : > { %1882 = vrot.lane.b32.xlu1 %v6160_v37, %s5635_s20  ;;  %1829 = vst.msk [vmem:[#allocation3 + $0x1c] sm:$0xf] %vm1821_vm13, %v1740_v9 }
 0x258   : > { %1878 = vrot.lane.b32.xlu2 %v6180_v25, %s5635_s20 }
 0x259   : > { %v1730_v45 = vpop.permute.xlu1 %1729 }
 0x25a   : > { %1824 = vst.msk [vmem:[#allocation3 + $0x8] sm:$0xf] %vm1821_vm13, %v1730_v45  ;;  %v1744_v56 = vpop.permute.xlu2 %1743  ;;  %v9422_v45 = vld [vmem:[#allocation27_spill] sm:$0xff] }
 0x25b   : > { %1831 = vst.msk [vmem:[#allocation3 + $0x24] sm:$0xf] %vm1821_vm13, %v1744_v56 }
 0x25c   : > { %1898 = vrot.lane.b32.xlu0 %v6219_v15, %s5635_s20 }
 0x25e   : > { %v1746_v60 = vpop.permute.xlu0 %1745 }
 0x25f   : > { %1888 = vrot.lane.b32.xlu1 %v6100_v61, %s5635_s20  ;;  %1832 = vst.msk [vmem:[#allocation3 + $0x28] sm:$0xf] %vm1821_vm13, %v1746_v60  ;;  %v9423_v60 = vld [vmem:[#allocation24_spill] sm:$0xff] }
 0x260   : > { %1884 = vrot.lane.b32.xlu2 %v6208_v27, %s5635_s20 }
 0x261   : > { %v1736_v43 = vpop.permute.xlu1 %1735 }
 0x262   : > { %1827 = vst.msk [vmem:[#allocation3 + $0x14] sm:$0xf] %vm1821_vm13, %v1736_v43  ;;  %v1750_v37 = vpop.permute.xlu2 %1749  ;;  %v9424_v43 = vld [vmem:[#allocation10_spill] sm:$0xff] }
 0x263   : > { %1834 = vst.msk [vmem:[#allocation3 + $0x30] sm:$0xf] %vm1821_vm13, %v1750_v37 }
 0x264   : > { %1904 = vrot.lane.b32.xlu0 %v6251_v7, %s5635_s20 }
 0x266   : > { %v1752_v25 = vpop.permute.xlu0 %1751 }
 0x267   : > { %1894 = vrot.lane.b32.xlu1 %v6257_v11, %s5635_s20  ;;  %1835 = vst.msk [vmem:[#allocation3 + $0x34] sm:$0xf] %vm1821_vm13, %v1752_v25 }
 0x268   : > { %1890 = vrot.lane.b32.xlu2 %v6213_v10, %s5635_s20 }
 0x269   : > { %v1742_v61 = vpop.permute.xlu1 %1741 }
 0x26a   : > { %1830 = vst.msk [vmem:[#allocation3 + $0x20] sm:$0xf] %vm1821_vm13, %v1742_v61  ;;  %v1756_v27 = vpop.permute.xlu2 %1755 }
 0x26b   : > { %1837 = vst.msk [vmem:[#allocation3 + $0x3c] sm:$0xf] %vm1821_vm13, %v1756_v27  ;;  %v9425_v27 = vld [vmem:[#allocation28_spill] sm:$0xff] }
 0x26c   : > { %1910 = vrot.lane.b32.xlu0 %v6275_v41, %s5635_s20 }
 0x26e   : > { %v1758_v15 = vpop.permute.xlu0 %1757 }
 0x26f   : > { %1900 = vrot.lane.b32.xlu1 %v6228_v34, %s5635_s20  ;;  %1838 = vst.msk [vmem:[#allocation3 + $0x40] sm:$0xf] %vm1821_vm13, %v1758_v15  ;;  %v9426_v15 = vld [vmem:[#allocation13_spill] sm:$0xff] }
 0x270   : > { %1896 = vrot.lane.b32.xlu2 %v6263_v17, %s5635_s20 }
 0x271   : > { %v1748_v7 = vpop.permute.xlu1 %1747 }
 0x272   : > { %1833 = vst.msk [vmem:[#allocation3 + $0x2c] sm:$0xf] %vm1821_vm13, %v1748_v7  ;;  %v1762_v10 = vpop.permute.xlu2 %1761 }
 0x273   : > { %1840 = vst.msk [vmem:[#allocation3 + $0x48] sm:$0xf] %vm1821_vm13, %v1762_v10 }
 0x274   : > { %1916 = vrot.lane.b32.xlu0 %v6844_v19, %s5635_s20 }
 0x276   : > { %v1764_v11 = vpop.permute.xlu0 %1763 }
 0x277   : > { %1906 = vrot.lane.b32.xlu1 %v6349_v6, %s5635_s20  ;;  %1841 = vst.msk [vmem:[#allocation3 + $0x4c] sm:$0xf] %vm1821_vm13, %v1764_v11  ;;  %v9427_v11 = vld [vmem:[#allocation34_spill] sm:$0xff] }
 0x278   : > { %1902 = vrot.lane.b32.xlu2 %v6320_v32, %s5635_s20  ;;  %v538_v32 = vld [vmem:[#allocation2 + $0x198] sm:$0xff] }
 0x279   : > { %v1754_v34 = vpop.permute.xlu1 %1753  ;;  %v7148_v63 = vpack.c.bf16 %v538_v32, %v538_v32 }
 0x27a   : > { %1836 = vst.msk [vmem:[#allocation3 + $0x38] sm:$0xf] %vm1821_vm13, %v1754_v34  ;;  %v1768_v17 = vpop.permute.xlu2 %1767 }
 0x27b   : > { %1843 = vst.msk [vmem:[#allocation3 + $0x54] sm:$0xf] %vm1821_vm13, %v1768_v17  ;;  %v9429_v17 = vld [vmem:[#allocation18_spill] sm:$0xff] }
 0x27c   : > { %2012 = vrot.lane.b32.xlu0 %v9383_v62, %s5636_s21  ;;  %v9416_v62 = vld [vmem:[#allocation15_spill] sm:$0xff] }
 0x27e   : > { %v1770_v41 = vpop.permute.xlu0 %1769 }
 0x27f   : > { %1912 = vrot.lane.b32.xlu1 %v6286_v58, %s5635_s20  ;;  %1844 = vst.msk [vmem:[#allocation3 + $0x58] sm:$0xf] %vm1821_vm13, %v1770_v41 }
 0x280   : > { %1908 = vrot.lane.b32.xlu2 %v6357_v33, %s5635_s20  ;;  %v539_v33 = vld [vmem:[#allocation2 + $0x1a0] sm:$0xff] }
 0x281   : > { %v1760_v6 = vpop.permute.xlu1 %1759  ;;  %v7162_v16 = vpack.c.bf16 %v539_v33, %v539_v33  ;;  %v1992_v33 = vshll.u32 %v7148_v63, 16 }
 0x282   : > { %1839 = vst.msk [vmem:[#allocation3 + $0x44] sm:$0xf] %vm1821_vm13, %v1760_v6  ;;  %v1774_v19 = vpop.permute.xlu2 %1773 }
 0x283   : > { %1846 = vst.msk [vmem:[#allocation3 + $0x60] sm:$0xf] %vm1821_vm13, %v1774_v19  ;;  %v9430_v19 = vld [vmem:[#allocation35_spill] sm:$0xff] }
 0x284   : > { %2018 = vrot.lane.b32.xlu0 %v9416_v62, %s5636_s21  ;;  %v9431_v62 = vld [vmem:[#allocation21_spill] sm:$0xff] }
 0x286   : > { %v1776_v23 = vpop.permute.xlu0 %1775 }
 0x287   : > { %1918 = vrot.lane.b32.xlu1 %v7148_v63, %s5635_s20  ;;  %1847 = vst.msk [vmem:[#allocation3 + $0x64] sm:$0xf] %vm1821_vm13, %v1776_v23 }
 0x288   : > { %1914 = vrot.lane.b32.xlu2 %v6830_v13, %s5635_s20 }
 0x289   : > { %v1766_v58 = vpop.permute.xlu1 %1765 }
 0x28a   : > { %1842 = vst.msk [vmem:[#allocation3 + $0x50] sm:$0xf] %vm1821_vm13, %v1766_v58  ;;  %v1780_v2 = vpop.permute.xlu2 %1779  ;;  %v1989_v58 = vshrl.u32 %v7148_v63, 16 }
 0x28b   : > { %1849 = vst.msk [vmem:[#allocation3 + $0x6c] sm:$0xf] %vm1821_vm13, %v1780_v2 }
 0x28c   : > { %2024 = vrot.lane.b32.xlu0 %v9417_v1, %s5636_s21  ;;  %v1994_v1 = vrot.slane %v1992_v33, 5 }
 0x28e   : > { %v1782_v51 = vpop.permute.xlu0 %1781 }
 0x28f   : > { %2014 = vrot.lane.b32.xlu1 %v9418_v28, %s5636_s21  ;;  %1850 = vst.msk [vmem:[#allocation3 + $0x70] sm:$0xf] %vm1821_vm13, %v1782_v51  ;;  %v9432_v28 = vld [vmem:[#allocation38_spill] sm:$0xff] }
 0x290   : > { %1920 = vrot.lane.b32.xlu2 %v7162_v16, %s5635_s20 }
 0x291   : > { %v1772_v13 = vpop.permute.xlu1 %1771 }
 0x292   : > { %1845 = vst.msk [vmem:[#allocation3 + $0x5c] sm:$0xf] %vm1821_vm13, %v1772_v13  ;;  %v1786_v36 = vpop.permute.xlu2 %1785  ;;  %v9433_v13 = vld [vmem:[#allocation26_spill] sm:$0xff] }
 0x293   : > { %1852 = vst.msk [vmem:[#allocation3 + $0x78] sm:$0xf] %vm1821_vm13, %v1786_v36 }
 0x294   : > { %2030 = vrot.lane.b32.xlu0 %v9419_v54, %s5636_s21 }
 0x296   : > { %v1788_v52 = vpop.permute.xlu0 %1787 }
 0x297   : > { %2020 = vrot.lane.b32.xlu1 %v9420_v48, %s5636_s21  ;;  %1853 = vst.msk [vmem:[#allocation3 + $0x7c] sm:$0xf] %vm1821_vm13, %v1788_v52  ;;  %v1998_v52 = vshll.u32 %v7162_v16, 16 }
 0x298   : > { %2016 = vrot.lane.b32.xlu2 %v9421_v21, %s5636_s21 }
 0x299   : > { %v1778_v55 = vpop.permute.xlu1 %1777  ;;  %v2000_v21 = vrot.slane %v1998_v52, 5 }
 0x29a   : > { %1848 = vst.msk [vmem:[#allocation3 + $0x68] sm:$0xf] %vm1821_vm13, %v1778_v55  ;;  %v1861_v9 = vpop.permute.xlu2 %1860 }
 0x29b   : > { %1956 = vst.msk [vmem:[#allocation3 + $0x4] sm:$0xf] %vm1954_vm14, %v1861_v9  ;;  %v9434_v9 = vld [vmem:[#allocation39_spill] sm:$0xff] }
 0x29c   : > { %2036 = vrot.lane.b32.xlu0 %v9422_v45, %s5636_s21  ;;  %v9435_v45 = vld [vmem:[#allocation30_spill] sm:$0xff] }
 0x29e   : > { %v1863_v56 = vpop.permute.xlu0 %1862 }
 0x29f   : > { %2026 = vrot.lane.b32.xlu1 %v9423_v60, %s5636_s21  ;;  %1957 = vst.msk [vmem:[#allocation3 + $0x8] sm:$0xf] %vm1954_vm14, %v1863_v56 }
 0x2a0   : > { %2022 = vrot.lane.b32.xlu2 %v9424_v43, %s5636_s21 }
 0x2a1   : > { %v1784_v37 = vpop.permute.xlu1 %1783 }
 0x2a2   : > { %1851 = vst.msk [vmem:[#allocation3 + $0x74] sm:$0xf] %vm1821_vm13, %v1784_v37  ;;  %v1867_v25 = vpop.permute.xlu2 %1866  ;;  %v540_v37 = vld [vmem:[#allocation2 + $0x1a8] sm:$0x3] }
 0x2a3   : > { %1959 = vst.msk [vmem:[#allocation3 + $0x10] sm:$0xf] %vm1954_vm14, %v1867_v25 }
 0x2a4   : > { %2042 = vrot.lane.b32.xlu0 %v9395_v57, %s5636_s21  ;;  %v9428_v57 = vld [vmem:[#allocation32_spill] sm:$0xff] }
 0x2a6   : > { %v1869_v61 = vpop.permute.xlu0 %1868 }
 0x2a7   : > { %2032 = vrot.lane.b32.xlu1 %v9425_v27, %s5636_s21  ;;  %1960 = vst.msk [vmem:[#allocation3 + $0x14] sm:$0xf] %vm1954_vm14, %v1869_v61  ;;  %v9436_v61 = vld [vmem:[#allocation40_spill] sm:$0xff]  ;;  %v9437_v27 = vld [vmem:[#allocation33_spill] sm:$0xff] }
 0x2a8   : > { %2028 = vrot.lane.b32.xlu2 %v9426_v15, %s5636_s21  ;;  %v7246_v15 = vpack.c.bf16 %v540_v37, %v540_v37 }
 0x2a9   : > { %v1859_v7 = vpop.permute.xlu1 %1858 }
 0x2aa   : > { %1955 = vst.msk [vmem:[#allocation3] sm:$0xf] %vm1954_vm14, %v1859_v7  ;;  %v1873_v10 = vpop.permute.xlu2 %1872 }
 0x2ab   : > { %1962 = vst.msk [vmem:[#allocation3 + $0x1c] sm:$0xf] %vm1954_vm14, %v1873_v10 }
 0x2ac   : > { %2048 = vrot.lane.b32.xlu0 %v9427_v11, %s5636_s21 }
 0x2ae   : > { %v1875_v34 = vpop.permute.xlu0 %1874 }
 0x2af   : > { %2038 = vrot.lane.b32.xlu1 %v9428_v57, %s5636_s21  ;;  %1963 = vst.msk [vmem:[#allocation3 + $0x20] sm:$0xf] %vm1954_vm14, %v1875_v34  ;;  %v2008_v57 = vshll.u32 %v7246_v15, 16 }
 0x2b0   : > { %2034 = vrot.lane.b32.xlu2 %v9429_v17, %s5636_s21 }
 0x2b1   : > { %v1865_v41 = vpop.permute.xlu1 %1864 }
 0x2b2   : > { %1958 = vst.msk [vmem:[#allocation3 + $0xc] sm:$0xf] %vm1954_vm14, %v1865_v41  ;;  %v1879_v32 = vpop.permute.xlu2 %1878  ;;  %v9438_v41 = vld [vmem:[#allocation9_spill] sm:$0xff] }
 0x2b3   : > { %1965 = vst.msk [vmem:[#allocation3 + $0x28] sm:$0xf] %vm1954_vm14, %v1879_v32 }
 0x2b4   : > { %2054 = vrot.lane.b32.xlu0 %v9400_v20, %s5636_s21  ;;  %v1991_v20 = vrot.slane %v1989_v58, 4 }
 0x2b6   : > { %v1881_v6 = vpop.permute.xlu0 %1880  ;;  %v1995_v54 = vor.u32 %v1994_v1, %v1991_v20 }
 0x2b7   : > { %2044 = vrot.lane.b32.xlu1 %v9430_v19, %s5636_s21  ;;  %1966 = vst.msk [vmem:[#allocation3 + $0x2c] sm:$0xf] %vm1954_vm14, %v1881_v6  ;;  %v2010_v6 = vrot.slane %v2008_v57, 5 }
 0x2b8   : > { %2040 = vrot.lane.b32.xlu2 %v9431_v62, %s5636_s21 }
 0x2b9   : > { %v1871_v23 = vpop.permute.xlu1 %1870 }
 0x2ba   : > { %1961 = vst.msk [vmem:[#allocation3 + $0x18] sm:$0xf] %vm1954_vm14, %v1871_v23  ;;  %v1885_v2 = vpop.permute.xlu2 %1884 }
 0x2bb   : > { %1968 = vst.msk [vmem:[#allocation3 + $0x34] sm:$0xf] %vm1954_vm14, %v1885_v2 }
 0x2bc   : > { %2060 = vrot.lane.b32.xlu0 %v6399_v8, %s5636_s21  ;;  %v1996_v8 = vrot.slane %v1995_v54, 4 }
 0x2be   : > { %v1887_v51 = vpop.permute.xlu0 %1886  ;;  %v2001_v60 = vsel %vm5735_vm3, %v1996_v8, %v2000_v21 }
 0x2bf   : > { %2050 = vrot.lane.b32.xlu1 %v9432_v28, %s5636_s21  ;;  %1969 = vst.msk [vmem:[#allocation3 + $0x38] sm:$0xf] %vm1954_vm14, %v1887_v51  ;;  %v9442_v28 = vld [vmem:[#allocation50_spill] sm:$0xff] }
 0x2c0   : > { %2046 = vrot.lane.b32.xlu2 %v9433_v13, %s5636_s21  ;;  %v9443_v13 = vld [vmem:[#allocation45_spill] sm:$0xff] }
 0x2c1   : > { %v1877_v36 = vpop.permute.xlu1 %1876 }
 0x2c2   : > { %1964 = vst.msk [vmem:[#allocation3 + $0x24] sm:$0xf] %vm1954_vm14, %v1877_v36  ;;  %v1891_v48 = vpop.permute.xlu2 %1890 }
 0x2c3   : > { %1971 = vst.msk [vmem:[#allocation3 + $0x40] sm:$0xf] %vm1954_vm14, %v1891_v48  ;;  %v9445_v48 = vld [vmem:[#allocation23_spill] sm:$0xff] }
 0x2c4   : > { %2066 = vrot.lane.b32.xlu0 %v6426_v59, %s5636_s21  ;;  %v2002_v59 = vshrl.u32 %v7162_v16, 16 }
 0x2c6   : > { %v1893_v55 = vpop.permute.xlu0 %1892  ;;  %v2004_v7 = vrot.slane %v2002_v59, 4 }
 0x2c7   : > { %2056 = vrot.lane.b32.xlu1 %v9434_v9, %s5636_s21  ;;  %1972 = vst.msk [vmem:[#allocation3 + $0x44] sm:$0xf] %vm1954_vm14, %v1893_v55  ;;  %v9447_v9 = vld [vmem:[#allocation25_spill] sm:$0xff] }
 0x2c8   : > { %2052 = vrot.lane.b32.xlu2 %v9435_v45, %s5636_s21  ;;  %v2005_v34 = vor.u32 %v2004_v7, %v2000_v21  ;;  %v5483_v7 = vld [vmem:[%s9126_s1 + $0x10] sm:$0xff] }
 0x2c9   : > { %v1883_v56 = vpop.permute.xlu1 %1882 }
 0x2ca   : > { %1967 = vst.msk [vmem:[#allocation3 + $0x30] sm:$0xf] %vm1954_vm14, %v1883_v56  ;;  %v1897_v43 = vpop.permute.xlu2 %1896  ;;  %v2006_v32 = vrot.slane %v2005_v34, 4  ;;  %v5482_v34 = vld [vmem:[%s9126_s1 + $0x8] sm:$0xff] }
 0x2cb   : > { %1974 = vst.msk [vmem:[#allocation3 + $0x4c] sm:$0xf] %vm1954_vm14, %v1897_v43 }
 0x2cc   : > { %2072 = vrot.lane.b32.xlu0 %v2001_v60, %s5636_s21  ;;  %v2318_v60 = vld [vmem:[%s9126_s1 + $0x20] sm:$0xf] }
 0x2ce   : > { %v1899_v25 = vpop.permute.xlu0 %1898 }
 0x2cf   : > { %2062 = vrot.lane.b32.xlu1 %v9436_v61, %s5636_s21  ;;  %1975 = vst.msk [vmem:[#allocation3 + $0x50] sm:$0xf] %vm1954_vm14, %v1899_v25  ;;  %v9448_v25 = vld [vmem:[#allocation29_spill] sm:$0xff] }
 0x2d0   : > { %2058 = vrot.lane.b32.xlu2 %v9437_v27, %s5636_s21 }
 0x2d1   : > { %v1889_v10 = vpop.permute.xlu1 %1888 }
 0x2d2   : > { %1970 = vst.msk [vmem:[#allocation3 + $0x3c] sm:$0xf] %vm1954_vm14, %v1889_v10  ;;  %v1903_v11 = vpop.permute.xlu2 %1902 }
 0x2d3   : > { %1977 = vst.msk [vmem:[#allocation3 + $0x58] sm:$0xf] %vm1954_vm14, %v1903_v11 }
 0x2d4   : > { %2151 = vrot.lane.b32.xlu0 %v9402_v46, %s5637_s22  ;;  %v2011_v46 = vsel %vm5735_vm3, %v2006_v32, %v2010_v6 }
 0x2d6   : > { %v1905_v17 = vpop.permute.xlu0 %1904 }
 0x2d7   : > { %2068 = vrot.lane.b32.xlu1 %v9438_v41, %s5636_s21  ;;  %1978 = vst.msk [vmem:[#allocation3 + $0x5c] sm:$0xf] %vm1954_vm14, %v1905_v17 }
 0x2d8   : > { %2064 = vrot.lane.b32.xlu2 %v9401_v18, %s5636_s21 }
 0x2d9   : > { %v1895_v19 = vpop.permute.xlu1 %1894 }
 0x2da   : > { %1973 = vst.msk [vmem:[#allocation3 + $0x48] sm:$0xf] %vm1954_vm14, %v1895_v19  ;;  %v1909_v62 = vpop.permute.xlu2 %1908 }
 0x2db   : > { %1980 = vst.msk [vmem:[#allocation3 + $0x64] sm:$0xf] %vm1954_vm14, %v1909_v62 }
 0x2dc   : > { %2157 = vrot.lane.b32.xlu0 %v9405_v44, %s5637_s22 }
 0x2de   : > { %v1911_v23 = vpop.permute.xlu0 %1910 }
 0x2df   : > { %2074 = vrot.lane.b32.xlu1 %v2011_v46, %s5636_s21  ;;  %1981 = vst.msk [vmem:[#allocation3 + $0x68] sm:$0xf] %vm1954_vm14, %v1911_v23 }
 0x2e0   : > { %2070 = vrot.lane.b32.xlu2 %v6949_v0, %s5636_s21 }
 0x2e1   : > { %v1901_v18 = vpop.permute.xlu1 %1900 }
 0x2e2   : > { %1976 = vst.msk [vmem:[#allocation3 + $0x54] sm:$0xf] %vm1954_vm14, %v1901_v18  ;;  %v1915_v58 = vpop.permute.xlu2 %1914 }
 0x2e3   : > { %1983 = vst.msk [vmem:[#allocation3 + $0x70] sm:$0xf] %vm1954_vm14, %v1915_v58 }
 0x2e4   : > { %2163 = vrot.lane.b32.xlu0 %v9407_v4, %s5637_s22 }
 0x2e6   : > { %v1917_v33 = vpop.permute.xlu0 %1916 }
 0x2e7   : > { %2153 = vrot.lane.b32.xlu1 %v6550_v40, %s5637_s22  ;;  %1984 = vst.msk [vmem:[#allocation3 + $0x74] sm:$0xf] %vm1954_vm14, %v1917_v33 }
 0x2e8   : > { %2149 = vrot.lane.b32.xlu2 %v6413_v22, %s5637_s22 }
 0x2e9   : > { %v1907_v44 = vpop.permute.xlu1 %1906 }
 0x2ea   : > { %1979 = vst.msk [vmem:[#allocation3 + $0x60] sm:$0xf] %vm1954_vm14, %v1907_v44  ;;  %v1921_v0 = vpop.permute.xlu2 %1920 }
 0x2eb   : > { %1986 = vst.msk [vmem:[#allocation3 + $0x7c] sm:$0xf] %vm1954_vm14, %v1921_v0 }
 0x2ec   : > { %2169 = vrot.lane.b32.xlu0 %v9409_v38, %s5637_s22  ;;  %v9439_v38 = vld [vmem:[#allocation49_spill] sm:$0xff] }
 0x2ee   : > { %v2013_v4 = vpop.permute.xlu0 %2012 }
 0x2ef   : > { %2109 = vst.msk [vmem:[#allocation3] sm:$0xf] %vm2108_vm15, %v2013_v4  ;;  %2159 = vrot.lane.b32.xlu1 %v6575_v35, %s5637_s22 }
 0x2f0   : > { %2155 = vrot.lane.b32.xlu2 %v6453_v31, %s5637_s22 }
 0x2f1   : > { %v1913_v22 = vpop.permute.xlu1 %1912 }
 0x2f2   : > { %1982 = vst.msk [vmem:[#allocation3 + $0x6c] sm:$0xf] %vm1954_vm14, %v1913_v22  ;;  %v2017_v40 = vpop.permute.xlu2 %2016 }
 0x2f3   : > { %2111 = vst.msk [vmem:[#allocation3 + $0x8] sm:$0xf] %vm2108_vm15, %v2017_v40 }
 0x2f4   : > { %2175 = vrot.lane.b32.xlu0 %v9411_v39, %s5637_s22  ;;  %v9440_v39 = vld [vmem:[#allocation47_spill] sm:$0xff] }
 0x2f6   : > { %v2019_v2 = vpop.permute.xlu0 %2018 }
 0x2f7   : > { %2112 = vst.msk [vmem:[#allocation3 + $0xc] sm:$0xf] %vm2108_vm15, %v2019_v2  ;;  %2165 = vrot.lane.b32.xlu1 %v6603_v30, %s5637_s22  ;;  %v9441_v30 = vld [vmem:[#allocation43_spill] sm:$0xff] }
 0x2f8   : > { %2161 = vrot.lane.b32.xlu2 %v9404_v29, %s5637_s22 }
 0x2f9   : > { %v1919_v35 = vpop.permute.xlu1 %1918 }
 0x2fa   : > { %1985 = vst.msk [vmem:[#allocation3 + $0x78] sm:$0xf] %vm1954_vm14, %v1919_v35  ;;  %v2023_v31 = vpop.permute.xlu2 %2022 }
 0x2fb   : > { %2114 = vst.msk [vmem:[#allocation3 + $0x14] sm:$0xf] %vm2108_vm15, %v2023_v31 }
 0x2fc   : > { %2181 = vrot.lane.b32.xlu0 %v9439_v38, %s5637_s22 }
 0x2fe   : > { %v2025_v20 = vpop.permute.xlu0 %2024 }
 0x2ff   : > { %2115 = vst.msk [vmem:[#allocation3 + $0x18] sm:$0xf] %vm2108_vm15, %v2025_v20  ;;  %2171 = vrot.lane.b32.xlu1 %v9440_v39, %s5637_s22 }
 0x300   : > { %2167 = vrot.lane.b32.xlu2 %v9441_v30, %s5637_s22 }
 0x301   : > { %v2015_v1 = vpop.permute.xlu1 %2014 }
 0x302   : > { %2110 = vst.msk [vmem:[#allocation3 + $0x4] sm:$0xf] %vm2108_vm15, %v2015_v1  ;;  %v2029_v29 = vpop.permute.xlu2 %2028 }
 0x303   : > { %2117 = vst.msk [vmem:[#allocation3 + $0x20] sm:$0xf] %vm2108_vm15, %v2029_v29 }
 0x304   : > { %2187 = vrot.lane.b32.xlu0 %v6676_v14, %s5637_s22  ;;  %v9444_v14 = vld [vmem:[#allocation17_spill] sm:$0xff] }
 0x306   : > { %v2031_v51 = vpop.permute.xlu0 %2030 }
 0x307   : > { %2118 = vst.msk [vmem:[#allocation3 + $0x24] sm:$0xf] %vm2108_vm15, %v2031_v51  ;;  %2177 = vrot.lane.b32.xlu1 %v9442_v28, %s5637_s22 }
 0x308   : > { %2173 = vrot.lane.b32.xlu2 %v9443_v13, %s5637_s22 }
 0x309   : > { %v2021_v36 = vpop.permute.xlu1 %2020 }
 0x30a   : > { %2113 = vst.msk [vmem:[#allocation3 + $0x10] sm:$0xf] %vm2108_vm15, %v2021_v36  ;;  %v2035_v54 = vpop.permute.xlu2 %2034 }
 0x30b   : > { %2120 = vst.msk [vmem:[#allocation3 + $0x2c] sm:$0xf] %vm2108_vm15, %v2035_v54 }
 0x30c   : > { %2193 = vrot.lane.b32.xlu0 %v6701_v26, %s5637_s22  ;;  %v9446_v26 = vld [vmem:[#allocation52_spill] sm:$0xff] }
 0x30e   : > { %v2037_v52 = vpop.permute.xlu0 %2036 }
 0x30f   : > { %2121 = vst.msk [vmem:[#allocation3 + $0x30] sm:$0xf] %vm2108_vm15, %v2037_v52  ;;  %2183 = vrot.lane.b32.xlu1 %v9444_v14, %s5637_s22 }
 0x310   : > { %2179 = vrot.lane.b32.xlu2 %v9445_v48, %s5637_s22 }
 0x311   : > { %v2027_v8 = vpop.permute.xlu1 %2026 }
 0x312   : > { %2116 = vst.msk [vmem:[#allocation3 + $0x1c] sm:$0xf] %vm2108_vm15, %v2027_v8  ;;  %v2041_v21 = vpop.permute.xlu2 %2040 }
 0x313   : > { %2123 = vst.msk [vmem:[#allocation3 + $0x38] sm:$0xf] %vm2108_vm15, %v2041_v21 }
 0x314   : > { %2199 = vrot.lane.b32.xlu0 %v6720_v5, %s5637_s22  ;;  %v2416_v5 = vunpack.c.l.b16 %v2318_v60 }
 0x316   : > { %v2043_v55 = vpop.permute.xlu0 %2042  ;;  %v2421_v43 = vpack.c.b16 %v2416_v5, %v2416_v5 }
 0x317   : > { %2124 = vst.msk [vmem:[#allocation3 + $0x3c] sm:$0xf] %vm2108_vm15, %v2043_v55  ;;  %2189 = vrot.lane.b32.xlu1 %v9446_v26, %s5637_s22 }
 0x318   : > { %2185 = vrot.lane.b32.xlu2 %v9447_v9, %s5637_s22  ;;  %v2477_v37 = vsel %vm2475_vm1, %v2421_v43, 0 }
 0x319   : > { %v2033_v45 = vpop.permute.xlu1 %2032  ;;  %2482 = vmatpush.bf16.msra.mxu0 %v2477_v37  ;;  %5584 = vmatpush.bf16.msra.mxu3 %v2477_v37 }
 0x31a   : > { %2119 = vst.msk [vmem:[#allocation3 + $0x28] sm:$0xf] %vm2108_vm15, %v2033_v45  ;;  %v2047_v56 = vpop.permute.xlu2 %2046 }
 0x31b   : > { %2126 = vst.msk [vmem:[#allocation3 + $0x44] sm:$0xf] %vm2108_vm15, %v2047_v56  ;;  %v2759_v56 = vld [vmem:[#allocation4] sm:$0xff] }
 0x31c   : > { %2205 = vrot.lane.b32.xlu0 %v7059_v49, %s5637_s22  ;;  %v5484_v49 = vld [vmem:[%s9126_s1 + $0x18] sm:$0xff]  ;;  %v7412_v43 = vpack.c.bf16 %v2759_v56, %v2759_v56 }
 0x31d   : > { %2483 = vmatpush.bf16.msra.mxu0 %v5484_v49  ;;  %5585 = vmatpush.bf16.msra.mxu3 %v5484_v49  ;;  %v2147_v49 = vrot.slane %v7246_v15, 5 }
 0x31e   : > { %v2049_v59 = vpop.permute.xlu0 %2048  ;;  %v2894_v37 = vshrl.u32 %v7412_v43, 16  ;;  %2845 = vst.msk [vmem:[#allocation5] sm:$0xf] %vm573_vm8, %v7412_v43 }
 0x31f   : > { %2127 = vst.msk [vmem:[#allocation3 + $0x48] sm:$0xf] %vm2108_vm15, %v2049_v59  ;;  %2195 = vrot.lane.b32.xlu1 %v9448_v25, %s5637_s22  ;;  %v2144_v59 = vrot.slane %v7162_v16, 5  ;;  %v2897_v25 = vshll.u32 %v7412_v43, 16 }
 0x320   : > { %2191 = vrot.lane.b32.xlu2 %v9414_v3, %s5637_s22 }
 0x321   : > { %v2039_v61 = vpop.permute.xlu1 %2038  ;;  %2484 = vmatpush.bf16.msra.mxu0 %v5483_v7  ;;  %5586 = vmatpush.bf16.msra.mxu3 %v5483_v7 }
 0x322   : > { %2122 = vst.msk [vmem:[#allocation3 + $0x34] sm:$0xf] %vm2108_vm15, %v2039_v61  ;;  %v2053_v27 = vpop.permute.xlu2 %2052  ;;  %v2760_v61 = vld [vmem:[#allocation4 + $0x8] sm:$0xff] }
 0x323   : > { %2129 = vst.msk [vmem:[#allocation3 + $0x50] sm:$0xf] %vm2108_vm15, %v2053_v27  ;;  %v2146_v27 = vrot.slane %v2144_v59, 4  ;;  %v7422_v7 = vpack.c.bf16 %v2760_v61, %v2760_v61 }
 0x325   : > { %2485 = vmatpush.bf16.msra.mxu0 %v5482_v34  ;;  %5587 = vmatpush.bf16.msra.mxu3 %v5482_v34  ;;  %v2148_v16 = vsel %vm6361_vm7, %v2146_v27, %v2147_v49  ;;  %2846 = vst.msk [vmem:[#allocation5 + $0x4] sm:$0xf] %vm573_vm8, %v7422_v7 }
 0x326   : > { %v2055_v10 = vpop.permute.xlu0 %2054  ;;  %2211 = vrot.lane.b32.xlu0 %v2148_v16, %s5637_s22 }
 0x327   : > { %2130 = vst.msk [vmem:[#allocation3 + $0x54] sm:$0xf] %vm2108_vm15, %v2055_v10  ;;  %2201 = vrot.lane.b32.xlu1 %v6738_v50, %s5637_s22  ;;  %v5481_v50 = vld [vmem:[%s9126_s1] sm:$0xff]  ;;  %v2896_v10 = vrot.slane %v2894_v37, 4 }
 0x328   : > { %2197 = vrot.lane.b32.xlu2 %v6667_v53, %s5637_s22 }
 0x329   : > { %v2045_v3 = vpop.permute.xlu1 %2044  ;;  %2486 = vmatpush.bf16.msra.mxu0 %v5481_v50  ;;  %5588 = vmatpush.bf16.msra.mxu3 %v5481_v50 }
 0x32a   : > { %2125 = vst.msk [vmem:[#allocation3 + $0x40] sm:$0xf] %vm2108_vm15, %v2045_v3  ;;  %v2059_v11 = vpop.permute.xlu2 %2058  ;;  %v2899_v3 = vrot.slane %v2897_v25, 5 }
 0x32b   : > { %2132 = vst.msk [vmem:[#allocation3 + $0x5c] sm:$0xf] %vm2108_vm15, %v2059_v11  ;;  %v2903_v11 = vshll.u32 %v7422_v7, 16 }
 0x32c   : > { %v2900_v34 = vor.u32 %v2899_v3, %v2896_v10 }
 0x32e   : > { %v2061_v57 = vpop.permute.xlu0 %2060  ;;  %v2901_v15 = vrot.slane %v2900_v34, 4 }
 0x32f   : > { %2133 = vst.msk [vmem:[#allocation3 + $0x60] sm:$0xf] %vm2108_vm15, %v2061_v57  ;;  %2207 = vrot.lane.b32.xlu1 %v7032_v42, %s5637_s22 }
 0x330   : > { %2203 = vrot.lane.b32.xlu2 %v9415_v24, %s5637_s22 }
 0x331   : > { %v2051_v53 = vpop.permute.xlu1 %2050 }
 0x332   : > { %2128 = vst.msk [vmem:[#allocation3 + $0x4c] sm:$0xf] %vm2108_vm15, %v2051_v53  ;;  %v2065_v17 = vpop.permute.xlu2 %2064  ;;  %v2905_v53 = vrot.slane %v2903_v11, 5 }
 0x333   : > { %2135 = vst.msk [vmem:[#allocation3 + $0x68] sm:$0xf] %vm2108_vm15, %v2065_v17  ;;  %v7435_v17 = vld [vmem:[%s9127_s2] ss:$0 sm:$0xff] }
 0x336   : > { %v2067_v41 = vpop.permute.xlu0 %2066 }
 0x337   : > { %2136 = vst.msk [vmem:[#allocation3 + $0x6c] sm:$0xf] %vm2108_vm15, %v2067_v41  ;;  %v2906_v41 = vsel %vm5735_vm3, %v2901_v15, %v2905_v53 }
 0x338   : > { %3277 = vrot.lane.b32.xlu1 %v2906_v41, %s5630_s11 }
 0x339   : > { %v2057_v32 = vpop.permute.xlu1 %2056 }
 0x33a   : > { %2131 = vst.msk [vmem:[#allocation3 + $0x58] sm:$0xf] %vm2108_vm15, %v2057_v32  ;;  %v2071_v6 = vpop.permute.xlu2 %2070  ;;  %v5234_v32 = vrot.slane %v7148_v63, 9 }
 0x33b   : > { %2138 = vst.msk [vmem:[#allocation3 + $0x74] sm:$0xf] %vm2108_vm15, %v2071_v6  ;;  %v7444_v6 = vld [vmem:[%s9128_s3] ss:$0 sm:$0xff] }
 0x33e   : > { %v2073_v42 = vpop.permute.xlu0 %2072 }
 0x33f   : > { %2139 = vst.msk [vmem:[#allocation3 + $0x78] sm:$0xf] %vm2108_vm15, %v2073_v42 }
 0x341   : > { %v2063_v24 = vpop.permute.xlu1 %2062 }
 0x342   : > { %2134 = vst.msk [vmem:[#allocation3 + $0x64] sm:$0xf] %vm2108_vm15, %v2063_v24  ;;  %v2150_v19 = vpop.permute.xlu2 %2149  ;;  %v2145_v24 = vsel %vm6361_vm7, %v5234_v32, %v2144_v59 }
 0x343   : > { %2246 = vst.msk [vmem:[#allocation3] sm:$0xf] %vm2245_vm2, %v2150_v19  ;;  %v2907_v19 = vshrl.u32 %v7422_v7, 16  ;;  %2209 = vrot.lane.b32.xlu2 %v2145_v24, %s5637_s22 }
 0x345   : > { %v2909_v63 = vrot.slane %v2907_v19, 4 }
 0x346   : > { %v2152_v62 = vpop.permute.xlu0 %2151 }
 0x347   : > { %2247 = vst.msk [vmem:[#allocation3 + $0x4] sm:$0xf] %vm2245_vm2, %v2152_v62 }
 0x349   : > { %v2069_v46 = vpop.permute.xlu1 %2068 }
 0x34a   : > { %2137 = vst.msk [vmem:[#allocation3 + $0x70] sm:$0xf] %vm2108_vm15, %v2069_v46  ;;  %v2156_v23 = vpop.permute.xlu2 %2155  ;;  %v2761_v46 = vld [vmem:[#allocation4 + $0x10] sm:$0x3] }
 0x34b   : > { %2249 = vst.msk [vmem:[#allocation3 + $0xc] sm:$0xf] %vm2245_vm2, %v2156_v23 }
 0x34e   : > { %v5465_v18 = vld [vmem:[#allocation3] sm:$0xff]  ;;  %v2158_v58 = vpop.permute.xlu0 %2157 }
 0x34f   : > { %2250 = vst.msk [vmem:[#allocation3 + $0x10] sm:$0xf] %vm2245_vm2, %v2158_v58  ;;  %5315 = vmatmul.msk.bf16.vlgmr.msra.gmra.mxu0 %vm2426_vm4, %v5465_v18  ;;  %v7451_v18 = vpack.c.bf16 %v2761_v46, %v2761_v46 }
 0x351   : > { %v2075_v33 = vpop.permute.xlu1 %2074 }
 0x352   : > { %2140 = vst.msk [vmem:[#allocation3 + $0x7c] sm:$0xf] %vm2108_vm15, %v2075_v33  ;;  %v2162_v44 = vpop.permute.xlu2 %2161 }
 0x353   : > { %2252 = vst.msk [vmem:[#allocation3 + $0x18] sm:$0xf] %vm2245_vm2, %v2162_v44  ;;  %v2910_v44 = vor.u32 %v2909_v63, %v2905_v53 }
 0x356   : > { %v2164_v0 = vpop.permute.xlu0 %2163 }
 0x357   : > { %2253 = vst.msk [vmem:[#allocation3 + $0x1c] sm:$0xf] %vm2245_vm2, %v2164_v0  ;;  %v2913_v0 = vshll.u32 %v7451_v18, 16 }
 0x359   : > { %v2154_v4 = vpop.permute.xlu1 %2153 }
 0x35a   : > { %2248 = vst.msk [vmem:[#allocation3 + $0x8] sm:$0xf] %vm2245_vm2, %v2154_v4  ;;  %v2168_v2 = vpop.permute.xlu2 %2167 }
 0x35b   : > { %2255 = vst.msk [vmem:[#allocation3 + $0x24] sm:$0xf] %vm2245_vm2, %v2168_v2 }
 0x35e   : > { %v2170_v38 = vpop.permute.xlu0 %2169  ;;  %v5468_v39 = vld [vmem:[#allocation3 + $0x18] sm:$0xff] }
 0x35f   : > { %2256 = vst.msk [vmem:[#allocation3 + $0x28] sm:$0xf] %vm2245_vm2, %v2170_v38 }
 0x361   : > { %v5466_v22 = vld [vmem:[#allocation3 + $0x8] sm:$0xff]  ;;  %v2160_v40 = vpop.permute.xlu1 %2159 }
 0x362   : > { %2251 = vst.msk [vmem:[#allocation3 + $0x14] sm:$0xf] %vm2245_vm2, %v2160_v40  ;;  %5316 = vmatmul.msk.bf16.gmra.mxu0 %vm2426_vm4, %v5466_v22  ;;  %v2174_v30 = vpop.permute.xlu2 %2173  ;;  %v2911_v22 = vrot.slane %v2910_v44, 4  ;;  %v2915_v40 = vrot.slane %v2913_v0, 5 }
 0x363   : > { %2258 = vst.msk [vmem:[#allocation3 + $0x30] sm:$0xf] %vm2245_vm2, %v2174_v30 }
 0x366   : > { %v2176_v1 = vpop.permute.xlu0 %2175 }
 0x367   : > { %2259 = vst.msk [vmem:[#allocation3 + $0x34] sm:$0xf] %vm2245_vm2, %v2176_v1 }
 0x369   : > { %v2166_v35 = vpop.permute.xlu1 %2165  ;;  %v5467_v31 = vld [vmem:[#allocation3 + $0x10] sm:$0xff] }
 0x36a   : > { %2254 = vst.msk [vmem:[#allocation3 + $0x20] sm:$0xf] %vm2245_vm2, %v2166_v35  ;;  %v2180_v51 = vpop.permute.xlu2 %2179  ;;  %v2916_v35 = vsel %vm5735_vm3, %v2911_v22, %v2915_v40 }
 0x36b   : > { %2261 = vst.msk [vmem:[#allocation3 + $0x3c] sm:$0xf] %vm2245_vm2, %v2180_v51  ;;  %3279 = vrot.lane.b32.xlu2 %v2916_v35, %s5630_s11 }
 0x36e   : > { %v2182_v13 = vpop.permute.xlu0 %2181  ;;  %v5471_v21 = vld [vmem:[#allocation3 + $0x30] sm:$0xff] }
 0x36f   : > { %2262 = vst.msk [vmem:[#allocation3 + $0x40] sm:$0xf] %vm2245_vm2, %v2182_v13 }
 0x371   : > { %v2172_v20 = vpop.permute.xlu1 %2171  ;;  %v5469_v29 = vld [vmem:[#allocation3 + $0x20] sm:$0xff] }
 0x372   : > { %5317 = vmatmul.msk.bf16.gmra.mxu0 %vm2426_vm4, %v5467_v31  ;;  %2257 = vst.msk [vmem:[#allocation3 + $0x2c] sm:$0xf] %vm2245_vm2, %v2172_v20  ;;  %v2186_v54 = vpop.permute.xlu2 %2185 }
 0x373   : > { %2264 = vst.msk [vmem:[#allocation3 + $0x48] sm:$0xf] %vm2245_vm2, %v2186_v54 }
 0x376   : > { %v2188_v52 = vpop.permute.xlu0 %2187 }
 0x377   : > { %2265 = vst.msk [vmem:[#allocation3 + $0x4c] sm:$0xf] %vm2245_vm2, %v2188_v52 }
 0x379   : > { %v2178_v28 = vpop.permute.xlu1 %2177  ;;  %v5470_v36 = vld [vmem:[#allocation3 + $0x28] sm:$0xff] }
 0x37a   : > { %2260 = vst.msk [vmem:[#allocation3 + $0x38] sm:$0xf] %vm2245_vm2, %v2178_v28  ;;  %v2192_v48 = vpop.permute.xlu2 %2191 }
 0x37b   : > { %2267 = vst.msk [vmem:[#allocation3 + $0x54] sm:$0xf] %vm2245_vm2, %v2192_v48 }
 0x37e   : > { %v2194_v8 = vpop.permute.xlu0 %2193  ;;  %v5474_v48 = vld [vmem:[#allocation3 + $0x48] sm:$0xff] }
 0x37f   : > { %2268 = vst.msk [vmem:[#allocation3 + $0x58] sm:$0xf] %vm2245_vm2, %v2194_v8 }
 0x381   : > { %v2184_v14 = vpop.permute.xlu1 %2183  ;;  %v5472_v60 = vld [vmem:[#allocation3 + $0x38] sm:$0xff] }
 0x382   : > { %5318 = vmatmul.msk.bf16.gmra.mxu0 %vm2426_vm4, %v5468_v39  ;;  %2263 = vst.msk [vmem:[#allocation3 + $0x44] sm:$0xf] %vm2245_vm2, %v2184_v14  ;;  %v2198_v26 = vpop.permute.xlu2 %2197 }
 0x383   : > { %2270 = vst.msk [vmem:[#allocation3 + $0x60] sm:$0xf] %vm2245_vm2, %v2198_v26 }
 0x386   : > { %v2200_v9 = vpop.permute.xlu0 %2199 }
 0x387   : > { %2271 = vst.msk [vmem:[#allocation3 + $0x64] sm:$0xf] %vm2245_vm2, %v2200_v9 }
 0x389   : > { %v2190_v55 = vpop.permute.xlu1 %2189  ;;  %v5473_v23 = vld [vmem:[#allocation3 + $0x40] sm:$0xff] }
 0x38a   : > { %2266 = vst.msk [vmem:[#allocation3 + $0x50] sm:$0xf] %vm2245_vm2, %v2190_v55  ;;  %v2204_v50 = vpop.permute.xlu2 %2203 }
 0x38b   : > { %2273 = vst.msk [vmem:[#allocation3 + $0x6c] sm:$0xf] %vm2245_vm2, %v2204_v50 }
 0x38e   : > { %v5477_v5 = vld [vmem:[#allocation3 + $0x60] sm:$0xff]  ;;  %v2206_v38 = vpop.permute.xlu0 %2205 }
 0x38f   : > { %5327 = vmatmul.msk.bf16.vlgmr.msra.gmra.mxu3 %vm2426_vm4, %v5477_v5  ;;  %2274 = vst.msk [vmem:[#allocation3 + $0x70] sm:$0xf] %vm2245_vm2, %v2206_v38 }
 0x391   : > { %v2196_v45 = vpop.permute.xlu1 %2195 }
 0x392   : > { %5319 = vmatmul.msk.bf16.gmra.mxu0 %vm2426_vm4, %v5469_v29  ;;  %2269 = vst.msk [vmem:[#allocation3 + $0x5c] sm:$0xf] %vm2245_vm2, %v2196_v45 }
 0x399   : > { %v2202_v57 = vpop.permute.xlu1 %2201 }
 0x39a   : > { %2272 = vst.msk [vmem:[#allocation3 + $0x68] sm:$0xf] %vm2245_vm2, %v2202_v57 }
 0x3a1   : > { %v5478_v33 = vld [vmem:[#allocation3 + $0x68] sm:$0xff]  ;;  %v2208_v20 = vpop.permute.xlu1 %2207 }
 0x3a2   : > { %5320 = vmatmul.msk.bf16.gmra.mxu0 %vm2426_vm4, %v5470_v36  ;;  %5328 = vmatmul.msk.bf16.gmra.mxu3 %vm2426_vm4, %v5478_v33  ;;  %2275 = vst.msk [vmem:[#allocation3 + $0x74] sm:$0xf] %vm2245_vm2, %v2208_v20 }
 0x3a9   : > { %v5479_v52 = vld [vmem:[#allocation3 + $0x70] sm:$0xff] }
 0x3b2   : > { %5321 = vmatmul.msk.bf16.gmra.mxu0 %vm2426_vm4, %v5471_v21  ;;  %5329 = vmatmul.msk.bf16.gmra.mxu3 %vm2426_vm4, %v5479_v52 }
 0x3c2   : > { %5322 = vmatmul.msk.bf16.gmra.mxu0 %vm2426_vm4, %v5472_v60 }
 0x3cc   : > { %v2488_v42 = vpop.f32.mrf.mxu0 }
 0x3cd   : > { %v2572_v62 = vmul.f32 %v7435_v17, %v2488_v42  ;;  %v5475_v42 = vld [vmem:[#allocation3 + $0x50] sm:$0xff] }
 0x3cf   : > { %v2608_v58 = vadd.f32 %v7444_v6, %v2572_v62 }
 0x3d1   : > { %v2640_v4 = vmax.f32 %v2608_v58, 0.0 }
 0x3d2   : > { %5323 = vmatmul.msk.bf16.gmra.mxu0 %vm2426_vm4, %v5473_v23 }
 0x3d3   : > { %2727 = vst.msk [vmem:[#allocation4 + $0x19] sm:$0xff] %vm334_vm0, %v2640_v4 }
 0x3d4   : > { %v2490_v2 = vpop.f32.mrf.mxu0 }
 0x3d5   : > { %v2573_v31 = vmul.f32 %v7435_v17, %v2490_v2 }
 0x3d7   : > { %v2609_v39 = vadd.f32 %v7444_v6, %v2573_v31 }
 0x3d9   : > { %v2641_v30 = vmax.f32 %v2609_v39, 0.0 }
 0x3da   : > { %v2762_v1 = vld [vmem:[#allocation4 + $0x18] sm:$0xff] }
 0x3db   : > { %2728 = vst.msk [vmem:[#allocation4 + $0x21] sm:$0xff] %vm334_vm0, %v2641_v30  ;;  %v7466_v29 = vpack.c.bf16 %v2762_v1, %v2762_v1 }
 0x3dd   : > { %v2918_v51 = vshrl.u32 %v7466_v29, 16  ;;  %v2921_v28 = vshll.u32 %v7466_v29, 16  ;;  %2847 = vst.msk [vmem:[#allocation5 + $0x8] sm:$0xf] %vm573_vm8, %v7466_v29 }
 0x3df   : > { %v2493_v13 = vpop.f32.mrf.mxu0  ;;  %v2920_v36 = vrot.slane %v2918_v51, 4  ;;  %v2923_v54 = vrot.slane %v2921_v28, 5 }
 0x3e0   : > { %v2574_v14 = vmul.f32 %v7435_v17, %v2493_v13 }
 0x3e1   : > { %v2924_v9 = vor.u32 %v2923_v54, %v2920_v36 }
 0x3e2   : > { %v2610_v8 = vadd.f32 %v7444_v6, %v2574_v14  ;;  %5324 = vmatmul.msk.bf16.gmra.mxu0 %vm2426_vm4, %v5474_v48  ;;  %v2763_v21 = vld [vmem:[#allocation4 + $0x20] sm:$0xff]  ;;  %v2764_v55 = vld [vmem:[#allocation4 + $0x28] sm:$0x3] }
 0x3e3   : > { %v7476_v26 = vpack.c.bf16 %v2763_v21, %v2763_v21  ;;  %v7478_v45 = vpack.c.bf16 %v2764_v55, %v2764_v55  ;;  %v2925_v37 = vrot.slane %v2924_v9, 4  ;;  %v5476_v21 = vld [vmem:[#allocation3 + $0x58] sm:$0xff] }
 0x3e4   : > { %v2642_v56 = vmax.f32 %v2610_v8, 0.0 }
 0x3e5   : > { %v2927_v60 = vshll.u32 %v7476_v26, 16  ;;  %2848 = vst.msk [vmem:[#allocation5 + $0xc] sm:$0xf] %vm573_vm8, %v7476_v26  ;;  %v2931_v5 = vshrl.u32 %v7476_v26, 16  ;;  %v2937_v27 = vshll.u32 %v7478_v45, 16 }
 0x3e6   : > { %2729 = vst.msk [vmem:[#allocation4 + $0x31] sm:$0xff] %vm334_vm0, %v2642_v56 }
 0x3e7   : > { %v2495_v59 = vpop.f32.mrf.mxu0  ;;  %v2929_v25 = vrot.slane %v2927_v60, 5  ;;  %v2933_v61 = vrot.slane %v2931_v5, 4  ;;  %v2939_v34 = vrot.slane %v2937_v27, 5 }
 0x3e8   : > { %v2575_v49 = vmul.f32 %v7435_v17, %v2495_v59 }
 0x3e9   : > { %v7489_v10 = vsel %vm5735_vm3, %v2925_v37, %v2929_v25  ;;  %v2934_v3 = vor.u32 %v2933_v61, %v2929_v25 }
 0x3ea   : > { %9449 = vst [vmem:[#allocation11_spill] sm:$0xff] %v7489_v10  ;;  %v2611_v16 = vadd.f32 %v7444_v6, %v2575_v49  ;;  %3281 = vrot.lane.b32.xlu0 %v7489_v10, %s5630_s11 }
 0x3eb   : > { %v2935_v11 = vrot.slane %v2934_v3, 4 }
 0x3ec   : > { %v2643_v50 = vmax.f32 %v2611_v16, 0.0 }
 0x3ed   : > { %v7496_v57 = vsel %vm5735_vm3, %v2935_v11, %v2939_v34  ;;  %v2765_v53 = vld [vmem:[#allocation4 + $0x30] sm:$0xff] }
 0x3ee   : > { %9450 = vst [vmem:[#allocation14_spill] sm:$0xff] %v7496_v57  ;;  %3283 = vrot.lane.b32.xlu1 %v7496_v57, %s5630_s11  ;;  %v7501_v15 = vpack.c.bf16 %v2765_v53, %v2765_v53 }
 0x3ef   : > { %2730 = vst.msk [vmem:[#allocation4 + $0x39] sm:$0xff] %vm334_vm0, %v2643_v50  ;;  %v2498_v41 = vpop.f32.mrf.mxu0 }
 0x3f0   : > { %v2576_v32 = vmul.f32 %v7435_v17, %v2498_v41  ;;  %v2942_v24 = vshrl.u32 %v7501_v15, 16  ;;  %v2945_v19 = vshll.u32 %v7501_v15, 16  ;;  %2849 = vst.msk [vmem:[#allocation5 + $0x10] sm:$0xf] %vm573_vm8, %v7501_v15 }
 0x3f2   : > { %v2612_v62 = vadd.f32 %v7444_v6, %v2576_v32  ;;  %5325 = vmatmul.msk.bf16.gmra.mxu0 %vm2426_vm4, %v5475_v42  ;;  %v2944_v46 = vrot.slane %v2942_v24, 4  ;;  %v2947_v23 = vrot.slane %v2945_v19, 5 }
 0x3f4   : > { %v2644_v63 = vmax.f32 %v2612_v62, 0.0  ;;  %v2948_v33 = vor.u32 %v2947_v23, %v2944_v46 }
 0x3f6   : > { %v2766_v58 = vld [vmem:[#allocation4 + $0x38] sm:$0xff]  ;;  %v2767_v44 = vld [vmem:[#allocation4 + $0x40] sm:$0x3]  ;;  %2731 = vst.msk [vmem:[#allocation4 + $0x49] sm:$0xff] %vm334_vm0, %v2644_v63  ;;  %v2949_v31 = vrot.slane %v2948_v33, 4 }
 0x3f7   : > { %v7511_v0 = vpack.c.bf16 %v2766_v58, %v2766_v58  ;;  %v7513_v4 = vpack.c.bf16 %v2767_v44, %v2767_v44  ;;  %v2500_v22 = vpop.f32.mrf.mxu0 }
 0x3f8   : > { %v2577_v40 = vmul.f32 %v7435_v17, %v2500_v22 }
 0x3f9   : > { %v2951_v2 = vshll.u32 %v7511_v0, 16  ;;  %2850 = vst.msk [vmem:[#allocation5 + $0x14] sm:$0xf] %vm573_vm8, %v7511_v0  ;;  %v2955_v35 = vshrl.u32 %v7511_v0, 16  ;;  %v2961_v30 = vshll.u32 %v7513_v4, 16 }
 0x3fa   : > { %v2613_v38 = vadd.f32 %v7444_v6, %v2577_v40 }
 0x3fb   : > { %v2953_v20 = vrot.slane %v2951_v2, 5  ;;  %v2957_v39 = vrot.slane %v2955_v35, 4  ;;  %v2963_v54 = vrot.slane %v2961_v30, 5 }
 0x3fc   : > { %v2645_v1 = vmax.f32 %v2613_v38, 0.0 }
 0x3fd   : > { %v7524_v51 = vsel %vm5735_vm3, %v2949_v31, %v2953_v20  ;;  %v2958_v28 = vor.u32 %v2957_v39, %v2953_v20  ;;  %v2768_v13 = vld [vmem:[#allocation4 + $0x48] sm:$0xff] }
 0x3fe   : > { %9451 = vst [vmem:[#allocation31_spill] sm:$0xff] %v7524_v51  ;;  %3285 = vrot.lane.b32.xlu2 %v7524_v51, %s5630_s11  ;;  %v7529_v52 = vpack.c.bf16 %v2768_v13, %v2768_v13 }
 0x3ff   : > { %2732 = vst.msk [vmem:[#allocation4 + $0x51] sm:$0xff] %vm334_vm0, %v2645_v1  ;;  %v2959_v36 = vrot.slane %v2958_v28, 4  ;;  %v2503_v14 = vpop.f32.mrf.mxu0 }
 0x400   : > { %v2578_v48 = vmul.f32 %v7435_v17, %v2503_v14  ;;  %v2966_v55 = vshrl.u32 %v7529_v52, 16  ;;  %v2969_v9 = vshll.u32 %v7529_v52, 16  ;;  %2851 = vst.msk [vmem:[#allocation5 + $0x18] sm:$0xf] %vm573_vm8, %v7529_v52 }
 0x401   : > { %v7534_v8 = vsel %vm5735_vm3, %v2959_v36, %v2963_v54 }
 0x402   : > { %9452 = vst [vmem:[#allocation37_spill] sm:$0xff] %v7534_v8  ;;  %3287 = vrot.lane.b32.xlu0 %v7534_v8, %s5630_s11  ;;  %v2614_v56 = vadd.f32 %v7444_v6, %v2578_v48  ;;  %5326 = vmatmul.msk.bf16.gmra.mxu0 %vm2426_vm4, %v5476_v21  ;;  %v2968_v60 = vrot.slane %v2966_v55, 4  ;;  %v2971_v5 = vrot.slane %v2969_v9, 5 }
 0x404   : > { %v2646_v59 = vmax.f32 %v2614_v56, 0.0  ;;  %v2972_v25 = vor.u32 %v2971_v5, %v2968_v60 }
 0x406   : > { %v2769_v37 = vld [vmem:[#allocation4 + $0x50] sm:$0xff]  ;;  %v2770_v61 = vld [vmem:[#allocation4 + $0x58] sm:$0x3]  ;;  %2733 = vst.msk [vmem:[#allocation4 + $0x61] sm:$0xff] %vm334_vm0, %v2646_v59  ;;  %v2973_v50 = vrot.slane %v2972_v25, 4 }
 0x407   : > { %v7545_v27 = vpack.c.bf16 %v2769_v37, %v2769_v37  ;;  %v7547_v49 = vpack.c.bf16 %v2770_v61, %v2770_v61  ;;  %v2505_v3 = vpop.f32.mrf.mxu0 }
 0x408   : > { %v2579_v16 = vmul.f32 %v7435_v17, %v2505_v3 }
 0x409   : > { %v2975_v11 = vshll.u32 %v7545_v27, 16  ;;  %2852 = vst.msk [vmem:[#allocation5 + $0x1c] sm:$0xf] %vm573_vm8, %v7545_v27  ;;  %v2979_v34 = vshrl.u32 %v7545_v27, 16  ;;  %v2985_v42 = vshll.u32 %v7547_v49, 16 }
 0x40a   : > { %v2615_v53 = vadd.f32 %v7444_v6, %v2579_v16 }
 0x40b   : > { %v2977_v41 = vrot.slane %v2975_v11, 5  ;;  %v2981_v32 = vrot.slane %v2979_v34, 4  ;;  %v2987_v63 = vrot.slane %v2985_v42, 5 }
 0x40c   : > { %v2647_v24 = vmax.f32 %v2615_v53, 0.0 }
 0x40d   : > { %v7558_v19 = vsel %vm5735_vm3, %v2973_v50, %v2977_v41  ;;  %v2982_v62 = vor.u32 %v2981_v32, %v2977_v41  ;;  %v2771_v46 = vld [vmem:[#allocation4 + $0x60] sm:$0xff] }
 0x40e   : > { %9453 = vst [vmem:[#allocation36_spill] sm:$0xff] %v7558_v19  ;;  %3289 = vrot.lane.b32.xlu1 %v7558_v19, %s5630_s11  ;;  %v7563_v58 = vpack.c.bf16 %v2771_v46, %v2771_v46 }
 0x40f   : > { %2734 = vst.msk [vmem:[#allocation4 + $0x69] sm:$0xff] %vm334_vm0, %v2647_v24  ;;  %v2983_v23 = vrot.slane %v2982_v62, 4  ;;  %v2508_v33 = vpop.f32.mrf.mxu0 }
 0x410   : > { %v2580_v44 = vmul.f32 %v7435_v17, %v2508_v33  ;;  %v2990_v40 = vshrl.u32 %v7563_v58, 16  ;;  %v2993_v2 = vshll.u32 %v7563_v58, 16  ;;  %2853 = vst.msk [vmem:[#allocation5 + $0x20] sm:$0xf] %vm573_vm8, %v7563_v58 }
 0x411   : > { %v7568_v22 = vsel %vm5735_vm3, %v2983_v23, %v2987_v63 }
 0x412   : > { %9454 = vst [vmem:[#allocation42_spill] sm:$0xff] %v7568_v22  ;;  %3291 = vrot.lane.b32.xlu2 %v7568_v22, %s5630_s11  ;;  %v2616_v35 = vadd.f32 %v7444_v6, %v2580_v44  ;;  %v2992_v31 = vrot.slane %v2990_v40, 4  ;;  %v2995_v38 = vrot.slane %v2993_v2, 5  ;;  %v2210_v2 = vpop.permute.xlu2 %2209 }
 0x413   : > { %2276 = vst.msk [vmem:[#allocation3 + $0x78] sm:$0xf] %vm2245_vm2, %v2210_v2 }
 0x414   : > { %v2648_v20 = vmax.f32 %v2616_v35, 0.0  ;;  %v2996_v30 = vor.u32 %v2995_v38, %v2992_v31 }
 0x416   : > { %v2772_v39 = vld [vmem:[#allocation4 + $0x68] sm:$0xff]  ;;  %v2773_v1 = vld [vmem:[#allocation4 + $0x70] sm:$0x3]  ;;  %2735 = vst.msk [vmem:[#allocation4 + $0x79] sm:$0xff] %vm334_vm0, %v2648_v20  ;;  %v2997_v21 = vrot.slane %v2996_v30, 4 }
 0x417   : > { %v7578_v28 = vpack.c.bf16 %v2772_v39, %v2772_v39  ;;  %v7580_v13 = vpack.c.bf16 %v2773_v1, %v2773_v1  ;;  %v2510_v36 = vpop.f32.mrf.mxu0 }
 0x418   : > { %v2581_v54 = vmul.f32 %v7435_v17, %v2510_v36 }
 0x419   : > { %v2999_v14 = vshll.u32 %v7578_v28, 16  ;;  %2854 = vst.msk [vmem:[#allocation5 + $0x24] sm:$0xf] %vm573_vm8, %v7578_v28  ;;  %v3003_v48 = vshrl.u32 %v7578_v28, 16  ;;  %v3009_v60 = vshll.u32 %v7580_v13, 16 }
 0x41a   : > { %v2617_v55 = vadd.f32 %v7444_v6, %v2581_v54 }
 0x41b   : > { %v3001_v9 = vrot.slane %v2999_v14, 5  ;;  %v3005_v56 = vrot.slane %v3003_v48, 4  ;;  %v3011_v3 = vrot.slane %v3009_v60, 5 }
 0x41c   : > { %v2649_v5 = vmax.f32 %v2617_v55, 0.0 }
 0x41d   : > { %v7591_v59 = vsel %vm5735_vm3, %v2997_v21, %v3001_v9  ;;  %v3006_v37 = vor.u32 %v3005_v56, %v3001_v9  ;;  %v2774_v25 = vld [vmem:[#allocation4 + $0x78] sm:$0xff] }
 0x41e   : > { %9455 = vst [vmem:[#allocation41_spill] sm:$0xff] %v7591_v59  ;;  %3293 = vrot.lane.b32.xlu0 %v7591_v59, %s5630_s11  ;;  %v7596_v16 = vpack.c.bf16 %v2774_v25, %v2774_v25 }
 0x41f   : > { %2736 = vst.msk [vmem:[#allocation4 + $0x81] sm:$0xff] %vm334_vm0, %v2649_v5  ;;  %v3007_v61 = vrot.slane %v3006_v37, 4  ;;  %v2513_v11 = vpop.f32.mrf.mxu0 }
 0x420   : > { %v2582_v34 = vmul.f32 %v7435_v17, %v2513_v11  ;;  %v3014_v53 = vshrl.u32 %v7596_v16, 16  ;;  %v3017_v41 = vshll.u32 %v7596_v16, 16  ;;  %2855 = vst.msk [vmem:[#allocation5 + $0x28] sm:$0xf] %vm573_vm8, %v7596_v16 }
 0x421   : > { %v7601_v50 = vsel %vm5735_vm3, %v3007_v61, %v3011_v3  ;;  %v3280_v3 = vpop.permute.xlu2 %3279 }
 0x422   : > { %9456 = vst [vmem:[#allocation44_spill] sm:$0xff] %v7601_v50  ;;  %3295 = vrot.lane.b32.xlu1 %v7601_v50, %s5630_s11  ;;  %v2618_v32 = vadd.f32 %v7444_v6, %v2582_v34  ;;  %v3016_v42 = vrot.slane %v3014_v53, 4  ;;  %v3019_v24 = vrot.slane %v3017_v41, 5 }
 0x423   : > { %3374 = vst.msk [vmem:[#allocation5 + $0x4] sm:$0xf] %vm1105_vm9, %v3280_v3 }
 0x424   : > { %v2650_v62 = vmax.f32 %v2618_v32, 0.0  ;;  %v3020_v23 = vor.u32 %v3019_v24, %v3016_v42 }
 0x426   : > { %v2775_v46 = vld [vmem:[#allocation4 + $0x80] sm:$0xff]  ;;  %v2776_v63 = vld [vmem:[#allocation4 + $0x88] sm:$0x3]  ;;  %2737 = vst.msk [vmem:[#allocation4 + $0x91] sm:$0xff] %vm334_vm0, %v2650_v62  ;;  %v3021_v20 = vrot.slane %v3020_v23, 4 }
 0x427   : > { %v7611_v33 = vpack.c.bf16 %v2775_v46, %v2775_v46  ;;  %v7613_v44 = vpack.c.bf16 %v2776_v63, %v2776_v63  ;;  %v2515_v40 = vpop.f32.mrf.mxu0 }
 0x428   : > { %v2583_v35 = vmul.f32 %v7435_v17, %v2515_v40 }
 0x429   : > { %v3023_v31 = vshll.u32 %v7611_v33, 16  ;;  %2856 = vst.msk [vmem:[#allocation5 + $0x2c] sm:$0xf] %vm573_vm8, %v7611_v33  ;;  %v3027_v38 = vshrl.u32 %v7611_v33, 16  ;;  %v3033_v36 = vshll.u32 %v7613_v44, 16 }
 0x42a   : > { %v2619_v39 = vadd.f32 %v7444_v6, %v2583_v35  ;;  %v2212_v35 = vpop.permute.xlu0 %2211 }
 0x42b   : > { %v3025_v30 = vrot.slane %v3023_v31, 5  ;;  %v3029_v1 = vrot.slane %v3027_v38, 4  ;;  %v3035_v9 = vrot.slane %v3033_v36, 5  ;;  %2277 = vst.msk [vmem:[#allocation3 + $0x7c] sm:$0xf] %vm2245_vm2, %v2212_v35 }
 0x42c   : > { %v2651_v54 = vmax.f32 %v2619_v39, 0.0 }
 0x42d   : > { %v7625_v14 = vsel %vm5735_vm3, %v3021_v20, %v3025_v30  ;;  %v3030_v48 = vor.u32 %v3029_v1, %v3025_v30  ;;  %v2777_v21 = vld [vmem:[#allocation4 + $0x90] sm:$0xff] }
 0x42e   : > { %9457 = vst [vmem:[#allocation7_spill] sm:$0xff] %v7625_v14  ;;  %3297 = vrot.lane.b32.xlu2 %v7625_v14, %s5630_s11  ;;  %v7630_v56 = vpack.c.bf16 %v2777_v21, %v2777_v21 }
 0x42f   : > { %2738 = vst.msk [vmem:[#allocation4 + $0x99] sm:$0xff] %vm334_vm0, %v2651_v54  ;;  %v3031_v55 = vrot.slane %v3030_v48, 4  ;;  %v2518_v60 = vpop.f32.mrf.mxu0  ;;  %v3278_v48 = vpop.permute.xlu1 %3277 }
 0x430   : > { %v2584_v5 = vmul.f32 %v7435_v17, %v2518_v60  ;;  %v3038_v25 = vshrl.u32 %v7630_v56, 16  ;;  %v3041_v61 = vshll.u32 %v7630_v56, 16  ;;  %2857 = vst.msk [vmem:[#allocation5 + $0x30] sm:$0xf] %vm573_vm8, %v7630_v56 }
 0x431   : > { %v7635_v37 = vsel %vm5735_vm3, %v3031_v55, %v3035_v9  ;;  %3373 = vst.msk [vmem:[#allocation5] sm:$0xf] %vm1105_vm9, %v3278_v48 }
 0x432   : > { %9458 = vst [vmem:[#allocation46_spill] sm:$0xff] %v7635_v37  ;;  %3299 = vrot.lane.b32.xlu0 %v7635_v37, %s5630_s11  ;;  %v2620_v11 = vadd.f32 %v7444_v6, %v2584_v5  ;;  %v3040_v34 = vrot.slane %v3038_v25, 4  ;;  %v3043_v53 = vrot.slane %v3041_v61, 5 }
 0x434   : > { %v2652_v41 = vmax.f32 %v2620_v11, 0.0  ;;  %v3044_v42 = vor.u32 %v3043_v53, %v3040_v34 }
 0x436   : > { %v2778_v32 = vld [vmem:[#allocation4 + $0x98] sm:$0xff]  ;;  %v2779_v24 = vld [vmem:[#allocation4 + $0xa0] sm:$0x3]  ;;  %2739 = vst.msk [vmem:[#allocation4 + $0xa9] sm:$0xff] %vm334_vm0, %v2652_v41  ;;  %v3045_v31 = vrot.slane %v3044_v42, 4  ;;  %v2548_v42 = vpop.f32.mrf.mxu3 }
 0x437   : > { %v7646_v62 = vpack.c.bf16 %v2778_v32, %v2778_v32  ;;  %v7648_v46 = vpack.c.bf16 %v2779_v24, %v2779_v24  ;;  %v2520_v23 = vpop.f32.mrf.mxu0  ;;  %v2596_v35 = vmul.f32 %v7435_v17, %v2548_v42 }
 0x438   : > { %v2585_v63 = vmul.f32 %v7435_v17, %v2520_v23 }
 0x439   : > { %v3047_v40 = vshll.u32 %v7646_v62, 16  ;;  %2858 = vst.msk [vmem:[#allocation5 + $0x34] sm:$0xf] %vm573_vm8, %v7646_v62  ;;  %v3051_v2 = vshrl.u32 %v7646_v62, 16  ;;  %v3057_v30 = vshll.u32 %v7648_v46, 16 }
 0x43a   : > { %v2621_v38 = vadd.f32 %v7444_v6, %v2585_v63 }
 0x43b   : > { %v3049_v20 = vrot.slane %v3047_v40, 5  ;;  %v3053_v39 = vrot.slane %v3051_v2, 4  ;;  %v3059_v9 = vrot.slane %v3057_v30, 5 }
 0x43c   : > { %v2653_v1 = vmax.f32 %v2621_v38, 0.0 }
 0x43d   : > { %v7660_v36 = vsel %vm5735_vm3, %v3045_v31, %v3049_v20  ;;  %v3054_v54 = vor.u32 %v3053_v39, %v3049_v20  ;;  %v2780_v21 = vld [vmem:[#allocation4 + $0xa8] sm:$0xff] }
 0x43e   : > { %9459 = vst [vmem:[#allocation12_spill] sm:$0xff] %v7660_v36  ;;  %3301 = vrot.lane.b32.xlu1 %v7660_v36, %s5630_s11  ;;  %v7666_v60 = vpack.c.bf16 %v2780_v21, %v2780_v21 }
 0x43f   : > { %2740 = vst.msk [vmem:[#allocation4 + $0xb1] sm:$0xff] %vm334_vm0, %v2653_v1  ;;  %v3055_v55 = vrot.slane %v3054_v54, 4  ;;  %v2523_v5 = vpop.f32.mrf.mxu0  ;;  %v2632_v1 = vadd.f32 %v7444_v6, %v2596_v35 }
 0x440   : > { %v2586_v25 = vmul.f32 %v7435_v17, %v2523_v5  ;;  %v3062_v3 = vshrl.u32 %v7666_v60, 16  ;;  %v3065_v11 = vshll.u32 %v7666_v60, 16  ;;  %2859 = vst.msk [vmem:[#allocation5 + $0x38] sm:$0xf] %vm573_vm8, %v7666_v60 }
 0x441   : > { %v7671_v61 = vsel %vm5735_vm3, %v3055_v55, %v3059_v9  ;;  %v2664_v9 = vmax.f32 %v2632_v1, 0.0 }
 0x442   : > { %9460 = vst [vmem:[#allocation48_spill] sm:$0xff] %v7671_v61  ;;  %3303 = vrot.lane.b32.xlu2 %v7671_v61, %s5630_s11  ;;  %v2622_v34 = vadd.f32 %v7444_v6, %v2586_v25  ;;  %v3064_v53 = vrot.slane %v3062_v3, 4  ;;  %v3067_v41 = vrot.slane %v3065_v11, 5  ;;  %v2550_v11 = vpop.f32.mrf.mxu3 }
 0x443   : > { %2751 = vst.msk [vmem:[#allocation4 + $0x139] sm:$0xff] %vm334_vm0, %v2664_v9 }
 0x444   : > { %v2654_v32 = vmax.f32 %v2622_v34, 0.0  ;;  %v3068_v23 = vor.u32 %v3067_v41, %v3064_v53  ;;  %v2597_v53 = vmul.f32 %v7435_v17, %v2550_v11 }
 0x446   : > { %v2781_v24 = vld [vmem:[#allocation4 + $0xb0] sm:$0xff]  ;;  %v2782_v63 = vld [vmem:[#allocation4 + $0xb8] sm:$0x3]  ;;  %2741 = vst.msk [vmem:[#allocation4 + $0xc1] sm:$0xff] %vm334_vm0, %v2654_v32  ;;  %v3069_v30 = vrot.slane %v3068_v23, 4  ;;  %v2633_v23 = vadd.f32 %v7444_v6, %v2597_v53 }
 0x447   : > { %v7681_v40 = vpack.c.bf16 %v2781_v24, %v2781_v24  ;;  %v7683_v2 = vpack.c.bf16 %v2782_v63, %v2782_v63  ;;  %v2525_v31 = vpop.f32.mrf.mxu0 }
 0x448   : > { %v2587_v38 = vmul.f32 %v7435_v17, %v2525_v31 }
 0x449   : > { %v3071_v20 = vshll.u32 %v7681_v40, 16  ;;  %2860 = vst.msk [vmem:[#allocation5 + $0x3c] sm:$0xf] %vm573_vm8, %v7681_v40  ;;  %v3075_v39 = vshrl.u32 %v7681_v40, 16  ;;  %v3081_v55 = vshll.u32 %v7683_v2, 16 }
 0x44a   : > { %v2623_v54 = vadd.f32 %v7444_v6, %v2587_v38 }
 0x44b   : > { %v3073_v48 = vrot.slane %v3071_v20, 5  ;;  %v3077_v21 = vrot.slane %v3075_v39, 4  ;;  %v3083_v32 = vrot.slane %v3081_v55, 5  ;;  %v2665_v20 = vmax.f32 %v2633_v23, 0.0 }
 0x44c   : > { %v2655_v5 = vmax.f32 %v2623_v54, 0.0 }
 0x44d   : > { %v7696_v25 = vsel %vm5735_vm3, %v3069_v30, %v3073_v48  ;;  %v3078_v3 = vor.u32 %v3077_v21, %v3073_v48  ;;  %v2783_v34 = vld [vmem:[#allocation4 + $0xc0] sm:$0xff]  ;;  %2752 = vst.msk [vmem:[#allocation4 + $0x141] sm:$0xff] %vm334_vm0, %v2665_v20  ;;  %v2553_v48 = vpop.f32.mrf.mxu3 }
 0x44e   : > { %9461 = vst [vmem:[#allocation51_spill] sm:$0xff] %v7696_v25  ;;  %3305 = vrot.lane.b32.xlu0 %v7696_v25, %s5630_s11  ;;  %v7703_v42 = vpack.c.bf16 %v2783_v34, %v2783_v34  ;;  %v2598_v11 = vmul.f32 %v7435_v17, %v2553_v48 }
 0x44f   : > { %2742 = vst.msk [vmem:[#allocation4 + $0xc9] sm:$0xff] %vm334_vm0, %v2655_v5  ;;  %v3079_v41 = vrot.slane %v3078_v3, 4  ;;  %v2528_v24 = vpop.f32.mrf.mxu0 }
 0x450   : > { %v2588_v63 = vmul.f32 %v7435_v17, %v2528_v24  ;;  %v3086_v31 = vshrl.u32 %v7703_v42, 16  ;;  %v3089_v38 = vshll.u32 %v7703_v42, 16  ;;  %2861 = vst.msk [vmem:[#allocation5 + $0x40] sm:$0xf] %vm573_vm8, %v7703_v42 }
 0x451   : > { %v7709_v35 = vsel %vm5735_vm3, %v3079_v41, %v3083_v32 }
 0x452   : > { %9462 = vst [vmem:[#allocation15_spill] sm:$0xff] %v7709_v35  ;;  %3307 = vrot.lane.b32.xlu1 %v7709_v35, %s5630_s11  ;;  %v2624_v39 = vadd.f32 %v7444_v6, %v2588_v63  ;;  %v3088_v30 = vrot.slane %v3086_v31, 4  ;;  %v3091_v1 = vrot.slane %v3089_v38, 5  ;;  %v2634_v63 = vadd.f32 %v7444_v6, %v2598_v11 }
 0x454   : > { %v2656_v54 = vmax.f32 %v2624_v39, 0.0  ;;  %v3092_v55 = vor.u32 %v3091_v1, %v3088_v30  ;;  %v2666_v30 = vmax.f32 %v2634_v63, 0.0  ;;  %v2799_v63 = vld [vmem:[#allocation4 + $0x140] sm:$0xff] }
 0x456   : > { %v2784_v21 = vld [vmem:[#allocation4 + $0xc8] sm:$0xff]  ;;  %v2785_v9 = vld [vmem:[#allocation4 + $0xd0] sm:$0x3]  ;;  %2743 = vst.msk [vmem:[#allocation4 + $0xd9] sm:$0xff] %vm334_vm0, %v2656_v54  ;;  %v3093_v23 = vrot.slane %v3092_v55, 4  ;;  %v2555_v55 = vpop.f32.mrf.mxu3 }
 0x457   : > { %v7720_v5 = vpack.c.bf16 %v2784_v21, %v2784_v21  ;;  %v7722_v3 = vpack.c.bf16 %v2785_v9, %v2785_v9  ;;  %v2530_v53 = vpop.f32.mrf.mxu0  ;;  %v2798_v9 = vld [vmem:[#allocation4 + $0x138] sm:$0xff]  ;;  %2753 = vst.msk [vmem:[#allocation4 + $0x151] sm:$0xff] %vm334_vm0, %v2666_v30 }
 0x458   : > { %v3286_v34 = vpop.permute.xlu2 %3285  ;;  %v2589_v41 = vmul.f32 %v7435_v17, %v2530_v53 }
 0x459   : > { %3377 = vst.msk [vmem:[#allocation5 + $0x10] sm:$0xf] %vm1105_vm9, %v3286_v34  ;;  %v3095_v32 = vshll.u32 %v7720_v5, 16  ;;  %v3099_v24 = vshrl.u32 %v7720_v5, 16  ;;  %v3105_v39 = vshll.u32 %v7722_v3, 16  ;;  %v2599_v34 = vmul.f32 %v7435_v17, %v2555_v55 }
 0x45a   : > { %2862 = vst.msk [vmem:[#allocation5 + $0x44] sm:$0xf] %vm573_vm8, %v7720_v5  ;;  %v2625_v31 = vadd.f32 %v7444_v6, %v2589_v41 }
 0x45b   : > { %v3097_v38 = vrot.slane %v3095_v32, 5  ;;  %v3101_v20 = vrot.slane %v3099_v24, 4  ;;  %v3107_v41 = vrot.slane %v3105_v39, 5 }
 0x45c   : > { %v2657_v1 = vmax.f32 %v2625_v31, 0.0  ;;  %v3282_v48 = vpop.permute.xlu0 %3281  ;;  %v7747_v31 = vpack.c.bf16 %v2798_v9, %v2798_v9 }
 0x45d   : > { %v7736_v54 = vsel %vm5735_vm3, %v3093_v23, %v3097_v38  ;;  %v3102_v21 = vor.u32 %v3101_v20, %v3097_v38  ;;  %3375 = vst.msk [vmem:[#allocation5 + $0x8] sm:$0xf] %vm1105_vm9, %v3282_v48  ;;  %v2786_v11 = vld [vmem:[#allocation4 + $0xd8] sm:$0xff]  ;;  %v2635_v23 = vadd.f32 %v7444_v6, %v2599_v34 }
 0x45e   : > { %9463 = vst [vmem:[#allocation19_spill] sm:$0xff] %v7736_v54  ;;  %3309 = vrot.lane.b32.xlu2 %v7736_v54, %s5630_s11  ;;  %v7743_v32 = vpack.c.bf16 %v2786_v11, %v2786_v11  ;;  %v7762_v11 = vpack.c.bf16 %v2799_v63, %v2799_v63  ;;  %v2801_v36 = vld [vmem:[#allocation4 + $0x150] sm:$0xff] }
 0x45f   : > { %2744 = vst.msk [vmem:[#allocation4 + $0xe1] sm:$0xff] %vm334_vm0, %v2657_v1  ;;  %v3103_v53 = vrot.slane %v3102_v21, 4  ;;  %v2533_v24 = vpop.f32.mrf.mxu0  ;;  %v2667_v30 = vmax.f32 %v2635_v23, 0.0 }
 0x460   : > { %9464 = vst [vmem:[#allocation16_spill] sm:$0xff] %v7747_v31  ;;  %v2590_v38 = vmul.f32 %v7435_v17, %v2533_v24  ;;  %v3284_v48 = vpop.permute.xlu1 %3283  ;;  %v3110_v1 = vshrl.u32 %v7743_v32, 16  ;;  %v3113_v39 = vshll.u32 %v7743_v32, 16 }
 0x461   : > { %v7752_v20 = vsel %vm5735_vm3, %v3103_v53, %v3107_v41  ;;  %2863 = vst.msk [vmem:[#allocation5 + $0x48] sm:$0xf] %vm573_vm8, %v7743_v32  ;;  %v2558_v53 = vpop.f32.mrf.mxu3 }
 0x462   : > { %9465 = vst [vmem:[#allocation22_spill] sm:$0xff] %v7752_v20  ;;  %3311 = vrot.lane.b32.xlu0 %v7752_v20, %s5630_s11  ;;  %v2626_v21 = vadd.f32 %v7444_v6, %v2590_v38  ;;  %v3112_v55 = vrot.slane %v3110_v1, 4  ;;  %v3115_v9 = vrot.slane %v3113_v39, 5  ;;  %v2600_v63 = vmul.f32 %v7435_v17, %v2558_v53 }
 0x463   : > { %3376 = vst.msk [vmem:[#allocation5 + $0xc] sm:$0xf] %vm1105_vm9, %v3284_v48 }
 0x464   : > { %9466 = vst [vmem:[#allocation20_spill] sm:$0xff] %v7762_v11  ;;  %v2658_v34 = vmax.f32 %v2626_v21, 0.0  ;;  %v3116_v24 = vor.u32 %v3115_v9, %v3112_v55  ;;  %v2636_v9 = vadd.f32 %v7444_v6, %v2600_v63 }
 0x465   : > { %2871 = vst.msk [vmem:[#allocation5 + $0x68] sm:$0xf] %vm573_vm8, %v7747_v31 }
 0x466   : > { %2754 = vst.msk [vmem:[#allocation4 + $0x159] sm:$0xff] %vm334_vm0, %v2667_v30  ;;  %v2787_v41 = vld [vmem:[#allocation4 + $0xe0] sm:$0xff]  ;;  %v2788_v48 = vld [vmem:[#allocation4 + $0xe8] sm:$0x3]  ;;  %v3117_v55 = vrot.slane %v3116_v24, 4  ;;  %v2668_v35 = vmax.f32 %v2636_v9, 0.0 }
 0x467   : > { %2872 = vst.msk [vmem:[#allocation5 + $0x6c] sm:$0xf] %vm573_vm8, %v7762_v11  ;;  %v7770_v23 = vpack.c.bf16 %v2787_v41, %v2787_v41  ;;  %v7772_v38 = vpack.c.bf16 %v2788_v48, %v2788_v48  ;;  %v2535_v1 = vpop.f32.mrf.mxu0 }
 0x468   : > { %2745 = vst.msk [vmem:[#allocation4 + $0xf1] sm:$0xff] %vm334_vm0, %v2658_v34  ;;  %v2591_v39 = vmul.f32 %v7435_v17, %v2535_v1 }
 0x469   : > { %v3119_v30 = vshll.u32 %v7770_v23, 16  ;;  %2864 = vst.msk [vmem:[#allocation5 + $0x4c] sm:$0xf] %vm573_vm8, %v7770_v23  ;;  %v3123_v21 = vshrl.u32 %v7770_v23, 16  ;;  %v3129_v54 = vshll.u32 %v7772_v38, 16  ;;  %v2560_v24 = vpop.f32.mrf.mxu3 }
 0x46a   : > { %v2627_v34 = vadd.f32 %v7444_v6, %v2591_v39  ;;  %2755 = vst.msk [vmem:[#allocation4 + $0x169] sm:$0xff] %vm334_vm0, %v2668_v35  ;;  %v2601_v39 = vmul.f32 %v7435_v17, %v2560_v24 }
 0x46b   : > { %v3121_v41 = vrot.slane %v3119_v30, 5  ;;  %v3125_v48 = vrot.slane %v3123_v21, 4  ;;  %v3131_v21 = vrot.slane %v3129_v54, 5 }
 0x46c   : > { %v3292_v20 = vpop.permute.xlu2 %3291  ;;  %v2659_v1 = vmax.f32 %v2627_v34, 0.0  ;;  %v2637_v34 = vadd.f32 %v7444_v6, %v2601_v39 }
 0x46d   : > { %v2802_v53 = vld [vmem:[#allocation4 + $0x158] sm:$0xff]  ;;  %3380 = vst.msk [vmem:[#allocation5 + $0x1c] sm:$0xf] %vm1105_vm9, %v3292_v20  ;;  %v7786_v25 = vsel %vm5735_vm3, %v3117_v55, %v3121_v41  ;;  %v3126_v61 = vor.u32 %v3125_v48, %v3121_v41  ;;  %v7800_v41 = vpack.c.bf16 %v2801_v36, %v2801_v36 }
 0x46e   : > { %9467 = vst [vmem:[#allocation8_spill] sm:$0xff] %v7786_v25  ;;  %3313 = vrot.lane.b32.xlu1 %v7786_v25, %s5630_s11  ;;  %v7792_v30 = vpack.c.bf16 %v2802_v53, %v2802_v53  ;;  %v2669_v54 = vmax.f32 %v2637_v34, 0.0 }
 0x46f   : > { %v2789_v63 = vld [vmem:[#allocation4 + $0xf0] sm:$0xff]  ;;  %2746 = vst.msk [vmem:[#allocation4 + $0xf9] sm:$0xff] %vm334_vm0, %v2659_v1  ;;  %v3127_v20 = vrot.slane %v3126_v61, 4  ;;  %v2538_v55 = vpop.f32.mrf.mxu0 }
 0x470   : > { %9468 = vst [vmem:[#allocation27_spill] sm:$0xff] %v7792_v30  ;;  %v7795_v9 = vpack.c.bf16 %v2789_v63, %v2789_v63  ;;  %v2592_v35 = vmul.f32 %v7435_v17, %v2538_v55 }
 0x471   : > { %2874 = vst.msk [vmem:[#allocation5 + $0x74] sm:$0xf] %vm573_vm8, %v7792_v30  ;;  %v7805_v48 = vsel %vm5735_vm3, %v3127_v20, %v3131_v21 }
 0x472   : > { %9469 = vst [vmem:[#allocation24_spill] sm:$0xff] %v7800_v41  ;;  %v3134_v53 = vshrl.u32 %v7795_v9, 16  ;;  %v3137_v61 = vshll.u32 %v7795_v9, 16  ;;  %3315 = vrot.lane.b32.xlu2 %v7805_v48, %s5630_s11  ;;  %v2628_v36 = vadd.f32 %v7444_v6, %v2592_v35 }
 0x473   : > { %9470 = vst [vmem:[#allocation10_spill] sm:$0xff] %v7805_v48 }
 0x474   : > { %2865 = vst.msk [vmem:[#allocation5 + $0x50] sm:$0xf] %vm573_vm8, %v7795_v9  ;;  %v3136_v1 = vrot.slane %v3134_v53, 4  ;;  %v3139_v24 = vrot.slane %v3137_v61, 5  ;;  %v3288_v63 = vpop.permute.xlu0 %3287  ;;  %v2660_v39 = vmax.f32 %v2628_v36, 0.0 }
 0x475   : > { %2873 = vst.msk [vmem:[#allocation5 + $0x70] sm:$0xf] %vm573_vm8, %v7800_v41 }
 0x476   : > { %2756 = vst.msk [vmem:[#allocation4 + $0x171] sm:$0xff] %vm334_vm0, %v2669_v54  ;;  %v2790_v20 = vld [vmem:[#allocation4 + $0xf8] sm:$0xff]  ;;  %v3140_v21 = vor.u32 %v3139_v24, %v3136_v1  ;;  %v2791_v55 = vld [vmem:[#allocation4 + $0x100] sm:$0x3] }
 0x477   : > { %3378 = vst.msk [vmem:[#allocation5 + $0x14] sm:$0xf] %vm1105_vm9, %v3288_v63  ;;  %v7819_v48 = vpack.c.bf16 %v2790_v20, %v2790_v20  ;;  %v7821_v34 = vpack.c.bf16 %v2791_v55, %v2791_v55  ;;  %v2540_v25 = vpop.f32.mrf.mxu0 }
 0x478   : > { %2747 = vst.msk [vmem:[#allocation4 + $0x109] sm:$0xff] %vm334_vm0, %v2660_v39  ;;  %v2593_v35 = vmul.f32 %v7435_v17, %v2540_v25  ;;  %v3141_v54 = vrot.slane %v3140_v21, 4  ;;  %v2804_v39 = vld [vmem:[#allocation4 + $0x168] sm:$0xff] }
 0x479   : > { %v3143_v53 = vshll.u32 %v7819_v48, 16  ;;  %2866 = vst.msk [vmem:[#allocation5 + $0x54] sm:$0xf] %vm573_vm8, %v7819_v48  ;;  %v3147_v61 = vshrl.u32 %v7819_v48, 16  ;;  %v3153_v63 = vshll.u32 %v7821_v34, 16  ;;  %v7830_v55 = vpack.c.bf16 %v2804_v39, %v2804_v39 }
 0x47a   : > { %v2629_v36 = vadd.f32 %v7444_v6, %v2593_v35 }
 0x47b   : > { %v3145_v1 = vrot.slane %v3143_v53, 5  ;;  %v3149_v24 = vrot.slane %v3147_v61, 4  ;;  %9471 = vst [vmem:[#allocation28_spill] sm:$0xff] %v7830_v55  ;;  %v3155_v53 = vrot.slane %v3153_v63, 5 }
 0x47c   : > { %v2661_v14 = vmax.f32 %v2629_v36, 0.0  ;;  %2875 = vst.msk [vmem:[#allocation5 + $0x78] sm:$0xf] %vm573_vm8, %v7830_v55 }
 0x47d   : > { %v2805_v20 = vld [vmem:[#allocation4 + $0x170] sm:$0xff]  ;;  %v7834_v25 = vsel %vm5735_vm3, %v3141_v54, %v3145_v1  ;;  %v3150_v37 = vor.u32 %v3149_v24, %v3145_v1 }
 0x47e   : > { %9472 = vst [vmem:[#allocation13_spill] sm:$0xff] %v7834_v25  ;;  %3317 = vrot.lane.b32.xlu0 %v7834_v25, %s5630_s11  ;;  %v7838_v50 = vpack.c.bf16 %v2805_v20, %v2805_v20 }
 0x47f   : > { %v2792_v21 = vld [vmem:[#allocation4 + $0x108] sm:$0xff]  ;;  %2748 = vst.msk [vmem:[#allocation4 + $0x111] sm:$0xff] %vm334_vm0, %v2661_v14  ;;  %v3151_v35 = vrot.slane %v3150_v37, 4  ;;  %v2543_v39 = vpop.f32.mrf.mxu0 }
 0x480   : > { %9473 = vst [vmem:[#allocation34_spill] sm:$0xff] %v7838_v50  ;;  %v7843_v61 = vpack.c.bf16 %v2792_v21, %v2792_v21  ;;  %v3290_v36 = vpop.permute.xlu1 %3289  ;;  %v2594_v54 = vmul.f32 %v7435_v17, %v2543_v39 }
 0x481   : > { %2876 = vst.msk [vmem:[#allocation5 + $0x7c] sm:$0xf] %vm573_vm8, %v7838_v50  ;;  %v7851_v1 = vsel %vm5735_vm3, %v3151_v35, %v3155_v53 }
 0x482   : > { %9474 = vst [vmem:[#allocation32_spill] sm:$0xff] %v7843_v61  ;;  %v3158_v24 = vshrl.u32 %v7843_v61, 16  ;;  %v3161_v14 = vshll.u32 %v7843_v61, 16  ;;  %3319 = vrot.lane.b32.xlu1 %v7851_v1, %s5630_s11  ;;  %v2630_v37 = vadd.f32 %v7444_v6, %v2594_v54 }
 0x483   : > { %3379 = vst.msk [vmem:[#allocation5 + $0x18] sm:$0xf] %vm1105_vm9, %v3290_v36 }
 0x484   : > { %9475 = vst [vmem:[#allocation18_spill] sm:$0xff] %v7851_v1  ;;  %v3160_v63 = vrot.slane %v3158_v24, 4  ;;  %v3163_v20 = vrot.slane %v3161_v14, 5  ;;  %v2662_v21 = vmax.f32 %v2630_v37, 0.0  ;;  %v3206_v1 = vshrl.u32 %v7747_v31, 16 }
 0x485   : > { %2867 = vst.msk [vmem:[#allocation5 + $0x58] sm:$0xf] %vm573_vm8, %v7843_v61  ;;  %v3209_v37 = vshll.u32 %v7747_v31, 16 }
 0x486   : > { %v2793_v36 = vld [vmem:[#allocation4 + $0x110] sm:$0xff]  ;;  %v3164_v39 = vor.u32 %v3163_v20, %v3160_v63  ;;  %v2794_v25 = vld [vmem:[#allocation4 + $0x118] sm:$0x3]  ;;  %2749 = vst.msk [vmem:[#allocation4 + $0x121] sm:$0xff] %vm334_vm0, %v2662_v21  ;;  %v3208_v19 = vrot.slane %v3206_v1, 4  ;;  %v3239_v1 = vshll.u32 %v7792_v30, 16 }
 0x487   : > { %v7861_v35 = vpack.c.bf16 %v2793_v36, %v2793_v36  ;;  %v7863_v53 = vpack.c.bf16 %v2794_v25, %v2794_v25  ;;  %v2545_v22 = vpop.f32.mrf.mxu0  ;;  %v3211_v51 = vrot.slane %v3209_v37, 5 }
 0x488   : > { %v3298_v59 = vpop.permute.xlu2 %3297  ;;  %v2595_v54 = vmul.f32 %v7435_v17, %v2545_v22  ;;  %v3165_v63 = vrot.slane %v3164_v39, 4 }
 0x489   : > { %9476 = vst [vmem:[#allocation35_spill] sm:$0xff] %v7861_v35  ;;  %v3167_v24 = vshll.u32 %v7861_v35, 16  ;;  %v3171_v14 = vshrl.u32 %v7861_v35, 16  ;;  %v3177_v36 = vshll.u32 %v7863_v53, 16 }
 0x48a   : > { %9477 = vst [vmem:[#allocation21_spill] sm:$0xff] %v7863_v53  ;;  %v2631_v25 = vadd.f32 %v7444_v6, %v2595_v54 }
 0x48b   : > { %3383 = vst.msk [vmem:[#allocation5 + $0x28] sm:$0xf] %vm1105_vm9, %v3298_v59  ;;  %v3169_v20 = vrot.slane %v3167_v24, 5  ;;  %v3173_v21 = vrot.slane %v3171_v14, 4  ;;  %v3179_v6 = vrot.slane %v3177_v36, 5  ;;  %v3243_v14 = vshrl.u32 %v7792_v30, 16 }
 0x48c   : > { %2868 = vst.msk [vmem:[#allocation5 + $0x5c] sm:$0xf] %vm573_vm8, %v7861_v35  ;;  %v2663_v59 = vmax.f32 %v2631_v25, 0.0  ;;  %v3215_v36 = vshll.u32 %v7762_v11, 16 }
 0x48d   : > { %v7877_v17 = vsel %vm5735_vm3, %v3165_v63, %v3169_v20  ;;  %v3174_v22 = vor.u32 %v3173_v21, %v3169_v20  ;;  %v2795_v39 = vld [vmem:[#allocation4 + $0x120] sm:$0xff]  ;;  %v3212_v63 = vor.u32 %v3211_v51, %v3208_v19  ;;  %v7901_v19 = vrot.slane %v3239_v1, 5 }
 0x48e   : > { %9478 = vst [vmem:[#allocation38_spill] sm:$0xff] %v7877_v17  ;;  %3321 = vrot.lane.b32.xlu2 %v7877_v17, %s5630_s11  ;;  %v7882_v54 = vpack.c.bf16 %v2795_v39, %v2795_v39  ;;  %v2803_v21 = vld [vmem:[#allocation4 + $0x160] sm:$0x3] }
 0x48f   : > { %2750 = vst.msk [vmem:[#allocation4 + $0x129] sm:$0xff] %vm334_vm0, %v2663_v59  ;;  %v3175_v8 = vrot.slane %v3174_v22, 4  ;;  %v3219_v59 = vshrl.u32 %v7762_v11, 16  ;;  %v7899_v51 = vpack.c.bf16 %v2803_v21, %v2803_v21  ;;  %v3213_v17 = vrot.slane %v3212_v63, 4 }
 0x490   : > { %9479 = vst [vmem:[#allocation26_spill] sm:$0xff] %v7882_v54  ;;  %v3294_v24 = vpop.permute.xlu0 %3293  ;;  %v3182_v25 = vshrl.u32 %v7882_v54, 16  ;;  %v3185_v20 = vshll.u32 %v7882_v54, 16 }
 0x491   : > { %3381 = vst.msk [vmem:[#allocation5 + $0x20] sm:$0xf] %vm1105_vm9, %v3294_v24  ;;  %v7889_v37 = vsel %vm5735_vm3, %v3175_v8, %v3179_v6  ;;  %v2800_v8 = vld [vmem:[#allocation4 + $0x148] sm:$0x3]  ;;  %v3245_v24 = vrot.slane %v3243_v14, 4  ;;  %v3221_v31 = vrot.slane %v3219_v59, 4 }
 0x492   : > { %9480 = vst [vmem:[#allocation39_spill] sm:$0xff] %v7889_v37  ;;  %3323 = vrot.lane.b32.xlu0 %v7889_v37, %s5630_s11  ;;  %v3184_v22 = vrot.slane %v3182_v25, 4  ;;  %v3187_v39 = vrot.slane %v3185_v20, 5  ;;  %v3217_v37 = vrot.slane %v3215_v36, 5  ;;  %v7904_v30 = vpack.c.bf16 %v2800_v8, %v2800_v8 }
 0x493   : > { %2869 = vst.msk [vmem:[#allocation5 + $0x60] sm:$0xf] %vm573_vm8, %v7882_v54  ;;  %v3246_v21 = vor.u32 %v3245_v24, %v7901_v19  ;;  %v3249_v1 = vshll.u32 %v7899_v51, 16  ;;  %v3230_v14 = vshrl.u32 %v7800_v41, 16 }
 0x494   : > { %v3296_v6 = vpop.permute.xlu1 %3295  ;;  %9481 = vst [vmem:[#allocation30_spill] sm:$0xff] %v7899_v51  ;;  %v3188_v25 = vor.u32 %v3187_v39, %v3184_v22  ;;  %v7916_v63 = vsel %vm5735_vm3, %v3213_v17, %v3217_v37  ;;  %v3225_v59 = vshll.u32 %v7904_v30, 16 }
 0x495   : > { %3382 = vst.msk [vmem:[#allocation5 + $0x24] sm:$0xf] %vm1105_vm9, %v3296_v6  ;;  %v3233_v6 = vshll.u32 %v7800_v41, 16  ;;  %v3247_v51 = vrot.slane %v3246_v21, 4  ;;  %v3251_v41 = vrot.slane %v3249_v1, 5  ;;  %v3232_v61 = vrot.slane %v3230_v14, 4 }
 0x496   : > { %v2796_v10 = vld [vmem:[#allocation4 + $0x128] sm:$0xff]  ;;  %v2797_v57 = vld [vmem:[#allocation4 + $0x130] sm:$0x3]  ;;  %9483 = vst [vmem:[#allocation33_spill] sm:$0xff] %v7916_v63  ;;  %v3189_v22 = vrot.slane %v3188_v25, 4  ;;  %v3227_v14 = vrot.slane %v3225_v59, 5 }
 0x497   : > { %v7906_v53 = vpack.c.bf16 %v2796_v10, %v2796_v10  ;;  %v7908_v20 = vpack.c.bf16 %v2797_v57, %v2797_v57  ;;  %v3222_v57 = vor.u32 %v3221_v31, %v3217_v37  ;;  %v3235_v11 = vrot.slane %v3233_v6, 5 }
 0x498   : > { %v3254_v31 = vshrl.u32 %v7830_v55, 16  ;;  %v3257_v37 = vshll.u32 %v7830_v55, 16  ;;  %v7937_v1 = vsel %vm5735_vm3, %v3247_v51, %v3251_v41  ;;  %v2806_v41 = vld [vmem:[#allocation4 + $0x178] sm:$0x3]  ;;  %v5331_v51 = vrot.slane %v7412_v43, 9 }
 0x499   : > { %9482 = vst [vmem:[#allocation40_spill] sm:$0xff] %v7906_v53  ;;  %v3191_v36 = vshll.u32 %v7906_v53, 16  ;;  %v3195_v10 = vshrl.u32 %v7906_v53, 16  ;;  %v3201_v24 = vshll.u32 %v7908_v20, 16  ;;  %v3223_v21 = vrot.slane %v3222_v57, 4 }
 0x49a   : > { %2870 = vst.msk [vmem:[#allocation5 + $0x64] sm:$0xf] %vm573_vm8, %v7906_v53  ;;  %3329 = vrot.lane.b32.xlu0 %v7916_v63, %s5630_s11  ;;  %v3236_v6 = vor.u32 %v3235_v11, %v3232_v61  ;;  %v3455_v11 = vrot.slane %v7422_v7, 5  ;;  %v3462_v7 = vrot.slane %v7476_v26, 5 }
 0x49b   : > { %v3193_v39 = vrot.slane %v3191_v36, 5  ;;  %v3197_v8 = vrot.slane %v3195_v10, 4  ;;  %v3203_v36 = vrot.slane %v3201_v24, 5  ;;  %v3263_v10 = vshll.u32 %v7838_v50, 16 }
 0x49c   : > { %v3304_v17 = vpop.permute.xlu2 %3303  ;;  %v3237_v57 = vrot.slane %v3236_v6, 4  ;;  %v3456_v43 = vsel %vm6361_vm7, %v5331_v51, %v3455_v11  ;;  %v5480_v6 = vld [vmem:[#allocation3 + $0x78] sm:$0xff]  ;;  %v3458_v51 = vrot.slane %v7451_v18, 5 }
 0x49d   : > { %3386 = vst.msk [vmem:[#allocation5 + $0x34] sm:$0xf] %vm1105_vm9, %v3304_v17  ;;  %v7929_v35 = vsel %vm5735_vm3, %v3189_v22, %v3193_v39  ;;  %v3198_v63 = vor.u32 %v3197_v8, %v3193_v39  ;;  %v3256_v39 = vrot.slane %v3254_v31, 4  ;;  %v3259_v8 = vrot.slane %v3257_v37, 5  ;;  %5330 = vmatmul.msk.bf16.gmra.mxu3 %vm2426_vm4, %v5480_v6 }
 0x49e   : > { %9484 = vst [vmem:[#allocation9_spill] sm:$0xff] %v7929_v35  ;;  %3325 = vrot.lane.b32.xlu1 %v7929_v35, %s5630_s11  ;;  %v3267_v17 = vshrl.u32 %v7838_v50, 16  ;;  %v3265_v24 = vrot.slane %v3263_v10, 5  ;;  %v7956_v31 = vpack.c.bf16 %v2806_v41, %v2806_v41  ;;  %v3457_v41 = vrot.slane %v3455_v11, 4  ;;  %v9491_v35 = vld [vmem:[#allocation32_spill] sm:$0xff] }
 0x49f   : > { %v3199_v25 = vrot.slane %v3198_v63, 4  ;;  %v7953_v63 = vsel %vm5735_vm3, %v3223_v21, %v3227_v14  ;;  %v3260_v59 = vor.u32 %v3259_v8, %v3256_v39  ;;  %v3464_v39 = vrot.slane %v3462_v7, 4 }
 0x4a0   : > { %v3269_v37 = vrot.slane %v3267_v17, 4  ;;  %v3273_v14 = vshll.u32 %v7956_v31, 16  ;;  %v3459_v18 = vsel %vm6361_vm7, %v3457_v41, %v3458_v51  ;;  %v5334_v11 = vrot.slane %v7529_v52, 9 }
 0x4a1   : > { %v7942_v22 = vsel %vm5735_vm3, %v3199_v25, %v3203_v36  ;;  %v7966_v25 = vsel %vm5735_vm3, %v3237_v57, %v7901_v19  ;;  %v3261_v36 = vrot.slane %v3260_v59, 4  ;;  %v3465_v19 = vrot.slane %v7478_v45, 5 }
 0x4a2   : > { %9485 = vst [vmem:[#allocation49_spill] sm:$0xff] %v7942_v22  ;;  %3335 = vrot.lane.b32.xlu0 %v7937_v1, %s5630_s11  ;;  %3327 = vrot.lane.b32.xlu2 %v7942_v22, %s5630_s11  ;;  %v3270_v21 = vor.u32 %v3269_v37, %v3265_v24  ;;  %v3275_v17 = vrot.slane %v3273_v14, 5  ;;  %v3476_v45 = vrot.slane %v7545_v27, 5  ;;  %v3483_v14 = vrot.slane %v7578_v28, 5 }
 0x4a3   : > { %v7974_v10 = vsel %vm5735_vm3, %v3261_v36, %v3265_v24  ;;  %v7984_v57 = vsel %vm6361_vm7, %v3464_v39, %v3465_v19  ;;  %v5332_v24 = vrot.slane %v7466_v29, 9  ;;  %v5333_v6 = vrot.slane %v7501_v15, 9 }
 0x4a4   : > { %v3300_v61 = vpop.permute.xlu0 %3299  ;;  %9486 = vst [vmem:[#allocation47_spill] sm:$0xff] %v7974_v10  ;;  %v3271_v8 = vrot.slane %v3270_v21, 4  ;;  %v3469_v21 = vrot.slane %v7511_v0, 5  ;;  %v3472_v19 = vrot.slane %v7513_v4, 5  ;;  %v3479_v4 = vrot.slane %v7547_v49, 5 }
 0x4a5   : > { %3384 = vst.msk [vmem:[#allocation5 + $0x2c] sm:$0xf] %vm1105_vm9, %v3300_v61  ;;  %v8007_v36 = vsel %vm6361_vm7, %v5332_v24, %v3462_v7  ;;  %v3486_v7 = vrot.slane %v7580_v13, 5  ;;  %v3497_v24 = vrot.slane %v7646_v62, 5 }
 0x4a6   : > { %3331 = vrot.lane.b32.xlu1 %v7953_v63, %s5630_s11  ;;  %v7988_v59 = vsel %vm5735_vm3, %v3271_v8, %v3275_v17  ;;  %v8018_v39 = vsel %vm6361_vm7, %v5333_v6, %v3469_v21  ;;  %v3485_v8 = vrot.slane %v3483_v14, 4  ;;  %v3471_v17 = vrot.slane %v3469_v21, 4 }
 0x4a7   : > { %9487 = vst [vmem:[#allocation43_spill] sm:$0xff] %v7988_v59  ;;  %v3490_v6 = vrot.slane %v7611_v33, 5 }
 0x4a8   : > { %v8027_v51 = vsel %vm6361_vm7, %v3485_v8, %v3486_v7  ;;  %v3504_v8 = vrot.slane %v7681_v40, 5 }
 0x4aa   : > { %3565 = vrot.lane.b32.xlu0 %v3456_v43, %s5631_s16  ;;  %3333 = vrot.lane.b32.xlu2 %v7966_v25, %s5630_s11  ;;  %v8003_v43 = vsel %vm6361_vm7, %v5334_v11, %v3476_v45 }
 0x4ae   : > { %3337 = vrot.lane.b32.xlu1 %v7974_v10, %s5630_s11 }
 0x4b0   : > { %v3302_v61 = vpop.permute.xlu1 %3301 }
 0x4b1   : > { %3385 = vst.msk [vmem:[#allocation5 + $0x30] sm:$0xf] %vm1105_vm9, %v3302_v61  ;;  %v8031_v61 = vsel %vm6361_vm7, %v3471_v17, %v3472_v19  ;;  %v5336_v17 = vrot.slane %v7596_v16, 9 }
 0x4b2   : > { %3571 = vrot.lane.b32.xlu0 %v7984_v57, %s5631_s16  ;;  %3339 = vrot.lane.b32.xlu2 %v7988_v59, %s5630_s11 }
 0x4b3   : > { %v8066_v19 = vsel %vm6361_vm7, %v5336_v17, %v3490_v6  ;;  %v3518_v17 = vrot.slane %v7770_v23, 5 }
 0x4b5   : > { %v3520_v22 = vrot.slane %v3518_v17, 4 }
 0x4b6   : > { %3567 = vrot.lane.b32.xlu1 %v3459_v18, %s5631_s16  ;;  %v3478_v18 = vrot.slane %v3476_v45, 4  ;;  %v5337_v45 = vrot.slane %v7630_v56, 9 }
 0x4b8   : > { %v3310_v37 = vpop.permute.xlu2 %3309  ;;  %v8041_v11 = vsel %vm6361_vm7, %v3478_v18, %v3479_v4  ;;  %v8050_v21 = vsel %vm6361_vm7, %v5337_v45, %v3497_v24  ;;  %v3507_v18 = vrot.slane %v7683_v2, 5  ;;  %v3493_v4 = vrot.slane %v7613_v44, 5 }
 0x4b9   : > { %3389 = vst.msk [vmem:[#allocation5 + $0x40] sm:$0xf] %vm1105_vm9, %v3310_v37  ;;  %v5335_v37 = vrot.slane %v7563_v58, 9 }
 0x4ba   : > { %3577 = vrot.lane.b32.xlu0 %v8003_v43, %s5631_s16  ;;  %3569 = vrot.lane.b32.xlu2 %v8007_v36, %s5631_s16 }
 0x4bb   : > { %v8054_v49 = vsel %vm6361_vm7, %v5335_v37, %v3483_v14  ;;  %v3506_v14 = vrot.slane %v3504_v8, 4  ;;  %v3499_v37 = vrot.slane %v3497_v24, 4  ;;  %v5340_v24 = vrot.slane %v7743_v32, 9 }
 0x4be   : > { %3573 = vrot.lane.b32.xlu1 %v8018_v39, %s5631_s16 }
 0x4c0   : > { %v3306_v41 = vpop.permute.xlu0 %3305 }
 0x4c1   : > { %3387 = vst.msk [vmem:[#allocation5 + $0x38] sm:$0xf] %vm1105_vm9, %v3306_v41  ;;  %v3492_v41 = vrot.slane %v3490_v6, 4  ;;  %v3500_v6 = vrot.slane %v7648_v46, 5 }
 0x4c2   : > { %3583 = vrot.lane.b32.xlu0 %v8027_v51, %s5631_s16  ;;  %3575 = vrot.lane.b32.xlu2 %v8031_v61, %s5631_s16 }
 0x4c3   : > { %v8078_v45 = vsel %vm6361_vm7, %v3492_v41, %v3493_v4  ;;  %v8088_v44 = vsel %vm6361_vm7, %v3499_v37, %v3500_v6  ;;  %v3511_v41 = vrot.slane %v7720_v5, 5  ;;  %v5339_v4 = vrot.slane %v7703_v42, 9 }
 0x4c4   : > { %v3308_v13 = vpop.permute.xlu1 %3307 }
 0x4c5   : > { %3388 = vst.msk [vmem:[#allocation5 + $0x3c] sm:$0xf] %vm1105_vm9, %v3308_v13  ;;  %v8074_v13 = vsel %vm6361_vm7, %v3506_v14, %v3507_v18  ;;  %v8097_v14 = vsel %vm6361_vm7, %v5340_v24, %v3518_v17  ;;  %v3525_v18 = vrot.slane %v7819_v48, 5  ;;  %v8112_v37 = vsel %vm6361_vm7, %v5339_v4, %v3511_v41 }
 0x4c6   : > { %3579 = vrot.lane.b32.xlu1 %v8041_v11, %s5631_s16  ;;  %v3514_v24 = vrot.slane %v7722_v3, 5  ;;  %v3521_v3 = vrot.slane %v7772_v38, 5  ;;  %v5341_v17 = vrot.slane %v7795_v9, 9 }
 0x4c7   : > { %v3527_v6 = vrot.slane %v3525_v18, 4 }
 0x4c8   : > { %v8148_v38 = vsel %vm6361_vm7, %v5341_v17, %v3525_v18  ;;  %v3549_v18 = vrot.slane %v7904_v30, 5  ;;  %v3542_v30 = vrot.slane %v7908_v20, 5 }
 0x4ca   : > { %3589 = vrot.lane.b32.xlu0 %v8050_v21, %s5631_s16  ;;  %3581 = vrot.lane.b32.xlu2 %v8054_v49, %s5631_s16 }
 0x4cc   : > { %v3316_v7 = vpop.permute.xlu2 %3315 }
 0x4cd   : > { %3392 = vst.msk [vmem:[#allocation5 + $0x4c] sm:$0xf] %vm1105_vm9, %v3316_v7  ;;  %v5338_v7 = vrot.slane %v7666_v60, 9 }
 0x4ce   : > { %3585 = vrot.lane.b32.xlu1 %v8066_v19, %s5631_s16 }
 0x4cf   : > { %v8101_v46 = vsel %vm6361_vm7, %v5338_v7, %v3504_v8  ;;  %v3528_v8 = vrot.slane %v7821_v34, 5  ;;  %v8134_v34 = vsel %vm6361_vm7, %v3520_v22, %v3521_v3  ;;  %v9489_v22 = vld [vmem:[#allocation35_spill] sm:$0xff] }
 0x4d1   : > { %v8121_v12 = vsel %vm6361_vm7, %v3527_v6, %v3528_v8  ;;  %v5343_v6 = vrot.slane %v7882_v54, 9 }
 0x4d2   : > { %3595 = vrot.lane.b32.xlu0 %v8074_v13, %s5631_s16  ;;  %3587 = vrot.lane.b32.xlu2 %v8078_v45, %s5631_s16 }
 0x4d4   : > { %v3312_v2 = vpop.permute.xlu0 %3311 }
 0x4d5   : > { %3390 = vst.msk [vmem:[#allocation5 + $0x44] sm:$0xf] %vm1105_vm9, %v3312_v2  ;;  %v3513_v2 = vrot.slane %v3511_v41, 4  ;;  %v3539_v41 = vrot.slane %v7906_v53, 5  ;;  %v9492_v53 = vld [vmem:[#allocation21_spill] sm:$0xff] }
 0x4d6   : > { %3591 = vrot.lane.b32.xlu1 %v8088_v44, %s5631_s16  ;;  %v3535_v59 = vrot.slane %v9492_v53, 5 }
 0x4d7   : > { %v8125_v4 = vsel %vm6361_vm7, %v3513_v2, %v3514_v24  ;;  %v8144_v8 = vsel %vm6361_vm7, %v5343_v6, %v3539_v41  ;;  %v3532_v24 = vrot.slane %v9489_v22, 5 }
 0x4d8   : > { %9488 = vst [vmem:[#allocation50_spill] sm:$0xff] %v8144_v8 }
 0x4d9   : > { %v3534_v17 = vrot.slane %v3532_v24, 4 }
 0x4da   : > { %3601 = vrot.lane.b32.xlu0 %v8097_v14, %s5631_s16  ;;  %3593 = vrot.lane.b32.xlu2 %v8101_v46, %s5631_s16 }
 0x4de   : > { %3597 = vrot.lane.b32.xlu1 %v8112_v37, %s5631_s16 }
 0x4e0   : > { %v3314_v7 = vpop.permute.xlu1 %3313 }
 0x4e1   : > { %3391 = vst.msk [vmem:[#allocation5 + $0x48] sm:$0xf] %vm1105_vm9, %v3314_v7  ;;  %v9490_v7 = vld [vmem:[#allocation20_spill] sm:$0xff] }
 0x4e2   : > { %3607 = vrot.lane.b32.xlu0 %v8121_v12, %s5631_s16  ;;  %3599 = vrot.lane.b32.xlu2 %v8125_v4, %s5631_s16  ;;  %v3546_v3 = vrot.slane %v9490_v7, 5 }
 0x4e4   : > { %v3548_v54 = vrot.slane %v3546_v3, 4 }
 0x4e6   : > { %3603 = vrot.lane.b32.xlu1 %v8134_v34, %s5631_s16 }
 0x4e8   : > { %v3322_v2 = vpop.permute.xlu2 %3321 }
 0x4e9   : > { %3395 = vst.msk [vmem:[#allocation5 + $0x58] sm:$0xf] %vm1105_vm9, %v3322_v2  ;;  %v5342_v2 = vrot.slane %v9491_v35, 9  ;;  %v3541_v35 = vrot.slane %v3539_v41, 4  ;;  %v3560_v41 = vrot.slane %v7838_v50, 5 }
 0x4ea   : > { %3613 = vrot.lane.b32.xlu0 %v8144_v8, %s5631_s16  ;;  %3605 = vrot.lane.b32.xlu2 %v8148_v38, %s5631_s16  ;;  %v8168_v8 = vsel %vm6361_vm7, %v3548_v54, %v3549_v18 }
 0x4eb   : > { %v8159_v6 = vsel %vm6361_vm7, %v5342_v2, %v3532_v24  ;;  %v8172_v2 = vsel %vm6361_vm7, %v3534_v17, %v3535_v59  ;;  %v8182_v54 = vsel %vm6361_vm7, %v3541_v35, %v3542_v30  ;;  %v9495_v59 = vld [vmem:[#allocation16_spill] sm:$0xff]  ;;  %v9498_v30 = vld [vmem:[#allocation27_spill] sm:$0xff] }
 0x4ec   : > { %9493 = vst [vmem:[#allocation45_spill] sm:$0xff] %v8172_v2  ;;  %v5344_v24 = vrot.slane %v9495_v59, 9  ;;  %v9497_v17 = vld [vmem:[#allocation24_spill] sm:$0xff] }
 0x4ed   : > { %9494 = vst [vmem:[#allocation17_spill] sm:$0xff] %v8182_v54  ;;  %v5345_v35 = vrot.slane %v9497_v17, 9 }
 0x4ee   : > { %3609 = vrot.lane.b32.xlu1 %v8159_v6, %s5631_s16  ;;  %v8195_v20 = vsel %vm6361_vm7, %v5344_v24, %v3546_v3  ;;  %v9499_v3 = vld [vmem:[#allocation30_spill] sm:$0xff] }
 0x4ef   : > { %v3556_v24 = vrot.slane %v9499_v3, 5 }
 0x4f0   : > { %v3318_v10 = vpop.permute.xlu0 %3317 }
 0x4f1   : > { %3393 = vst.msk [vmem:[#allocation5 + $0x50] sm:$0xf] %vm1105_vm9, %v3318_v10  ;;  %v5346_v10 = vrot.slane %v7830_v55, 9 }
 0x4f2   : > { %3619 = vrot.lane.b32.xlu0 %v8168_v8, %s5631_s16  ;;  %3611 = vrot.lane.b32.xlu2 %v8172_v2, %s5631_s16  ;;  %v3563_v2 = vrot.slane %v7956_v31, 5 }
 0x4f3   : > { %v8191_v18 = vsel %vm6361_vm7, %v5346_v10, %v3560_v41 }
 0x4f4   : > { %v3320_v53 = vpop.permute.xlu1 %3319  ;;  %9496 = vst [vmem:[#allocation23_spill] sm:$0xff] %v8191_v18 }
 0x4f5   : > { %3394 = vst.msk [vmem:[#allocation5 + $0x54] sm:$0xf] %vm1105_vm9, %v3320_v53  ;;  %v3553_v53 = vrot.slane %v9498_v30, 5 }
 0x4f6   : > { %3615 = vrot.lane.b32.xlu1 %v8182_v54, %s5631_s16 }
 0x4f7   : > { %v8206_v10 = vsel %vm6361_vm7, %v5345_v35, %v3553_v53  ;;  %v3555_v55 = vrot.slane %v3553_v53, 4 }
 0x4f9   : > { %v8213_v50 = vsel %vm6361_vm7, %v3555_v55, %v3556_v24 }
 0x4fa   : > { %3625 = vrot.lane.b32.xlu0 %v8191_v18, %s5631_s16  ;;  %3617 = vrot.lane.b32.xlu2 %v8195_v20, %s5631_s16  ;;  %v3562_v18 = vrot.slane %v3560_v41, 4 }
 0x4fc   : > { %v3328_v54 = vpop.permute.xlu2 %3327  ;;  %v8223_v53 = vsel %vm6361_vm7, %v3562_v18, %v3563_v2 }
 0x4fd   : > { %3398 = vst.msk [vmem:[#allocation5 + $0x64] sm:$0xf] %vm1105_vm9, %v3328_v54 }
 0x4fe   : > { %3621 = vrot.lane.b32.xlu1 %v8206_v10, %s5631_s16 }
 0x502   : > { %3699 = vrot.lane.b32.xlu0 %v7476_v26, %s5632_s17  ;;  %3623 = vrot.lane.b32.xlu2 %v8213_v50, %s5631_s16 }
 0x504   : > { %v3324_v54 = vpop.permute.xlu0 %3323  ;;  %v3334_v35 = vpop.permute.xlu2 %3333 }
 0x505   : > { %3396 = vst.msk [vmem:[#allocation5 + $0x5c] sm:$0xf] %vm1105_vm9, %v3324_v54 }
 0x506   : > { %3401 = vst.msk [vmem:[#allocation5 + $0x70] sm:$0xf] %vm1105_vm9, %v3334_v35  ;;  %3627 = vrot.lane.b32.xlu1 %v8223_v53, %s5631_s16 }
 0x50a   : > { %3705 = vrot.lane.b32.xlu0 %v7529_v52, %s5632_s17  ;;  %3697 = vrot.lane.b32.xlu2 %v7466_v29, %s5632_s17 }
 0x50c   : > { %v3330_v26 = vpop.permute.xlu0 %3329  ;;  %v3340_v55 = vpop.permute.xlu2 %3339 }
 0x50d   : > { %3399 = vst.msk [vmem:[#allocation5 + $0x68] sm:$0xf] %vm1105_vm9, %v3330_v26 }
 0x50e   : > { %3404 = vst.msk [vmem:[#allocation5 + $0x7c] sm:$0xf] %vm1105_vm9, %v3340_v55  ;;  %3701 = vrot.lane.b32.xlu1 %v7501_v15, %s5632_s17  ;;  %v9500_v55 = vld [vmem:[#allocation14_spill] sm:$0xff] }
 0x510   : > { %v3326_v31 = vpop.permute.xlu1 %3325 }
 0x511   : > { %3397 = vst.msk [vmem:[#allocation5 + $0x60] sm:$0xf] %vm1105_vm9, %v3326_v31 }
 0x512   : > { %3711 = vrot.lane.b32.xlu0 %v7578_v28, %s5632_s17  ;;  %3703 = vrot.lane.b32.xlu2 %v7511_v0, %s5632_s17 }
 0x514   : > { %v3336_v2 = vpop.permute.xlu0 %3335  ;;  %v3570_v29 = vpop.permute.xlu2 %3569 }
 0x515   : > { %3402 = vst.msk [vmem:[#allocation5 + $0x74] sm:$0xf] %vm1105_vm9, %v3336_v2 }
 0x516   : > { %3663 = vst.msk [vmem:[#allocation5 + $0x8] sm:$0xf] %vm1397_vm10, %v3570_v29  ;;  %3707 = vrot.lane.b32.xlu1 %v7545_v27, %s5632_s17 }
 0x518   : > { %v3332_v41 = vpop.permute.xlu1 %3331 }
 0x519   : > { %3400 = vst.msk [vmem:[#allocation5 + $0x6c] sm:$0xf] %vm1105_vm9, %v3332_v41 }
 0x51a   : > { %3717 = vrot.lane.b32.xlu0 %v7630_v56, %s5632_s17  ;;  %3709 = vrot.lane.b32.xlu2 %v7563_v58, %s5632_s17 }
 0x51c   : > { %v3566_v18 = vpop.permute.xlu0 %3565  ;;  %v3576_v3 = vpop.permute.xlu2 %3575 }
 0x51d   : > { %3661 = vst.msk [vmem:[#allocation5] sm:$0xf] %vm1397_vm10, %v3566_v18  ;;  %v9501_v18 = vld [vmem:[#allocation11_spill] sm:$0xff] }
 0x51e   : > { %3666 = vst.msk [vmem:[#allocation5 + $0x14] sm:$0xf] %vm1397_vm10, %v3576_v3  ;;  %3713 = vrot.lane.b32.xlu1 %v7596_v16, %s5632_s17  ;;  %v5617_v3 = vld [vmem:[%s9127_s2] ss:$0 sm:$0xff] }
 0x520   : > { %v3338_v24 = vpop.permute.xlu1 %3337  ;;  %v2563_v41 = vpop.f32.mrf.mxu3 }
 0x521   : > { %3403 = vst.msk [vmem:[#allocation5 + $0x78] sm:$0xf] %vm1105_vm9, %v3338_v24  ;;  %v2602_v24 = vmul.f32 %v5617_v3, %v2563_v41 }
 0x522   : > { %3723 = vrot.lane.b32.xlu0 %v7681_v40, %s5632_s17  ;;  %3715 = vrot.lane.b32.xlu2 %v7611_v33, %s5632_s17 }
 0x524   : > { %v3572_v54 = vpop.permute.xlu0 %3571  ;;  %v3582_v35 = vpop.permute.xlu2 %3581 }
 0x525   : > { %3664 = vst.msk [vmem:[#allocation5 + $0xc] sm:$0xf] %vm1397_vm10, %v3572_v54 }
 0x526   : > { %3669 = vst.msk [vmem:[#allocation5 + $0x20] sm:$0xf] %vm1397_vm10, %v3582_v35  ;;  %3719 = vrot.lane.b32.xlu1 %v7646_v62, %s5632_s17 }
 0x528   : > { %v3568_v26 = vpop.permute.xlu1 %3567 }
 0x529   : > { %3662 = vst.msk [vmem:[#allocation5 + $0x4] sm:$0xf] %vm1397_vm10, %v3568_v26  ;;  %v5618_v26 = vld [vmem:[%s9128_s3] ss:$0 sm:$0xff] }
 0x52a   : > { %3852 = vrot.lane.b32.xlu0 %v9500_v55, %s5633_s18  ;;  %3721 = vrot.lane.b32.xlu2 %v7666_v60, %s5632_s17  ;;  %v2638_v55 = vadd.f32 %v5618_v26, %v2602_v24 }
 0x52c   : > { %v3578_v31 = vpop.permute.xlu0 %3577  ;;  %v3588_v2 = vpop.permute.xlu2 %3587 }
 0x52d   : > { %3667 = vst.msk [vmem:[#allocation5 + $0x18] sm:$0xf] %vm1397_vm10, %v3578_v31 }
 0x52e   : > { %3672 = vst.msk [vmem:[#allocation5 + $0x2c] sm:$0xf] %vm1397_vm10, %v3588_v2  ;;  %3725 = vrot.lane.b32.xlu1 %v7703_v42, %s5632_s17  ;;  %v2565_v2 = vpop.f32.mrf.mxu3 }
 0x52f   : > { %v2603_v41 = vmul.f32 %v5617_v3, %v2565_v2  ;;  %v9504_v2 = vld [vmem:[#allocation36_spill] sm:$0xff] }
 0x530   : > { %v3574_v29 = vpop.permute.xlu1 %3573 }
 0x531   : > { %3665 = vst.msk [vmem:[#allocation5 + $0x10] sm:$0xf] %vm1397_vm10, %v3574_v29  ;;  %v9502_v29 = vld [vmem:[#allocation37_spill] sm:$0xff] }
 0x532   : > { %4118 = vrot.lane.b32.xlu0 %v7501_v15, %s5635_s20  ;;  %3850 = vrot.lane.b32.xlu2 %v9501_v18, %s5633_s18  ;;  %v2670_v15 = vmax.f32 %v2638_v55, 0.0  ;;  %v9503_v55 = vld [vmem:[#allocation31_spill] sm:$0xff] }
 0x534   : > { %v3584_v54 = vpop.permute.xlu0 %3583  ;;  %v3594_v35 = vpop.permute.xlu2 %3593  ;;  %2757 = vst.msk [vmem:[#allocation4 + $0x181] sm:$0xff] %vm334_vm0, %v2670_v15 }
 0x535   : > { %3670 = vst.msk [vmem:[#allocation5 + $0x24] sm:$0xf] %vm1397_vm10, %v3584_v54  ;;  %v2639_v54 = vadd.f32 %v5618_v26, %v2603_v41 }
 0x536   : > { %3675 = vst.msk [vmem:[#allocation5 + $0x38] sm:$0xf] %vm1397_vm10, %v3594_v35  ;;  %3986 = vrot.lane.b32.xlu1 %v8007_v36, %s5634_s19 }
 0x537   : > { %v2671_v36 = vmax.f32 %v2639_v54, 0.0 }
 0x538   : > { %v3580_v31 = vpop.permute.xlu1 %3579 }
 0x539   : > { %3668 = vst.msk [vmem:[#allocation5 + $0x1c] sm:$0xf] %vm1397_vm10, %v3580_v31 }
 0x53a   : > { %4273 = vrot.lane.b32.xlu0 %v9502_v29, %s5636_s21  ;;  %3988 = vrot.lane.b32.xlu2 %v7984_v57, %s5634_s19  ;;  %2758 = vst.msk [vmem:[#allocation4 + $0x189] sm:$0xff] %vm334_vm0, %v2671_v36 }
 0x53c   : > { %v3590_v18 = vpop.permute.xlu0 %3589  ;;  %v3600_v24 = vpop.permute.xlu2 %3599 }
 0x53d   : > { %3673 = vst.msk [vmem:[#allocation5 + $0x30] sm:$0xf] %vm1397_vm10, %v3590_v18 }
 0x53e   : > { %3678 = vst.msk [vmem:[#allocation5 + $0x44] sm:$0xf] %vm1397_vm10, %v3600_v24  ;;  %4120 = vrot.lane.b32.xlu1 %v7511_v0, %s5635_s20  ;;  %v9505_v24 = vld [vmem:[#allocation42_spill] sm:$0xff] }
 0x540   : > { %v3586_v35 = vpop.permute.xlu1 %3585 }
 0x541   : > { %3671 = vst.msk [vmem:[#allocation5 + $0x28] sm:$0xf] %vm1397_vm10, %v3586_v35 }
 0x542   : > { %3854 = vrot.lane.b32.xlu0 %v9503_v55, %s5633_s18  ;;  %4271 = vrot.lane.b32.xlu2 %v9503_v55, %s5636_s21 }
 0x544   : > { %v3596_v57 = vpop.permute.xlu0 %3595  ;;  %v3606_v3 = vpop.permute.xlu2 %3605 }
 0x545   : > { %3676 = vst.msk [vmem:[#allocation5 + $0x3c] sm:$0xf] %vm1397_vm10, %v3596_v57 }
 0x546   : > { %3681 = vst.msk [vmem:[#allocation5 + $0x50] sm:$0xf] %vm1397_vm10, %v3606_v3  ;;  %4407 = vrot.lane.b32.xlu1 %v8018_v39, %s5637_s22  ;;  %v9506_v3 = vld [vmem:[#allocation41_spill] sm:$0xff] }
 0x548   : > { %v3592_v0 = vpop.permute.xlu1 %3591 }
 0x549   : > { %3674 = vst.msk [vmem:[#allocation5 + $0x34] sm:$0xf] %vm1397_vm10, %v3592_v0 }
 0x54a   : > { %3992 = vrot.lane.b32.xlu0 %v8031_v61, %s5634_s19  ;;  %4409 = vrot.lane.b32.xlu2 %v8031_v61, %s5637_s22 }
 0x54c   : > { %v3602_v26 = vpop.permute.xlu0 %3601  ;;  %v3612_v15 = vpop.permute.xlu2 %3611 }
 0x54d   : > { %3679 = vst.msk [vmem:[#allocation5 + $0x48] sm:$0xf] %vm1397_vm10, %v3602_v26 }
 0x54e   : > { %3684 = vst.msk [vmem:[#allocation5 + $0x5c] sm:$0xf] %vm1397_vm10, %v3612_v15  ;;  %3856 = vrot.lane.b32.xlu1 %v9502_v29, %s5633_s18 }
 0x550   : > { %v3598_v31 = vpop.permute.xlu1 %3597 }
 0x551   : > { %3677 = vst.msk [vmem:[#allocation5 + $0x40] sm:$0xf] %vm1397_vm10, %v3598_v31 }
 0x552   : > { %4275 = vrot.lane.b32.xlu0 %v9504_v2, %s5636_s21  ;;  %3990 = vrot.lane.b32.xlu2 %v8018_v39, %s5634_s19 }
 0x554   : > { %v3608_v41 = vpop.permute.xlu0 %3607  ;;  %v3618_v61 = vpop.permute.xlu2 %3617 }
 0x555   : > { %3682 = vst.msk [vmem:[#allocation5 + $0x54] sm:$0xf] %vm1397_vm10, %v3608_v41 }
 0x556   : > { %3687 = vst.msk [vmem:[#allocation5 + $0x68] sm:$0xf] %vm1397_vm10, %v3618_v61  ;;  %4122 = vrot.lane.b32.xlu1 %v7529_v52, %s5635_s20  ;;  %v9508_v61 = vld [vmem:[#allocation46_spill] sm:$0xff] }
 0x558   : > { %v3604_v18 = vpop.permute.xlu1 %3603 }
 0x559   : > { %3680 = vst.msk [vmem:[#allocation5 + $0x4c] sm:$0xf] %vm1397_vm10, %v3604_v18 }
 0x55a   : > { %4413 = vrot.lane.b32.xlu0 %v8041_v11, %s5637_s22  ;;  %4124 = vrot.lane.b32.xlu2 %v7545_v27, %s5635_s20 }
 0x55c   : > { %v3614_v29 = vpop.permute.xlu0 %3613  ;;  %v3624_v39 = vpop.permute.xlu2 %3623 }
 0x55d   : > { %3685 = vst.msk [vmem:[#allocation5 + $0x60] sm:$0xf] %vm1397_vm10, %v3614_v29  ;;  %v4575_v29 = vld [vmem:[%s9129_s4 + $0x20] sm:$0xf] }
 0x55e   : > { %3690 = vst.msk [vmem:[#allocation5 + $0x74] sm:$0xf] %vm1397_vm10, %v3624_v39  ;;  %4277 = vrot.lane.b32.xlu1 %v9505_v24, %s5636_s21  ;;  %v4673_v39 = vunpack.c.l.b16 %v4575_v29 }
 0x560   : > { %v3610_v54 = vpop.permute.xlu1 %3609 }
 0x561   : > { %3683 = vst.msk [vmem:[#allocation5 + $0x58] sm:$0xf] %vm1397_vm10, %v3610_v54  ;;  %v9509_v54 = vld [vmem:[#allocation7_spill] sm:$0xff] }
 0x562   : > { %3994 = vrot.lane.b32.xlu0 %v8003_v43, %s5634_s19  ;;  %4411 = vrot.lane.b32.xlu2 %v8003_v43, %s5637_s22 }
 0x564   : > { %v3620_v52 = vpop.permute.xlu0 %3619  ;;  %v3698_v27 = vpop.permute.xlu2 %3697 }
 0x565   : > { %3688 = vst.msk [vmem:[#allocation5 + $0x6c] sm:$0xf] %vm1397_vm10, %v3620_v52  ;;  %v5504_v52 = vld [vmem:[%s9129_s4 + $0x18] sm:$0xff] }
 0x566   : > { %3793 = vst.msk [vmem:[#allocation5] sm:$0xf] %vm1530_vm11, %v3698_v27  ;;  %3858 = vrot.lane.b32.xlu1 %v9504_v2, %s5633_s18 }
 0x568   : > { %v3616_v36 = vpop.permute.xlu1 %3615 }
 0x569   : > { %3686 = vst.msk [vmem:[#allocation5 + $0x64] sm:$0xf] %vm1397_vm10, %v3616_v36  ;;  %v5503_v36 = vld [vmem:[%s9129_s4 + $0x10] sm:$0xff] }
 0x56a   : > { %4128 = vrot.lane.b32.xlu0 %v7578_v28, %s5635_s20  ;;  %3860 = vrot.lane.b32.xlu2 %v9505_v24, %s5633_s18 }
 0x56c   : > { %v3626_v35 = vpop.permute.xlu0 %3625  ;;  %v3704_v43 = vpop.permute.xlu2 %3703 }
 0x56d   : > { %3691 = vst.msk [vmem:[#allocation5 + $0x78] sm:$0xf] %vm1397_vm10, %v3626_v35 }
 0x56e   : > { %3796 = vst.msk [vmem:[#allocation5 + $0xc] sm:$0xf] %vm1530_vm11, %v3704_v43  ;;  %3996 = vrot.lane.b32.xlu1 %v8041_v11, %s5634_s19  ;;  %v9507_v11 = vld [vmem:[#allocation44_spill] sm:$0xff]  ;;  %v5502_v43 = vld [vmem:[%s9129_s4 + $0x8] sm:$0xff] }
 0x570   : > { %v3622_v55 = vpop.permute.xlu1 %3621 }
 0x571   : > { %3689 = vst.msk [vmem:[#allocation5 + $0x70] sm:$0xf] %vm1397_vm10, %v3622_v55 }
 0x572   : > { %4415 = vrot.lane.b32.xlu0 %v8054_v49, %s5637_s22  ;;  %4126 = vrot.lane.b32.xlu2 %v7563_v58, %s5635_s20 }
 0x574   : > { %v3700_v28 = vpop.permute.xlu0 %3699  ;;  %v3710_v57 = vpop.permute.xlu2 %3709 }
 0x575   : > { %3794 = vst.msk [vmem:[#allocation5 + $0x4] sm:$0xf] %vm1530_vm11, %v3700_v28 }
 0x576   : > { %3799 = vst.msk [vmem:[#allocation5 + $0x18] sm:$0xf] %vm1530_vm11, %v3710_v57  ;;  %4279 = vrot.lane.b32.xlu1 %v9506_v3, %s5636_s21 }
 0x578   : > { %v3628_v0 = vpop.permute.xlu1 %3627 }
 0x579   : > { %3692 = vst.msk [vmem:[#allocation5 + $0x7c] sm:$0xf] %vm1397_vm10, %v3628_v0 }
 0x57a   : > { %3864 = vrot.lane.b32.xlu0 %v9507_v11, %s5633_s18  ;;  %4281 = vrot.lane.b32.xlu2 %v9507_v11, %s5636_s21 }
 0x57c   : > { %v3706_v26 = vpop.permute.xlu0 %3705  ;;  %v3716_v58 = vpop.permute.xlu2 %3715 }
 0x57d   : > { %3797 = vst.msk [vmem:[#allocation5 + $0x10] sm:$0xf] %vm1530_vm11, %v3706_v26 }
 0x57e   : > { %3802 = vst.msk [vmem:[#allocation5 + $0x24] sm:$0xf] %vm1530_vm11, %v3716_v58  ;;  %4417 = vrot.lane.b32.xlu1 %v8027_v51, %s5637_s22 }
 0x580   : > { %v3702_v15 = vpop.permute.xlu1 %3701 }
 0x581   : > { %3795 = vst.msk [vmem:[#allocation5 + $0x8] sm:$0xf] %vm1530_vm11, %v3702_v15  ;;  %v9511_v15 = vld [vmem:[#allocation48_spill] sm:$0xff] }
 0x582   : > { %4130 = vrot.lane.b32.xlu0 %v7596_v16, %s5635_s20  ;;  %3862 = vrot.lane.b32.xlu2 %v9506_v3, %s5633_s18  ;;  %v9510_v3 = vld [vmem:[#allocation12_spill] sm:$0xff] }
 0x584   : > { %v3712_v31 = vpop.permute.xlu0 %3711  ;;  %v3722_v2 = vpop.permute.xlu2 %3721 }
 0x585   : > { %3800 = vst.msk [vmem:[#allocation5 + $0x1c] sm:$0xf] %vm1530_vm11, %v3712_v31 }
 0x586   : > { %3805 = vst.msk [vmem:[#allocation5 + $0x30] sm:$0xf] %vm1530_vm11, %v3722_v2  ;;  %3998 = vrot.lane.b32.xlu1 %v8054_v49, %s5634_s19  ;;  %v4678_v49 = vpack.c.b16 %v4673_v39, %v4673_v39  ;;  %v9513_v39 = vld [vmem:[#allocation15_spill] sm:$0xff] }
 0x588   : > { %v3708_v41 = vpop.permute.xlu1 %3707 }
 0x589   : > { %3798 = vst.msk [vmem:[#allocation5 + $0x14] sm:$0xf] %vm1530_vm11, %v3708_v41 }
 0x58a   : > { %4285 = vrot.lane.b32.xlu0 %v9508_v61, %s5636_s21  ;;  %4000 = vrot.lane.b32.xlu2 %v8027_v51, %s5634_s19  ;;  %v4732_v51 = vsel %vm2475_vm1, %v4678_v49, 0 }
 0x58b   : > { %4737 = vmatpush.bf16.msra.mxu1 %v4732_v51  ;;  %5589 = vmatpush.bf16.msrb.mxu3 %v4732_v51 }
 0x58c   : > { %v3718_v16 = vpop.permute.xlu0 %3717  ;;  %v3851_v18 = vpop.permute.xlu2 %3850 }
 0x58d   : > { %3803 = vst.msk [vmem:[#allocation5 + $0x28] sm:$0xf] %vm1530_vm11, %v3718_v16 }
 0x58e   : > { %3946 = vst.msk [vmem:[#allocation5] sm:$0xf] %vm1684_vm12, %v3851_v18  ;;  %4132 = vrot.lane.b32.xlu1 %v7611_v33, %s5635_s20 }
 0x58f   : > { %4738 = vmatpush.bf16.msra.mxu1 %v5504_v52  ;;  %5590 = vmatpush.bf16.msrb.mxu3 %v5504_v52 }
 0x590   : > { %v3714_v24 = vpop.permute.xlu1 %3713 }
 0x591   : > { %3801 = vst.msk [vmem:[#allocation5 + $0x20] sm:$0xf] %vm1530_vm11, %v3714_v24 }
 0x592   : > { %3866 = vrot.lane.b32.xlu0 %v9509_v54, %s5633_s18  ;;  %4283 = vrot.lane.b32.xlu2 %v9509_v54, %s5636_s21 }
 0x593   : > { %4739 = vmatpush.bf16.msra.mxu1 %v5503_v36  ;;  %5591 = vmatpush.bf16.msrb.mxu3 %v5503_v36 }
 0x594   : > { %v3724_v27 = vpop.permute.xlu0 %3723  ;;  %v3989_v33 = vpop.permute.xlu2 %3988 }
 0x595   : > { %3806 = vst.msk [vmem:[#allocation5 + $0x34] sm:$0xf] %vm1530_vm11, %v3724_v27 }
 0x596   : > { %4419 = vrot.lane.b32.xlu1 %v8066_v19, %s5637_s22 }
 0x597   : > { %4740 = vmatpush.bf16.msra.mxu1 %v5502_v43  ;;  %5592 = vmatpush.bf16.msrb.mxu3 %v5502_v43 }
 0x598   : > { %v3720_v35 = vpop.permute.xlu1 %3719 }
 0x599   : > { %3804 = vst.msk [vmem:[#allocation5 + $0x2c] sm:$0xf] %vm1530_vm11, %v3720_v35 }
 0x59a   : > { %4004 = vrot.lane.b32.xlu0 %v8078_v45, %s5634_s19  ;;  %4421 = vrot.lane.b32.xlu2 %v8078_v45, %s5637_s22  ;;  %v5501_v45 = vld [vmem:[%s9129_s4] sm:$0xff] }
 0x59b   : > { %4741 = vmatpush.bf16.msra.mxu1 %v5501_v45  ;;  %5593 = vmatpush.bf16.msrb.mxu3 %v5501_v45 }
 0x59c   : > { %v3853_v55 = vpop.permute.xlu0 %3852  ;;  %v4272_v28 = vpop.permute.xlu2 %4271 }
 0x59d   : > { %3947 = vst.msk [vmem:[#allocation5 + $0x4] sm:$0xf] %vm1684_vm12, %v3853_v55 }
 0x59e   : > { %4083 = vst.msk [vmem:[#allocation5 + $0x4] sm:$0xf] %vm1821_vm13, %v3989_v33  ;;  %3868 = vrot.lane.b32.xlu1 %v9508_v61, %s5633_s18  ;;  %v9514_v33 = vld [vmem:[#allocation22_spill] sm:$0xff] }
 0x5a0   : > { %v3726_v57 = vpop.permute.xlu1 %3725 }
 0x5a1   : > { %3807 = vst.msk [vmem:[#allocation5 + $0x38] sm:$0xf] %vm1530_vm11, %v3726_v57 }
 0x5a2   : > { %4287 = vrot.lane.b32.xlu0 %v9510_v3, %s5636_s21  ;;  %4002 = vrot.lane.b32.xlu2 %v8066_v19, %s5634_s19 }
 0x5a4   : > { %v4119_v0 = vpop.permute.xlu0 %4118  ;;  %v4410_v11 = vpop.permute.xlu2 %4409 }
 0x5a6   : > { %4134 = vrot.lane.b32.xlu1 %v7630_v56, %s5635_s20 }
 0x5a8   : > { %v3987_v26 = vpop.permute.xlu1 %3986 }
 0x5a9   : > { %4082 = vst.msk [vmem:[#allocation5] sm:$0xf] %vm1821_vm13, %v3987_v26 }
 0x5aa   : > { %4214 = vst.msk [vmem:[#allocation5] sm:$0xf] %vm1954_vm14, %v4119_v0  ;;  %4425 = vrot.lane.b32.xlu0 %v8088_v44, %s5637_s22  ;;  %4136 = vrot.lane.b32.xlu2 %v7646_v62, %s5635_s20 }
 0x5ab   : > { %4367 = vst.msk [vmem:[#allocation5] sm:$0xf] %vm2108_vm15, %v4272_v28 }
 0x5ac   : > { %v4274_v19 = vpop.permute.xlu0 %4273  ;;  %v3991_v58 = vpop.permute.xlu2 %3990 }
 0x5ae   : > { %4289 = vrot.lane.b32.xlu1 %v9511_v15, %s5636_s21 }
 0x5b0   : > { %v4121_v31 = vpop.permute.xlu1 %4120 }
 0x5b1   : > { %4215 = vst.msk [vmem:[#allocation5 + $0x4] sm:$0xf] %vm1954_vm14, %v4121_v31 }
 0x5b2   : > { %4368 = vst.msk [vmem:[#allocation5 + $0x4] sm:$0xf] %vm2108_vm15, %v4274_v19  ;;  %4006 = vrot.lane.b32.xlu0 %v8050_v21, %s5634_s19  ;;  %4423 = vrot.lane.b32.xlu2 %v8050_v21, %s5637_s22 }
 0x5b3   : > { %4504 = vst.msk [vmem:[#allocation5 + $0x4] sm:$0xf] %vm2245_vm2, %v4410_v11 }
 0x5b4   : > { %v3855_v56 = vpop.permute.xlu0 %3854  ;;  %v4125_v62 = vpop.permute.xlu2 %4124 }
 0x5b5   : > { %3948 = vst.msk [vmem:[#allocation5 + $0x8] sm:$0xf] %vm1684_vm12, %v3855_v56 }
 0x5b6   : > { %4084 = vst.msk [vmem:[#allocation5 + $0x8] sm:$0xf] %vm1821_vm13, %v3991_v58  ;;  %3870 = vrot.lane.b32.xlu1 %v9510_v3, %s5633_s18  ;;  %v9517_v58 = vld [vmem:[#allocation10_spill] sm:$0xff] }
 0x5b8   : > { %v4408_v2 = vpop.permute.xlu1 %4407 }
 0x5b9   : > { %4503 = vst.msk [vmem:[#allocation5] sm:$0xf] %vm2245_vm2, %v4408_v2 }
 0x5ba   : > { %4140 = vrot.lane.b32.xlu0 %v7681_v40, %s5635_s20  ;;  %3872 = vrot.lane.b32.xlu2 %v9511_v15, %s5633_s18 }
 0x5bc   : > { %v3993_v21 = vpop.permute.xlu0 %3992  ;;  %v4412_v41 = vpop.permute.xlu2 %4411 }
 0x5be   : > { %4008 = vrot.lane.b32.xlu1 %v8088_v44, %s5634_s19  ;;  %v9512_v44 = vld [vmem:[#allocation51_spill] sm:$0xff] }
 0x5c0   : > { %v3857_v61 = vpop.permute.xlu1 %3856  ;;  %v5485_v16 = vld [vmem:[#allocation5] sm:$0xff] }
 0x5c1   : > { %3949 = vst.msk [vmem:[#allocation5 + $0xc] sm:$0xf] %vm1684_vm12, %v3857_v61  ;;  %5429 = vmatmul.msk.bf16.vlgmr.msra.gmra.mxu1 %vm2426_vm4, %v5485_v16 }
 0x5c2   : > { %4085 = vst.msk [vmem:[#allocation5 + $0xc] sm:$0xf] %vm1821_vm13, %v3993_v21  ;;  %4427 = vrot.lane.b32.xlu0 %v8101_v46, %s5637_s22  ;;  %4138 = vrot.lane.b32.xlu2 %v7666_v60, %s5635_s20 }
 0x5c3   : > { %4217 = vst.msk [vmem:[#allocation5 + $0xc] sm:$0xf] %vm1954_vm14, %v4125_v62 }
 0x5c4   : > { %v4276_v40 = vpop.permute.xlu0 %4275  ;;  %v3861_v18 = vpop.permute.xlu2 %3860 }
 0x5c5   : > { %3951 = vst.msk [vmem:[#allocation5 + $0x14] sm:$0xf] %vm1684_vm12, %v3861_v18 }
 0x5c6   : > { %4291 = vrot.lane.b32.xlu1 %v9512_v44, %s5636_s21 }
 0x5c8   : > { %v4123_v29 = vpop.permute.xlu1 %4122 }
 0x5c9   : > { %4216 = vst.msk [vmem:[#allocation5 + $0x8] sm:$0xf] %vm1954_vm14, %v4123_v29 }
 0x5ca   : > { %4369 = vst.msk [vmem:[#allocation5 + $0x8] sm:$0xf] %vm2108_vm15, %v4276_v40  ;;  %3876 = vrot.lane.b32.xlu0 %v9513_v39, %s5633_s18  ;;  %4293 = vrot.lane.b32.xlu2 %v9513_v39, %s5636_s21  ;;  %v9518_v40 = vld [vmem:[#allocation13_spill] sm:$0xff] }
 0x5cb   : > { %4505 = vst.msk [vmem:[#allocation5 + $0x8] sm:$0xf] %vm2245_vm2, %v4412_v41 }
 0x5cc   : > { %v4414_v60 = vpop.permute.xlu0 %4413  ;;  %v4127_v49 = vpop.permute.xlu2 %4126 }
 0x5ce   : > { %4429 = vrot.lane.b32.xlu1 %v8074_v13, %s5637_s22 }
 0x5d0   : > { %v4278_v24 = vpop.permute.xlu1 %4277 }
 0x5d1   : > { %4370 = vst.msk [vmem:[#allocation5 + $0xc] sm:$0xf] %vm2108_vm15, %v4278_v24 }
 0x5d2   : > { %4506 = vst.msk [vmem:[#allocation5 + $0xc] sm:$0xf] %vm2245_vm2, %v4414_v60  ;;  %4142 = vrot.lane.b32.xlu0 %v7703_v42, %s5635_s20  ;;  %3874 = vrot.lane.b32.xlu2 %v9512_v44, %s5633_s18 }
 0x5d4   : > { %v3995_v51 = vpop.permute.xlu0 %3994  ;;  %v4282_v54 = vpop.permute.xlu2 %4281 }
 0x5d6   : > { %4010 = vrot.lane.b32.xlu1 %v8101_v46, %s5634_s19 }
 0x5d8   : > { %v3859_v52 = vpop.permute.xlu1 %3858 }
 0x5d9   : > { %3950 = vst.msk [vmem:[#allocation5 + $0x10] sm:$0xf] %vm1684_vm12, %v3859_v52  ;;  %v5486_v27 = vld [vmem:[#allocation5 + $0x8] sm:$0xff] }
 0x5da   : > { %4086 = vst.msk [vmem:[#allocation5 + $0x10] sm:$0xf] %vm1821_vm13, %v3995_v51  ;;  %4297 = vrot.lane.b32.xlu0 %v9514_v33, %s5636_s21  ;;  %4012 = vrot.lane.b32.xlu2 %v8074_v13, %s5634_s19  ;;  %v9515_v13 = vld [vmem:[#allocation19_spill] sm:$0xff]  ;;  %v4943_v51 = vld [vmem:[%s9132_s7] sm:$0xf] }
 0x5db   : > { %4218 = vst.msk [vmem:[#allocation5 + $0x10] sm:$0xf] %vm1954_vm14, %v4127_v49  ;;  %5430 = vmatmul.msk.bf16.gmra.mxu1 %vm2426_vm4, %v5486_v27  ;;  %v4997_v52 = vsel %vm2475_vm1, %v4943_v51, 0 }
 0x5dc   : > { %v4129_v42 = vpop.permute.xlu0 %4128  ;;  %v3863_v36 = vpop.permute.xlu2 %3862  ;;  %5006 = vmatpush.bf16.msra.mxu2 %v4997_v52  ;;  %5594 = vmatpush.bf16.msra.mxu3 %v4997_v52 }
 0x5dd   : > { %3952 = vst.msk [vmem:[#allocation5 + $0x18] sm:$0xf] %vm1684_vm12, %v3863_v36 }
 0x5de   : > { %4144 = vrot.lane.b32.xlu1 %v7720_v5, %s5635_s20 }
 0x5e0   : > { %v3997_v46 = vpop.permute.xlu1 %3996 }
 0x5e1   : > { %4087 = vst.msk [vmem:[#allocation5 + $0x14] sm:$0xf] %vm1821_vm13, %v3997_v46 }
 0x5e2   : > { %4219 = vst.msk [vmem:[#allocation5 + $0x14] sm:$0xf] %vm1954_vm14, %v4129_v42  ;;  %3727 = vrot.lane.b32.xlu0 %v7720_v5, %s5632_s17  ;;  %4295 = vrot.lane.b32.xlu2 %v9515_v13, %s5636_s21 }
 0x5e3   : > { %4372 = vst.msk [vmem:[#allocation5 + $0x14] sm:$0xf] %vm2108_vm15, %v4282_v54  ;;  %v9520_v54 = vld [vmem:[#allocation33_spill] sm:$0xff] }
 0x5e4   : > { %v4416_v35 = vpop.permute.xlu0 %4415  ;;  %v4001_v43 = vpop.permute.xlu2 %4000 }
 0x5e6   : > { %4431 = vrot.lane.b32.xlu1 %v8112_v37, %s5637_s22 }
 0x5e8   : > { %v4280_v55 = vpop.permute.xlu1 %4279 }
 0x5e9   : > { %4371 = vst.msk [vmem:[#allocation5 + $0x10] sm:$0xf] %vm2108_vm15, %v4280_v55  ;;  %v8613_v55 = vld [vmem:[%s9130_s5] ss:$0 sm:$0xff] }
 0x5ea   : > { %4507 = vst.msk [vmem:[#allocation5 + $0x10] sm:$0xf] %vm2245_vm2, %v4416_v35  ;;  %4014 = vrot.lane.b32.xlu0 %v8112_v37, %s5634_s19  ;;  %4433 = vrot.lane.b32.xlu2 %v8125_v4, %s5637_s22 }
 0x5ec   : > { %v3865_v5 = vpop.permute.xlu0 %3864  ;;  %v4284_v28 = vpop.permute.xlu2 %4283 }
 0x5ed   : > { %3953 = vst.msk [vmem:[#allocation5 + $0x1c] sm:$0xf] %vm1684_vm12, %v3865_v5 }
 0x5ee   : > { %4089 = vst.msk [vmem:[#allocation5 + $0x1c] sm:$0xf] %vm1821_vm13, %v4001_v43  ;;  %3878 = vrot.lane.b32.xlu1 %v9515_v13, %s5633_s18 }
 0x5f0   : > { %v4418_v45 = vpop.permute.xlu1 %4417 }
 0x5f1   : > { %4508 = vst.msk [vmem:[#allocation5 + $0x14] sm:$0xf] %vm2245_vm2, %v4418_v45 }
 0x5f2   : > { %4148 = vrot.lane.b32.xlu0 %v7770_v23, %s5635_s20  ;;  %3880 = vrot.lane.b32.xlu2 %v9514_v33, %s5633_s18 }
 0x5f4   : > { %v4131_v37 = vpop.permute.xlu0 %4130  ;;  %v4422_v57 = vpop.permute.xlu2 %4421 }
 0x5f6   : > { %4016 = vrot.lane.b32.xlu1 %v8125_v4, %s5634_s19  ;;  %v9516_v4 = vld [vmem:[#allocation8_spill] sm:$0xff] }
 0x5f8   : > { %v3999_v3 = vpop.permute.xlu1 %3998  ;;  %v5487_v0 = vld [vmem:[#allocation5 + $0x10] sm:$0xff] }
 0x5f9   : > { %4088 = vst.msk [vmem:[#allocation5 + $0x18] sm:$0xf] %vm1821_vm13, %v3999_v3  ;;  %5431 = vmatmul.msk.bf16.gmra.mxu1 %vm2426_vm4, %v5487_v0 }
 0x5fa   : > { %4220 = vst.msk [vmem:[#allocation5 + $0x18] sm:$0xf] %vm1954_vm14, %v4131_v37  ;;  %4435 = vrot.lane.b32.xlu0 %v8097_v14, %s5637_s22  ;;  %4146 = vrot.lane.b32.xlu2 %v7743_v32, %s5635_s20  ;;  %v8624_v37 = vld [vmem:[%s9131_s6] ss:$0 sm:$0xff] }
 0x5fb   : > { %4373 = vst.msk [vmem:[#allocation5 + $0x18] sm:$0xf] %vm2108_vm15, %v4284_v28 }
 0x5fc   : > { %v4286_v11 = vpop.permute.xlu0 %4285  ;;  %v4003_v26 = vpop.permute.xlu2 %4002 }
 0x5fe   : > { %4299 = vrot.lane.b32.xlu1 %v9516_v4, %s5636_s21 }
 0x600   : > { %v4133_v19 = vpop.permute.xlu1 %4132 }
 0x601   : > { %4221 = vst.msk [vmem:[#allocation5 + $0x1c] sm:$0xf] %vm1954_vm14, %v4133_v19 }
 0x602   : > { %4374 = vst.msk [vmem:[#allocation5 + $0x1c] sm:$0xf] %vm2108_vm15, %v4286_v11  ;;  %3731 = vrot.lane.b32.xlu0 %v7770_v23, %s5632_s17  ;;  %4301 = vrot.lane.b32.xlu2 %v9517_v58, %s5636_s21 }
 0x603   : > { %4510 = vst.msk [vmem:[#allocation5 + $0x1c] sm:$0xf] %vm2245_vm2, %v4422_v57 }
 0x604   : > { %v3867_v15 = vpop.permute.xlu0 %3866  ;;  %v4137_v31 = vpop.permute.xlu2 %4136 }
 0x605   : > { %3954 = vst.msk [vmem:[#allocation5 + $0x20] sm:$0xf] %vm1684_vm12, %v3867_v15 }
 0x606   : > { %4090 = vst.msk [vmem:[#allocation5 + $0x20] sm:$0xf] %vm1821_vm13, %v4003_v26  ;;  %4437 = vrot.lane.b32.xlu1 %v8134_v34, %s5637_s22 }
 0x608   : > { %v4420_v56 = vpop.permute.xlu1 %4419 }
 0x609   : > { %4509 = vst.msk [vmem:[#allocation5 + $0x18] sm:$0xf] %vm2245_vm2, %v4420_v56 }
 0x60a   : > { %4018 = vrot.lane.b32.xlu0 %v8097_v14, %s5634_s19  ;;  %3729 = vrot.lane.b32.xlu2 %v7743_v32, %s5632_s17 }
 0x60c   : > { %v4005_v23 = vpop.permute.xlu0 %4004  ;;  %v4424_v62 = vpop.permute.xlu2 %4423 }
 0x60e   : > { %3882 = vrot.lane.b32.xlu1 %v9516_v4, %s5633_s18 }
 0x610   : > { %v3869_v2 = vpop.permute.xlu1 %3868  ;;  %v5488_v21 = vld [vmem:[#allocation5 + $0x18] sm:$0xff] }
 0x611   : > { %3955 = vst.msk [vmem:[#allocation5 + $0x24] sm:$0xf] %vm1684_vm12, %v3869_v2  ;;  %5432 = vmatmul.msk.bf16.gmra.mxu1 %vm2426_vm4, %v5488_v21  ;;  %v9521_v2 = vld [vmem:[#allocation32_spill] sm:$0xff] }
 0x612   : > { %4091 = vst.msk [vmem:[#allocation5 + $0x24] sm:$0xf] %vm1821_vm13, %v4005_v23  ;;  %4152 = vrot.lane.b32.xlu0 %v7819_v48, %s5635_s20  ;;  %3884 = vrot.lane.b32.xlu2 %v9517_v58, %s5633_s18 }
 0x613   : > { %4223 = vst.msk [vmem:[#allocation5 + $0x24] sm:$0xf] %vm1954_vm14, %v4137_v31 }
 0x614   : > { %v4288_v32 = vpop.permute.xlu0 %4287  ;;  %v3873_v14 = vpop.permute.xlu2 %3872 }
 0x615   : > { %3957 = vst.msk [vmem:[#allocation5 + $0x2c] sm:$0xf] %vm1684_vm12, %v3873_v14 }
 0x616   : > { %4020 = vrot.lane.b32.xlu1 %v8134_v34, %s5634_s19  ;;  %v9519_v34 = vld [vmem:[#allocation18_spill] sm:$0xff] }
 0x618   : > { %v4135_v41 = vpop.permute.xlu1 %4134 }
 0x619   : > { %4222 = vst.msk [vmem:[#allocation5 + $0x20] sm:$0xf] %vm1954_vm14, %v4135_v41  ;;  %v9522_v41 = vld [vmem:[#allocation38_spill] sm:$0xff] }
 0x61a   : > { %4375 = vst.msk [vmem:[#allocation5 + $0x20] sm:$0xf] %vm2108_vm15, %v4288_v32  ;;  %4439 = vrot.lane.b32.xlu0 %v8148_v38, %s5637_s22  ;;  %4150 = vrot.lane.b32.xlu2 %v7795_v9, %s5635_s20 }
 0x61b   : > { %4511 = vst.msk [vmem:[#allocation5 + $0x20] sm:$0xf] %vm2245_vm2, %v4424_v62 }
 0x61c   : > { %v4426_v61 = vpop.permute.xlu0 %4425  ;;  %v4139_v16 = vpop.permute.xlu2 %4138 }
 0x61e   : > { %4303 = vrot.lane.b32.xlu1 %v9518_v40, %s5636_s21 }
 0x620   : > { %v4290_v18 = vpop.permute.xlu1 %4289 }
 0x621   : > { %4376 = vst.msk [vmem:[#allocation5 + $0x24] sm:$0xf] %vm2108_vm15, %v4290_v18 }
 0x622   : > { %4512 = vst.msk [vmem:[#allocation5 + $0x24] sm:$0xf] %vm2245_vm2, %v4426_v61  ;;  %3747 = vrot.lane.b32.xlu0 %v9490_v7, %s5632_s17  ;;  %4305 = vrot.lane.b32.xlu2 %v9519_v34, %s5636_s21 }
 0x624   : > { %v4007_v44 = vpop.permute.xlu0 %4006  ;;  %v4294_v29 = vpop.permute.xlu2 %4293 }
 0x626   : > { %4441 = vrot.lane.b32.xlu1 %v8121_v12, %s5637_s22 }
 0x628   : > { %v3871_v39 = vpop.permute.xlu1 %3870 }
 0x629   : > { %3956 = vst.msk [vmem:[#allocation5 + $0x28] sm:$0xf] %vm1684_vm12, %v3871_v39  ;;  %v5489_v60 = vld [vmem:[#allocation5 + $0x20] sm:$0xff] }
 0x62a   : > { %4092 = vst.msk [vmem:[#allocation5 + $0x28] sm:$0xf] %vm1821_vm13, %v4007_v44  ;;  %4034 = vrot.lane.b32.xlu0 %v8195_v20, %s5634_s19  ;;  %3745 = vrot.lane.b32.xlu2 %v9495_v59, %s5632_s17 }
 0x62b   : > { %4224 = vst.msk [vmem:[#allocation5 + $0x28] sm:$0xf] %vm1954_vm14, %v4139_v16  ;;  %5433 = vmatmul.msk.bf16.gmra.mxu1 %vm2426_vm4, %v5489_v60 }
 0x62c   : > { %v4141_v49 = vpop.permute.xlu0 %4140  ;;  %v3875_v24 = vpop.permute.xlu2 %3874 }
 0x62d   : > { %3958 = vst.msk [vmem:[#allocation5 + $0x30] sm:$0xf] %vm1684_vm12, %v3875_v24  ;;  %v9524_v24 = vld [vmem:[#allocation45_spill] sm:$0xff] }
 0x62e   : > { %3898 = vrot.lane.b32.xlu1 %v9520_v54, %s5633_s18 }
 0x630   : > { %v4009_v27 = vpop.permute.xlu1 %4008 }
 0x631   : > { %4093 = vst.msk [vmem:[#allocation5 + $0x2c] sm:$0xf] %vm1821_vm13, %v4009_v27 }
 0x632   : > { %4225 = vst.msk [vmem:[#allocation5 + $0x2c] sm:$0xf] %vm1954_vm14, %v4141_v49  ;;  %4168 = vrot.lane.b32.xlu0 %v9498_v30, %s5635_s20  ;;  %3900 = vrot.lane.b32.xlu2 %v7953_v63, %s5633_s18 }
 0x633   : > { %4378 = vst.msk [vmem:[#allocation5 + $0x2c] sm:$0xf] %vm2108_vm15, %v4294_v29 }
 0x634   : > { %v4428_v33 = vpop.permute.xlu0 %4427  ;;  %v4013_v42 = vpop.permute.xlu2 %4012 }
 0x636   : > { %4036 = vrot.lane.b32.xlu1 %v8168_v8, %s5634_s19 }
 0x638   : > { %v4292_v36 = vpop.permute.xlu1 %4291 }
 0x639   : > { %4377 = vst.msk [vmem:[#allocation5 + $0x28] sm:$0xf] %vm2108_vm15, %v4292_v36 }
 0x63a   : > { %4513 = vst.msk [vmem:[#allocation5 + $0x28] sm:$0xf] %vm2245_vm2, %v4428_v33  ;;  %4455 = vrot.lane.b32.xlu0 %v8206_v10, %s5637_s22  ;;  %4166 = vrot.lane.b32.xlu2 %v9497_v17, %s5635_s20 }
 0x63c   : > { %v3877_v46 = vpop.permute.xlu0 %3876  ;;  %v4296_v13 = vpop.permute.xlu2 %4295 }
 0x63d   : > { %3959 = vst.msk [vmem:[#allocation5 + $0x34] sm:$0xf] %vm1684_vm12, %v3877_v46  ;;  %v9526_v46 = vld [vmem:[#allocation23_spill] sm:$0xff] }
 0x63e   : > { %4095 = vst.msk [vmem:[#allocation5 + $0x34] sm:$0xf] %vm1821_vm13, %v4013_v42  ;;  %4319 = vrot.lane.b32.xlu1 %v7966_v25, %s5636_s21  ;;  %v4743_v35 = vpop.f32.mrf.mxu1  ;;  %v9525_v42 = vld [vmem:[#allocation34_spill] sm:$0xff] }
 0x63f   : > { %v4827_v45 = vmul.f32 %v8613_v55, %v4743_v35 }
 0x640   : > { %v4430_v43 = vpop.permute.xlu1 %4429 }
 0x641   : > { %4514 = vst.msk [vmem:[#allocation5 + $0x2c] sm:$0xf] %vm2245_vm2, %v4430_v43 }
 0x642   : > { %3735 = vrot.lane.b32.xlu0 %v7819_v48, %s5632_s17  ;;  %4321 = vrot.lane.b32.xlu2 %v7937_v1, %s5636_s21  ;;  %v4863_v48 = vadd.f32 %v8624_v37, %v4827_v45 }
 0x644   : > { %v4143_v5 = vpop.permute.xlu0 %4142  ;;  %v4434_v28 = vpop.permute.xlu2 %4433  ;;  %v4895_v58 = vmax.f32 %v4863_v48, 0.0 }
 0x646   : > { %4457 = vrot.lane.b32.xlu1 %v8213_v50, %s5637_s22  ;;  %v4745_v57 = vpop.f32.mrf.mxu1 }
 0x647   : > { %v4828_v11 = vmul.f32 %v8613_v55, %v4745_v57 }
 0x648   : > { %v4011_v3 = vpop.permute.xlu1 %4010  ;;  %v5490_v0 = vld [vmem:[#allocation5 + $0x28] sm:$0xff] }
 0x649   : > { %4094 = vst.msk [vmem:[#allocation5 + $0x30] sm:$0xf] %vm1821_vm13, %v4011_v3  ;;  %v4864_v26 = vadd.f32 %v8624_v37, %v4828_v11  ;;  %5434 = vmatmul.msk.bf16.gmra.mxu1 %vm2426_vm4, %v5490_v0  ;;  %v9529_v0 = vld [vmem:[#allocation43_spill] sm:$0xff] }
 0x64a   : > { %4226 = vst.msk [vmem:[#allocation5 + $0x30] sm:$0xf] %vm1954_vm14, %v4143_v5  ;;  %4022 = vrot.lane.b32.xlu0 %v8148_v38, %s5634_s19  ;;  %3733 = vrot.lane.b32.xlu2 %v7795_v9, %s5632_s17  ;;  %v9528_v5 = vld [vmem:[#allocation47_spill] sm:$0xff] }
 0x64b   : > { %4379 = vst.msk [vmem:[#allocation5 + $0x30] sm:$0xf] %vm2108_vm15, %v4296_v13  ;;  %v4896_v15 = vmax.f32 %v4864_v26, 0.0  ;;  %v9527_v13 = vld [vmem:[#allocation28_spill] sm:$0xff] }
 0x64c   : > { %v4298_v4 = vpop.permute.xlu0 %4297  ;;  %v3881_v19 = vpop.permute.xlu2 %3880 }
 0x64d   : > { %v4927_v31 = vpack.c.bf16 %v4896_v15, %v4895_v58 }
 0x64e   : > { %3886 = vrot.lane.b32.xlu1 %v9518_v40, %s5633_s18 }
 0x64f   : > { %5445 = vmatmul.msk.bf16.vlgmr.msra.gmra.mxu2 %vm334_vm0, %v4927_v31 }
 0x650   : > { %v4145_v56 = vpop.permute.xlu1 %4144 }
 0x651   : > { %4227 = vst.msk [vmem:[#allocation5 + $0x34] sm:$0xf] %vm1954_vm14, %v4145_v56 }
 0x652   : > { %4380 = vst.msk [vmem:[#allocation5 + $0x34] sm:$0xf] %vm2108_vm15, %v4298_v4  ;;  %4156 = vrot.lane.b32.xlu0 %v9489_v22, %s5635_s20  ;;  %3888 = vrot.lane.b32.xlu2 %v9519_v34, %s5633_s18  ;;  %v9523_v34 = vld [vmem:[#allocation39_spill] sm:$0xff] }
 0x653   : > { %4516 = vst.msk [vmem:[#allocation5 + $0x34] sm:$0xf] %vm2245_vm2, %v4434_v28 }
 0x654   : > { %v3728_v9 = vpop.permute.xlu0 %3727  ;;  %v4147_v38 = vpop.permute.xlu2 %4146 }
 0x655   : > { %3808 = vst.msk [vmem:[#allocation5 + $0x3c] sm:$0xf] %vm1530_vm11, %v3728_v9 }
 0x656   : > { %3961 = vst.msk [vmem:[#allocation5 + $0x3c] sm:$0xf] %vm1684_vm12, %v3881_v19  ;;  %4024 = vrot.lane.b32.xlu1 %v8121_v12, %s5634_s19 }
 0x658   : > { %v4432_v23 = vpop.permute.xlu1 %4431  ;;  %v4748_v62 = vpop.f32.mrf.mxu1 }
 0x659   : > { %4515 = vst.msk [vmem:[#allocation5 + $0x30] sm:$0xf] %vm2245_vm2, %v4432_v23  ;;  %v4829_v14 = vmul.f32 %v8613_v55, %v4748_v62 }
 0x65a   : > { %4443 = vrot.lane.b32.xlu0 %v8159_v6, %s5637_s22  ;;  %4154 = vrot.lane.b32.xlu2 %v9521_v2, %s5635_s20 }
 0x65b   : > { %v4865_v40 = vadd.f32 %v8624_v37, %v4829_v14 }
 0x65c   : > { %v4015_v21 = vpop.permute.xlu0 %4014  ;;  %v4302_v32 = vpop.permute.xlu2 %4301 }
 0x65d   : > { %v4897_v60 = vmax.f32 %v4865_v40, 0.0 }
 0x65e   : > { %4307 = vrot.lane.b32.xlu1 %v9522_v41, %s5636_s21 }
 0x660   : > { %v3879_v61 = vpop.permute.xlu1 %3878  ;;  %v4750_v16 = vpop.f32.mrf.mxu1  ;;  %v5491_v12 = vld [vmem:[#allocation5 + $0x30] sm:$0xff] }
 0x661   : > { %3960 = vst.msk [vmem:[#allocation5 + $0x38] sm:$0xf] %vm1684_vm12, %v3879_v61  ;;  %v4830_v18 = vmul.f32 %v8613_v55, %v4750_v16  ;;  %5435 = vmatmul.msk.bf16.gmra.mxu1 %vm2426_vm4, %v5491_v12  ;;  %v9532_v61 = vld [vmem:[#allocation26_spill] sm:$0xff] }
 0x662   : > { %4096 = vst.msk [vmem:[#allocation5 + $0x38] sm:$0xf] %vm1821_vm13, %v4015_v21  ;;  %3751 = vrot.lane.b32.xlu0 %v9498_v30, %s5632_s17  ;;  %4309 = vrot.lane.b32.xlu2 %v9523_v34, %s5636_s21 }
 0x663   : > { %4228 = vst.msk [vmem:[#allocation5 + $0x38] sm:$0xf] %vm1954_vm14, %v4147_v38  ;;  %v4866_v44 = vadd.f32 %v8624_v37, %v4830_v18  ;;  %v9530_v38 = vld [vmem:[#allocation40_spill] sm:$0xff] }
 0x664   : > { %v4149_v29 = vpop.permute.xlu0 %4148  ;;  %v3730_v39 = vpop.permute.xlu2 %3729 }
 0x665   : > { %v4898_v49 = vmax.f32 %v4866_v44, 0.0  ;;  %3809 = vst.msk [vmem:[#allocation5 + $0x40] sm:$0xf] %vm1530_vm11, %v3730_v39  ;;  %v9533_v44 = vld [vmem:[#allocation9_spill] sm:$0xff] }
 0x666   : > { %4445 = vrot.lane.b32.xlu1 %v9524_v24, %s5637_s22 }
 0x667   : > { %v4928_v51 = vpack.c.bf16 %v4898_v49, %v4897_v60  ;;  %v9534_v49 = vld [vmem:[#allocation49_spill] sm:$0xff] }
 0x668   : > { %v4017_v30 = vpop.permute.xlu1 %4016 }
 0x669   : > { %4097 = vst.msk [vmem:[#allocation5 + $0x3c] sm:$0xf] %vm1821_vm13, %v4017_v30  ;;  %5446 = vmatmul.msk.bf16.gmra.mxu2 %vm334_vm0, %v4928_v51  ;;  %v9535_v30 = vld [vmem:[#allocation17_spill] sm:$0xff] }
 0x66a   : > { %4229 = vst.msk [vmem:[#allocation5 + $0x3c] sm:$0xf] %vm1954_vm14, %v4149_v29  ;;  %4038 = vrot.lane.b32.xlu0 %v8206_v10, %s5634_s19  ;;  %3749 = vrot.lane.b32.xlu2 %v9497_v17, %s5632_s17 }
 0x66b   : > { %4382 = vst.msk [vmem:[#allocation5 + $0x3c] sm:$0xf] %vm2108_vm15, %v4302_v32 }
 0x66c   : > { %v4436_v52 = vpop.permute.xlu0 %4435  ;;  %v3885_v27 = vpop.permute.xlu2 %3884 }
 0x66e   : > { %3902 = vrot.lane.b32.xlu1 %v7966_v25, %s5633_s18 }
 0x670   : > { %v4300_v33 = vpop.permute.xlu1 %4299 }
 0x671   : > { %4381 = vst.msk [vmem:[#allocation5 + $0x38] sm:$0xf] %vm2108_vm15, %v4300_v33 }
 0x672   : > { %4517 = vst.msk [vmem:[#allocation5 + $0x38] sm:$0xf] %vm2245_vm2, %v4436_v52  ;;  %4172 = vrot.lane.b32.xlu0 %v9525_v42, %s5635_s20  ;;  %3904 = vrot.lane.b32.xlu2 %v7937_v1, %s5633_s18  ;;  %v2807_v52 = vld [vmem:[#allocation4 + $0x180] sm:$0xff] }
 0x674   : > { %v3732_v10 = vpop.permute.xlu0 %3731  ;;  %v4151_v17 = vpop.permute.xlu2 %4150 }
 0x675   : > { %3810 = vst.msk [vmem:[#allocation5 + $0x44] sm:$0xf] %vm1530_vm11, %v3732_v10  ;;  %v8761_v10 = vpack.c.bf16 %v2807_v52, %v2807_v52 }
 0x676   : > { %3963 = vst.msk [vmem:[#allocation5 + $0x44] sm:$0xf] %vm1684_vm12, %v3885_v27  ;;  %4040 = vrot.lane.b32.xlu1 %v8213_v50, %s5634_s19  ;;  %v4753_v25 = vpop.f32.mrf.mxu1 }
 0x677   : > { %v4831_v43 = vmul.f32 %v8613_v55, %v4753_v25 }
 0x678   : > { %v4438_v36 = vpop.permute.xlu1 %4437 }
 0x679   : > { %4518 = vst.msk [vmem:[#allocation5 + $0x3c] sm:$0xf] %vm2245_vm2, %v4438_v36  ;;  %v4867_v57 = vadd.f32 %v8624_v37, %v4831_v43  ;;  %v3830_v43 = vshll.u32 %v8761_v10, 16 }
 0x67a   : > { %4459 = vrot.lane.b32.xlu0 %v9526_v46, %s5637_s22  ;;  %4170 = vrot.lane.b32.xlu2 %v9527_v13, %s5635_s20 }
 0x67b   : > { %v4899_v4 = vmax.f32 %v4867_v57, 0.0 }
 0x67c   : > { %v4019_v1 = vpop.permute.xlu0 %4018  ;;  %v4306_v35 = vpop.permute.xlu2 %4305 }
 0x67e   : > { %4323 = vrot.lane.b32.xlu1 %v9528_v5, %s5636_s21  ;;  %v4755_v28 = vpop.f32.mrf.mxu1 }
 0x67f   : > { %v4832_v3 = vmul.f32 %v8613_v55, %v4755_v28 }
 0x680   : > { %v3883_v45 = vpop.permute.xlu1 %3882  ;;  %v5492_v50 = vld [vmem:[#allocation5 + $0x38] sm:$0xff] }
 0x681   : > { %3962 = vst.msk [vmem:[#allocation5 + $0x40] sm:$0xf] %vm1684_vm12, %v3883_v45  ;;  %v4868_v48 = vadd.f32 %v8624_v37, %v4832_v3  ;;  %5436 = vmatmul.msk.bf16.gmra.mxu1 %vm2426_vm4, %v5492_v50 }
 0x682   : > { %4098 = vst.msk [vmem:[#allocation5 + $0x40] sm:$0xf] %vm1821_vm13, %v4019_v1  ;;  %3739 = vrot.lane.b32.xlu0 %v9489_v22, %s5632_s17  ;;  %4325 = vrot.lane.b32.xlu2 %v9529_v0, %s5636_s21 }
 0x683   : > { %4230 = vst.msk [vmem:[#allocation5 + $0x40] sm:$0xf] %vm1954_vm14, %v4151_v17  ;;  %v4900_v19 = vmax.f32 %v4868_v48, 0.0  ;;  %v3832_v48 = vrot.slane %v3830_v43, 5 }
 0x684   : > { %v4153_v11 = vpop.permute.xlu0 %4152  ;;  %v3746_v26 = vpop.permute.xlu2 %3745 }
 0x685   : > { %3817 = vst.msk [vmem:[#allocation5 + $0x60] sm:$0xf] %vm1530_vm11, %v3746_v26  ;;  %v4929_v58 = vpack.c.bf16 %v4900_v19, %v4899_v4 }
 0x686   : > { %4461 = vrot.lane.b32.xlu1 %v8223_v53, %s5637_s22 }
 0x687   : > { %5447 = vmatmul.msk.bf16.gmra.mxu2 %vm334_vm0, %v4929_v58 }
 0x688   : > { %v4021_v22 = vpop.permute.xlu1 %4020 }
 0x689   : > { %4099 = vst.msk [vmem:[#allocation5 + $0x44] sm:$0xf] %vm1821_vm13, %v4021_v22 }
 0x68a   : > { %4231 = vst.msk [vmem:[#allocation5 + $0x44] sm:$0xf] %vm1954_vm14, %v4153_v11  ;;  %4026 = vrot.lane.b32.xlu0 %v8159_v6, %s5634_s19  ;;  %3737 = vrot.lane.b32.xlu2 %v9521_v2, %s5632_s17  ;;  %v2809_v11 = vld [vmem:[#allocation4 + $0x190] sm:$0x3] }
 0x68b   : > { %4384 = vst.msk [vmem:[#allocation5 + $0x44] sm:$0xf] %vm2108_vm15, %v4306_v35  ;;  %v3827_v35 = vshrl.u32 %v8761_v10, 16  ;;  %v3825_v58 = vpack.c.bf16 %v2809_v11, %v2809_v11 }
 0x68c   : > { %v4440_v15 = vpop.permute.xlu0 %4439  ;;  %v3901_v31 = vpop.permute.xlu2 %3900 }
 0x68d   : > { %v3829_v3 = vrot.slane %v3827_v35, 4 }
 0x68e   : > { %3890 = vrot.lane.b32.xlu1 %v9522_v41, %s5633_s18  ;;  %v4758_v56 = vpop.f32.mrf.mxu1  ;;  %v9531_v41 = vld [vmem:[#allocation50_spill] sm:$0xff] }
 0x68f   : > { %v4833_v62 = vmul.f32 %v8613_v55, %v4758_v56  ;;  %v5347_v56 = vrot.slane %v8761_v10, 9 }
 0x690   : > { %v4304_v9 = vpop.permute.xlu1 %4303 }
 0x691   : > { %4383 = vst.msk [vmem:[#allocation5 + $0x40] sm:$0xf] %vm2108_vm15, %v4304_v9  ;;  %v4869_v32 = vadd.f32 %v8624_v37, %v4833_v62  ;;  %v3833_v9 = vor.u32 %v3832_v48, %v3829_v3 }
 0x692   : > { %4519 = vst.msk [vmem:[#allocation5 + $0x40] sm:$0xf] %vm2245_vm2, %v4440_v15  ;;  %4160 = vrot.lane.b32.xlu0 %v9530_v38, %s5635_s20  ;;  %3892 = vrot.lane.b32.xlu2 %v9523_v34, %s5633_s18 }
 0x693   : > { %v4901_v18 = vmax.f32 %v4869_v32, 0.0  ;;  %v3846_v32 = vshll.u32 %v3825_v58, 16 }
 0x694   : > { %v3748_v6 = vpop.permute.xlu0 %3747  ;;  %v4167_v23 = vpop.permute.xlu2 %4166 }
 0x695   : > { %3818 = vst.msk [vmem:[#allocation5 + $0x64] sm:$0xf] %vm1530_vm11, %v3748_v6 }
 0x696   : > { %3971 = vst.msk [vmem:[#allocation5 + $0x64] sm:$0xf] %vm1684_vm12, %v3901_v31  ;;  %4028 = vrot.lane.b32.xlu1 %v9524_v24, %s5634_s19  ;;  %v4760_v2 = vpop.f32.mrf.mxu1 }
 0x697   : > { %v4834_v14 = vmul.f32 %v8613_v55, %v4760_v2  ;;  %v3834_v2 = vrot.slane %v3833_v9, 4 }
 0x698   : > { %v4442_v21 = vpop.permute.xlu1 %4441 }
 0x699   : > { %4520 = vst.msk [vmem:[#allocation5 + $0x44] sm:$0xf] %vm2245_vm2, %v4442_v21  ;;  %v4870_v16 = vadd.f32 %v8624_v37, %v4834_v14 }
 0x69a   : > { %4447 = vrot.lane.b32.xlu0 %v9531_v41, %s5637_s22  ;;  %4158 = vrot.lane.b32.xlu2 %v9532_v61, %s5635_s20 }
 0x69b   : > { %v4902_v34 = vmax.f32 %v4870_v16, 0.0 }
 0x69c   : > { %v4035_v12 = vpop.permute.xlu0 %4034  ;;  %v4322_v40 = vpop.permute.xlu2 %4321 }
 0x69d   : > { %v4930_v29 = vpack.c.bf16 %v4902_v34, %v4901_v18  ;;  %v3848_v18 = vrot.slane %v3846_v32, 5 }
 0x69e   : > { %4311 = vrot.lane.b32.xlu1 %v9533_v44, %s5636_s21 }
 0x69f   : > { %5448 = vmatmul.msk.bf16.gmra.mxu2 %vm334_vm0, %v4930_v29 }
 0x6a0   : > { %v3899_v39 = vpop.permute.xlu1 %3898  ;;  %v5493_v60 = vld [vmem:[#allocation5 + $0x40] sm:$0xff] }
 0x6a1   : > { %3970 = vst.msk [vmem:[#allocation5 + $0x60] sm:$0xf] %vm1684_vm12, %v3899_v39  ;;  %5437 = vmatmul.msk.bf16.gmra.mxu1 %vm2426_vm4, %v5493_v60 }
 0x6a2   : > { %4106 = vst.msk [vmem:[#allocation5 + $0x60] sm:$0xf] %vm1821_vm13, %v4035_v12  ;;  %3755 = vrot.lane.b32.xlu0 %v9525_v42, %s5632_s17  ;;  %4313 = vrot.lane.b32.xlu2 %v9534_v49, %s5636_s21  ;;  %v2808_v42 = vld [vmem:[#allocation4 + $0x188] sm:$0xff] }
 0x6a3   : > { %4238 = vst.msk [vmem:[#allocation5 + $0x60] sm:$0xf] %vm1954_vm14, %v4167_v23  ;;  %v8769_v36 = vpack.c.bf16 %v2808_v42, %v2808_v42 }
 0x6a4   : > { %v4169_v24 = vpop.permute.xlu0 %4168  ;;  %v3734_v51 = vpop.permute.xlu2 %3733 }
 0x6a5   : > { %3811 = vst.msk [vmem:[#allocation5 + $0x48] sm:$0xf] %vm1530_vm11, %v3734_v51  ;;  %v3836_v45 = vshll.u32 %v8769_v36, 16 }
 0x6a6   : > { %4449 = vrot.lane.b32.xlu1 %v9535_v30, %s5637_s22 }
 0x6a7   : > { %v3838_v19 = vrot.slane %v3836_v45, 5 }
 0x6a8   : > { %v4037_v27 = vpop.permute.xlu1 %4036  ;;  %v4763_v33 = vpop.f32.mrf.mxu1 }
 0x6a9   : > { %4107 = vst.msk [vmem:[#allocation5 + $0x64] sm:$0xf] %vm1821_vm13, %v4037_v27  ;;  %v4835_v1 = vmul.f32 %v8613_v55, %v4763_v33  ;;  %v8805_v12 = vsel %vm5735_vm3, %v3834_v2, %v3838_v19  ;;  %v2811_v2 = vld [vmem:[#allocation4 + $0x1a0] sm:$0xff] }
 0x6aa   : > { %4239 = vst.msk [vmem:[#allocation5 + $0x64] sm:$0xf] %vm1954_vm14, %v4169_v24  ;;  %4042 = vrot.lane.b32.xlu0 %v9526_v46, %s5634_s19  ;;  %3753 = vrot.lane.b32.xlu2 %v9527_v13, %s5632_s17  ;;  %v3840_v13 = vshrl.u32 %v8769_v36, 16  ;;  %v3984_v24 = vrot.slane %v3825_v58, 5 }
 0x6ab   : > { %4392 = vst.msk [vmem:[#allocation5 + $0x64] sm:$0xf] %vm2108_vm15, %v4322_v40  ;;  %v4871_v50 = vadd.f32 %v8624_v37, %v4835_v1 }
 0x6ac   : > { %v4456_v17 = vpop.permute.xlu0 %4455  ;;  %v3889_v25 = vpop.permute.xlu2 %3888  ;;  %v3842_v22 = vrot.slane %v3840_v13, 4 }
 0x6ad   : > { %v4903_v15 = vmax.f32 %v4871_v50, 0.0 }
 0x6ae   : > { %3906 = vrot.lane.b32.xlu1 %v9528_v5, %s5633_s18  ;;  %v3843_v21 = vor.u32 %v3842_v22, %v3838_v19 }
 0x6b0   : > { %v4320_v28 = vpop.permute.xlu1 %4319  ;;  %v4765_v46 = vpop.f32.mrf.mxu1  ;;  %v3844_v40 = vrot.slane %v3843_v21, 4 }
 0x6b1   : > { %4391 = vst.msk [vmem:[#allocation5 + $0x60] sm:$0xf] %vm2108_vm15, %v4320_v28  ;;  %v4836_v57 = vmul.f32 %v8613_v55, %v4765_v46 }
 0x6b2   : > { %4527 = vst.msk [vmem:[#allocation5 + $0x60] sm:$0xf] %vm2245_vm2, %v4456_v17  ;;  %4176 = vrot.lane.b32.xlu0 %v8769_v36, %s5635_s20  ;;  %3908 = vrot.lane.b32.xlu2 %v9529_v0, %s5633_s18  ;;  %v3981_v0 = vrot.slane %v8769_v36, 5  ;;  %v8812_v39 = vsel %vm5735_vm3, %v3844_v40, %v3848_v18 }
 0x6b3   : > { %v4872_v5 = vadd.f32 %v8624_v37, %v4836_v57 }
 0x6b4   : > { %v3736_v26 = vpop.permute.xlu0 %3735  ;;  %v4155_v4 = vpop.permute.xlu2 %4154  ;;  %v8796_v62 = vsel %vm6361_vm7, %v5347_v56, %v3981_v0  ;;  %v3983_v60 = vrot.slane %v3981_v0, 4 }
 0x6b5   : > { %v4904_v31 = vmax.f32 %v4872_v5, 0.0  ;;  %3812 = vst.msk [vmem:[#allocation5 + $0x4c] sm:$0xf] %vm1530_vm11, %v3736_v26 }
 0x6b6   : > { %3965 = vst.msk [vmem:[#allocation5 + $0x4c] sm:$0xf] %vm1684_vm12, %v3889_v25  ;;  %4044 = vrot.lane.b32.xlu1 %v8223_v53, %s5634_s19  ;;  %v8824_v27 = vsel %vm6361_vm7, %v3983_v60, %v3984_v24 }
 0x6b7   : > { %v4931_v6 = vpack.c.bf16 %v4904_v31, %v4903_v15 }
 0x6b8   : > { %v4458_v23 = vpop.permute.xlu1 %4457 }
 0x6b9   : > { %4528 = vst.msk [vmem:[#allocation5 + $0x64] sm:$0xf] %vm2245_vm2, %v4458_v23  ;;  %5449 = vmatmul.msk.bf16.gmra.mxu2 %vm334_vm0, %v4931_v6 }
 0x6ba   : > { %4463 = vrot.lane.b32.xlu0 %v8796_v62, %s5637_s22  ;;  %4174 = vrot.lane.b32.xlu2 %v8761_v10, %s5635_s20 }
 0x6bc   : > { %v4023_v53 = vpop.permute.xlu0 %4022  ;;  %v4310_v14 = vpop.permute.xlu2 %4309 }
 0x6be   : > { %4327 = vrot.lane.b32.xlu1 %v8805_v12, %s5636_s21 }
 0x6c0   : > { %v3887_v34 = vpop.permute.xlu1 %3886  ;;  %v5497_v29 = vld [vmem:[#allocation5 + $0x60] sm:$0xff] }
 0x6c1   : > { %3964 = vst.msk [vmem:[#allocation5 + $0x48] sm:$0xf] %vm1684_vm12, %v3887_v34  ;;  %5441 = vmatmul.msk.bf16.vlgmr.msrb.gmra.mxu3 %vm2426_vm4, %v5497_v29 }
 0x6c2   : > { %4100 = vst.msk [vmem:[#allocation5 + $0x48] sm:$0xf] %vm1821_vm13, %v4023_v53  ;;  %3743 = vrot.lane.b32.xlu0 %v9530_v38, %s5632_s17  ;;  %4329 = vrot.lane.b32.xlu2 %v8812_v39, %s5636_s21 }
 0x6c3   : > { %4232 = vst.msk [vmem:[#allocation5 + $0x48] sm:$0xf] %vm1954_vm14, %v4155_v4 }
 0x6c4   : > { %v4157_v51 = vpop.permute.xlu0 %4156  ;;  %v3750_v52 = vpop.permute.xlu2 %3749 }
 0x6c5   : > { %3819 = vst.msk [vmem:[#allocation5 + $0x68] sm:$0xf] %vm1530_vm11, %v3750_v52 }
 0x6c6   : > { %4465 = vrot.lane.b32.xlu1 %v8824_v27, %s5637_s22  ;;  %v4768_v33 = vpop.f32.mrf.mxu1 }
 0x6c7   : > { %v4837_v25 = vmul.f32 %v8613_v55, %v4768_v33 }
 0x6c8   : > { %v4025_v38 = vpop.permute.xlu1 %4024 }
 0x6c9   : > { %4101 = vst.msk [vmem:[#allocation5 + $0x4c] sm:$0xf] %vm1821_vm13, %v4025_v38  ;;  %v4873_v43 = vadd.f32 %v8624_v37, %v4837_v25 }
 0x6ca   : > { %4233 = vst.msk [vmem:[#allocation5 + $0x4c] sm:$0xf] %vm1954_vm14, %v4157_v51  ;;  %4030 = vrot.lane.b32.xlu0 %v9531_v41, %s5634_s19  ;;  %3741 = vrot.lane.b32.xlu2 %v9532_v61, %s5632_s17  ;;  %v8849_v41 = vld [vmem:[%s9133_s8] ss:$0 sm:$0xff] }
 0x6cb   : > { %4386 = vst.msk [vmem:[#allocation5 + $0x4c] sm:$0xf] %vm2108_vm15, %v4310_v14  ;;  %v4905_v45 = vmax.f32 %v4873_v43, 0.0 }
 0x6cc   : > { %v4444_v42 = vpop.permute.xlu0 %4443  ;;  %v3905_v17 = vpop.permute.xlu2 %3904 }
 0x6ce   : > { %3894 = vrot.lane.b32.xlu1 %v9533_v44, %s5633_s18  ;;  %v4770_v1 = vpop.f32.mrf.mxu1 }
 0x6cf   : > { %v4838_v28 = vmul.f32 %v8613_v55, %v4770_v1 }
 0x6d0   : > { %v4308_v35 = vpop.permute.xlu1 %4307 }
 0x6d1   : > { %4385 = vst.msk [vmem:[#allocation5 + $0x48] sm:$0xf] %vm2108_vm15, %v4308_v35  ;;  %v4874_v61 = vadd.f32 %v8624_v37, %v4838_v28 }
 0x6d2   : > { %4521 = vst.msk [vmem:[#allocation5 + $0x48] sm:$0xf] %vm2245_vm2, %v4444_v42  ;;  %4164 = vrot.lane.b32.xlu0 %v9490_v7, %s5635_s20  ;;  %3896 = vrot.lane.b32.xlu2 %v9534_v49, %s5633_s18  ;;  %v5008_v50 = vpop.f32.mrf.mxu2 }
 0x6d3   : > { %v4906_v13 = vmax.f32 %v4874_v61, 0.0  ;;  %v5009_v7 = vadd.f32 %v8849_v41, %v5008_v50 }
 0x6d4   : > { %v3752_v44 = vpop.permute.xlu0 %3751  ;;  %v4171_v46 = vpop.permute.xlu2 %4170 }
 0x6d5   : > { %3820 = vst.msk [vmem:[#allocation5 + $0x6c] sm:$0xf] %vm1530_vm11, %v3752_v44  ;;  %v4932_v49 = vpack.c.bf16 %v4906_v13, %v4905_v45  ;;  %v5088_v57 = vmax.f32 %v5009_v7, 0.0 }
 0x6d6   : > { %3973 = vst.msk [vmem:[#allocation5 + $0x6c] sm:$0xf] %vm1684_vm12, %v3905_v17  ;;  %4032 = vrot.lane.b32.xlu1 %v9535_v30, %s5634_s19 }
 0x6d7   : > { %5450 = vmatmul.msk.bf16.gmra.mxu2 %vm334_vm0, %v4932_v49  ;;  %5121 = vst.msk [vmem:[%s8861_s25] sm:$0xff] %vm5120_vm5, %v5088_v57 }
 0x6d8   : > { %v4446_v3 = vpop.permute.xlu1 %4445 }
 0x6d9   : > { %4522 = vst.msk [vmem:[#allocation5 + $0x4c] sm:$0xf] %vm2245_vm2, %v4446_v3 }
 0x6da   : > { %4451 = vrot.lane.b32.xlu0 %v8195_v20, %s5637_s22  ;;  %4162 = vrot.lane.b32.xlu2 %v9495_v59, %s5635_s20  ;;  %v5010_v11 = vpop.f32.mrf.mxu2 }
 0x6db   : > { %v5011_v5 = vadd.f32 %v8849_v41, %v5010_v11 }
 0x6dc   : > { %v4039_v30 = vpop.permute.xlu0 %4038  ;;  %v4326_v48 = vpop.permute.xlu2 %4325 }
 0x6dd   : > { %v5089_v26 = vmax.f32 %v5011_v5, 0.0 }
 0x6de   : > { %4315 = vrot.lane.b32.xlu1 %v9520_v54, %s5636_s21  ;;  %v4773_v4 = vpop.f32.mrf.mxu1  ;;  %v2810_v54 = vld [vmem:[#allocation4 + $0x198] sm:$0xff] }
 0x6df   : > { %5122 = vst.msk [vmem:[%s8861_s25 + $0x8] sm:$0xff] %vm5120_vm5, %v5089_v26  ;;  %v4839_v22 = vmul.f32 %v8613_v55, %v4773_v4 }
 0x6e0   : > { %v3903_v19 = vpop.permute.xlu1 %3902  ;;  %v5494_v58 = vld [vmem:[#allocation5 + $0x48] sm:$0xff] }
 0x6e1   : > { %3972 = vst.msk [vmem:[#allocation5 + $0x68] sm:$0xf] %vm1684_vm12, %v3903_v19  ;;  %5438 = vmatmul.msk.bf16.gmra.mxu1 %vm2426_vm4, %v5494_v58 }
 0x6e2   : > { %3759 = vrot.lane.b32.xlu0 %v8769_v36, %s5632_s17  ;;  %4317 = vrot.lane.b32.xlu2 %v7953_v63, %s5636_s21  ;;  %4108 = vst.msk [vmem:[#allocation5 + $0x68] sm:$0xf] %vm1821_vm13, %v4039_v30  ;;  %v4114_v36 = vpack.c.bf16 %v2810_v54, %v2810_v54  ;;  %v4875_v63 = vadd.f32 %v8624_v37, %v4839_v22 }
 0x6e3   : > { %4240 = vst.msk [vmem:[#allocation5 + $0x68] sm:$0xf] %vm1954_vm14, %v4171_v46 }
 0x6e4   : > { %v4173_v59 = vpop.permute.xlu0 %4172  ;;  %v3738_v20 = vpop.permute.xlu2 %3737  ;;  %v4251_v0 = vshll.u32 %v4114_v36, 16  ;;  %v4907_v21 = vmax.f32 %v4875_v63, 0.0  ;;  %v5348_v24 = vrot.slane %v4114_v36, 9 }
 0x6e5   : > { %3813 = vst.msk [vmem:[#allocation5 + $0x50] sm:$0xf] %vm1530_vm11, %v3738_v20 }
 0x6e6   : > { %4453 = vrot.lane.b32.xlu1 %v8168_v8, %s5637_s22  ;;  %v4775_v15 = vpop.f32.mrf.mxu1  ;;  %v4248_v8 = vshrl.u32 %v4114_v36, 16  ;;  %v4253_v18 = vrot.slane %v4251_v0, 5 }
 0x6e7   : > { %v4840_v56 = vmul.f32 %v8613_v55, %v4775_v15 }
 0x6e8   : > { %v4041_v31 = vpop.permute.xlu1 %4040  ;;  %v4250_v40 = vrot.slane %v4248_v8, 4 }
 0x6e9   : > { %4109 = vst.msk [vmem:[#allocation5 + $0x6c] sm:$0xf] %vm1821_vm13, %v4041_v31  ;;  %v4876_v9 = vadd.f32 %v8624_v37, %v4840_v56 }
 0x6ea   : > { %4241 = vst.msk [vmem:[#allocation5 + $0x6c] sm:$0xf] %vm1954_vm14, %v4173_v59  ;;  %4046 = vrot.lane.b32.xlu0 %v8796_v62, %s5634_s19  ;;  %3757 = vrot.lane.b32.xlu2 %v8761_v10, %s5632_s17  ;;  %v4115_v10 = vpack.c.bf16 %v2811_v2, %v2811_v2 }
 0x6eb   : > { %4394 = vst.msk [vmem:[#allocation5 + $0x6c] sm:$0xf] %vm2108_vm15, %v4326_v48  ;;  %v4908_v32 = vmax.f32 %v4876_v9, 0.0 }
 0x6ec   : > { %v4460_v6 = vpop.permute.xlu0 %4459  ;;  %v3893_v23 = vpop.permute.xlu2 %3892  ;;  %v4257_v60 = vshll.u32 %v4115_v10, 16  ;;  %v4402_v38 = vrot.slane %v4115_v10, 5  ;;  %v4261_v35 = vshrl.u32 %v4115_v10, 16 }
 0x6ed   : > { %v5013_v53 = vpop.f32.mrf.mxu2  ;;  %v4933_v62 = vpack.c.bf16 %v4908_v32, %v4907_v21 }
 0x6ee   : > { %v5014_v14 = vadd.f32 %v8849_v41, %v5013_v53  ;;  %3910 = vrot.lane.b32.xlu1 %v8805_v12, %s5633_s18  ;;  %v4254_v12 = vor.u32 %v4253_v18, %v4250_v40  ;;  %v4259_v25 = vrot.slane %v4257_v60, 5  ;;  %v4403_v1 = vsel %vm6361_vm7, %v5348_v24, %v4402_v38 }
 0x6ef   : > { %5451 = vmatmul.msk.bf16.gmra.mxu2 %vm334_vm0, %v4933_v62  ;;  %v4263_v44 = vrot.slane %v4261_v35, 4  ;;  %v4404_v57 = vrot.slane %v4402_v38, 4 }
 0x6f0   : > { %v5090_v34 = vmax.f32 %v5014_v14, 0.0  ;;  %v4324_v29 = vpop.permute.xlu1 %4323  ;;  %v4255_v17 = vrot.slane %v4254_v12, 4 }
 0x6f1   : > { %4393 = vst.msk [vmem:[#allocation5 + $0x68] sm:$0xf] %vm2108_vm15, %v4324_v29  ;;  %v4264_v46 = vor.u32 %v4263_v44, %v4259_v25 }
 0x6f2   : > { %5123 = vst.msk [vmem:[%s8861_s25 + $0x10] sm:$0xff] %vm5120_vm5, %v5090_v34  ;;  %3912 = vrot.lane.b32.xlu2 %v8812_v39, %s5633_s18  ;;  %4180 = vrot.lane.b32.xlu0 %v4115_v10, %s5635_s20  ;;  %v2812_v39 = vld [vmem:[#allocation4 + $0x1a8] sm:$0x3] }
 0x6f3   : > { %4529 = vst.msk [vmem:[#allocation5 + $0x68] sm:$0xf] %vm2245_vm2, %v4460_v6  ;;  %v4246_v61 = vpack.c.bf16 %v2812_v39, %v2812_v39  ;;  %v4265_v7 = vrot.slane %v4264_v46, 4 }
 0x6f4   : > { %v3740_v51 = vpop.permute.xlu0 %3739  ;;  %v4159_v52 = vpop.permute.xlu2 %4158 }
 0x6f5   : > { %3814 = vst.msk [vmem:[#allocation5 + $0x54] sm:$0xf] %vm1530_vm11, %v3740_v51  ;;  %v5015_v33 = vpop.f32.mrf.mxu2  ;;  %v4267_v45 = vshll.u32 %v4246_v61, 16  ;;  %v4405_v3 = vrot.slane %v4246_v61, 5 }
 0x6f6   : > { %3967 = vst.msk [vmem:[#allocation5 + $0x54] sm:$0xf] %vm1684_vm12, %v3893_v23  ;;  %v5016_v42 = vadd.f32 %v8849_v41, %v5015_v33  ;;  %4048 = vrot.lane.b32.xlu1 %v8824_v27, %s5634_s19  ;;  %v4260_v27 = vsel %vm5735_vm3, %v4255_v17, %v4259_v25 }
 0x6f7   : > { %v4269_v49 = vrot.slane %v4267_v45, 5  ;;  %v4406_v26 = vsel %vm6361_vm7, %v4404_v57, %v4405_v3 }
 0x6f8   : > { %v5091_v43 = vmax.f32 %v5016_v42, 0.0  ;;  %v4462_v28 = vpop.permute.xlu1 %4461 }
 0x6f9   : > { %4530 = vst.msk [vmem:[#allocation5 + $0x6c] sm:$0xf] %vm2245_vm2, %v4462_v28  ;;  %v4270_v30 = vsel %vm5735_vm3, %v4265_v7, %v4269_v49 }
 0x6fa   : > { %5124 = vst.msk [vmem:[%s8861_s25 + $0x18] sm:$0xff] %vm5120_vm5, %v5091_v43  ;;  %4467 = vrot.lane.b32.xlu0 %v4403_v1, %s5637_s22  ;;  %4178 = vrot.lane.b32.xlu2 %v4114_v36, %s5635_s20 }
 0x6fc   : > { %v4027_v13 = vpop.permute.xlu0 %4026  ;;  %v4314_v50 = vpop.permute.xlu2 %4313 }
 0x6fe   : > { %4331 = vrot.lane.b32.xlu1 %v4260_v27, %s5636_s21  ;;  %v4778_v48 = vpop.f32.mrf.mxu1 }
 0x6ff   : > { %v4841_v16 = vmul.f32 %v8613_v55, %v4778_v48 }
 0x700   : > { %v3891_v11 = vpop.permute.xlu1 %3890  ;;  %v5498_v5 = vld [vmem:[#allocation5 + $0x68] sm:$0xff] }
 0x701   : > { %3966 = vst.msk [vmem:[#allocation5 + $0x50] sm:$0xf] %vm1684_vm12, %v3891_v11  ;;  %5442 = vmatmul.msk.bf16.gmra.mxu3 %vm2426_vm4, %v5498_v5  ;;  %v4877_v20 = vadd.f32 %v8624_v37, %v4841_v16 }
 0x702   : > { %4102 = vst.msk [vmem:[#allocation5 + $0x50] sm:$0xf] %vm1821_vm13, %v4027_v13  ;;  %4333 = vrot.lane.b32.xlu2 %v4270_v30, %s5636_s21 }
 0x703   : > { %4234 = vst.msk [vmem:[#allocation5 + $0x50] sm:$0xf] %vm1954_vm14, %v4159_v52  ;;  %v4909_v15 = vmax.f32 %v4877_v20, 0.0 }
 0x704   : > { %v4161_v4 = vpop.permute.xlu0 %4160  ;;  %v3754_v19 = vpop.permute.xlu2 %3753 }
 0x705   : > { %3821 = vst.msk [vmem:[#allocation5 + $0x70] sm:$0xf] %vm1530_vm11, %v3754_v19 }
 0x706   : > { %4469 = vrot.lane.b32.xlu1 %v4406_v26, %s5637_s22  ;;  %v4780_v58 = vpop.f32.mrf.mxu1 }
 0x707   : > { %v4842_v54 = vmul.f32 %v8613_v55, %v4780_v58 }
 0x708   : > { %v4029_v59 = vpop.permute.xlu1 %4028 }
 0x709   : > { %4103 = vst.msk [vmem:[#allocation5 + $0x54] sm:$0xf] %vm1821_vm13, %v4029_v59  ;;  %v4878_v47 = vadd.f32 %v8624_v37, %v4842_v54 }
 0x70a   : > { %4235 = vst.msk [vmem:[#allocation5 + $0x54] sm:$0xf] %vm1954_vm14, %v4161_v4  ;;  %v5018_v63 = vpop.f32.mrf.mxu2 }
 0x70b   : > { %4388 = vst.msk [vmem:[#allocation5 + $0x54] sm:$0xf] %vm2108_vm15, %v4314_v50  ;;  %v4910_v31 = vmax.f32 %v4878_v47, 0.0  ;;  %v5019_v56 = vadd.f32 %v8849_v41, %v5018_v63 }
 0x70c   : > { %v4448_v22 = vpop.permute.xlu0 %4447  ;;  %v3909_v36 = vpop.permute.xlu2 %3908 }
 0x70d   : > { %v4934_v9 = vpack.c.bf16 %v4910_v31, %v4909_v15  ;;  %v5092_v8 = vmax.f32 %v5019_v56, 0.0 }
 0x70f   : > { %5452 = vmatmul.msk.bf16.gmra.mxu2 %vm334_vm0, %v4934_v9  ;;  %5125 = vst.msk [vmem:[%s8861_s25 + $0x20] sm:$0xff] %vm5120_vm5, %v5092_v8 }
 0x710   : > { %v4312_v0 = vpop.permute.xlu1 %4311 }
 0x711   : > { %4387 = vst.msk [vmem:[#allocation5 + $0x50] sm:$0xf] %vm2108_vm15, %v4312_v0 }
 0x712   : > { %4523 = vst.msk [vmem:[#allocation5 + $0x50] sm:$0xf] %vm2245_vm2, %v4448_v22  ;;  %v5020_v2 = vpop.f32.mrf.mxu2 }
 0x713   : > { %v5021_v21 = vadd.f32 %v8849_v41, %v5020_v2 }
 0x714   : > { %v3756_v6 = vpop.permute.xlu0 %3755  ;;  %v4175_v23 = vpop.permute.xlu2 %4174 }
 0x715   : > { %3822 = vst.msk [vmem:[#allocation5 + $0x74] sm:$0xf] %vm1530_vm11, %v3756_v6  ;;  %v5093_v32 = vmax.f32 %v5021_v21, 0.0 }
 0x716   : > { %3975 = vst.msk [vmem:[#allocation5 + $0x74] sm:$0xf] %vm1684_vm12, %v3909_v36 }
 0x717   : > { %5126 = vst.msk [vmem:[%s8861_s25 + $0x28] sm:$0xff] %vm5120_vm5, %v5093_v32 }
 0x718   : > { %v4450_v53 = vpop.permute.xlu1 %4449 }
 0x719   : > { %4524 = vst.msk [vmem:[#allocation5 + $0x54] sm:$0xf] %vm2245_vm2, %v4450_v53 }
 0x71c   : > { %v4043_v14 = vpop.permute.xlu0 %4042  ;;  %v4330_v62 = vpop.permute.xlu2 %4329 }
 0x71e   : > { %v4783_v10 = vpop.f32.mrf.mxu1 }
 0x71f   : > { %v4843_v12 = vmul.f32 %v8613_v55, %v4783_v10 }
 0x720   : > { %v3907_v40 = vpop.permute.xlu1 %3906  ;;  %v5495_v18 = vld [vmem:[#allocation5 + $0x50] sm:$0xff] }
 0x721   : > { %3974 = vst.msk [vmem:[#allocation5 + $0x70] sm:$0xf] %vm1684_vm12, %v3907_v40  ;;  %5439 = vmatmul.msk.bf16.gmra.mxu1 %vm2426_vm4, %v5495_v18  ;;  %v4879_v38 = vadd.f32 %v8624_v37, %v4843_v12 }
 0x722   : > { %4110 = vst.msk [vmem:[#allocation5 + $0x70] sm:$0xf] %vm1821_vm13, %v4043_v14  ;;  %v5023_v60 = vpop.f32.mrf.mxu2 }
 0x723   : > { %4242 = vst.msk [vmem:[#allocation5 + $0x70] sm:$0xf] %vm1954_vm14, %v4175_v23  ;;  %v5024_v24 = vadd.f32 %v8849_v41, %v5023_v60  ;;  %v4911_v1 = vmax.f32 %v4879_v38, 0.0  ;;  %v9020_v60 = vld [vmem:[%s9131_s6] ss:$0 sm:$0xff] }
 0x724   : > { %v4177_v34 = vpop.permute.xlu0 %4176  ;;  %v3742_v29 = vpop.permute.xlu2 %3741 }
 0x725   : > { %3815 = vst.msk [vmem:[#allocation5 + $0x58] sm:$0xf] %vm1530_vm11, %v3742_v29  ;;  %v5094_v51 = vmax.f32 %v5024_v24, 0.0 }
 0x726   : > { %v4785_v52 = vpop.f32.mrf.mxu1 }
 0x727   : > { %v4844_v42 = vmul.f32 %v8613_v55, %v4785_v52  ;;  %5127 = vst.msk [vmem:[%s8861_s25 + $0x30] sm:$0xff] %vm5120_vm5, %v5094_v51 }
 0x728   : > { %v4045_v33 = vpop.permute.xlu1 %4044 }
 0x729   : > { %4111 = vst.msk [vmem:[#allocation5 + $0x74] sm:$0xf] %vm1821_vm13, %v4045_v33  ;;  %v4880_v39 = vadd.f32 %v8624_v37, %v4844_v42 }
 0x72a   : > { %4243 = vst.msk [vmem:[#allocation5 + $0x74] sm:$0xf] %vm1954_vm14, %v4177_v34  ;;  %v5025_v43 = vpop.f32.mrf.mxu2 }
 0x72b   : > { %4396 = vst.msk [vmem:[#allocation5 + $0x74] sm:$0xf] %vm2108_vm15, %v4330_v62  ;;  %v4912_v35 = vmax.f32 %v4880_v39, 0.0  ;;  %v5026_v28 = vadd.f32 %v8849_v41, %v5025_v43  ;;  %v9013_v62 = vld [vmem:[%s9130_s5] ss:$0 sm:$0xff] }
 0x72c   : > { %v4464_v17 = vpop.permute.xlu0 %4463  ;;  %v3897_v25 = vpop.permute.xlu2 %3896 }
 0x72d   : > { %v4935_v61 = vpack.c.bf16 %v4912_v35, %v4911_v1  ;;  %v5095_v44 = vmax.f32 %v5026_v28, 0.0 }
 0x72f   : > { %5453 = vmatmul.msk.bf16.gmra.mxu2 %vm334_vm0, %v4935_v61  ;;  %5128 = vst.msk [vmem:[%s8861_s25 + $0x38] sm:$0xff] %vm5120_vm5, %v5095_v44 }
 0x730   : > { %v4328_v27 = vpop.permute.xlu1 %4327 }
 0x731   : > { %4395 = vst.msk [vmem:[#allocation5 + $0x70] sm:$0xf] %vm2108_vm15, %v4328_v27 }
 0x732   : > { %4531 = vst.msk [vmem:[#allocation5 + $0x70] sm:$0xf] %vm2245_vm2, %v4464_v17 }
 0x734   : > { %v3744_v46 = vpop.permute.xlu0 %3743  ;;  %v4163_v45 = vpop.permute.xlu2 %4162 }
 0x735   : > { %3816 = vst.msk [vmem:[#allocation5 + $0x5c] sm:$0xf] %vm1530_vm11, %v3744_v46 }
 0x736   : > { %3969 = vst.msk [vmem:[#allocation5 + $0x5c] sm:$0xf] %vm1684_vm12, %v3897_v25 }
 0x738   : > { %v4466_v13 = vpop.permute.xlu1 %4465 }
 0x739   : > { %4532 = vst.msk [vmem:[#allocation5 + $0x74] sm:$0xf] %vm2245_vm2, %v4466_v13 }
 0x73c   : > { %v4031_v50 = vpop.permute.xlu0 %4030  ;;  %v4318_v7 = vpop.permute.xlu2 %4317 }
 0x73d   : > { %v5028_v49 = vpop.f32.mrf.mxu2 }
 0x73e   : > { %v5029_v57 = vadd.f32 %v8849_v41, %v5028_v49 }
 0x740   : > { %v5096_v3 = vmax.f32 %v5029_v57, 0.0  ;;  %v3895_v30 = vpop.permute.xlu1 %3894  ;;  %v5499_v48 = vld [vmem:[#allocation5 + $0x70] sm:$0xff] }
 0x741   : > { %3968 = vst.msk [vmem:[#allocation5 + $0x58] sm:$0xf] %vm1684_vm12, %v3895_v30  ;;  %5443 = vmatmul.msk.bf16.gmra.mxu3 %vm2426_vm4, %v5499_v48 }
 0x742   : > { %5129 = vst.msk [vmem:[%s8861_s25 + $0x40] sm:$0xff] %vm5120_vm5, %v5096_v3 }
 0x743   : > { %4104 = vst.msk [vmem:[#allocation5 + $0x58] sm:$0xf] %vm1821_vm13, %v4031_v50 }
 0x744   : > { %4236 = vst.msk [vmem:[#allocation5 + $0x58] sm:$0xf] %vm1954_vm14, %v4163_v45  ;;  %v4165_v11 = vpop.permute.xlu0 %4164  ;;  %v3758_v5 = vpop.permute.xlu2 %3757 }
 0x745   : > { %3823 = vst.msk [vmem:[#allocation5 + $0x78] sm:$0xf] %vm1530_vm11, %v3758_v5  ;;  %v5030_v26 = vpop.f32.mrf.mxu2  ;;  %v4803_v19 = vpop.f32.mrf.mxu3 }
 0x746   : > { %v5031_v4 = vadd.f32 %v8849_v41, %v5030_v26  ;;  %v4851_v59 = vmul.f32 %v8613_v55, %v4803_v19 }
 0x748   : > { %v5097_v16 = vmax.f32 %v5031_v4, 0.0  ;;  %v4033_v58 = vpop.permute.xlu1 %4032  ;;  %v4887_v47 = vadd.f32 %v8624_v37, %v4851_v59 }
 0x749   : > { %4105 = vst.msk [vmem:[#allocation5 + $0x5c] sm:$0xf] %vm1821_vm13, %v4033_v58 }
 0x74a   : > { %5130 = vst.msk [vmem:[%s8861_s25 + $0x48] sm:$0xff] %vm5120_vm5, %v5097_v16  ;;  %v4919_v31 = vmax.f32 %v4887_v47, 0.0 }
 0x74b   : > { %4237 = vst.msk [vmem:[#allocation5 + $0x5c] sm:$0xf] %vm1954_vm14, %v4165_v11 }
 0x74c   : > { %4390 = vst.msk [vmem:[#allocation5 + $0x5c] sm:$0xf] %vm2108_vm15, %v4318_v7  ;;  %v4452_v20 = vpop.permute.xlu0 %4451  ;;  %v3913_v9 = vpop.permute.xlu2 %3912 }
 0x74d   : > { %v4805_v54 = vpop.f32.mrf.mxu3 }
 0x74e   : > { %v4852_v22 = vmul.f32 %v8613_v55, %v4805_v54 }
 0x750   : > { %v4316_v36 = vpop.permute.xlu1 %4315  ;;  %v4888_v15 = vadd.f32 %v8624_v37, %v4852_v22 }
 0x751   : > { %4389 = vst.msk [vmem:[#allocation5 + $0x58] sm:$0xf] %vm2108_vm15, %v4316_v36 }
 0x752   : > { %4525 = vst.msk [vmem:[#allocation5 + $0x58] sm:$0xf] %vm2245_vm2, %v4452_v20  ;;  %v4920_v63 = vmax.f32 %v4888_v15, 0.0 }
 0x754   : > { %v3760_v56 = vpop.permute.xlu0 %3759  ;;  %v8998_v8 = vpack.c.bf16 %v4920_v63, %v4919_v31  ;;  %v4179_v2 = vpop.permute.xlu2 %4178 }
 0x755   : > { %3824 = vst.msk [vmem:[#allocation5 + $0x7c] sm:$0xf] %vm1530_vm11, %v3760_v56 }
 0x756   : > { %3977 = vst.msk [vmem:[#allocation5 + $0x7c] sm:$0xf] %vm1684_vm12, %v3913_v9 }
 0x758   : > { %v4454_v0 = vpop.permute.xlu1 %4453 }
 0x759   : > { %4526 = vst.msk [vmem:[#allocation5 + $0x5c] sm:$0xf] %vm2245_vm2, %v4454_v0 }
 0x75a   : > { %v5033_v55 = vpop.f32.mrf.mxu2 }
 0x75b   : > { %v5034_v6 = vadd.f32 %v8849_v41, %v5033_v55 }
 0x75c   : > { %v4047_v37 = vpop.permute.xlu0 %4046  ;;  %v4334_v52 = vpop.permute.xlu2 %4333 }
 0x75d   : > { %v5098_v23 = vmax.f32 %v5034_v6, 0.0 }
 0x75e   : > { %v4788_v21 = vpop.f32.mrf.mxu1 }
 0x75f   : > { %5131 = vst.msk [vmem:[%s8861_s25 + $0x50] sm:$0xff] %vm5120_vm5, %v5098_v23  ;;  %v4845_v10 = vmul.f32 %v9013_v62, %v4788_v21 }
 0x760   : > { %v3911_v32 = vpop.permute.xlu1 %3910  ;;  %v5496_v53 = vld [vmem:[#allocation5 + $0x58] sm:$0xff] }
 0x761   : > { %3976 = vst.msk [vmem:[#allocation5 + $0x78] sm:$0xf] %vm1684_vm12, %v3911_v32  ;;  %5440 = vmatmul.msk.bf16.gmra.mxu1 %vm2426_vm4, %v5496_v53  ;;  %v4881_v24 = vadd.f32 %v9020_v60, %v4845_v10 }
 0x762   : > { %4112 = vst.msk [vmem:[#allocation5 + $0x78] sm:$0xf] %vm1821_vm13, %v4047_v37  ;;  %v5035_v14 = vpop.f32.mrf.mxu2 }
 0x763   : > { %4244 = vst.msk [vmem:[#allocation5 + $0x78] sm:$0xf] %vm1954_vm14, %v4179_v2  ;;  %v5036_v40 = vadd.f32 %v8849_v41, %v5035_v14  ;;  %v4913_v38 = vmax.f32 %v4881_v24, 0.0 }
 0x764   : > { %v4181_v18 = vpop.permute.xlu0 %4180 }
 0x765   : > { %v5099_v34 = vmax.f32 %v5036_v40, 0.0 }
 0x766   : > { %v4790_v29 = vpop.f32.mrf.mxu1 }
 0x767   : > { %5132 = vst.msk [vmem:[%s8861_s25 + $0x58] sm:$0xff] %vm5120_vm5, %v5099_v34  ;;  %v4846_v51 = vmul.f32 %v9013_v62, %v4790_v29 }
 0x768   : > { %v4049_v12 = vpop.permute.xlu1 %4048 }
 0x769   : > { %4113 = vst.msk [vmem:[#allocation5 + $0x7c] sm:$0xf] %vm1821_vm13, %v4049_v12  ;;  %v4882_v33 = vadd.f32 %v9020_v60, %v4846_v51 }
 0x76a   : > { %4245 = vst.msk [vmem:[#allocation5 + $0x7c] sm:$0xf] %vm1954_vm14, %v4181_v18 }
 0x76b   : > { %4398 = vst.msk [vmem:[#allocation5 + $0x7c] sm:$0xf] %vm2108_vm15, %v4334_v52  ;;  %v4914_v42 = vmax.f32 %v4882_v33, 0.0 }
 0x76c   : > { %v4468_v17 = vpop.permute.xlu0 %4467 }
 0x76d   : > { %v4936_v39 = vpack.c.bf16 %v4914_v42, %v4913_v38 }
 0x76f   : > { %5454 = vmatmul.msk.bf16.gmra.mxu2 %vm334_vm0, %v4936_v39 }
 0x770   : > { %v4332_v25 = vpop.permute.xlu1 %4331 }
 0x771   : > { %4397 = vst.msk [vmem:[#allocation5 + $0x78] sm:$0xf] %vm2108_vm15, %v4332_v25 }
 0x772   : > { %4533 = vst.msk [vmem:[#allocation5 + $0x78] sm:$0xf] %vm2245_vm2, %v4468_v17  ;;  %v5038_v1 = vpop.f32.mrf.mxu2 }
 0x773   : > { %v5039_v35 = vadd.f32 %v8849_v41, %v5038_v1 }
 0x775   : > { %v5100_v43 = vmax.f32 %v5039_v35, 0.0 }
 0x777   : > { %5133 = vst.msk [vmem:[%s8861_s25 + $0x60] sm:$0xff] %vm5120_vm5, %v5100_v43 }
 0x778   : > { %v4470_v28 = vpop.permute.xlu1 %4469 }
 0x779   : > { %4534 = vst.msk [vmem:[#allocation5 + $0x7c] sm:$0xf] %vm2245_vm2, %v4470_v28 }
 0x77a   : > { %v5040_v61 = vpop.f32.mrf.mxu2 }
 0x77b   : > { %v5041_v44 = vadd.f32 %v8849_v41, %v5040_v61 }
 0x77d   : > { %v5101_v27 = vmax.f32 %v5041_v44, 0.0 }
 0x77f   : > { %5134 = vst.msk [vmem:[%s8861_s25 + $0x68] sm:$0xff] %vm5120_vm5, %v5101_v27 }
 0x780   : > { %v5500_v46 = vld [vmem:[#allocation5 + $0x78] sm:$0xff] }
 0x781   : > { %5444 = vmatmul.msk.bf16.gmra.mxu3 %vm2426_vm4, %v5500_v46 }
 0x784   : > { %v4808_v45 = vpop.f32.mrf.mxu3 }
 0x785   : > { %v4853_v13 = vmul.f32 %v9013_v62, %v4808_v45 }
 0x787   : > { %v4889_v7 = vadd.f32 %v9020_v60, %v4853_v13 }
 0x789   : > { %v4921_v3 = vmax.f32 %v4889_v7, 0.0 }
 0x78c   : > { %v4810_v50 = vpop.f32.mrf.mxu3 }
 0x78d   : > { %v4854_v49 = vmul.f32 %v9013_v62, %v4810_v50 }
 0x78f   : > { %v4890_v57 = vadd.f32 %v9020_v60, %v4854_v49 }
 0x791   : > { %v4922_v30 = vmax.f32 %v4890_v57, 0.0 }
 0x792   : > { %v5043_v11 = vpop.f32.mrf.mxu2 }
 0x793   : > { %v4940_v48 = vpack.c.bf16 %v4922_v30, %v4921_v3  ;;  %v5044_v5 = vadd.f32 %v8849_v41, %v5043_v11 }
 0x795   : > { %5458 = vmatmul.msk.bf16.vlgmr.msra.gmra.mxu3 %vm334_vm0, %v4940_v48  ;;  %v5102_v26 = vmax.f32 %v5044_v5, 0.0 }
 0x797   : > { %5135 = vst.msk [vmem:[%s8861_s25 + $0x70] sm:$0xff] %vm5120_vm5, %v5102_v26 }
 0x79a   : > { %v5045_v4 = vpop.f32.mrf.mxu2 }
 0x79b   : > { %v5046_v19 = vadd.f32 %v8849_v41, %v5045_v4 }
 0x79d   : > { %v5103_v16 = vmax.f32 %v5046_v19, 0.0 }
 0x79e   : > { %v4793_v58 = vpop.f32.mrf.mxu1 }
 0x79f   : > { %5136 = vst.msk [vmem:[%s8861_s25 + $0x78] sm:$0xff] %vm5120_vm5, %v5103_v16  ;;  %v4847_v59 = vmul.f32 %v9013_v62, %v4793_v58 }
 0x7a1   : > { %v4883_v54 = vadd.f32 %v9020_v60, %v4847_v59 }
 0x7a3   : > { %v4915_v36 = vmax.f32 %v4883_v54, 0.0 }
 0x7a6   : > { %v4795_v20 = vpop.f32.mrf.mxu1 }
 0x7a7   : > { %v4848_v47 = vmul.f32 %v9013_v62, %v4795_v20 }
 0x7a9   : > { %v4884_v22 = vadd.f32 %v9020_v60, %v4848_v47 }
 0x7ab   : > { %v4916_v15 = vmax.f32 %v4884_v22, 0.0 }
 0x7ad   : > { %v4937_v31 = vpack.c.bf16 %v4916_v15, %v4915_v36 }
 0x7af   : > { %5455 = vmatmul.msk.bf16.gmra.mxu2 %vm334_vm0, %v4937_v31 }
 0x7b2   : > { %v5048_v63 = vpop.f32.mrf.mxu2 }
 0x7b3   : > { %v5049_v56 = vadd.f32 %v8849_v41, %v5048_v63 }
 0x7b5   : > { %v5104_v9 = vmax.f32 %v5049_v56, 0.0 }
 0x7b7   : > { %5137 = vst.msk [vmem:[%s8861_s25 + $0x80] sm:$0xff] %vm5120_vm5, %v5104_v9 }
 0x7ba   : > { %v5050_v0 = vpop.f32.mrf.mxu2 }
 0x7bb   : > { %v5051_v55 = vadd.f32 %v8849_v41, %v5050_v0 }
 0x7bd   : > { %v5105_v37 = vmax.f32 %v5051_v55, 0.0 }
 0x7bf   : > { %5138 = vst.msk [vmem:[%s8861_s25 + $0x88] sm:$0xff] %vm5120_vm5, %v5105_v37 }
 0x7c4   : > { %v4813_v6 = vpop.f32.mrf.mxu3 }
 0x7c5   : > { %v4855_v23 = vmul.f32 %v9013_v62, %v4813_v6 }
 0x7c7   : > { %v4891_v21 = vadd.f32 %v9020_v60, %v4855_v23 }
 0x7c9   : > { %v4923_v14 = vmax.f32 %v4891_v21, 0.0 }
 0x7cc   : > { %v4815_v2 = vpop.f32.mrf.mxu3 }
 0x7cd   : > { %v4856_v32 = vmul.f32 %v9013_v62, %v4815_v2 }
 0x7cf   : > { %v4892_v53 = vadd.f32 %v9020_v60, %v4856_v32 }
 0x7d1   : > { %v4924_v10 = vmax.f32 %v4892_v53, 0.0 }
 0x7d3   : > { %v4941_v40 = vpack.c.bf16 %v4924_v10, %v4923_v14 }
 0x7d5   : > { %5459 = vmatmul.msk.bf16.gmra.mxu3 %vm334_vm0, %v4941_v40 }
 0x7de   : > { %v4798_v18 = vpop.f32.mrf.mxu1 }
 0x7df   : > { %v4849_v34 = vmul.f32 %v9013_v62, %v4798_v18 }
 0x7e1   : > { %v4885_v12 = vadd.f32 %v9020_v60, %v4849_v34 }
 0x7e3   : > { %v4917_v52 = vmax.f32 %v4885_v12, 0.0 }
 0x7e6   : > { %v4800_v29 = vpop.f32.mrf.mxu1 }
 0x7e7   : > { %v4850_v24 = vmul.f32 %v9013_v62, %v4800_v29 }
 0x7e9   : > { %v4886_v51 = vadd.f32 %v9020_v60, %v4850_v24 }
 0x7eb   : > { %v4918_v33 = vmax.f32 %v4886_v51, 0.0 }
 0x7ed   : > { %v4938_v38 = vpack.c.bf16 %v4918_v33, %v4917_v52 }
 0x7ef   : > { %5456 = vmatmul.msk.bf16.gmra.mxu2 %vm334_vm0, %v4938_v38 }
 0x7f2   : > { %v5053_v42 = vpop.f32.mrf.mxu2 }
 0x7f3   : > { %v5054_v39 = vadd.f32 %v8849_v41, %v5053_v42 }
 0x7f5   : > { %v5106_v17 = vmax.f32 %v5054_v39, 0.0 }
 0x7f7   : > { %5139 = vst.msk [vmem:[%s8861_s25 + $0x90] sm:$0xff] %vm5120_vm5, %v5106_v17 }
 0x7fa   : > { %v5055_v25 = vpop.f32.mrf.mxu2 }
 0x7fb   : > { %v5056_v1 = vadd.f32 %v8849_v41, %v5055_v25 }
 0x7fd   : > { %v5107_v35 = vmax.f32 %v5056_v1, 0.0 }
 0x7ff   : > { %5457 = vmatmul.msk.bf16.gmra.mxu2 %vm334_vm0, %v8998_v8  ;;  %5140 = vst.msk [vmem:[%s8861_s25 + $0x98] sm:$0xff] %vm5120_vm5, %v5107_v35 }
 0x804   : > { %v4818_v43 = vpop.f32.mrf.mxu3 }
 0x805   : > { %v4857_v28 = vmul.f32 %v9013_v62, %v4818_v43 }
 0x807   : > { %v4893_v44 = vadd.f32 %v9020_v60, %v4857_v28 }
 0x809   : > { %v4925_v45 = vmax.f32 %v4893_v44, 0.0 }
 0x80c   : > { %v4820_v61 = vpop.f32.mrf.mxu3 }
 0x80d   : > { %v4858_v27 = vmul.f32 %v9013_v62, %v4820_v61 }
 0x80f   : > { %v4894_v46 = vadd.f32 %v9020_v60, %v4858_v27 }
 0x811   : > { %v4926_v13 = vmax.f32 %v4894_v46, 0.0 }
 0x813   : > { %v4942_v50 = vpack.c.bf16 %v4926_v13, %v4925_v45 }
 0x815   : > { %5460 = vmatmul.msk.bf16.gmra.mxu3 %vm334_vm0, %v4942_v50 }
 0x818   : > { %v5073_v8 = vpop.f32.mrf.mxu3 }
 0x819   : > { %v5074_v7 = vadd.f32 %v8849_v41, %v5073_v8 }
 0x81b   : > { %v5114_v49 = vmax.f32 %v5074_v7, 0.0 }
 0x81d   : > { %5147 = vst.msk [vmem:[%s8861_s25 + $0xd0] sm:$0xff] %vm5120_vm5, %v5114_v49 }
 0x820   : > { %v5075_v57 = vpop.f32.mrf.mxu3 }
 0x821   : > { %v5076_v3 = vadd.f32 %v8849_v41, %v5075_v57 }
 0x823   : > { %v5115_v62 = vmax.f32 %v5076_v3, 0.0 }
 0x825   : > { %5148 = vst.msk [vmem:[%s8861_s25 + $0xd8] sm:$0xff] %vm5120_vm5, %v5115_v62 }
 0x832   : > { %v5058_v60 = vpop.f32.mrf.mxu2 }
 0x833   : > { %v5059_v30 = vadd.f32 %v8849_v41, %v5058_v60 }
 0x835   : > { %v5108_v48 = vmax.f32 %v5059_v30, 0.0 }
 0x837   : > { %5141 = vst.msk [vmem:[%s8861_s25 + $0xa0] sm:$0xff] %vm5120_vm5, %v5108_v48 }
 0x83a   : > { %v5060_v11 = vpop.f32.mrf.mxu2 }
 0x83b   : > { %v5061_v5 = vadd.f32 %v8849_v41, %v5060_v11 }
 0x83d   : > { %v5109_v26 = vmax.f32 %v5061_v5, 0.0 }
 0x83f   : > { %5142 = vst.msk [vmem:[%s8861_s25 + $0xa8] sm:$0xff] %vm5120_vm5, %v5109_v26 }
 0x858   : > { %v5078_v4 = vpop.f32.mrf.mxu3 }
 0x859   : > { %v5079_v19 = vadd.f32 %v8849_v41, %v5078_v4 }
 0x85b   : > { %v5116_v16 = vmax.f32 %v5079_v19, 0.0 }
 0x85d   : > { %5149 = vst.msk [vmem:[%s8861_s25 + $0xe0] sm:$0xff] %vm5120_vm5, %v5116_v16 }
 0x860   : > { %v5080_v58 = vpop.f32.mrf.mxu3 }
 0x861   : > { %v5081_v59 = vadd.f32 %v8849_v41, %v5080_v58 }
 0x863   : > { %v5117_v20 = vmax.f32 %v5081_v59, 0.0 }
 0x865   : > { %5150 = vst.msk [vmem:[%s8861_s25 + $0xe8] sm:$0xff] %vm5120_vm5, %v5117_v20 }
 0x872   : > { %v5063_v54 = vpop.f32.mrf.mxu2 }
 0x873   : > { %v5064_v47 = vadd.f32 %v8849_v41, %v5063_v54 }
 0x875   : > { %v5110_v22 = vmax.f32 %v5064_v47, 0.0 }
 0x877   : > { %5143 = vst.msk [vmem:[%s8861_s25 + $0xb0] sm:$0xff] %vm5120_vm5, %v5110_v22 }
 0x87a   : > { %v5065_v36 = vpop.f32.mrf.mxu2 }
 0x87b   : > { %v5066_v15 = vadd.f32 %v8849_v41, %v5065_v36 }
 0x87d   : > { %v5111_v31 = vmax.f32 %v5066_v15, 0.0 }
 0x87f   : > { %5144 = vst.msk [vmem:[%s8861_s25 + $0xb8] sm:$0xff] %vm5120_vm5, %v5111_v31 }
 0x882   : > { %v5068_v63 = vpop.f32.mrf.mxu2 }
 0x883   : > { %v5069_v56 = vadd.f32 %v8849_v41, %v5068_v63 }
 0x885   : > { %v5112_v9 = vmax.f32 %v5069_v56, 0.0 }
 0x887   : > { %5145 = vst.msk [vmem:[%s8861_s25 + $0xc0] sm:$0xff] %vm5120_vm5, %v5112_v9 }
 0x88a   : > { %v5070_v0 = vpop.f32.mrf.mxu2 }
 0x88b   : > { %v5071_v55 = vadd.f32 %v8849_v41, %v5070_v0 }
 0x88d   : > { %v5113_v37 = vmax.f32 %v5071_v55, 0.0 }
 0x88f   : > { %5146 = vst.msk [vmem:[%s8861_s25 + $0xc8] sm:$0xff] %vm5120_vm5, %v5113_v37 }
 0x898   : > { %v5083_v6 = vpop.f32.mrf.mxu3 }
 0x899   : > { %v5084_v23 = vadd.f32 %v8849_v41, %v5083_v6 }
 0x89b   : > { %v5118_v2 = vmax.f32 %v5084_v23, 0.0 }
 0x89d   : > { %5151 = vst.msk [vmem:[%s8861_s25 + $0xf0] sm:$0xff] %vm5120_vm5, %v5118_v2 }
 0x8a0   : > { %v5085_v21 = vpop.f32.mrf.mxu3 }
 0x8a1   : > { %v5086_v32 = vadd.f32 %v8849_v41, %v5085_v21 }
 0x8a3   : > { %v5119_v53 = vmax.f32 %v5086_v32, 0.0 }
 0x8a5   : > { %5152 = vst.msk [vmem:[%s8861_s25 + $0xf8] sm:$0xff] %vm5120_vm5, %v5119_v53 }
 0x8a6 PF: > { %s19_s30 = sadd.s32 1, %s5627_s30  }
 0x8a7   : > { %p16_p4 = scmp.ge.s32.totalorder %s19_s30, 4  }
 0x8a9   :  { %18 = sbr.rel (!%p16_p4) target bundleno = 1 (0x1), region = 88 }

</bundles_post_ra>
